<compile_context>
chip_gen: v7x
topology: tpu7x:2x2x1
jax: 0.10.0
libtpu: 0.0.40
codegen_flags: <defaults>
</compile_context>

<pallas_src>
import functools
import math

import jax
import jax.numpy as jnp
import numpy as np
from jax.experimental import pallas as pl
from jax.experimental.pallas import tpu as pltpu

EPS = 1e-5    # PyTorch BatchNorm default eps
CPAD = 128    # lane-dense channel padding


# ----------------------------- Pallas kernels ------------------------------

def _conv_bn_relu_pool_kernel(cols_ref, w_ref, g_ref, b_ref, o_ref, *, pool, eps):
    """Fused: conv (im2col matmul, bf16 x bf16 -> f32) + BN2d (batch stats)
    + ReLU + optional 2x2 pool (rows pre-ordered as 4 contiguous corner blocks)."""
    y = jnp.dot(cols_ref[...], w_ref[...], preferred_element_type=jnp.float32)
    # training-mode BatchNorm2d over all N*H*W rows, per channel
    mean = jnp.mean(y, axis=0, keepdims=True)
    diff = y - mean
    var = jnp.mean(diff * diff, axis=0, keepdims=True)
    y = diff * jax.lax.rsqrt(var + eps) * g_ref[...] + b_ref[...]
    y = jnp.maximum(y, 0.0)                                   # ReLU
    if pool is None:
        o_ref[...] = y
    else:
        q = y.shape[0] // 4   # rows ordered (pool_corner, n, ho, wo)
        a, b, c, d = y[0:q], y[q:2 * q], y[2 * q:3 * q], y[3 * q:4 * q]
        if pool == "max":                                     # nn.MaxPool2d(2)
            o_ref[...] = jnp.maximum(jnp.maximum(a, b), jnp.maximum(c, d))
        else:                                                 # nn.AvgPool2d(2)
            o_ref[...] = (a + b + c + d) * 0.25


def _classifier_kernel(x_ref, w1_ref, b1_ref, g_ref, be_ref, w2_ref, b2_ref,
                       o_ref, *, eps):
    """Fused: MaskedMLP -> BatchNorm1d (batch stats) -> ReLU -> MaskedMLP."""
    h = jnp.dot(x_ref[...], w1_ref[...],
                preferred_element_type=jnp.float32) + b1_ref[...]
    mean = jnp.mean(h, axis=0, keepdims=True)
    diff = h - mean
    var = jnp.mean(diff * diff, axis=0, keepdims=True)
    h = jnp.maximum(diff * jax.lax.rsqrt(var + eps) * g_ref[...] + be_ref[...], 0.0)
    o_ref[...] = jnp.dot(h, w2_ref[...],
                         preferred_element_type=jnp.float32) + b2_ref[...]


# ------------------------------ kernel wrappers -----------------------------

def conv_bn_relu_pool(cols, w, gamma, beta, pool):
    M, K = cols.shape
    C = w.shape[1]
    Mo = M // 4 if pool is not None else M
    return pl.pallas_call(
        functools.partial(_conv_bn_relu_pool_kernel, pool=pool, eps=EPS),
        out_shape=jax.ShapeDtypeStruct((Mo, C), jnp.float32),
        grid=(1,),
        in_specs=[
            pl.BlockSpec((M, K), lambda i: (0, 0)),
            pl.BlockSpec((K, C), lambda i: (0, 0)),
            pl.BlockSpec((1, C), lambda i: (0, 0)),
            pl.BlockSpec((1, C), lambda i: (0, 0)),
        ],
        out_specs=pl.BlockSpec((Mo, C), lambda i: (0, 0)),
        compiler_params=pltpu.CompilerParams(dimension_semantics=("arbitrary",)),
    )(cols, w, gamma, beta)


def classifier_fused(x, w1, b1, g1, be1, w2, b2):
    N, Din = x.shape
    D1 = w1.shape[1]
    D2 = w2.shape[1]
    return pl.pallas_call(
        functools.partial(_classifier_kernel, eps=EPS),
        out_shape=jax.ShapeDtypeStruct((N, D2), jnp.float32),
        grid=(1,),
        in_specs=[
            pl.BlockSpec((N, Din), lambda i: (0, 0)),
            pl.BlockSpec((Din, D1), lambda i: (0, 0)),
            pl.BlockSpec((1, D1), lambda i: (0, 0)),
            pl.BlockSpec((1, D1), lambda i: (0, 0)),
            pl.BlockSpec((1, D1), lambda i: (0, 0)),
            pl.BlockSpec((D1, D2), lambda i: (0, 0)),
            pl.BlockSpec((1, D2), lambda i: (0, 0)),
        ],
        out_specs=pl.BlockSpec((N, D2), lambda i: (0, 0)),
        compiler_params=pltpu.CompilerParams(dimension_semantics=("arbitrary",)),
    )(x, w1, b1, g1, be1, w2, b2)


# ------------------------------- glue (JAX) ---------------------------------

def _masked(w, threshold=0.0):
    # MaskedConv2d / MaskedMLP: w * BinaryStep(|w| - threshold); threshold is
    # initialised to 0, so the ratio<=0.01 re-threshold branch never triggers.
    return w * (jnp.abs(w) > threshold).astype(w.dtype)


def _pad_to(a, axis, size):
    if a.shape[axis] == size:
        return a
    pad = [(0, 0)] * a.ndim
    pad[axis] = (0, size - a.shape[axis])
    return jnp.pad(a, pad)


def im2col3x3(x, pooled):
    """x: (N,H,W,C) -> (N*H*W, 9*C) patches of a 3x3 pad-1 conv.

    When `pooled`, rows are ordered (pool_corner, n, ho, wo) so the following
    2x2 pool in the fused kernel reduces 4 contiguous row blocks."""
    N, H, W, C = x.shape
    xp = jnp.pad(x, ((0, 0), (1, 1), (1, 1), (0, 0)))
    patches = [xp[:, i:i + H, j:j + W, :] for i in range(3) for j in range(3)]
    cols = jnp.concatenate(patches, axis=-1)               # (N, H, W, 9*C)
    if pooled:
        parts = [cols[:, ph::2, pw::2, :] for ph in (0, 1) for pw in (0, 1)]
        cols = jnp.stack(parts, axis=0)                    # (4, N, H/2, W/2, 9C)
    return cols.reshape(N * H * W, 9 * C)


def init_params(cfg, num_classes=10, key=None):
    """Mirrors masked_vgg init: MaskedConv2d/MaskedMLP kaiming_uniform(a=sqrt(5))
    == U(-1/sqrt(fan_in), 1/sqrt(fan_in)); BN2d weight=0.5 bias=0; BN1d default."""
    if key is None:
        key = jax.random.PRNGKey(0)
    feats = []
    in_c = 1
    k = key
    for v in cfg:
        if v == 'M':
            continue
        k, sub = jax.random.split(k)
        bound = 1.0 / math.sqrt(9 * in_c)
        w = jax.random.uniform(sub, (v, in_c, 3, 3), jnp.float32, -bound, bound)
        # (Cout,Cin,kh,kw) -> (kh,kw,Cin,Cout) -> (9*Cin, Cout): matches im2col order
        wmat = jnp.transpose(w, (2, 3, 1, 0)).reshape(9 * in_c, v)
        gamma = jnp.full((v,), 0.5, jnp.float32)
        beta = jnp.zeros((v,), jnp.float32)
        feats.append((wmat, gamma, beta))
        in_c = v
    k, k1, k2, k3, k4 = jax.random.split(k, 5)
    b1v = 1.0 / math.sqrt(cfg[-1])
    w1 = jax.random.uniform(k1, (cfg[-1], 512), jnp.float32, -b1v, b1v)  # (in, out)
    b1 = jax.random.uniform(k2, (512,), jnp.float32, -b1v, b1v)
    g1 = jnp.ones((512,), jnp.float32)
    be1 = jnp.zeros((512,), jnp.float32)
    b2v = 1.0 / math.sqrt(512)
    w2 = jax.random.uniform(k3, (512, num_classes), jnp.float32, -b2v, b2v)
    b2 = jax.random.uniform(k4, (num_classes,), jnp.float32, -b2v, b2v)
    return {"features": feats, "classifier": (w1, b1, g1, be1, w2, b2)}


def vgg_forward(x_nchw, params, cfg, num_classes):
    cfg = list(cfg)
    # NCHW (PyTorch) -> NHWC for lane-dense channel-last compute
    x = jnp.transpose(x_nchw, (0, 2, 3, 1)).astype(jnp.float32)
    if x.shape[-1] < 8:                       # align first-layer im2col K to sublanes
        x = _pad_to(x, 3, 8)
    feats = params["features"]
    pi = 0
    i = 0
    while i < len(cfg):
        v = cfg[i]
        assert v != 'M', "every 'M' must directly follow a conv entry"
        if i + 1 < len(cfg) and cfg[i + 1] == 'M':
            pool, step = "max", 2             # conv -> BN -> ReLU -> MaxPool2d(2)
        elif i + 1 == len(cfg):
            pool, step = "avg", 1             # trailing nn.AvgPool2d(2) in forward()
        else:
            pool, step = None, 1
        wmat, gamma, beta = feats[pi]; pi += 1
        wmat = _masked(wmat)                  # MaskedConv2d weight masking
        N, H, W, C = x.shape
        cin = wmat.shape[0] // 9
        cols = im2col3x3(x, pooled=(pool is not None)).astype(jnp.bfloat16)
        # pad weight: per-patch input channels -> C, output channels -> CPAD
        w_p = _pad_to(_pad_to(wmat.reshape(9, cin, v), 1, C), 2, CPAD)
        w_p = w_p.reshape(9 * C, CPAD).astype(jnp.bfloat16)
        g_p = _pad_to(gamma.reshape(1, v), 1, CPAD)
        b_p = _pad_to(beta.reshape(1, v), 1, CPAD)
        y = conv_bn_relu_pool(cols, w_p, g_p, b_p, pool)      # one fused Pallas call
        Ho, Wo = (H // 2, W // 2) if pool is not None else (H, W)
        x = y.reshape(N, Ho, Wo, CPAD)
        i += step
    N, Hf, Wf, _ = x.shape
    assert Hf == 1 and Wf == 1, "cfg must reduce spatial dims to 1x1 before flatten"
    x = x.reshape(N, CPAD)                    # == x.view(N,-1); padded channels are 0
    w1, b1, g1, be1, w2, b2 = params["classifier"]
    w1p = _pad_to(_masked(w1), 0, CPAD)       # (CPAD, 512)
    w2p = _pad_to(_masked(w2), 1, CPAD)       # (512, CPAD)
    out = classifier_fused(x, w1p, b1.reshape(1, -1), g1.reshape(1, -1),
                           be1.reshape(1, -1), w2p,
                           _pad_to(b2.reshape(1, -1), 1, CPAD))
    return out[:, :num_classes]


# ------------------------- pure-JAX reference -------------------------------

def reference_forward(x_nchw, params, cfg, eps=EPS):
    x = jnp.transpose(x_nchw, (0, 2, 3, 1)).astype(jnp.float32)
    pi = 0
    for v in cfg:
        if v == 'M':
            N, H, W, C = x.shape
            x = x.reshape(N, H // 2, 2, W // 2, 2, C).max(axis=(2, 4))
        else:
            wmat, gamma, beta = params["features"][pi]; pi += 1
            wmat = _masked(wmat)
            w_hwio = wmat.reshape(3, 3, x.shape[-1], v)
            y = jax.lax.conv_general_dilated(
                x.astype(jnp.bfloat16), w_hwio.astype(jnp.bfloat16), (1, 1), "SAME",
                dimension_numbers=("NHWC", "HWIO", "NHWC"),
                preferred_element_type=jnp.float32)
            mean = y.mean(axis=(0, 1, 2))
            var = y.var(axis=(0, 1, 2))
            y = (y - mean) * jax.lax.rsqrt(var + eps) * gamma + beta
            x = jnp.maximum(y, 0.0)
    N, H, W, C = x.shape
    x = x.reshape(N, H // 2, 2, W // 2, 2, C).mean(axis=(2, 4))   # AvgPool2d(2)
    x = jnp.transpose(x, (0, 3, 1, 2)).reshape(N, -1)             # x.view(N, -1)
    w1, b1, g1, be1, w2, b2 = params["classifier"]
    h = x @ _masked(w1) + b1
    mean = h.mean(axis=0)
    var = h.var(axis=0)
    h = jnp.maximum((h - mean) * jax.lax.rsqrt(var + eps) * g1 + be1, 0.0)
    return h @ _masked(w2) + b2


# ---------------------------------- main -------------------------------------

if __name__ == "__main__":
    # Small VGG-style cfg (masked_vgg accepts a custom cfg); three maxpools plus
    # the trailing AvgPool2d(2) reduce the 16x16 input to 1x1, so the flatten
    # size equals cfg[-1] as masked_vgg.forward implies.
    cfg = [8, 8, 'M', 16, 16, 'M', 32, 32, 'M', 32, 32]
    num_classes = 10

    key = jax.random.PRNGKey(0)
    pkey, xkey = jax.random.split(key)
    params = init_params(cfg, num_classes=num_classes, key=pkey)
    x = jax.random.normal(xkey, (2, 1, 16, 16), jnp.float32)   # NCHW like PyTorch

    fwd = jax.jit(functools.partial(vgg_forward, params=params, cfg=tuple(cfg),
                                    num_classes=num_classes))
    y = fwd(x)
    y = jax.block_until_ready(y)
    assert y.shape == (2, num_classes)

    y_ref = reference_forward(x, params, cfg)
    np.testing.assert_allclose(np.asarray(y), np.asarray(y_ref),
                               rtol=3e-2, atol=3e-2)
    print("KERNEL_OK")
</pallas_src>

<mosaic_0001>
module attributes {stable_mosaic.version = 11 : i64} {
  func.func @_conv_bn_relu_pool_kernel(%arg0: i32, %arg1: memref<512x72xbf16, #tpu.memory_space<vmem>>, %arg2: memref<72x128xbf16, #tpu.memory_space<vmem>>, %arg3: memref<1x128xf32, #tpu.memory_space<vmem>>, %arg4: memref<1x128xf32, #tpu.memory_space<vmem>>, %arg5: memref<512x128xf32, #tpu.memory_space<vmem>>) attributes {dimension_semantics = [#tpu.dimension_semantics<arbitrary>], iteration_bounds = array<i64: 1>, scalar_prefetch = 0 : i64, scratch_operands = 0 : i64, tpu.core_type = #tpu.core_type<tc>, window_params = [{pipeline_mode = #tpu.pipeline_mode<synchronous>, transform_indices = @transform_0, window_bounds = array<i64: 512, 72>}, {pipeline_mode = #tpu.pipeline_mode<synchronous>, transform_indices = @transform_1, window_bounds = array<i64: 72, 128>}, {pipeline_mode = #tpu.pipeline_mode<synchronous>, transform_indices = @transform_2, window_bounds = array<i64: 1, 128>}, {pipeline_mode = #tpu.pipeline_mode<synchronous>, transform_indices = @transform_3, window_bounds = array<i64: 1, 128>}, {pipeline_mode = #tpu.pipeline_mode<synchronous>, transform_indices = @transform_4, window_bounds = array<i64: 512, 128>}]} {
    %c0 = arith.constant 0 : index
    %c0_0 = arith.constant 0 : index
    %0 = vector.load %arg1[%c0, %c0_0] : memref<512x72xbf16, #tpu.memory_space<vmem>>, vector<512x72xbf16>
    %c0_1 = arith.constant 0 : index
    %c0_2 = arith.constant 0 : index
    %1 = vector.load %arg2[%c0_1, %c0_2] : memref<72x128xbf16, #tpu.memory_space<vmem>>, vector<72x128xbf16>
    %cst = arith.constant dense<0.000000e+00> : vector<512x128xf32>
    %2 = tpu.matmul %0, %1, %cst {dimension_numbers = #tpu.dot_dimension_numbers<[1], [0], [0], [1], [0, 0, 1, 1], [], []>} : vector<512x72xbf16>, vector<72x128xbf16>, vector<512x128xf32> -> vector<512x128xf32>
    %cst_3 = arith.constant dense<0.000000e+00> : vector<128xf32>
    %3 = vector.multi_reduction <add>, %2, %cst_3 [0] : vector<512x128xf32> to vector<128xf32>
    %4 = vector.shape_cast %3 : vector<128xf32> to vector<1x128xf32>
    %cst_4 = arith.constant 5.120000e+02 : f32
    %5 = vector.broadcast %cst_4 : f32 to vector<1x128xf32>
    %6 = arith.divf %4, %5 : vector<1x128xf32>
    %7 = vector.broadcast %6 : vector<1x128xf32> to vector<512x128xf32>
    %8 = arith.subf %2, %7 : vector<512x128xf32>
    %9 = arith.mulf %8, %8 : vector<512x128xf32>
    %cst_5 = arith.constant dense<0.000000e+00> : vector<128xf32>
    %10 = vector.multi_reduction <add>, %9, %cst_5 [0] : vector<512x128xf32> to vector<128xf32>
    %11 = vector.shape_cast %10 : vector<128xf32> to vector<1x128xf32>
    %cst_6 = arith.constant 5.120000e+02 : f32
    %12 = vector.broadcast %cst_6 : f32 to vector<1x128xf32>
    %13 = arith.divf %11, %12 : vector<1x128xf32>
    %cst_7 = arith.constant 9.99999974E-6 : f32
    %14 = vector.broadcast %cst_7 : f32 to vector<1x128xf32>
    %15 = arith.addf %13, %14 : vector<1x128xf32>
    %16 = math.rsqrt %15 : vector<1x128xf32>
    %17 = vector.broadcast %16 : vector<1x128xf32> to vector<512x128xf32>
    %18 = arith.mulf %8, %17 : vector<512x128xf32>
    %c0_8 = arith.constant 0 : index
    %c0_9 = arith.constant 0 : index
    %19 = vector.load %arg3[%c0_8, %c0_9] : memref<1x128xf32, #tpu.memory_space<vmem>>, vector<1x128xf32>
    %20 = vector.broadcast %19 : vector<1x128xf32> to vector<512x128xf32>
    %21 = arith.mulf %18, %20 : vector<512x128xf32>
    %c0_10 = arith.constant 0 : index
    %c0_11 = arith.constant 0 : index
    %22 = vector.load %arg4[%c0_10, %c0_11] : memref<1x128xf32, #tpu.memory_space<vmem>>, vector<1x128xf32>
    %23 = vector.broadcast %22 : vector<1x128xf32> to vector<512x128xf32>
    %24 = arith.addf %21, %23 : vector<512x128xf32>
    %cst_12 = arith.constant 0.000000e+00 : f32
    %25 = vector.broadcast %cst_12 : f32 to vector<512x128xf32>
    %26 = arith.maximumf %24, %25 : vector<512x128xf32>
    %c0_13 = arith.constant 0 : index
    %c0_14 = arith.constant 0 : index
    %27 = vector.load %arg5[%c0_13, %c0_14] : memref<512x128xf32, #tpu.memory_space<vmem>>, vector<512x128xf32>
    tpu.vector_store %arg5[%c0_13, %c0_14], %26 {strides = array<i32>} : memref<512x128xf32, #tpu.memory_space<vmem>>, vector<512x128xf32>,
    return
  }
  func.func @transform_0(%arg0: i32) -> (i32, i32) {
    %c0_i32 = arith.constant 0 : i32
    %c0_i32_0 = arith.constant 0 : i32
    %c0_i32_1 = arith.constant 0 : i32
    return %c0_i32, %c0_i32_0 : i32, i32
  }
  func.func @transform_1(%arg0: i32) -> (i32, i32) {
    %c0_i32 = arith.constant 0 : i32
    %c0_i32_0 = arith.constant 0 : i32
    %c0_i32_1 = arith.constant 0 : i32
    return %c0_i32, %c0_i32_0 : i32, i32
  }
  func.func @transform_2(%arg0: i32) -> (i32, i32) {
    %c0_i32 = arith.constant 0 : i32
    %c0_i32_0 = arith.constant 0 : i32
    %c0_i32_1 = arith.constant 0 : i32
    return %c0_i32, %c0_i32_0 : i32, i32
  }
  func.func @transform_3(%arg0: i32) -> (i32, i32) {
    %c0_i32 = arith.constant 0 : i32
    %c0_i32_0 = arith.constant 0 : i32
    %c0_i32_1 = arith.constant 0 : i32
    return %c0_i32, %c0_i32_0 : i32, i32
  }
  func.func @transform_4(%arg0: i32) -> (i32, i32) {
    %c0_i32 = arith.constant 0 : i32
    %c0_i32_0 = arith.constant 0 : i32
    %c0_i32_1 = arith.constant 0 : i32
    return %c0_i32, %c0_i32_0 : i32, i32
  }
}

module attributes {stable_mosaic.version = 11 : i64} {
  func.func @_conv_bn_relu_pool_kernel(%arg0: i32, %arg1: memref<512x1152xbf16, #tpu.memory_space<vmem>>, %arg2: memref<1152x128xbf16, #tpu.memory_space<vmem>>, %arg3: memref<1x128xf32, #tpu.memory_space<vmem>>, %arg4: memref<1x128xf32, #tpu.memory_space<vmem>>, %arg5: memref<128x128xf32, #tpu.memory_space<vmem>>) attributes {dimension_semantics = [#tpu.dimension_semantics<arbitrary>], iteration_bounds = array<i64: 1>, scalar_prefetch = 0 : i64, scratch_operands = 0 : i64, tpu.core_type = #tpu.core_type<tc>, window_params = [{pipeline_mode = #tpu.pipeline_mode<synchronous>, transform_indices = @transform_0, window_bounds = array<i64: 512, 1152>}, {pipeline_mode = #tpu.pipeline_mode<synchronous>, transform_indices = @transform_1, window_bounds = array<i64: 1152, 128>}, {pipeline_mode = #tpu.pipeline_mode<synchronous>, transform_indices = @transform_2, window_bounds = array<i64: 1, 128>}, {pipeline_mode = #tpu.pipeline_mode<synchronous>, transform_indices = @transform_3, window_bounds = array<i64: 1, 128>}, {pipeline_mode = #tpu.pipeline_mode<synchronous>, transform_indices = @transform_4, window_bounds = array<i64: 128, 128>}]} {
    %c0 = arith.constant 0 : index
    %c0_0 = arith.constant 0 : index
    %0 = vector.load %arg1[%c0, %c0_0] : memref<512x1152xbf16, #tpu.memory_space<vmem>>, vector<512x1152xbf16>
    %c0_1 = arith.constant 0 : index
    %c0_2 = arith.constant 0 : index
    %1 = vector.load %arg2[%c0_1, %c0_2] : memref<1152x128xbf16, #tpu.memory_space<vmem>>, vector<1152x128xbf16>
    %cst = arith.constant dense<0.000000e+00> : vector<512x128xf32>
    %2 = tpu.matmul %0, %1, %cst {dimension_numbers = #tpu.dot_dimension_numbers<[1], [0], [0], [1], [0, 0, 1, 1], [], []>} : vector<512x1152xbf16>, vector<1152x128xbf16>, vector<512x128xf32> -> vector<512x128xf32>
    %cst_3 = arith.constant dense<0.000000e+00> : vector<128xf32>
    %3 = vector.multi_reduction <add>, %2, %cst_3 [0] : vector<512x128xf32> to vector<128xf32>
    %4 = vector.shape_cast %3 : vector<128xf32> to vector<1x128xf32>
    %cst_4 = arith.constant 5.120000e+02 : f32
    %5 = vector.broadcast %cst_4 : f32 to vector<1x128xf32>
    %6 = arith.divf %4, %5 : vector<1x128xf32>
    %7 = vector.broadcast %6 : vector<1x128xf32> to vector<512x128xf32>
    %8 = arith.subf %2, %7 : vector<512x128xf32>
    %9 = arith.mulf %8, %8 : vector<512x128xf32>
    %cst_5 = arith.constant dense<0.000000e+00> : vector<128xf32>
    %10 = vector.multi_reduction <add>, %9, %cst_5 [0] : vector<512x128xf32> to vector<128xf32>
    %11 = vector.shape_cast %10 : vector<128xf32> to vector<1x128xf32>
    %cst_6 = arith.constant 5.120000e+02 : f32
    %12 = vector.broadcast %cst_6 : f32 to vector<1x128xf32>
    %13 = arith.divf %11, %12 : vector<1x128xf32>
    %cst_7 = arith.constant 9.99999974E-6 : f32
    %14 = vector.broadcast %cst_7 : f32 to vector<1x128xf32>
    %15 = arith.addf %13, %14 : vector<1x128xf32>
    %16 = math.rsqrt %15 : vector<1x128xf32>
    %17 = vector.broadcast %16 : vector<1x128xf32> to vector<512x128xf32>
    %18 = arith.mulf %8, %17 : vector<512x128xf32>
    %c0_8 = arith.constant 0 : index
    %c0_9 = arith.constant 0 : index
    %19 = vector.load %arg3[%c0_8, %c0_9] : memref<1x128xf32, #tpu.memory_space<vmem>>, vector<1x128xf32>
    %20 = vector.broadcast %19 : vector<1x128xf32> to vector<512x128xf32>
    %21 = arith.mulf %18, %20 : vector<512x128xf32>
    %c0_10 = arith.constant 0 : index
    %c0_11 = arith.constant 0 : index
    %22 = vector.load %arg4[%c0_10, %c0_11] : memref<1x128xf32, #tpu.memory_space<vmem>>, vector<1x128xf32>
    %23 = vector.broadcast %22 : vector<1x128xf32> to vector<512x128xf32>
    %24 = arith.addf %21, %23 : vector<512x128xf32>
    %cst_12 = arith.constant 0.000000e+00 : f32
    %25 = vector.broadcast %cst_12 : f32 to vector<512x128xf32>
    %26 = arith.maximumf %24, %25 : vector<512x128xf32>
    %27 = vector.extract_strided_slice %26 {offsets = [0, 0], sizes = [128, 128], strides = [1, 1]} : vector<512x128xf32> to vector<128x128xf32>
    %28 = vector.extract_strided_slice %26 {offsets = [128, 0], sizes = [128, 128], strides = [1, 1]} : vector<512x128xf32> to vector<128x128xf32>
    %29 = vector.extract_strided_slice %26 {offsets = [256, 0], sizes = [128, 128], strides = [1, 1]} : vector<512x128xf32> to vector<128x128xf32>
    %30 = vector.extract_strided_slice %26 {offsets = [384, 0], sizes = [128, 128], strides = [1, 1]} : vector<512x128xf32> to vector<128x128xf32>
    %31 = arith.maximumf %27, %28 : vector<128x128xf32>
    %32 = arith.maximumf %29, %30 : vector<128x128xf32>
    %33 = arith.maximumf %31, %32 : vector<128x128xf32>
    %c0_13 = arith.constant 0 : index
    %c0_14 = arith.constant 0 : index
    %34 = vector.load %arg5[%c0_13, %c0_14] : memref<128x128xf32, #tpu.memory_space<vmem>>, vector<128x128xf32>
    tpu.vector_store %arg5[%c0_13, %c0_14], %33 {strides = array<i32>} : memref<128x128xf32, #tpu.memory_space<vmem>>, vector<128x128xf32>,
    return
  }
  func.func @transform_0(%arg0: i32) -> (i32, i32) {
    %c0_i32 = arith.constant 0 : i32
    %c0_i32_0 = arith.constant 0 : i32
    %c0_i32_1 = arith.constant 0 : i32
    return %c0_i32, %c0_i32_0 : i32, i32
  }
  func.func @transform_1(%arg0: i32) -> (i32, i32) {
    %c0_i32 = arith.constant 0 : i32
    %c0_i32_0 = arith.constant 0 : i32
    %c0_i32_1 = arith.constant 0 : i32
    return %c0_i32, %c0_i32_0 : i32, i32
  }
  func.func @transform_2(%arg0: i32) -> (i32, i32) {
    %c0_i32 = arith.constant 0 : i32
    %c0_i32_0 = arith.constant 0 : i32
    %c0_i32_1 = arith.constant 0 : i32
    return %c0_i32, %c0_i32_0 : i32, i32
  }
  func.func @transform_3(%arg0: i32) -> (i32, i32) {
    %c0_i32 = arith.constant 0 : i32
    %c0_i32_0 = arith.constant 0 : i32
    %c0_i32_1 = arith.constant 0 : i32
    return %c0_i32, %c0_i32_0 : i32, i32
  }
  func.func @transform_4(%arg0: i32) -> (i32, i32) {
    %c0_i32 = arith.constant 0 : i32
    %c0_i32_0 = arith.constant 0 : i32
    %c0_i32_1 = arith.constant 0 : i32
    return %c0_i32, %c0_i32_0 : i32, i32
  }
}

module attributes {stable_mosaic.version = 11 : i64} {
  func.func @_conv_bn_relu_pool_kernel(%arg0: i32, %arg1: memref<128x1152xbf16, #tpu.memory_space<vmem>>, %arg2: memref<1152x128xbf16, #tpu.memory_space<vmem>>, %arg3: memref<1x128xf32, #tpu.memory_space<vmem>>, %arg4: memref<1x128xf32, #tpu.memory_space<vmem>>, %arg5: memref<128x128xf32, #tpu.memory_space<vmem>>) attributes {dimension_semantics = [#tpu.dimension_semantics<arbitrary>], iteration_bounds = array<i64: 1>, scalar_prefetch = 0 : i64, scratch_operands = 0 : i64, tpu.core_type = #tpu.core_type<tc>, window_params = [{pipeline_mode = #tpu.pipeline_mode<synchronous>, transform_indices = @transform_0, window_bounds = array<i64: 128, 1152>}, {pipeline_mode = #tpu.pipeline_mode<synchronous>, transform_indices = @transform_1, window_bounds = array<i64: 1152, 128>}, {pipeline_mode = #tpu.pipeline_mode<synchronous>, transform_indices = @transform_2, window_bounds = array<i64: 1, 128>}, {pipeline_mode = #tpu.pipeline_mode<synchronous>, transform_indices = @transform_3, window_bounds = array<i64: 1, 128>}, {pipeline_mode = #tpu.pipeline_mode<synchronous>, transform_indices = @transform_4, window_bounds = array<i64: 128, 128>}]} {
    %c0 = arith.constant 0 : index
    %c0_0 = arith.constant 0 : index
    %0 = vector.load %arg1[%c0, %c0_0] : memref<128x1152xbf16, #tpu.memory_space<vmem>>, vector<128x1152xbf16>
    %c0_1 = arith.constant 0 : index
    %c0_2 = arith.constant 0 : index
    %1 = vector.load %arg2[%c0_1, %c0_2] : memref<1152x128xbf16, #tpu.memory_space<vmem>>, vector<1152x128xbf16>
    %cst = arith.constant dense<0.000000e+00> : vector<128x128xf32>
    %2 = tpu.matmul %0, %1, %cst {dimension_numbers = #tpu.dot_dimension_numbers<[1], [0], [0], [1], [0, 0, 1, 1], [], []>} : vector<128x1152xbf16>, vector<1152x128xbf16>, vector<128x128xf32> -> vector<128x128xf32>
    %cst_3 = arith.constant dense<0.000000e+00> : vector<128xf32>
    %3 = vector.multi_reduction <add>, %2, %cst_3 [0] : vector<128x128xf32> to vector<128xf32>
    %4 = vector.shape_cast %3 : vector<128xf32> to vector<1x128xf32>
    %cst_4 = arith.constant 1.280000e+02 : f32
    %5 = vector.broadcast %cst_4 : f32 to vector<1x128xf32>
    %6 = arith.divf %4, %5 : vector<1x128xf32>
    %7 = vector.broadcast %6 : vector<1x128xf32> to vector<128x128xf32>
    %8 = arith.subf %2, %7 : vector<128x128xf32>
    %9 = arith.mulf %8, %8 : vector<128x128xf32>
    %cst_5 = arith.constant dense<0.000000e+00> : vector<128xf32>
    %10 = vector.multi_reduction <add>, %9, %cst_5 [0] : vector<128x128xf32> to vector<128xf32>
    %11 = vector.shape_cast %10 : vector<128xf32> to vector<1x128xf32>
    %cst_6 = arith.constant 1.280000e+02 : f32
    %12 = vector.broadcast %cst_6 : f32 to vector<1x128xf32>
    %13 = arith.divf %11, %12 : vector<1x128xf32>
    %cst_7 = arith.constant 9.99999974E-6 : f32
    %14 = vector.broadcast %cst_7 : f32 to vector<1x128xf32>
    %15 = arith.addf %13, %14 : vector<1x128xf32>
    %16 = math.rsqrt %15 : vector<1x128xf32>
    %17 = vector.broadcast %16 : vector<1x128xf32> to vector<128x128xf32>
    %18 = arith.mulf %8, %17 : vector<128x128xf32>
    %c0_8 = arith.constant 0 : index
    %c0_9 = arith.constant 0 : index
    %19 = vector.load %arg3[%c0_8, %c0_9] : memref<1x128xf32, #tpu.memory_space<vmem>>, vector<1x128xf32>
    %20 = vector.broadcast %19 : vector<1x128xf32> to vector<128x128xf32>
    %21 = arith.mulf %18, %20 : vector<128x128xf32>
    %c0_10 = arith.constant 0 : index
    %c0_11 = arith.constant 0 : index
    %22 = vector.load %arg4[%c0_10, %c0_11] : memref<1x128xf32, #tpu.memory_space<vmem>>, vector<1x128xf32>
    %23 = vector.broadcast %22 : vector<1x128xf32> to vector<128x128xf32>
    %24 = arith.addf %21, %23 : vector<128x128xf32>
    %cst_12 = arith.constant 0.000000e+00 : f32
    %25 = vector.broadcast %cst_12 : f32 to vector<128x128xf32>
    %26 = arith.maximumf %24, %25 : vector<128x128xf32>
    %c0_13 = arith.constant 0 : index
    %c0_14 = arith.constant 0 : index
    %27 = vector.load %arg5[%c0_13, %c0_14] : memref<128x128xf32, #tpu.memory_space<vmem>>, vector<128x128xf32>
    tpu.vector_store %arg5[%c0_13, %c0_14], %26 {strides = array<i32>} : memref<128x128xf32, #tpu.memory_space<vmem>>, vector<128x128xf32>,
    return
  }
  func.func @transform_0(%arg0: i32) -> (i32, i32) {
    %c0_i32 = arith.constant 0 : i32
    %c0_i32_0 = arith.constant 0 : i32
    %c0_i32_1 = arith.constant 0 : i32
    return %c0_i32, %c0_i32_0 : i32, i32
  }
  func.func @transform_1(%arg0: i32) -> (i32, i32) {
    %c0_i32 = arith.constant 0 : i32
    %c0_i32_0 = arith.constant 0 : i32
    %c0_i32_1 = arith.constant 0 : i32
    return %c0_i32, %c0_i32_0 : i32, i32
  }
  func.func @transform_2(%arg0: i32) -> (i32, i32) {
    %c0_i32 = arith.constant 0 : i32
    %c0_i32_0 = arith.constant 0 : i32
    %c0_i32_1 = arith.constant 0 : i32
    return %c0_i32, %c0_i32_0 : i32, i32
  }
  func.func @transform_3(%arg0: i32) -> (i32, i32) {
    %c0_i32 = arith.constant 0 : i32
    %c0_i32_0 = arith.constant 0 : i32
    %c0_i32_1 = arith.constant 0 : i32
    return %c0_i32, %c0_i32_0 : i32, i32
  }
  func.func @transform_4(%arg0: i32) -> (i32, i32) {
    %c0_i32 = arith.constant 0 : i32
    %c0_i32_0 = arith.constant 0 : i32
    %c0_i32_1 = arith.constant 0 : i32
    return %c0_i32, %c0_i32_0 : i32, i32
  }
}

module attributes {stable_mosaic.version = 11 : i64} {
  func.func @_conv_bn_relu_pool_kernel(%arg0: i32, %arg1: memref<128x1152xbf16, #tpu.memory_space<vmem>>, %arg2: memref<1152x128xbf16, #tpu.memory_space<vmem>>, %arg3: memref<1x128xf32, #tpu.memory_space<vmem>>, %arg4: memref<1x128xf32, #tpu.memory_space<vmem>>, %arg5: memref<32x128xf32, #tpu.memory_space<vmem>>) attributes {dimension_semantics = [#tpu.dimension_semantics<arbitrary>], iteration_bounds = array<i64: 1>, scalar_prefetch = 0 : i64, scratch_operands = 0 : i64, tpu.core_type = #tpu.core_type<tc>, window_params = [{pipeline_mode = #tpu.pipeline_mode<synchronous>, transform_indices = @transform_0, window_bounds = array<i64: 128, 1152>}, {pipeline_mode = #tpu.pipeline_mode<synchronous>, transform_indices = @transform_1, window_bounds = array<i64: 1152, 128>}, {pipeline_mode = #tpu.pipeline_mode<synchronous>, transform_indices = @transform_2, window_bounds = array<i64: 1, 128>}, {pipeline_mode = #tpu.pipeline_mode<synchronous>, transform_indices = @transform_3, window_bounds = array<i64: 1, 128>}, {pipeline_mode = #tpu.pipeline_mode<synchronous>, transform_indices = @transform_4, window_bounds = array<i64: 32, 128>}]} {
    %c0 = arith.constant 0 : index
    %c0_0 = arith.constant 0 : index
    %0 = vector.load %arg1[%c0, %c0_0] : memref<128x1152xbf16, #tpu.memory_space<vmem>>, vector<128x1152xbf16>
    %c0_1 = arith.constant 0 : index
    %c0_2 = arith.constant 0 : index
    %1 = vector.load %arg2[%c0_1, %c0_2] : memref<1152x128xbf16, #tpu.memory_space<vmem>>, vector<1152x128xbf16>
    %cst = arith.constant dense<0.000000e+00> : vector<128x128xf32>
    %2 = tpu.matmul %0, %1, %cst {dimension_numbers = #tpu.dot_dimension_numbers<[1], [0], [0], [1], [0, 0, 1, 1], [], []>} : vector<128x1152xbf16>, vector<1152x128xbf16>, vector<128x128xf32> -> vector<128x128xf32>
    %cst_3 = arith.constant dense<0.000000e+00> : vector<128xf32>
    %3 = vector.multi_reduction <add>, %2, %cst_3 [0] : vector<128x128xf32> to vector<128xf32>
    %4 = vector.shape_cast %3 : vector<128xf32> to vector<1x128xf32>
    %cst_4 = arith.constant 1.280000e+02 : f32
    %5 = vector.broadcast %cst_4 : f32 to vector<1x128xf32>
    %6 = arith.divf %4, %5 : vector<1x128xf32>
    %7 = vector.broadcast %6 : vector<1x128xf32> to vector<128x128xf32>
    %8 = arith.subf %2, %7 : vector<128x128xf32>
    %9 = arith.mulf %8, %8 : vector<128x128xf32>
    %cst_5 = arith.constant dense<0.000000e+00> : vector<128xf32>
    %10 = vector.multi_reduction <add>, %9, %cst_5 [0] : vector<128x128xf32> to vector<128xf32>
    %11 = vector.shape_cast %10 : vector<128xf32> to vector<1x128xf32>
    %cst_6 = arith.constant 1.280000e+02 : f32
    %12 = vector.broadcast %cst_6 : f32 to vector<1x128xf32>
    %13 = arith.divf %11, %12 : vector<1x128xf32>
    %cst_7 = arith.constant 9.99999974E-6 : f32
    %14 = vector.broadcast %cst_7 : f32 to vector<1x128xf32>
    %15 = arith.addf %13, %14 : vector<1x128xf32>
    %16 = math.rsqrt %15 : vector<1x128xf32>
    %17 = vector.broadcast %16 : vector<1x128xf32> to vector<128x128xf32>
    %18 = arith.mulf %8, %17 : vector<128x128xf32>
    %c0_8 = arith.constant 0 : index
    %c0_9 = arith.constant 0 : index
    %19 = vector.load %arg3[%c0_8, %c0_9] : memref<1x128xf32, #tpu.memory_space<vmem>>, vector<1x128xf32>
    %20 = vector.broadcast %19 : vector<1x128xf32> to vector<128x128xf32>
    %21 = arith.mulf %18, %20 : vector<128x128xf32>
    %c0_10 = arith.constant 0 : index
    %c0_11 = arith.constant 0 : index
    %22 = vector.load %arg4[%c0_10, %c0_11] : memref<1x128xf32, #tpu.memory_space<vmem>>, vector<1x128xf32>
    %23 = vector.broadcast %22 : vector<1x128xf32> to vector<128x128xf32>
    %24 = arith.addf %21, %23 : vector<128x128xf32>
    %cst_12 = arith.constant 0.000000e+00 : f32
    %25 = vector.broadcast %cst_12 : f32 to vector<128x128xf32>
    %26 = arith.maximumf %24, %25 : vector<128x128xf32>
    %27 = vector.extract_strided_slice %26 {offsets = [0, 0], sizes = [32, 128], strides = [1, 1]} : vector<128x128xf32> to vector<32x128xf32>
    %28 = vector.extract_strided_slice %26 {offsets = [32, 0], sizes = [32, 128], strides = [1, 1]} : vector<128x128xf32> to vector<32x128xf32>
    %29 = vector.extract_strided_slice %26 {offsets = [64, 0], sizes = [32, 128], strides = [1, 1]} : vector<128x128xf32> to vector<32x128xf32>
    %30 = vector.extract_strided_slice %26 {offsets = [96, 0], sizes = [32, 128], strides = [1, 1]} : vector<128x128xf32> to vector<32x128xf32>
    %31 = arith.maximumf %27, %28 : vector<32x128xf32>
    %32 = arith.maximumf %29, %30 : vector<32x128xf32>
    %33 = arith.maximumf %31, %32 : vector<32x128xf32>
    %c0_13 = arith.constant 0 : index
    %c0_14 = arith.constant 0 : index
    %34 = vector.load %arg5[%c0_13, %c0_14] : memref<32x128xf32, #tpu.memory_space<vmem>>, vector<32x128xf32>
    tpu.vector_store %arg5[%c0_13, %c0_14], %33 {strides = array<i32>} : memref<32x128xf32, #tpu.memory_space<vmem>>, vector<32x128xf32>,
    return
  }
  func.func @transform_0(%arg0: i32) -> (i32, i32) {
    %c0_i32 = arith.constant 0 : i32
    %c0_i32_0 = arith.constant 0 : i32
    %c0_i32_1 = arith.constant 0 : i32
    return %c0_i32, %c0_i32_0 : i32, i32
  }
  func.func @transform_1(%arg0: i32) -> (i32, i32) {
    %c0_i32 = arith.constant 0 : i32
    %c0_i32_0 = arith.constant 0 : i32
    %c0_i32_1 = arith.constant 0 : i32
    return %c0_i32, %c0_i32_0 : i32, i32
  }
  func.func @transform_2(%arg0: i32) -> (i32, i32) {
    %c0_i32 = arith.constant 0 : i32
    %c0_i32_0 = arith.constant 0 : i32
    %c0_i32_1 = arith.constant 0 : i32
    return %c0_i32, %c0_i32_0 : i32, i32
  }
  func.func @transform_3(%arg0: i32) -> (i32, i32) {
    %c0_i32 = arith.constant 0 : i32
    %c0_i32_0 = arith.constant 0 : i32
    %c0_i32_1 = arith.constant 0 : i32
    return %c0_i32, %c0_i32_0 : i32, i32
  }
  func.func @transform_4(%arg0: i32) -> (i32, i32) {
    %c0_i32 = arith.constant 0 : i32
    %c0_i32_0 = arith.constant 0 : i32
    %c0_i32_1 = arith.constant 0 : i32
    return %c0_i32, %c0_i32_0 : i32, i32
  }
}

module attributes {stable_mosaic.version = 11 : i64} {
  func.func @_conv_bn_relu_pool_kernel(%arg0: i32, %arg1: memref<32x1152xbf16, #tpu.memory_space<vmem>>, %arg2: memref<1152x128xbf16, #tpu.memory_space<vmem>>, %arg3: memref<1x128xf32, #tpu.memory_space<vmem>>, %arg4: memref<1x128xf32, #tpu.memory_space<vmem>>, %arg5: memref<32x128xf32, #tpu.memory_space<vmem>>) attributes {dimension_semantics = [#tpu.dimension_semantics<arbitrary>], iteration_bounds = array<i64: 1>, scalar_prefetch = 0 : i64, scratch_operands = 0 : i64, tpu.core_type = #tpu.core_type<tc>, window_params = [{pipeline_mode = #tpu.pipeline_mode<synchronous>, transform_indices = @transform_0, window_bounds = array<i64: 32, 1152>}, {pipeline_mode = #tpu.pipeline_mode<synchronous>, transform_indices = @transform_1, window_bounds = array<i64: 1152, 128>}, {pipeline_mode = #tpu.pipeline_mode<synchronous>, transform_indices = @transform_2, window_bounds = array<i64: 1, 128>}, {pipeline_mode = #tpu.pipeline_mode<synchronous>, transform_indices = @transform_3, window_bounds = array<i64: 1, 128>}, {pipeline_mode = #tpu.pipeline_mode<synchronous>, transform_indices = @transform_4, window_bounds = array<i64: 32, 128>}]} {
    %c0 = arith.constant 0 : index
    %c0_0 = arith.constant 0 : index
    %0 = vector.load %arg1[%c0, %c0_0] : memref<32x1152xbf16, #tpu.memory_space<vmem>>, vector<32x1152xbf16>
    %c0_1 = arith.constant 0 : index
    %c0_2 = arith.constant 0 : index
    %1 = vector.load %arg2[%c0_1, %c0_2] : memref<1152x128xbf16, #tpu.memory_space<vmem>>, vector<1152x128xbf16>
    %cst = arith.constant dense<0.000000e+00> : vector<32x128xf32>
    %2 = tpu.matmul %0, %1, %cst {dimension_numbers = #tpu.dot_dimension_numbers<[1], [0], [0], [1], [0, 0, 1, 1], [], []>} : vector<32x1152xbf16>, vector<1152x128xbf16>, vector<32x128xf32> -> vector<32x128xf32>
    %cst_3 = arith.constant dense<0.000000e+00> : vector<128xf32>
    %3 = vector.multi_reduction <add>, %2, %cst_3 [0] : vector<32x128xf32> to vector<128xf32>
    %4 = vector.shape_cast %3 : vector<128xf32> to vector<1x128xf32>
    %cst_4 = arith.constant 3.200000e+01 : f32
    %5 = vector.broadcast %cst_4 : f32 to vector<1x128xf32>
    %6 = arith.divf %4, %5 : vector<1x128xf32>
    %7 = vector.broadcast %6 : vector<1x128xf32> to vector<32x128xf32>
    %8 = arith.subf %2, %7 : vector<32x128xf32>
    %9 = arith.mulf %8, %8 : vector<32x128xf32>
    %cst_5 = arith.constant dense<0.000000e+00> : vector<128xf32>
    %10 = vector.multi_reduction <add>, %9, %cst_5 [0] : vector<32x128xf32> to vector<128xf32>
    %11 = vector.shape_cast %10 : vector<128xf32> to vector<1x128xf32>
    %cst_6 = arith.constant 3.200000e+01 : f32
    %12 = vector.broadcast %cst_6 : f32 to vector<1x128xf32>
    %13 = arith.divf %11, %12 : vector<1x128xf32>
    %cst_7 = arith.constant 9.99999974E-6 : f32
    %14 = vector.broadcast %cst_7 : f32 to vector<1x128xf32>
    %15 = arith.addf %13, %14 : vector<1x128xf32>
    %16 = math.rsqrt %15 : vector<1x128xf32>
    %17 = vector.broadcast %16 : vector<1x128xf32> to vector<32x128xf32>
    %18 = arith.mulf %8, %17 : vector<32x128xf32>
    %c0_8 = arith.constant 0 : index
    %c0_9 = arith.constant 0 : index
    %19 = vector.load %arg3[%c0_8, %c0_9] : memref<1x128xf32, #tpu.memory_space<vmem>>, vector<1x128xf32>
    %20 = vector.broadcast %19 : vector<1x128xf32> to vector<32x128xf32>
    %21 = arith.mulf %18, %20 : vector<32x128xf32>
    %c0_10 = arith.constant 0 : index
    %c0_11 = arith.constant 0 : index
    %22 = vector.load %arg4[%c0_10, %c0_11] : memref<1x128xf32, #tpu.memory_space<vmem>>, vector<1x128xf32>
    %23 = vector.broadcast %22 : vector<1x128xf32> to vector<32x128xf32>
    %24 = arith.addf %21, %23 : vector<32x128xf32>
    %cst_12 = arith.constant 0.000000e+00 : f32
    %25 = vector.broadcast %cst_12 : f32 to vector<32x128xf32>
    %26 = arith.maximumf %24, %25 : vector<32x128xf32>
    %c0_13 = arith.constant 0 : index
    %c0_14 = arith.constant 0 : index
    %27 = vector.load %arg5[%c0_13, %c0_14] : memref<32x128xf32, #tpu.memory_space<vmem>>, vector<32x128xf32>
    tpu.vector_store %arg5[%c0_13, %c0_14], %26 {strides = array<i32>} : memref<32x128xf32, #tpu.memory_space<vmem>>, vector<32x128xf32>,
    return
  }
  func.func @transform_0(%arg0: i32) -> (i32, i32) {
    %c0_i32 = arith.constant 0 : i32
    %c0_i32_0 = arith.constant 0 : i32
    %c0_i32_1 = arith.constant 0 : i32
    return %c0_i32, %c0_i32_0 : i32, i32
  }
  func.func @transform_1(%arg0: i32) -> (i32, i32) {
    %c0_i32 = arith.constant 0 : i32
    %c0_i32_0 = arith.constant 0 : i32
    %c0_i32_1 = arith.constant 0 : i32
    return %c0_i32, %c0_i32_0 : i32, i32
  }
  func.func @transform_2(%arg0: i32) -> (i32, i32) {
    %c0_i32 = arith.constant 0 : i32
    %c0_i32_0 = arith.constant 0 : i32
    %c0_i32_1 = arith.constant 0 : i32
    return %c0_i32, %c0_i32_0 : i32, i32
  }
  func.func @transform_3(%arg0: i32) -> (i32, i32) {
    %c0_i32 = arith.constant 0 : i32
    %c0_i32_0 = arith.constant 0 : i32
    %c0_i32_1 = arith.constant 0 : i32
    return %c0_i32, %c0_i32_0 : i32, i32
  }
  func.func @transform_4(%arg0: i32) -> (i32, i32) {
    %c0_i32 = arith.constant 0 : i32
    %c0_i32_0 = arith.constant 0 : i32
    %c0_i32_1 = arith.constant 0 : i32
    return %c0_i32, %c0_i32_0 : i32, i32
  }
}

module attributes {stable_mosaic.version = 11 : i64} {
  func.func @_conv_bn_relu_pool_kernel(%arg0: i32, %arg1: memref<32x1152xbf16, #tpu.memory_space<vmem>>, %arg2: memref<1152x128xbf16, #tpu.memory_space<vmem>>, %arg3: memref<1x128xf32, #tpu.memory_space<vmem>>, %arg4: memref<1x128xf32, #tpu.memory_space<vmem>>, %arg5: memref<8x128xf32, #tpu.memory_space<vmem>>) attributes {dimension_semantics = [#tpu.dimension_semantics<arbitrary>], iteration_bounds = array<i64: 1>, scalar_prefetch = 0 : i64, scratch_operands = 0 : i64, tpu.core_type = #tpu.core_type<tc>, window_params = [{pipeline_mode = #tpu.pipeline_mode<synchronous>, transform_indices = @transform_0, window_bounds = array<i64: 32, 1152>}, {pipeline_mode = #tpu.pipeline_mode<synchronous>, transform_indices = @transform_1, window_bounds = array<i64: 1152, 128>}, {pipeline_mode = #tpu.pipeline_mode<synchronous>, transform_indices = @transform_2, window_bounds = array<i64: 1, 128>}, {pipeline_mode = #tpu.pipeline_mode<synchronous>, transform_indices = @transform_3, window_bounds = array<i64: 1, 128>}, {pipeline_mode = #tpu.pipeline_mode<synchronous>, transform_indices = @transform_4, window_bounds = array<i64: 8, 128>}]} {
    %c0 = arith.constant 0 : index
    %c0_0 = arith.constant 0 : index
    %0 = vector.load %arg1[%c0, %c0_0] : memref<32x1152xbf16, #tpu.memory_space<vmem>>, vector<32x1152xbf16>
    %c0_1 = arith.constant 0 : index
    %c0_2 = arith.constant 0 : index
    %1 = vector.load %arg2[%c0_1, %c0_2] : memref<1152x128xbf16, #tpu.memory_space<vmem>>, vector<1152x128xbf16>
    %cst = arith.constant dense<0.000000e+00> : vector<32x128xf32>
    %2 = tpu.matmul %0, %1, %cst {dimension_numbers = #tpu.dot_dimension_numbers<[1], [0], [0], [1], [0, 0, 1, 1], [], []>} : vector<32x1152xbf16>, vector<1152x128xbf16>, vector<32x128xf32> -> vector<32x128xf32>
    %cst_3 = arith.constant dense<0.000000e+00> : vector<128xf32>
    %3 = vector.multi_reduction <add>, %2, %cst_3 [0] : vector<32x128xf32> to vector<128xf32>
    %4 = vector.shape_cast %3 : vector<128xf32> to vector<1x128xf32>
    %cst_4 = arith.constant 3.200000e+01 : f32
    %5 = vector.broadcast %cst_4 : f32 to vector<1x128xf32>
    %6 = arith.divf %4, %5 : vector<1x128xf32>
    %7 = vector.broadcast %6 : vector<1x128xf32> to vector<32x128xf32>
    %8 = arith.subf %2, %7 : vector<32x128xf32>
    %9 = arith.mulf %8, %8 : vector<32x128xf32>
    %cst_5 = arith.constant dense<0.000000e+00> : vector<128xf32>
    %10 = vector.multi_reduction <add>, %9, %cst_5 [0] : vector<32x128xf32> to vector<128xf32>
    %11 = vector.shape_cast %10 : vector<128xf32> to vector<1x128xf32>
    %cst_6 = arith.constant 3.200000e+01 : f32
    %12 = vector.broadcast %cst_6 : f32 to vector<1x128xf32>
    %13 = arith.divf %11, %12 : vector<1x128xf32>
    %cst_7 = arith.constant 9.99999974E-6 : f32
    %14 = vector.broadcast %cst_7 : f32 to vector<1x128xf32>
    %15 = arith.addf %13, %14 : vector<1x128xf32>
    %16 = math.rsqrt %15 : vector<1x128xf32>
    %17 = vector.broadcast %16 : vector<1x128xf32> to vector<32x128xf32>
    %18 = arith.mulf %8, %17 : vector<32x128xf32>
    %c0_8 = arith.constant 0 : index
    %c0_9 = arith.constant 0 : index
    %19 = vector.load %arg3[%c0_8, %c0_9] : memref<1x128xf32, #tpu.memory_space<vmem>>, vector<1x128xf32>
    %20 = vector.broadcast %19 : vector<1x128xf32> to vector<32x128xf32>
    %21 = arith.mulf %18, %20 : vector<32x128xf32>
    %c0_10 = arith.constant 0 : index
    %c0_11 = arith.constant 0 : index
    %22 = vector.load %arg4[%c0_10, %c0_11] : memref<1x128xf32, #tpu.memory_space<vmem>>, vector<1x128xf32>
    %23 = vector.broadcast %22 : vector<1x128xf32> to vector<32x128xf32>
    %24 = arith.addf %21, %23 : vector<32x128xf32>
    %cst_12 = arith.constant 0.000000e+00 : f32
    %25 = vector.broadcast %cst_12 : f32 to vector<32x128xf32>
    %26 = arith.maximumf %24, %25 : vector<32x128xf32>
    %27 = vector.extract_strided_slice %26 {offsets = [0, 0], sizes = [8, 128], strides = [1, 1]} : vector<32x128xf32> to vector<8x128xf32>
    %28 = vector.extract_strided_slice %26 {offsets = [8, 0], sizes = [8, 128], strides = [1, 1]} : vector<32x128xf32> to vector<8x128xf32>
    %29 = vector.extract_strided_slice %26 {offsets = [16, 0], sizes = [8, 128], strides = [1, 1]} : vector<32x128xf32> to vector<8x128xf32>
    %30 = vector.extract_strided_slice %26 {offsets = [24, 0], sizes = [8, 128], strides = [1, 1]} : vector<32x128xf32> to vector<8x128xf32>
    %31 = arith.maximumf %27, %28 : vector<8x128xf32>
    %32 = arith.maximumf %29, %30 : vector<8x128xf32>
    %33 = arith.maximumf %31, %32 : vector<8x128xf32>
    %c0_13 = arith.constant 0 : index
    %c0_14 = arith.constant 0 : index
    %34 = vector.load %arg5[%c0_13, %c0_14] : memref<8x128xf32, #tpu.memory_space<vmem>>, vector<8x128xf32>
    tpu.vector_store %arg5[%c0_13, %c0_14], %33 {strides = array<i32>} : memref<8x128xf32, #tpu.memory_space<vmem>>, vector<8x128xf32>,
    return
  }
  func.func @transform_0(%arg0: i32) -> (i32, i32) {
    %c0_i32 = arith.constant 0 : i32
    %c0_i32_0 = arith.constant 0 : i32
    %c0_i32_1 = arith.constant 0 : i32
    return %c0_i32, %c0_i32_0 : i32, i32
  }
  func.func @transform_1(%arg0: i32) -> (i32, i32) {
    %c0_i32 = arith.constant 0 : i32
    %c0_i32_0 = arith.constant 0 : i32
    %c0_i32_1 = arith.constant 0 : i32
    return %c0_i32, %c0_i32_0 : i32, i32
  }
  func.func @transform_2(%arg0: i32) -> (i32, i32) {
    %c0_i32 = arith.constant 0 : i32
    %c0_i32_0 = arith.constant 0 : i32
    %c0_i32_1 = arith.constant 0 : i32
    return %c0_i32, %c0_i32_0 : i32, i32
  }
  func.func @transform_3(%arg0: i32) -> (i32, i32) {
    %c0_i32 = arith.constant 0 : i32
    %c0_i32_0 = arith.constant 0 : i32
    %c0_i32_1 = arith.constant 0 : i32
    return %c0_i32, %c0_i32_0 : i32, i32
  }
  func.func @transform_4(%arg0: i32) -> (i32, i32) {
    %c0_i32 = arith.constant 0 : i32
    %c0_i32_0 = arith.constant 0 : i32
    %c0_i32_1 = arith.constant 0 : i32
    return %c0_i32, %c0_i32_0 : i32, i32
  }
}

module attributes {stable_mosaic.version = 11 : i64} {
  func.func @_conv_bn_relu_pool_kernel(%arg0: i32, %arg1: memref<8x1152xbf16, #tpu.memory_space<vmem>>, %arg2: memref<1152x128xbf16, #tpu.memory_space<vmem>>, %arg3: memref<1x128xf32, #tpu.memory_space<vmem>>, %arg4: memref<1x128xf32, #tpu.memory_space<vmem>>, %arg5: memref<8x128xf32, #tpu.memory_space<vmem>>) attributes {dimension_semantics = [#tpu.dimension_semantics<arbitrary>], iteration_bounds = array<i64: 1>, scalar_prefetch = 0 : i64, scratch_operands = 0 : i64, tpu.core_type = #tpu.core_type<tc>, window_params = [{pipeline_mode = #tpu.pipeline_mode<synchronous>, transform_indices = @transform_0, window_bounds = array<i64: 8, 1152>}, {pipeline_mode = #tpu.pipeline_mode<synchronous>, transform_indices = @transform_1, window_bounds = array<i64: 1152, 128>}, {pipeline_mode = #tpu.pipeline_mode<synchronous>, transform_indices = @transform_2, window_bounds = array<i64: 1, 128>}, {pipeline_mode = #tpu.pipeline_mode<synchronous>, transform_indices = @transform_3, window_bounds = array<i64: 1, 128>}, {pipeline_mode = #tpu.pipeline_mode<synchronous>, transform_indices = @transform_4, window_bounds = array<i64: 8, 128>}]} {
    %c0 = arith.constant 0 : index
    %c0_0 = arith.constant 0 : index
    %0 = vector.load %arg1[%c0, %c0_0] : memref<8x1152xbf16, #tpu.memory_space<vmem>>, vector<8x1152xbf16>
    %c0_1 = arith.constant 0 : index
    %c0_2 = arith.constant 0 : index
    %1 = vector.load %arg2[%c0_1, %c0_2] : memref<1152x128xbf16, #tpu.memory_space<vmem>>, vector<1152x128xbf16>
    %cst = arith.constant dense<0.000000e+00> : vector<8x128xf32>
    %2 = tpu.matmul %0, %1, %cst {dimension_numbers = #tpu.dot_dimension_numbers<[1], [0], [0], [1], [0, 0, 1, 1], [], []>} : vector<8x1152xbf16>, vector<1152x128xbf16>, vector<8x128xf32> -> vector<8x128xf32>
    %cst_3 = arith.constant dense<0.000000e+00> : vector<128xf32>
    %3 = vector.multi_reduction <add>, %2, %cst_3 [0] : vector<8x128xf32> to vector<128xf32>
    %4 = vector.shape_cast %3 : vector<128xf32> to vector<1x128xf32>
    %cst_4 = arith.constant 8.000000e+00 : f32
    %5 = vector.broadcast %cst_4 : f32 to vector<1x128xf32>
    %6 = arith.divf %4, %5 : vector<1x128xf32>
    %7 = vector.broadcast %6 : vector<1x128xf32> to vector<8x128xf32>
    %8 = arith.subf %2, %7 : vector<8x128xf32>
    %9 = arith.mulf %8, %8 : vector<8x128xf32>
    %cst_5 = arith.constant dense<0.000000e+00> : vector<128xf32>
    %10 = vector.multi_reduction <add>, %9, %cst_5 [0] : vector<8x128xf32> to vector<128xf32>
    %11 = vector.shape_cast %10 : vector<128xf32> to vector<1x128xf32>
    %cst_6 = arith.constant 8.000000e+00 : f32
    %12 = vector.broadcast %cst_6 : f32 to vector<1x128xf32>
    %13 = arith.divf %11, %12 : vector<1x128xf32>
    %cst_7 = arith.constant 9.99999974E-6 : f32
    %14 = vector.broadcast %cst_7 : f32 to vector<1x128xf32>
    %15 = arith.addf %13, %14 : vector<1x128xf32>
    %16 = math.rsqrt %15 : vector<1x128xf32>
    %17 = vector.broadcast %16 : vector<1x128xf32> to vector<8x128xf32>
    %18 = arith.mulf %8, %17 : vector<8x128xf32>
    %c0_8 = arith.constant 0 : index
    %c0_9 = arith.constant 0 : index
    %19 = vector.load %arg3[%c0_8, %c0_9] : memref<1x128xf32, #tpu.memory_space<vmem>>, vector<1x128xf32>
    %20 = vector.broadcast %19 : vector<1x128xf32> to vector<8x128xf32>
    %21 = arith.mulf %18, %20 : vector<8x128xf32>
    %c0_10 = arith.constant 0 : index
    %c0_11 = arith.constant 0 : index
    %22 = vector.load %arg4[%c0_10, %c0_11] : memref<1x128xf32, #tpu.memory_space<vmem>>, vector<1x128xf32>
    %23 = vector.broadcast %22 : vector<1x128xf32> to vector<8x128xf32>
    %24 = arith.addf %21, %23 : vector<8x128xf32>
    %cst_12 = arith.constant 0.000000e+00 : f32
    %25 = vector.broadcast %cst_12 : f32 to vector<8x128xf32>
    %26 = arith.maximumf %24, %25 : vector<8x128xf32>
    %c0_13 = arith.constant 0 : index
    %c0_14 = arith.constant 0 : index
    %27 = vector.load %arg5[%c0_13, %c0_14] : memref<8x128xf32, #tpu.memory_space<vmem>>, vector<8x128xf32>
    tpu.vector_store %arg5[%c0_13, %c0_14], %26 {strides = array<i32>} : memref<8x128xf32, #tpu.memory_space<vmem>>, vector<8x128xf32>,
    return
  }
  func.func @transform_0(%arg0: i32) -> (i32, i32) {
    %c0_i32 = arith.constant 0 : i32
    %c0_i32_0 = arith.constant 0 : i32
    %c0_i32_1 = arith.constant 0 : i32
    return %c0_i32, %c0_i32_0 : i32, i32
  }
  func.func @transform_1(%arg0: i32) -> (i32, i32) {
    %c0_i32 = arith.constant 0 : i32
    %c0_i32_0 = arith.constant 0 : i32
    %c0_i32_1 = arith.constant 0 : i32
    return %c0_i32, %c0_i32_0 : i32, i32
  }
  func.func @transform_2(%arg0: i32) -> (i32, i32) {
    %c0_i32 = arith.constant 0 : i32
    %c0_i32_0 = arith.constant 0 : i32
    %c0_i32_1 = arith.constant 0 : i32
    return %c0_i32, %c0_i32_0 : i32, i32
  }
  func.func @transform_3(%arg0: i32) -> (i32, i32) {
    %c0_i32 = arith.constant 0 : i32
    %c0_i32_0 = arith.constant 0 : i32
    %c0_i32_1 = arith.constant 0 : i32
    return %c0_i32, %c0_i32_0 : i32, i32
  }
  func.func @transform_4(%arg0: i32) -> (i32, i32) {
    %c0_i32 = arith.constant 0 : i32
    %c0_i32_0 = arith.constant 0 : i32
    %c0_i32_1 = arith.constant 0 : i32
    return %c0_i32, %c0_i32_0 : i32, i32
  }
}

module attributes {stable_mosaic.version = 11 : i64} {
  func.func @_conv_bn_relu_pool_kernel(%arg0: i32, %arg1: memref<8x1152xbf16, #tpu.memory_space<vmem>>, %arg2: memref<1152x128xbf16, #tpu.memory_space<vmem>>, %arg3: memref<1x128xf32, #tpu.memory_space<vmem>>, %arg4: memref<1x128xf32, #tpu.memory_space<vmem>>, %arg5: memref<2x128xf32, #tpu.memory_space<vmem>>) attributes {dimension_semantics = [#tpu.dimension_semantics<arbitrary>], iteration_bounds = array<i64: 1>, scalar_prefetch = 0 : i64, scratch_operands = 0 : i64, tpu.core_type = #tpu.core_type<tc>, window_params = [{pipeline_mode = #tpu.pipeline_mode<synchronous>, transform_indices = @transform_0, window_bounds = array<i64: 8, 1152>}, {pipeline_mode = #tpu.pipeline_mode<synchronous>, transform_indices = @transform_1, window_bounds = array<i64: 1152, 128>}, {pipeline_mode = #tpu.pipeline_mode<synchronous>, transform_indices = @transform_2, window_bounds = array<i64: 1, 128>}, {pipeline_mode = #tpu.pipeline_mode<synchronous>, transform_indices = @transform_3, window_bounds = array<i64: 1, 128>}, {pipeline_mode = #tpu.pipeline_mode<synchronous>, transform_indices = @transform_4, window_bounds = array<i64: 2, 128>}]} {
    %c0 = arith.constant 0 : index
    %c0_0 = arith.constant 0 : index
    %0 = vector.load %arg1[%c0, %c0_0] : memref<8x1152xbf16, #tpu.memory_space<vmem>>, vector<8x1152xbf16>
    %c0_1 = arith.constant 0 : index
    %c0_2 = arith.constant 0 : index
    %1 = vector.load %arg2[%c0_1, %c0_2] : memref<1152x128xbf16, #tpu.memory_space<vmem>>, vector<1152x128xbf16>
    %cst = arith.constant dense<0.000000e+00> : vector<8x128xf32>
    %2 = tpu.matmul %0, %1, %cst {dimension_numbers = #tpu.dot_dimension_numbers<[1], [0], [0], [1], [0, 0, 1, 1], [], []>} : vector<8x1152xbf16>, vector<1152x128xbf16>, vector<8x128xf32> -> vector<8x128xf32>
    %cst_3 = arith.constant dense<0.000000e+00> : vector<128xf32>
    %3 = vector.multi_reduction <add>, %2, %cst_3 [0] : vector<8x128xf32> to vector<128xf32>
    %4 = vector.shape_cast %3 : vector<128xf32> to vector<1x128xf32>
    %cst_4 = arith.constant 8.000000e+00 : f32
    %5 = vector.broadcast %cst_4 : f32 to vector<1x128xf32>
    %6 = arith.divf %4, %5 : vector<1x128xf32>
    %7 = vector.broadcast %6 : vector<1x128xf32> to vector<8x128xf32>
    %8 = arith.subf %2, %7 : vector<8x128xf32>
    %9 = arith.mulf %8, %8 : vector<8x128xf32>
    %cst_5 = arith.constant dense<0.000000e+00> : vector<128xf32>
    %10 = vector.multi_reduction <add>, %9, %cst_5 [0] : vector<8x128xf32> to vector<128xf32>
    %11 = vector.shape_cast %10 : vector<128xf32> to vector<1x128xf32>
    %cst_6 = arith.constant 8.000000e+00 : f32
    %12 = vector.broadcast %cst_6 : f32 to vector<1x128xf32>
    %13 = arith.divf %11, %12 : vector<1x128xf32>
    %cst_7 = arith.constant 9.99999974E-6 : f32
    %14 = vector.broadcast %cst_7 : f32 to vector<1x128xf32>
    %15 = arith.addf %13, %14 : vector<1x128xf32>
    %16 = math.rsqrt %15 : vector<1x128xf32>
    %17 = vector.broadcast %16 : vector<1x128xf32> to vector<8x128xf32>
    %18 = arith.mulf %8, %17 : vector<8x128xf32>
    %c0_8 = arith.constant 0 : index
    %c0_9 = arith.constant 0 : index
    %19 = vector.load %arg3[%c0_8, %c0_9] : memref<1x128xf32, #tpu.memory_space<vmem>>, vector<1x128xf32>
    %20 = vector.broadcast %19 : vector<1x128xf32> to vector<8x128xf32>
    %21 = arith.mulf %18, %20 : vector<8x128xf32>
    %c0_10 = arith.constant 0 : index
    %c0_11 = arith.constant 0 : index
    %22 = vector.load %arg4[%c0_10, %c0_11] : memref<1x128xf32, #tpu.memory_space<vmem>>, vector<1x128xf32>
    %23 = vector.broadcast %22 : vector<1x128xf32> to vector<8x128xf32>
    %24 = arith.addf %21, %23 : vector<8x128xf32>
    %cst_12 = arith.constant 0.000000e+00 : f32
    %25 = vector.broadcast %cst_12 : f32 to vector<8x128xf32>
    %26 = arith.maximumf %24, %25 : vector<8x128xf32>
    %27 = vector.extract_strided_slice %26 {offsets = [0, 0], sizes = [2, 128], strides = [1, 1]} : vector<8x128xf32> to vector<2x128xf32>
    %28 = vector.extract_strided_slice %26 {offsets = [2, 0], sizes = [2, 128], strides = [1, 1]} : vector<8x128xf32> to vector<2x128xf32>
    %29 = vector.extract_strided_slice %26 {offsets = [4, 0], sizes = [2, 128], strides = [1, 1]} : vector<8x128xf32> to vector<2x128xf32>
    %30 = vector.extract_strided_slice %26 {offsets = [6, 0], sizes = [2, 128], strides = [1, 1]} : vector<8x128xf32> to vector<2x128xf32>
    %31 = arith.addf %27, %28 : vector<2x128xf32>
    %32 = arith.addf %31, %29 : vector<2x128xf32>
    %33 = arith.addf %32, %30 : vector<2x128xf32>
    %cst_13 = arith.constant 2.500000e-01 : f32
    %34 = vector.broadcast %cst_13 : f32 to vector<2x128xf32>
    %35 = arith.mulf %33, %34 : vector<2x128xf32>
    %c0_14 = arith.constant 0 : index
    %c0_15 = arith.constant 0 : index
    %36 = vector.load %arg5[%c0_14, %c0_15] : memref<2x128xf32, #tpu.memory_space<vmem>>, vector<2x128xf32>
    tpu.vector_store %arg5[%c0_14, %c0_15], %35 {strides = array<i32>} : memref<2x128xf32, #tpu.memory_space<vmem>>, vector<2x128xf32>,
    return
  }
  func.func @transform_0(%arg0: i32) -> (i32, i32) {
    %c0_i32 = arith.constant 0 : i32
    %c0_i32_0 = arith.constant 0 : i32
    %c0_i32_1 = arith.constant 0 : i32
    return %c0_i32, %c0_i32_0 : i32, i32
  }
  func.func @transform_1(%arg0: i32) -> (i32, i32) {
    %c0_i32 = arith.constant 0 : i32
    %c0_i32_0 = arith.constant 0 : i32
    %c0_i32_1 = arith.constant 0 : i32
    return %c0_i32, %c0_i32_0 : i32, i32
  }
  func.func @transform_2(%arg0: i32) -> (i32, i32) {
    %c0_i32 = arith.constant 0 : i32
    %c0_i32_0 = arith.constant 0 : i32
    %c0_i32_1 = arith.constant 0 : i32
    return %c0_i32, %c0_i32_0 : i32, i32
  }
  func.func @transform_3(%arg0: i32) -> (i32, i32) {
    %c0_i32 = arith.constant 0 : i32
    %c0_i32_0 = arith.constant 0 : i32
    %c0_i32_1 = arith.constant 0 : i32
    return %c0_i32, %c0_i32_0 : i32, i32
  }
  func.func @transform_4(%arg0: i32) -> (i32, i32) {
    %c0_i32 = arith.constant 0 : i32
    %c0_i32_0 = arith.constant 0 : i32
    %c0_i32_1 = arith.constant 0 : i32
    return %c0_i32, %c0_i32_0 : i32, i32
  }
}

module attributes {stable_mosaic.version = 11 : i64} {
  func.func @_classifier_kernel(%arg0: i32, %arg1: memref<2x128xf32, #tpu.memory_space<vmem>>, %arg2: memref<128x512xf32, #tpu.memory_space<vmem>>, %arg3: memref<1x512xf32, #tpu.memory_space<vmem>>, %arg4: memref<1x512xf32, #tpu.memory_space<vmem>>, %arg5: memref<1x512xf32, #tpu.memory_space<vmem>>, %arg6: memref<512x128xf32, #tpu.memory_space<vmem>>, %arg7: memref<1x128xf32, #tpu.memory_space<vmem>>, %arg8: memref<2x128xf32, #tpu.memory_space<vmem>>) attributes {dimension_semantics = [#tpu.dimension_semantics<arbitrary>], iteration_bounds = array<i64: 1>, scalar_prefetch = 0 : i64, scratch_operands = 0 : i64, tpu.core_type = #tpu.core_type<tc>, window_params = [{pipeline_mode = #tpu.pipeline_mode<synchronous>, transform_indices = @transform_0, window_bounds = array<i64: 2, 128>}, {pipeline_mode = #tpu.pipeline_mode<synchronous>, transform_indices = @transform_1, window_bounds = array<i64: 128, 512>}, {pipeline_mode = #tpu.pipeline_mode<synchronous>, transform_indices = @transform_2, window_bounds = array<i64: 1, 512>}, {pipeline_mode = #tpu.pipeline_mode<synchronous>, transform_indices = @transform_3, window_bounds = array<i64: 1, 512>}, {pipeline_mode = #tpu.pipeline_mode<synchronous>, transform_indices = @transform_4, window_bounds = array<i64: 1, 512>}, {pipeline_mode = #tpu.pipeline_mode<synchronous>, transform_indices = @transform_5, window_bounds = array<i64: 512, 128>}, {pipeline_mode = #tpu.pipeline_mode<synchronous>, transform_indices = @transform_6, window_bounds = array<i64: 1, 128>}, {pipeline_mode = #tpu.pipeline_mode<synchronous>, transform_indices = @transform_7, window_bounds = array<i64: 2, 128>}]} {
    %c0 = arith.constant 0 : index
    %c0_0 = arith.constant 0 : index
    %0 = vector.load %arg1[%c0, %c0_0] : memref<2x128xf32, #tpu.memory_space<vmem>>, vector<2x128xf32>
    %c0_1 = arith.constant 0 : index
    %c0_2 = arith.constant 0 : index
    %1 = vector.load %arg2[%c0_1, %c0_2] : memref<128x512xf32, #tpu.memory_space<vmem>>, vector<128x512xf32>
    %cst = arith.constant dense<0.000000e+00> : vector<2x512xf32>
    %2 = tpu.matmul %0, %1, %cst {dimension_numbers = #tpu.dot_dimension_numbers<[1], [0], [0], [1], [0, 0, 1, 1], [], []>} : vector<2x128xf32>, vector<128x512xf32>, vector<2x512xf32> -> vector<2x512xf32>
    %c0_3 = arith.constant 0 : index
    %c0_4 = arith.constant 0 : index
    %3 = vector.load %arg3[%c0_3, %c0_4] : memref<1x512xf32, #tpu.memory_space<vmem>>, vector<1x512xf32>
    %4 = vector.broadcast %3 : vector<1x512xf32> to vector<2x512xf32>
    %5 = arith.addf %2, %4 : vector<2x512xf32>
    %cst_5 = arith.constant dense<0.000000e+00> : vector<512xf32>
    %6 = vector.multi_reduction <add>, %5, %cst_5 [0] : vector<2x512xf32> to vector<512xf32>
    %7 = vector.shape_cast %6 : vector<512xf32> to vector<1x512xf32>
    %cst_6 = arith.constant 2.000000e+00 : f32
    %8 = vector.broadcast %cst_6 : f32 to vector<1x512xf32>
    %9 = arith.divf %7, %8 : vector<1x512xf32>
    %10 = vector.broadcast %9 : vector<1x512xf32> to vector<2x512xf32>
    %11 = arith.subf %5, %10 : vector<2x512xf32>
    %12 = arith.mulf %11, %11 : vector<2x512xf32>
    %cst_7 = arith.constant dense<0.000000e+00> : vector<512xf32>
    %13 = vector.multi_reduction <add>, %12, %cst_7 [0] : vector<2x512xf32> to vector<512xf32>
    %14 = vector.shape_cast %13 : vector<512xf32> to vector<1x512xf32>
    %cst_8 = arith.constant 2.000000e+00 : f32
    %15 = vector.broadcast %cst_8 : f32 to vector<1x512xf32>
    %16 = arith.divf %14, %15 : vector<1x512xf32>
    %cst_9 = arith.constant 9.99999974E-6 : f32
    %17 = vector.broadcast %cst_9 : f32 to vector<1x512xf32>
    %18 = arith.addf %16, %17 : vector<1x512xf32>
    %19 = math.rsqrt %18 : vector<1x512xf32>
    %20 = vector.broadcast %19 : vector<1x512xf32> to vector<2x512xf32>
    %21 = arith.mulf %11, %20 : vector<2x512xf32>
    %c0_10 = arith.constant 0 : index
    %c0_11 = arith.constant 0 : index
    %22 = vector.load %arg4[%c0_10, %c0_11] : memref<1x512xf32, #tpu.memory_space<vmem>>, vector<1x512xf32>
    %23 = vector.broadcast %22 : vector<1x512xf32> to vector<2x512xf32>
    %24 = arith.mulf %21, %23 : vector<2x512xf32>
    %c0_12 = arith.constant 0 : index
    %c0_13 = arith.constant 0 : index
    %25 = vector.load %arg5[%c0_12, %c0_13] : memref<1x512xf32, #tpu.memory_space<vmem>>, vector<1x512xf32>
    %26 = vector.broadcast %25 : vector<1x512xf32> to vector<2x512xf32>
    %27 = arith.addf %24, %26 : vector<2x512xf32>
    %cst_14 = arith.constant 0.000000e+00 : f32
    %28 = vector.broadcast %cst_14 : f32 to vector<2x512xf32>
    %29 = arith.maximumf %27, %28 : vector<2x512xf32>
    %c0_15 = arith.constant 0 : index
    %c0_16 = arith.constant 0 : index
    %30 = vector.load %arg6[%c0_15, %c0_16] : memref<512x128xf32, #tpu.memory_space<vmem>>, vector<512x128xf32>
    %cst_17 = arith.constant dense<0.000000e+00> : vector<2x128xf32>
    %31 = tpu.matmul %29, %30, %cst_17 {dimension_numbers = #tpu.dot_dimension_numbers<[1], [0], [0], [1], [0, 0, 1, 1], [], []>} : vector<2x512xf32>, vector<512x128xf32>, vector<2x128xf32> -> vector<2x128xf32>
    %c0_18 = arith.constant 0 : index
    %c0_19 = arith.constant 0 : index
    %32 = vector.load %arg7[%c0_18, %c0_19] : memref<1x128xf32, #tpu.memory_space<vmem>>, vector<1x128xf32>
    %33 = vector.broadcast %32 : vector<1x128xf32> to vector<2x128xf32>
    %34 = arith.addf %31, %33 : vector<2x128xf32>
    %c0_20 = arith.constant 0 : index
    %c0_21 = arith.constant 0 : index
    %35 = vector.load %arg8[%c0_20, %c0_21] : memref<2x128xf32, #tpu.memory_space<vmem>>, vector<2x128xf32>
    tpu.vector_store %arg8[%c0_20, %c0_21], %34 {strides = array<i32>} : memref<2x128xf32, #tpu.memory_space<vmem>>, vector<2x128xf32>,
    return
  }
  func.func @transform_0(%arg0: i32) -> (i32, i32) {
    %c0_i32 = arith.constant 0 : i32
    %c0_i32_0 = arith.constant 0 : i32
    %c0_i32_1 = arith.constant 0 : i32
    return %c0_i32, %c0_i32_0 : i32, i32
  }
  func.func @transform_1(%arg0: i32) -> (i32, i32) {
    %c0_i32 = arith.constant 0 : i32
    %c0_i32_0 = arith.constant 0 : i32
    %c0_i32_1 = arith.constant 0 : i32
    return %c0_i32, %c0_i32_0 : i32, i32
  }
  func.func @transform_2(%arg0: i32) -> (i32, i32) {
    %c0_i32 = arith.constant 0 : i32
    %c0_i32_0 = arith.constant 0 : i32
    %c0_i32_1 = arith.constant 0 : i32
    return %c0_i32, %c0_i32_0 : i32, i32
  }
  func.func @transform_3(%arg0: i32) -> (i32, i32) {
    %c0_i32 = arith.constant 0 : i32
    %c0_i32_0 = arith.constant 0 : i32
    %c0_i32_1 = arith.constant 0 : i32
    return %c0_i32, %c0_i32_0 : i32, i32
  }
  func.func @transform_4(%arg0: i32) -> (i32, i32) {
    %c0_i32 = arith.constant 0 : i32
    %c0_i32_0 = arith.constant 0 : i32
    %c0_i32_1 = arith.constant 0 : i32
    return %c0_i32, %c0_i32_0 : i32, i32
  }
  func.func @transform_5(%arg0: i32) -> (i32, i32) {
    %c0_i32 = arith.constant 0 : i32
    %c0_i32_0 = arith.constant 0 : i32
    %c0_i32_1 = arith.constant 0 : i32
    return %c0_i32, %c0_i32_0 : i32, i32
  }
  func.func @transform_6(%arg0: i32) -> (i32, i32) {
    %c0_i32 = arith.constant 0 : i32
    %c0_i32_0 = arith.constant 0 : i32
    %c0_i32_1 = arith.constant 0 : i32
    return %c0_i32, %c0_i32_0 : i32, i32
  }
  func.func @transform_7(%arg0: i32) -> (i32, i32) {
    %c0_i32 = arith.constant 0 : i32
    %c0_i32_0 = arith.constant 0 : i32
    %c0_i32_1 = arith.constant 0 : i32
    return %c0_i32, %c0_i32_0 : i32, i32
  }
}

</mosaic_0001>

<bundles_post_ra>
// kernel: vgg_forward.9
= control target key start
LH: loop header
LB: loop body
LE: loop exit
PB: predicated region body
PF: predicated region fallthrough
CT: control target
= control target key end

     0   :  { %vm278_vm0 = vcmask 588800   ;;  %vm375_vm1 = vcmask 1043456   ;;  %s3292_s1 = inlined_call_operand.vmem [shape: bf16[72,128], index: 1, kind: input, shape index: {}]   ;;  %s3293_s0 = inlined_call_operand.vmem [shape: bf16[512,72], index: 0, kind: input, shape index: {}]   ;;  %s3294_s2 = inlined_call_operand.vmem [shape: f32[1,128], index: 2, kind: input, shape index: {}]   ;;  %s3295_s3 = inlined_call_operand.vmem [shape: f32[1,128], index: 3, kind: input, shape index: {}]   ;;  %s3296_s4 = inlined_call_operand.vmem [shape: f32[512,128], index: 4, kind: output, shape index: {}]  }
   0x1   :  { %v1471_v0 = vld [vmem:[%s3292_s1] sm:$0xff]   ;;  %v1472_v1 = vld [vmem:[%s3292_s1 + $0x8] sm:$0xff]   ;;  %v1473_v2 = vld [vmem:[%s3292_s1 + $0x10] sm:$0xff]  }
   0x2   :  { %1385 = vmatprep.subr.bf16.mxu0 %v1471_v0  ;;  %1459 = vmatprep.subr.bf16.mxu1 %v1471_v0  ;;  %v1476_v3 = vld [vmem:[%s3293_s0] sm:$0xff]   ;;  %v1474_v4 = vld [vmem:[%s3292_s1 + $0x18] sm:$0xff]   ;;  %v1477_v7 = vld [vmem:[%s3293_s0 + $0x8] sm:$0xff]  }
   0x3   :  { %1386 = vmatpush3.bf16.msra.mxu0 %v1471_v0  ;;  %1464 = vmatpush3.bf16.msra.mxu1 %v1471_v0  ;;  %v1475_v5 = vld [vmem:[%s3292_s1 + $0x20] ss:$0 sps:$4 sm:$0xff]   ;;  %v1478_v8 = vld [vmem:[%s3293_s0 + $0x10] sm:$0xff]   ;;  %v1493_v10 = vld [vmem:[%s3293_s0 + $0x88] sm:$0xff]  }
   0x4   :  { %1387 = vmatprep.subr.bf16.mxu0 %v1472_v1  ;;  %1460 = vmatprep.subr.bf16.mxu1 %v1472_v1  ;;  %v377_v6 = vsel %vm375_vm1, %v1475_v5, 0  ;;  %v1492_v9 = vld [vmem:[%s3293_s0 + $0x80] sm:$0xff]   ;;  %v1494_v11 = vld [vmem:[%s3293_s0 + $0x90] sm:$0xff]   ;;  %v1479_v12 = vld [vmem:[%s3293_s0 + $0x18] sm:$0xff]  }
   0x5   :  { %1395 = vmatprep.mubr.msk.bf16.mxu0 %vm278_vm0, %v1476_v3  ;;  %1427 = vmatprep.mubr.msk.bf16.mxu1 %vm278_vm0, %v1492_v9  ;;  %v1480_v13 = vld [vmem:[%s3293_s0 + $0x20] sm:$0xff]   ;;  %v1495_v14 = vld [vmem:[%s3293_s0 + $0x98] sm:$0xff]   ;;  %v1481_v16 = vld [vmem:[%s3293_s0 + $0x28] sm:$0xff]  }
   0x6   :  { %v1496_v15 = vld [vmem:[%s3293_s0 + $0xa0] sm:$0xff]   ;;  %v1482_v17 = vld [vmem:[%s3293_s0 + $0x30] sm:$0xff]   ;;  %v1497_v18 = vld [vmem:[%s3293_s0 + $0xa8] sm:$0xff]  }
   0x7   :  { %1388 = vmatpush3.bf16.msra.mxu0 %v1472_v1  ;;  %1465 = vmatpush3.bf16.msra.mxu1 %v1472_v1  ;;  %v1498_v19 = vld [vmem:[%s3293_s0 + $0xb0] sm:$0xff]   ;;  %v1483_v20 = vld [vmem:[%s3293_s0 + $0x38] sm:$0xff]   ;;  %v1484_v21 = vld [vmem:[%s3293_s0 + $0x40] sm:$0xff]  }
   0x8   :  { %1389 = vmatprep.subr.bf16.mxu0 %v1473_v2  ;;  %1461 = vmatprep.subr.bf16.mxu1 %v1473_v2  ;;  %v1499_v22 = vld [vmem:[%s3293_s0 + $0xb8] sm:$0xff]   ;;  %v1500_v23 = vld [vmem:[%s3293_s0 + $0xc0] sm:$0xff]   ;;  %v1485_v24 = vld [vmem:[%s3293_s0 + $0x48] sm:$0xff]  }
   0x9   :  { %v1486_v25 = vld [vmem:[%s3293_s0 + $0x50] sm:$0xff]   ;;  %v1501_v26 = vld [vmem:[%s3293_s0 + $0xc8] sm:$0xff]   ;;  %v1487_v28 = vld [vmem:[%s3293_s0 + $0x58] sm:$0xff]  }
   0xa   :  { %v1502_v27 = vld [vmem:[%s3293_s0 + $0xd0] sm:$0xff]   ;;  %v1488_v29 = vld [vmem:[%s3293_s0 + $0x60] sm:$0xff]   ;;  %v1503_v30 = vld [vmem:[%s3293_s0 + $0xd8] sm:$0xff]  }
   0xb   :  { %1390 = vmatpush3.bf16.msra.mxu0 %v1473_v2  ;;  %1466 = vmatpush3.bf16.msra.mxu1 %v1473_v2  ;;  %v1504_v31 = vld [vmem:[%s3293_s0 + $0xe0] sm:$0xff]   ;;  %v1489_v32 = vld [vmem:[%s3293_s0 + $0x68] sm:$0xff]   ;;  %v1490_v33 = vld [vmem:[%s3293_s0 + $0x70] sm:$0xff]  }
   0xc   :  { %1391 = vmatprep.subr.bf16.mxu0 %v1474_v4  ;;  %1462 = vmatprep.subr.bf16.mxu1 %v1474_v4  ;;  %v1505_v34 = vld [vmem:[%s3293_s0 + $0xe8] sm:$0xff]   ;;  %v1506_v35 = vld [vmem:[%s3293_s0 + $0xf0] sm:$0xff]   ;;  %v1491_v36 = vld [vmem:[%s3293_s0 + $0x78] sm:$0xff]  }
   0xd   :  { %v1507_v37 = vld [vmem:[%s3293_s0 + $0xf8] sm:$0xff]  }
   0xf   :  { %1392 = vmatpush3.bf16.msra.mxu0 %v1474_v4  ;;  %1467 = vmatpush3.bf16.msra.mxu1 %v1474_v4 }
  0x10   :  { %1469 = vmatprep.subr.msk.bf16.mxu0 %vm375_vm1, %v1475_v5  ;;  %1470 = vmatprep.subr.msk.bf16.mxu1 %vm375_vm1, %v1475_v5 }
  0x13   :  { %1394 = vmatpush3.bf16.msra.mxu0 %v377_v6  ;;  %1468 = vmatpush3.bf16.msra.mxu1 %v377_v6 }
  0x16   :  { %1396 = vmatmul.mubr.msk.bf16.vlgmr.msra.gmra.mrb[0].mxu0 %vm278_vm0, %v1477_v7  ;;  %1428 = vmatmul.mubr.msk.bf16.vlgmr.msra.gmra.mrb[0].mxu1 %vm278_vm0, %v1493_v10 }
  0x17   :  { %1399 = vmatprep.mubr.msk.bf16.mxu0 %vm278_vm0, %v1478_v8  ;;  %1431 = vmatprep.mubr.msk.bf16.mxu1 %vm278_vm0, %v1494_v11 }
  0x1e   :  { %1400 = vmatmul.mubr.msk.bf16.gmra.mrb[4].mxu0 %vm278_vm0, %v1479_v12  ;;  %1432 = vmatmul.mubr.msk.bf16.gmra.mrb[4].mxu1 %vm278_vm0, %v1495_v14 }
  0x1f   :  { %1403 = vmatprep.mubr.msk.bf16.mxu0 %vm278_vm0, %v1480_v13  ;;  %1435 = vmatprep.mubr.msk.bf16.mxu1 %vm278_vm0, %v1496_v15 }
  0x26   :  { %1404 = vmatmul.mubr.msk.bf16.gmra.mrb[8].mxu0 %vm278_vm0, %v1481_v16  ;;  %1436 = vmatmul.mubr.msk.bf16.gmra.mrb[8].mxu1 %vm278_vm0, %v1497_v18 }
  0x27   :  { %1407 = vmatprep.mubr.msk.bf16.mxu0 %vm278_vm0, %v1482_v17  ;;  %1439 = vmatprep.mubr.msk.bf16.mxu1 %vm278_vm0, %v1498_v19 }
  0x2e   :  { %1408 = vmatmul.mubr.msk.bf16.gmra.mrb[12].mxu0 %vm278_vm0, %v1483_v20  ;;  %1440 = vmatmul.mubr.msk.bf16.gmra.mrb[12].mxu1 %vm278_vm0, %v1499_v22 }
  0x2f   :  { %1411 = vmatprep.mubr.msk.bf16.mxu0 %vm278_vm0, %v1484_v21  ;;  %1443 = vmatprep.mubr.msk.bf16.mxu1 %vm278_vm0, %v1500_v23 }
  0x36   :  { %1412 = vmatmul.mubr.msk.bf16.gmra.mrb[16].mxu0 %vm278_vm0, %v1485_v24  ;;  %1444 = vmatmul.mubr.msk.bf16.gmra.mrb[16].mxu1 %vm278_vm0, %v1501_v26 }
  0x37   :  { %1415 = vmatprep.mubr.msk.bf16.mxu0 %vm278_vm0, %v1486_v25  ;;  %1447 = vmatprep.mubr.msk.bf16.mxu1 %vm278_vm0, %v1502_v27 }
  0x3e   :  { %1416 = vmatmul.mubr.msk.bf16.gmra.mrb[20].mxu0 %vm278_vm0, %v1487_v28  ;;  %1448 = vmatmul.mubr.msk.bf16.gmra.mrb[20].mxu1 %vm278_vm0, %v1503_v30 }
  0x3f   :  { %1419 = vmatprep.mubr.msk.bf16.mxu0 %vm278_vm0, %v1488_v29  ;;  %1451 = vmatprep.mubr.msk.bf16.mxu1 %vm278_vm0, %v1504_v31 }
  0x46   :  { %1420 = vmatmul.mubr.msk.bf16.gmra.mrb[24].mxu0 %vm278_vm0, %v1489_v32  ;;  %1452 = vmatmul.mubr.msk.bf16.gmra.mrb[24].mxu1 %vm278_vm0, %v1505_v34 }
  0x47   :  { %1423 = vmatprep.mubr.msk.bf16.mxu0 %vm278_vm0, %v1490_v33  ;;  %1455 = vmatprep.mubr.msk.bf16.mxu1 %vm278_vm0, %v1506_v35 }
  0x4e   :  { %1424 = vmatmul.mubr.msk.bf16.gmra.mrb[28].mxu0 %vm278_vm0, %v1491_v36  ;;  %1456 = vmatmul.mubr.msk.bf16.gmra.mrb[28].mxu1 %vm278_vm0, %v1507_v37 }
  0xe9   :  { %v1678_v38 = vpop.f32.mrb[0].mxu0  ;;  %v1684_v41 = vpop.f32.mrb[0].mxu1 }
  0xea   :  { %v1680_v39 = vpop.f32.mrb[1].mxu0  ;;  %v1688_v43 = vpop.f32.mrb[1].mxu1 }
  0xeb   :  { %v1682_v40 = vpop.f32.mrb[2].mxu0  ;;  %v1692_v45 = vpop.f32.mrb[2].mxu1 }
  0xec   :  { %v1686_v42 = vpop.f32.mrb[3].mxu0  ;;  %v1694_v46 = vpop.f32.mrb[3].mxu1 }
  0xed   :  { %v668_v44 = vadd.f32 %v1686_v42, %v1680_v39 }
  0xef   :  { %v669_v47 = vadd.f32 %v1678_v38, %v668_v44 }
  0xf1   :  { %v1697_v48 = vpop.f32.mrb[4].mxu0  ;;  %v670_v49 = vadd.f32 %v1682_v40, %v669_v47  ;;  %v1705_v53 = vpop.f32.mrb[4].mxu1 }
  0xf2   :  { %v1700_v50 = vpop.f32.mrb[5].mxu0  ;;  %v1709_v55 = vpop.f32.mrb[5].mxu1 }
  0xf3   :  { %v671_v51 = vadd.f32 %v670_v49, %v1700_v50  ;;  %v1703_v52 = vpop.f32.mrb[6].mxu0  ;;  %v1712_v57 = vpop.f32.mrb[6].mxu1 }
  0xf4   :  { %v1707_v54 = vpop.f32.mrb[7].mxu0  ;;  %v1714_v58 = vpop.f32.mrb[7].mxu1 }
  0xf5   :  { %v672_v56 = vadd.f32 %v671_v51, %v1707_v54 }
  0xf7   :  { %v673_v59 = vadd.f32 %v1697_v48, %v672_v56 }
  0xf9   :  { %v1717_v60 = vpop.f32.mrb[8].mxu0  ;;  %v674_v61 = vadd.f32 %v1703_v52, %v673_v59  ;;  %v1725_v1 = vpop.f32.mrb[8].mxu1 }
  0xfa   :  { %v1720_v62 = vpop.f32.mrb[9].mxu0  ;;  %v1729_v3 = vpop.f32.mrb[9].mxu1 }
  0xfb   :  { %v675_v63 = vadd.f32 %v674_v61, %v1720_v62  ;;  %v1723_v0 = vpop.f32.mrb[10].mxu0  ;;  %v1732_v5 = vpop.f32.mrb[10].mxu1 }
  0xfc   :  { %v1727_v2 = vpop.f32.mrb[11].mxu0  ;;  %v1734_v6 = vpop.f32.mrb[11].mxu1 }
  0xfd   :  { %v676_v4 = vadd.f32 %v675_v63, %v1727_v2 }
  0xff   :  { %v677_v7 = vadd.f32 %v1717_v60, %v676_v4 }
 0x101   :  { %v1737_v8 = vpop.f32.mrb[12].mxu0  ;;  %v678_v9 = vadd.f32 %v1723_v0, %v677_v7  ;;  %v1745_v13 = vpop.f32.mrb[12].mxu1 }
 0x102   :  { %v1740_v10 = vpop.f32.mrb[13].mxu0  ;;  %v1749_v15 = vpop.f32.mrb[13].mxu1 }
 0x103   :  { %v679_v11 = vadd.f32 %v678_v9, %v1740_v10  ;;  %v1743_v12 = vpop.f32.mrb[14].mxu0  ;;  %v1752_v17 = vpop.f32.mrb[14].mxu1 }
 0x104   :  { %v1747_v14 = vpop.f32.mrb[15].mxu0  ;;  %v1754_v18 = vpop.f32.mrb[15].mxu1 }
 0x105   :  { %v680_v16 = vadd.f32 %v679_v11, %v1747_v14 }
 0x107   :  { %v681_v19 = vadd.f32 %v1737_v8, %v680_v16 }
 0x109   :  { %v1757_v20 = vpop.f32.mrb[16].mxu0  ;;  %v682_v21 = vadd.f32 %v1743_v12, %v681_v19  ;;  %v1765_v25 = vpop.f32.mrb[16].mxu1 }
 0x10a   :  { %v1760_v22 = vpop.f32.mrb[17].mxu0  ;;  %v1769_v27 = vpop.f32.mrb[17].mxu1 }
 0x10b   :  { %v683_v23 = vadd.f32 %v682_v21, %v1760_v22  ;;  %v1763_v24 = vpop.f32.mrb[18].mxu0  ;;  %v1772_v29 = vpop.f32.mrb[18].mxu1 }
 0x10c   :  { %3337 = vst [vmem:[#allocation2_spill] sm:$0xff] %v1763_v24  ;;  %v1767_v26 = vpop.f32.mrb[19].mxu0  ;;  %v1774_v30 = vpop.f32.mrb[19].mxu1 }
 0x10d   :  { %v684_v28 = vadd.f32 %v683_v23, %v1767_v26 }
 0x10f   :  { %v685_v31 = vadd.f32 %v1757_v20, %v684_v28 }
 0x111   :  { %v1777_v32 = vpop.f32.mrb[20].mxu0  ;;  %v686_v33 = vadd.f32 %v1763_v24, %v685_v31  ;;  %v1785_v37 = vpop.f32.mrb[20].mxu1 }
 0x112   :  { %3338 = vst [vmem:[#allocation3_spill] sm:$0xff] %v1777_v32  ;;  %v1780_v34 = vpop.f32.mrb[21].mxu0  ;;  %3341 = vst [vmem:[#allocation6_spill] sm:$0xff] %v1785_v37  ;;  %v1789_v47 = vpop.f32.mrb[21].mxu1 }
 0x113   :  { %3339 = vst [vmem:[#allocation4_spill] sm:$0xff] %v1780_v34  ;;  %v687_v35 = vadd.f32 %v686_v33, %v1780_v34  ;;  %v1783_v36 = vpop.f32.mrb[22].mxu0  ;;  %v1792_v51 = vpop.f32.mrb[22].mxu1 }
 0x114   :  { %3340 = vst [vmem:[#allocation5_spill] sm:$0xff] %v1783_v36  ;;  %v1787_v44 = vpop.f32.mrb[23].mxu0  ;;  %3343 = vst [vmem:[#allocation8_spill] sm:$0xff] %v1792_v51  ;;  %v1794_v56 = vpop.f32.mrb[23].mxu1 }
 0x115   :  { %3342 = vst [vmem:[#allocation7_spill] sm:$0xff] %v1787_v44  ;;  %v688_v49 = vadd.f32 %v687_v35, %v1787_v44  ;;  %3344 = vst [vmem:[#allocation9_spill] sm:$0xff] %v1794_v56 }
 0x117   :  { %v689_v59 = vadd.f32 %v1777_v32, %v688_v49 }
 0x119   :  { %v1797_v61 = vpop.f32.mrb[24].mxu0  ;;  %v690_v63 = vadd.f32 %v1783_v36, %v689_v59  ;;  %v1805_v11 = vpop.f32.mrb[24].mxu1 }
 0x11a   :  { %3345 = vst [vmem:[#allocation10_spill] sm:$0xff] %v1797_v61  ;;  %v1800_v4 = vpop.f32.mrb[25].mxu0  ;;  %v1809_v19 = vpop.f32.mrb[25].mxu1 }
 0x11b   :  { %3346 = vst [vmem:[#allocation11_spill] sm:$0xff] %v1800_v4  ;;  %v691_v7 = vadd.f32 %v690_v63, %v1800_v4  ;;  %v1803_v9 = vpop.f32.mrb[26].mxu0  ;;  %3349 = vst [vmem:[#allocation14_spill] sm:$0xff] %v1809_v19  ;;  %v1812_v23 = vpop.f32.mrb[26].mxu1 }
 0x11c   :  { %3347 = vst [vmem:[#allocation12_spill] sm:$0xff] %v1803_v9  ;;  %v1807_v16 = vpop.f32.mrb[27].mxu0  ;;  %v1814_v28 = vpop.f32.mrb[27].mxu1 }
 0x11d   :  { %3348 = vst [vmem:[#allocation13_spill] sm:$0xff] %v1807_v16  ;;  %v692_v21 = vadd.f32 %v691_v7, %v1807_v16 }
 0x11f   :  { %v693_v31 = vadd.f32 %v1797_v61, %v692_v21 }
 0x121   :  { %v1817_v33 = vpop.f32.mrb[28].mxu0  ;;  %v694_v35 = vadd.f32 %v1803_v9, %v693_v31  ;;  %v1825_v4 = vpop.f32.mrb[28].mxu1 }
 0x122   :  { %v1820_v49 = vpop.f32.mrb[29].mxu0  ;;  %v1829_v7 = vpop.f32.mrb[29].mxu1 }
 0x123   :  { %3350 = vst [vmem:[#allocation15_spill] sm:$0xff] %v1820_v49  ;;  %v695_v59 = vadd.f32 %v694_v35, %v1820_v49  ;;  %v1823_v63 = vpop.f32.mrb[30].mxu0  ;;  %v1832_v32 = vpop.f32.mrb[30].mxu1 }
 0x124   :  { %v1827_v36 = vpop.f32.mrb[31].mxu0  ;;  %v1834_v21 = vpop.f32.mrb[31].mxu1 }
 0x125   :  { %3351 = vst [vmem:[#allocation16_spill] sm:$0xff] %v1827_v36  ;;  %v696_v16 = vadd.f32 %v695_v59, %v1827_v36 }
 0x127   :  { %v697_v31 = vadd.f32 %v1817_v33, %v696_v16 }
 0x129   :  { %v698_v9 = vadd.f32 %v1823_v63, %v697_v31 }
 0x12b   :  { %v699_v35 = vadd.f32 %v698_v9, %v1688_v43 }
 0x12d   :  { %v700_v49 = vadd.f32 %v699_v35, %v1694_v46 }
 0x12f   :  { %v701_v61 = vadd.f32 %v1684_v41, %v700_v49 }
 0x131   :  { %v702_v44 = vadd.f32 %v1692_v45, %v701_v61 }
 0x133   :  { %v703_v34 = vadd.f32 %v702_v44, %v1709_v55 }
 0x135   :  { %v704_v59 = vadd.f32 %v703_v34, %v1714_v58 }
 0x137   :  { %v705_v36 = vadd.f32 %v1705_v53, %v704_v59 }
 0x139   :  { %v706_v24 = vadd.f32 %v1712_v57, %v705_v36 }
 0x13b   :  { %v707_v16 = vadd.f32 %v706_v24, %v1729_v3 }
 0x13d   :  { %v708_v31 = vadd.f32 %v707_v16, %v1734_v6 }
 0x13f   :  { %v709_v9 = vadd.f32 %v1725_v1, %v708_v31 }
 0x141   :  { %v710_v35 = vadd.f32 %v1732_v5, %v709_v9 }
 0x143   :  { %v711_v49 = vadd.f32 %v710_v35, %v1749_v15 }
 0x145   :  { %v712_v61 = vadd.f32 %v711_v49, %v1754_v18 }
 0x147   :  { %v713_v44 = vadd.f32 %v1745_v13, %v712_v61 }
 0x149   :  { %v714_v34 = vadd.f32 %v1752_v17, %v713_v44 }
 0x14b   :  { %v715_v59 = vadd.f32 %v714_v34, %v1769_v27 }
 0x14d   :  { %v716_v36 = vadd.f32 %v715_v59, %v1774_v30 }
 0x14f   :  { %v717_v24 = vadd.f32 %v1765_v25, %v716_v36 }
 0x151   :  { %v718_v16 = vadd.f32 %v1772_v29, %v717_v24 }
 0x153   :  { %v719_v31 = vadd.f32 %v718_v16, %v1789_v47 }
 0x155   :  { %v720_v9 = vadd.f32 %v719_v31, %v1794_v56 }
 0x157   :  { %v721_v35 = vadd.f32 %v1785_v37, %v720_v9 }
 0x159   :  { %v722_v49 = vadd.f32 %v1792_v51, %v721_v35 }
 0x15b   :  { %v723_v61 = vadd.f32 %v722_v49, %v1809_v19 }
 0x15d   :  { %v724_v44 = vadd.f32 %v723_v61, %v1814_v28 }
 0x15f   :  { %v725_v34 = vadd.f32 %v1805_v11, %v724_v44 }
 0x161   :  { %v726_v59 = vadd.f32 %v1812_v23, %v725_v34 }
 0x163   :  { %v727_v36 = vadd.f32 %v726_v59, %v1829_v7  ;;  %v3358_v59 = vld [vmem:[#allocation4_spill] sm:$0xff] }
 0x165   :  { %v728_v24 = vadd.f32 %v727_v36, %v1834_v21  ;;  %v3359_v36 = vld [vmem:[#allocation7_spill] sm:$0xff] }
 0x167   :  { %v729_v16 = vadd.f32 %v1825_v4, %v728_v24  ;;  %v3360_v24 = vld [vmem:[#allocation3_spill] sm:$0xff] }
 0x169   :  { %v730_v31 = vadd.f32 %v1832_v32, %v729_v16  ;;  %v3362_v16 = vld [vmem:[#allocation5_spill] sm:$0xff] }
 0x16b   :  { %v731_v56 = vrot.slane %v730_v31, 4 }
 0x16d   :  { %v732_v9 = vadd.f32 %v731_v56, %v730_v31  ;;  %v3364_v31 = vld [vmem:[#allocation11_spill] sm:$0xff] }
 0x16f   :  { %v733_v37 = vrot.slane %v732_v9, 2 }
 0x171   :  { %v734_v35 = vadd.f32 %v733_v37, %v732_v9 }
 0x173   :  { %v735_v51 = vrot.slane %v734_v35, 1 }
 0x175   :  { %v736_v49 = vadd.f32 %v735_v51, %v734_v35  ;;  %v3357_v51 = vld [vmem:[#allocation2_spill] sm:$0xff]  ;;  %v3365_v35 = vld [vmem:[#allocation13_spill] sm:$0xff] }
 0x177   :  { %v1870_v19 = vmul.f32 0.001953125, %v736_v49 }
 0x179   :  { %v1874_v61 = vsub.f32 %v1680_v39, %v1870_v19  ;;  %v1878_v44 = vsub.f32 %v1686_v42, %v1870_v19  ;;  %v1882_v34 = vsub.f32 %v1678_v38, %v1870_v19  ;;  %v1886_v56 = vsub.f32 %v1682_v40, %v1870_v19 }
 0x17a   :  { %v1890_v37 = vsub.f32 %v1700_v50, %v1870_v19  ;;  %v1894_v39 = vsub.f32 %v1707_v54, %v1870_v19  ;;  %v1898_v42 = vsub.f32 %v1697_v48, %v1870_v19  ;;  %v1902_v38 = vsub.f32 %v1703_v52, %v1870_v19 }
 0x17b   :  { %3352 = vst [vmem:[#allocation17_spill] sm:$0xff] %v1874_v61  ;;  %3353 = vst [vmem:[#allocation18_spill] sm:$0xff] %v1878_v44  ;;  %v1906_v40 = vsub.f32 %v1720_v62, %v1870_v19  ;;  %v1910_v50 = vsub.f32 %v1727_v2, %v1870_v19  ;;  %v1914_v54 = vsub.f32 %v1717_v60, %v1870_v19 }
 0x17c   :  { %3354 = vst [vmem:[#allocation19_spill] sm:$0xff] %v1882_v34  ;;  %v1918_v48 = vsub.f32 %v1723_v0, %v1870_v19  ;;  %v1922_v52 = vsub.f32 %v1740_v10, %v1870_v19  ;;  %v1926_v62 = vsub.f32 %v1747_v14, %v1870_v19  ;;  %v1930_v2 = vsub.f32 %v1737_v8, %v1870_v19 }
 0x17d   :  { %v1934_v60 = vsub.f32 %v1743_v12, %v1870_v19  ;;  %v1938_v0 = vsub.f32 %v1760_v22, %v1870_v19  ;;  %v1942_v10 = vsub.f32 %v1767_v26, %v1870_v19  ;;  %v1946_v14 = vsub.f32 %v1757_v20, %v1870_v19 }
 0x17e   :  { %v1950_v8 = vsub.f32 %v3357_v51, %v1870_v19  ;;  %v1954_v12 = vsub.f32 %v3358_v59, %v1870_v19  ;;  %v1958_v22 = vsub.f32 %v3359_v36, %v1870_v19  ;;  %v1962_v26 = vsub.f32 %v3360_v24, %v1870_v19  ;;  %v3366_v51 = vld [vmem:[#allocation10_spill] sm:$0xff]  ;;  %v3367_v36 = vld [vmem:[#allocation12_spill] sm:$0xff] }
 0x17f   :  { %3355 = vst [vmem:[#allocation20_spill] sm:$0xff] %v1942_v10  ;;  %3356 = vst [vmem:[#allocation21_spill] sm:$0xff] %v1946_v14  ;;  %v1966_v20 = vsub.f32 %v3362_v16, %v1870_v19  ;;  %v1970_v9 = vsub.f32 %v3364_v31, %v1870_v19  ;;  %v1974_v49 = vsub.f32 %v3365_v35, %v1870_v19 }
 0x180   :  { %3361 = vst [vmem:[#allocation2_spill] sm:$0xff] %v1962_v26  ;;  %v1978_v59 = vsub.f32 %v3366_v51, %v1870_v19  ;;  %v1982_v24 = vsub.f32 %v3367_v36, %v1870_v19  ;;  %v3368_v26 = vld [vmem:[#allocation15_spill] sm:$0xff]  ;;  %v1994_v35 = vsub.f32 %v1817_v33, %v1870_v19  ;;  %v1998_v51 = vsub.f32 %v1823_v63, %v1870_v19 }
 0x181   :  { %3363 = vst [vmem:[#allocation4_spill] sm:$0xff] %v1966_v20  ;;  %v1986_v16 = vsub.f32 %v3368_v26, %v1870_v19  ;;  %v3369_v20 = vld [vmem:[#allocation16_spill] sm:$0xff]  ;;  %v2002_v36 = vsub.f32 %v1688_v43, %v1870_v19  ;;  %v2006_v26 = vsub.f32 %v1694_v46, %v1870_v19  ;;  %v2014_v33 = vsub.f32 %v1692_v45, %v1870_v19 }
 0x182   :  { %v1990_v31 = vsub.f32 %v3369_v20, %v1870_v19  ;;  %v2010_v20 = vsub.f32 %v1684_v41, %v1870_v19  ;;  %v2018_v63 = vsub.f32 %v1709_v55, %v1870_v19  ;;  %v2022_v43 = vsub.f32 %v1714_v58, %v1870_v19 }
 0x183   :  { %v2026_v46 = vsub.f32 %v1705_v53, %v1870_v19  ;;  %v2030_v41 = vsub.f32 %v1712_v57, %v1870_v19  ;;  %v2034_v45 = vsub.f32 %v1729_v3, %v1870_v19  ;;  %v2038_v55 = vsub.f32 %v1734_v6, %v1870_v19 }
 0x184   :  { %v2042_v58 = vsub.f32 %v1725_v1, %v1870_v19  ;;  %v2046_v53 = vsub.f32 %v1732_v5, %v1870_v19  ;;  %v2050_v57 = vsub.f32 %v1749_v15, %v1870_v19  ;;  %v2054_v3 = vsub.f32 %v1754_v18, %v1870_v19 }
 0x185   :  { %v2058_v6 = vsub.f32 %v1745_v13, %v1870_v19  ;;  %v2062_v1 = vsub.f32 %v1752_v17, %v1870_v19  ;;  %v2066_v5 = vsub.f32 %v1769_v27, %v1870_v19  ;;  %v2070_v15 = vsub.f32 %v1774_v30, %v1870_v19 }
 0x186   :  { %3370 = vst [vmem:[#allocation7_spill] sm:$0xff] %v2042_v58  ;;  %3371 = vst [vmem:[#allocation3_spill] sm:$0xff] %v2046_v53  ;;  %v2074_v18 = vsub.f32 %v1765_v25, %v1870_v19  ;;  %v2078_v13 = vsub.f32 %v1772_v29, %v1870_v19  ;;  %v2082_v17 = vsub.f32 %v1789_v47, %v1870_v19 }
 0x187   :  { %3372 = vst [vmem:[#allocation5_spill] sm:$0xff] %v2050_v57  ;;  %3373 = vst [vmem:[#allocation11_spill] sm:$0xff] %v2054_v3  ;;  %v2102_v47 = vsub.f32 %v1814_v28, %v1870_v19  ;;  %v2122_v28 = vsub.f32 %v1825_v4, %v1870_v19  ;;  %v807_v4 = vmul.f32 %v1890_v37, %v1890_v37 }
 0x188   :  { %3374 = vst [vmem:[#allocation13_spill] sm:$0xff] %v2062_v1  ;;  %3375 = vst [vmem:[#allocation10_spill] sm:$0xff] %v2066_v5  ;;  %v3378_v1 = vld [vmem:[#allocation9_spill] sm:$0xff]  ;;  %v3380_v5 = vld [vmem:[#allocation6_spill] sm:$0xff] }
 0x189   :  { %3376 = vst [vmem:[#allocation12_spill] sm:$0xff] %v2070_v15  ;;  %3377 = vst [vmem:[#allocation15_spill] sm:$0xff] %v2074_v18  ;;  %v2086_v27 = vsub.f32 %v3378_v1, %v1870_v19  ;;  %v2090_v30 = vsub.f32 %v3380_v5, %v1870_v19  ;;  %v3382_v15 = vld [vmem:[#allocation8_spill] sm:$0xff]  ;;  %v3384_v18 = vld [vmem:[#allocation14_spill] sm:$0xff]  ;;  %v2106_v1 = vsub.f32 %v1805_v11, %v1870_v19 }
 0x18a   :  { %v2094_v25 = vsub.f32 %v3382_v15, %v1870_v19  ;;  %v2098_v29 = vsub.f32 %v3384_v18, %v1870_v19  ;;  %3386 = vst [vmem:[#allocation14_spill] sm:$0xff] %v2102_v47  ;;  %v2110_v5 = vsub.f32 %v1812_v23, %v1870_v19  ;;  %v2114_v15 = vsub.f32 %v1829_v7, %v1870_v19 }
 0x18b   :  { %3379 = vst [vmem:[#allocation16_spill] sm:$0xff] %v2086_v27  ;;  %3381 = vst [vmem:[#allocation9_spill] sm:$0xff] %v2090_v30  ;;  %v2118_v18 = vsub.f32 %v1834_v21, %v1870_v19  ;;  %v2126_v11 = vsub.f32 %v1832_v32, %v1870_v19  ;;  %v803_v23 = vmul.f32 %v1874_v61, %v1874_v61 }
 0x18c   :  { %3383 = vst [vmem:[#allocation6_spill] sm:$0xff] %v2094_v25  ;;  %3385 = vst [vmem:[#allocation8_spill] sm:$0xff] %v2098_v29  ;;  %v805_v7 = vmul.f32 %v1882_v34, %v1882_v34  ;;  %v806_v21 = vmul.f32 %v1886_v56, %v1886_v56  ;;  %v808_v32 = vmul.f32 %v1894_v39, %v1894_v39 }
 0x18d   :  { %3387 = vst [vmem:[#allocation22_spill] sm:$0xff] %v2106_v1  ;;  %3388 = vst [vmem:[#allocation23_spill] sm:$0xff] %v2110_v5  ;;  %v804_v5 = vmul.f32 %v1878_v44, %v1878_v44  ;;  %v809_v61 = vmul.f32 %v1898_v42, %v1898_v42  ;;  %v810_v34 = vmul.f32 %v1902_v38, %v1902_v38 }
 0x18e   :  { %3389 = vst [vmem:[#allocation24_spill] sm:$0xff] %v2114_v15  ;;  %3390 = vst [vmem:[#allocation25_spill] sm:$0xff] %v2118_v18 }
 0x18f   :  { %3391 = vst [vmem:[#allocation26_spill] sm:$0xff] %v2122_v28  ;;  %v867_v15 = vadd.f32 %v804_v5, %v803_v23  ;;  %v811_v23 = vmul.f32 %v1906_v40, %v1906_v40 }
 0x191   :  { %v868_v18 = vadd.f32 %v867_v15, %v805_v7  ;;  %v812_v7 = vmul.f32 %v1910_v50, %v1910_v50 }
 0x193   :  { %v869_v28 = vadd.f32 %v868_v18, %v806_v21  ;;  %v813_v21 = vmul.f32 %v1914_v54, %v1914_v54 }
 0x195   :  { %v870_v19 = vadd.f32 %v869_v28, %v807_v4  ;;  %v814_v4 = vmul.f32 %v1918_v48, %v1918_v48 }
 0x197   :  { %v871_v44 = vadd.f32 %v870_v19, %v808_v32  ;;  %v815_v19 = vmul.f32 %v1922_v52, %v1922_v52 }
 0x199   :  { %v872_v5 = vadd.f32 %v871_v44, %v809_v61  ;;  %v816_v44 = vmul.f32 %v1926_v62, %v1926_v62 }
 0x19b   :  { %v873_v15 = vadd.f32 %v872_v5, %v810_v34  ;;  %v817_v5 = vmul.f32 %v1930_v2, %v1930_v2 }
 0x19d   :  { %v874_v18 = vadd.f32 %v873_v15, %v811_v23  ;;  %v818_v15 = vmul.f32 %v1934_v60, %v1934_v60 }
 0x19f   :  { %v875_v28 = vadd.f32 %v874_v18, %v812_v7  ;;  %v819_v18 = vmul.f32 %v1938_v0, %v1938_v0 }
 0x1a1   :  { %v876_v32 = vadd.f32 %v875_v28, %v813_v21  ;;  %v820_v28 = vmul.f32 %v1942_v10, %v1942_v10 }
 0x1a3   :  { %v877_v61 = vadd.f32 %v876_v32, %v814_v4  ;;  %v821_v32 = vmul.f32 %v1946_v14, %v1946_v14 }
 0x1a5   :  { %v878_v34 = vadd.f32 %v877_v61, %v815_v19  ;;  %v822_v61 = vmul.f32 %v1950_v8, %v1950_v8 }
 0x1a7   :  { %v879_v23 = vadd.f32 %v878_v34, %v816_v44  ;;  %v823_v34 = vmul.f32 %v1954_v12, %v1954_v12 }
 0x1a9   :  { %v880_v7 = vadd.f32 %v879_v23, %v817_v5  ;;  %v824_v23 = vmul.f32 %v1958_v22, %v1958_v22 }
 0x1ab   :  { %v881_v21 = vadd.f32 %v880_v7, %v818_v15  ;;  %v3392_v7 = vld [vmem:[#allocation2_spill] sm:$0xff] }
 0x1ac   :  { %v825_v10 = vmul.f32 %v3392_v7, %v3392_v7 }
 0x1ad   :  { %v882_v4 = vadd.f32 %v881_v21, %v819_v18  ;;  %v3393_v21 = vld [vmem:[#allocation4_spill] sm:$0xff] }
 0x1ae   :  { %v826_v14 = vmul.f32 %v3393_v21, %v3393_v21 }
 0x1af   :  { %v883_v19 = vadd.f32 %v882_v4, %v820_v28  ;;  %v827_v4 = vmul.f32 %v1970_v9, %v1970_v9 }
 0x1b1   :  { %v884_v44 = vadd.f32 %v883_v19, %v821_v32  ;;  %v828_v19 = vmul.f32 %v1974_v49, %v1974_v49 }
 0x1b3   :  { %v885_v5 = vadd.f32 %v884_v44, %v822_v61  ;;  %v829_v44 = vmul.f32 %v1978_v59, %v1978_v59 }
 0x1b5   :  { %v886_v15 = vadd.f32 %v885_v5, %v823_v34  ;;  %v830_v5 = vmul.f32 %v1982_v24, %v1982_v24 }
 0x1b7   :  { %v887_v18 = vadd.f32 %v886_v15, %v824_v23  ;;  %v831_v15 = vmul.f32 %v1986_v16, %v1986_v16 }
 0x1b9   :  { %v888_v28 = vadd.f32 %v887_v18, %v825_v10  ;;  %v832_v18 = vmul.f32 %v1990_v31, %v1990_v31 }
 0x1bb   :  { %v889_v32 = vadd.f32 %v888_v28, %v826_v14  ;;  %v833_v28 = vmul.f32 %v1994_v35, %v1994_v35 }
 0x1bd   :  { %v890_v61 = vadd.f32 %v889_v32, %v827_v4  ;;  %v834_v32 = vmul.f32 %v1998_v51, %v1998_v51 }
 0x1bf   :  { %v891_v34 = vadd.f32 %v890_v61, %v828_v19  ;;  %v835_v61 = vmul.f32 %v2002_v36, %v2002_v36 }
 0x1c1   :  { %v892_v23 = vadd.f32 %v891_v34, %v829_v44  ;;  %v836_v34 = vmul.f32 %v2006_v26, %v2006_v26 }
 0x1c3   :  { %v893_v10 = vadd.f32 %v892_v23, %v830_v5  ;;  %v837_v23 = vmul.f32 %v2010_v20, %v2010_v20 }
 0x1c5   :  { %v894_v14 = vadd.f32 %v893_v10, %v831_v15  ;;  %v838_v10 = vmul.f32 %v2014_v33, %v2014_v33 }
 0x1c7   :  { %v895_v4 = vadd.f32 %v894_v14, %v832_v18  ;;  %v839_v14 = vmul.f32 %v2018_v63, %v2018_v63 }
 0x1c9   :  { %v896_v19 = vadd.f32 %v895_v4, %v833_v28  ;;  %v840_v4 = vmul.f32 %v2022_v43, %v2022_v43 }
 0x1cb   :  { %v897_v44 = vadd.f32 %v896_v19, %v834_v32  ;;  %v841_v19 = vmul.f32 %v2026_v46, %v2026_v46 }
 0x1cd   :  { %v898_v5 = vadd.f32 %v897_v44, %v835_v61  ;;  %v842_v44 = vmul.f32 %v2030_v41, %v2030_v41 }
 0x1cf   :  { %v899_v15 = vadd.f32 %v898_v5, %v836_v34  ;;  %v843_v5 = vmul.f32 %v2034_v45, %v2034_v45 }
 0x1d1   :  { %v900_v18 = vadd.f32 %v899_v15, %v837_v23  ;;  %v844_v15 = vmul.f32 %v2038_v55, %v2038_v55 }
 0x1d3   :  { %v901_v28 = vadd.f32 %v900_v18, %v838_v10  ;;  %v845_v18 = vmul.f32 %v2042_v58, %v2042_v58 }
 0x1d5   :  { %v902_v32 = vadd.f32 %v901_v28, %v839_v14  ;;  %v846_v28 = vmul.f32 %v2046_v53, %v2046_v53 }
 0x1d7   :  { %v903_v61 = vadd.f32 %v902_v32, %v840_v4  ;;  %v847_v32 = vmul.f32 %v2050_v57, %v2050_v57 }
 0x1d9   :  { %v904_v34 = vadd.f32 %v903_v61, %v841_v19  ;;  %v848_v61 = vmul.f32 %v2054_v3, %v2054_v3 }
 0x1db   :  { %v905_v23 = vadd.f32 %v904_v34, %v842_v44  ;;  %v849_v34 = vmul.f32 %v2058_v6, %v2058_v6 }
 0x1dd   :  { %v906_v10 = vadd.f32 %v905_v23, %v843_v5  ;;  %v3394_v23 = vld [vmem:[#allocation13_spill] sm:$0xff] }
 0x1de   :  { %v850_v58 = vmul.f32 %v3394_v23, %v3394_v23 }
 0x1df   :  { %v907_v14 = vadd.f32 %v906_v10, %v844_v15  ;;  %v3395_v10 = vld [vmem:[#allocation10_spill] sm:$0xff] }
 0x1e0   :  { %v851_v53 = vmul.f32 %v3395_v10, %v3395_v10 }
 0x1e1   :  { %v908_v4 = vadd.f32 %v907_v14, %v845_v18  ;;  %v3396_v14 = vld [vmem:[#allocation12_spill] sm:$0xff] }
 0x1e2   :  { %v852_v57 = vmul.f32 %v3396_v14, %v3396_v14 }
 0x1e3   :  { %v909_v19 = vadd.f32 %v908_v4, %v846_v28  ;;  %v3397_v4 = vld [vmem:[#allocation15_spill] sm:$0xff] }
 0x1e4   :  { %v853_v3 = vmul.f32 %v3397_v4, %v3397_v4 }
 0x1e5   :  { %v910_v44 = vadd.f32 %v909_v19, %v847_v32  ;;  %v854_v19 = vmul.f32 %v2078_v13, %v2078_v13 }
 0x1e7   :  { %v911_v5 = vadd.f32 %v910_v44, %v848_v61  ;;  %v855_v44 = vmul.f32 %v2082_v17, %v2082_v17 }
 0x1e9   :  { %v912_v15 = vadd.f32 %v911_v5, %v849_v34  ;;  %v856_v5 = vmul.f32 %v2086_v27, %v2086_v27 }
 0x1eb   :  { %v913_v18 = vadd.f32 %v912_v15, %v850_v58  ;;  %v857_v15 = vmul.f32 %v2090_v30, %v2090_v30 }
 0x1ed   :  { %v914_v28 = vadd.f32 %v913_v18, %v851_v53  ;;  %v858_v18 = vmul.f32 %v2094_v25, %v2094_v25 }
 0x1ef   :  { %v915_v32 = vadd.f32 %v914_v28, %v852_v57  ;;  %v859_v28 = vmul.f32 %v2098_v29, %v2098_v29 }
 0x1f1   :  { %v916_v61 = vadd.f32 %v915_v32, %v853_v3  ;;  %v860_v32 = vmul.f32 %v2102_v47, %v2102_v47 }
 0x1f3   :  { %v917_v34 = vadd.f32 %v916_v61, %v854_v19  ;;  %v861_v61 = vmul.f32 %v2106_v1, %v2106_v1 }
 0x1f5   :  { %v918_v58 = vadd.f32 %v917_v34, %v855_v44  ;;  %v3398_v34 = vld [vmem:[#allocation23_spill] sm:$0xff] }
 0x1f6   :  { %v862_v30 = vmul.f32 %v3398_v34, %v3398_v34 }
 0x1f7   :  { %v919_v53 = vadd.f32 %v918_v58, %v856_v5  ;;  %v3399_v58 = vld [vmem:[#allocation24_spill] sm:$0xff] }
 0x1f8   :  { %v863_v25 = vmul.f32 %v3399_v58, %v3399_v58 }
 0x1f9   :  { %v920_v57 = vadd.f32 %v919_v53, %v857_v15  ;;  %v3400_v53 = vld [vmem:[#allocation25_spill] sm:$0xff] }
 0x1fa   :  { %v864_v29 = vmul.f32 %v3400_v53, %v3400_v53 }
 0x1fb   :  { %v921_v3 = vadd.f32 %v920_v57, %v858_v18  ;;  %v3401_v57 = vld [vmem:[#allocation26_spill] sm:$0xff] }
 0x1fc   :  { %v865_v47 = vmul.f32 %v3401_v57, %v3401_v57 }
 0x1fd   :  { %v922_v19 = vadd.f32 %v921_v3, %v859_v28  ;;  %v866_v3 = vmul.f32 %v2126_v11, %v2126_v11 }
 0x1ff   :  { %v923_v44 = vadd.f32 %v922_v19, %v860_v32 }
 0x201   :  { %v924_v5 = vadd.f32 %v923_v44, %v861_v61 }
 0x203   :  { %v925_v15 = vadd.f32 %v924_v5, %v862_v30 }
 0x205   :  { %v926_v18 = vadd.f32 %v925_v15, %v863_v25  ;;  %v3402_v25 = vld [vmem:[#allocation17_spill] sm:$0xff] }
 0x207   :  { %v927_v28 = vadd.f32 %v926_v18, %v864_v29  ;;  %v3403_v29 = vld [vmem:[#allocation18_spill] sm:$0xff] }
 0x209   :  { %v928_v32 = vadd.f32 %v927_v28, %v865_v47  ;;  %v3404_v47 = vld [vmem:[#allocation19_spill] sm:$0xff] }
 0x20b   :  { %v929_v19 = vadd.f32 %v928_v32, %v866_v3  ;;  %v3405_v32 = vld [vmem:[#allocation20_spill] sm:$0xff] }
 0x20d   :  { %v930_v1 = vrot.slane %v929_v19, 4 }
 0x20f   :  { %v931_v34 = vadd.f32 %v930_v1, %v929_v19  ;;  %v3406_v19 = vld [vmem:[#allocation21_spill] sm:$0xff] }
 0x211   :  { %v932_v61 = vrot.slane %v931_v34, 2 }
 0x213   :  { %v933_v44 = vadd.f32 %v932_v61, %v931_v34 }
 0x215   :  { %v934_v27 = vrot.slane %v933_v44, 1 }
 0x217   :  { %v935_v58 = vadd.f32 %v934_v27, %v933_v44 }
 0x219   :  { %v936_v30 = vmul.f32 0.001953125, %v935_v58 }
 0x21b   :  { %v937_v5 = vadd.f32 1e-05, %v936_v30  ;;  %v3407_v30 = vld [vmem:[#allocation7_spill] sm:$0xff] }
 0x21d   :  { %1508 = vrsqrt.f32 %v937_v5  ;;  %v3408_v5 = vld [vmem:[#allocation3_spill] sm:$0xff] }
 0x227   :  { %v2256_v53 = vpop.eup %1508 }
 0x228   :  { %v2260_v15 = vmul.f32 %v2256_v53, %v3402_v25  ;;  %v2264_v18 = vmul.f32 %v2256_v53, %v3403_v29  ;;  %v2268_v1 = vmul.f32 %v2256_v53, %v3404_v47  ;;  %v2272_v27 = vmul.f32 %v2256_v53, %v1886_v56  ;;  %v3409_v25 = vld [vmem:[#allocation5_spill] sm:$0xff]  ;;  %v3410_v29 = vld [vmem:[#allocation11_spill] sm:$0xff] }
 0x229   :  { %v2276_v34 = vmul.f32 %v2256_v53, %v1890_v37  ;;  %v2280_v58 = vmul.f32 %v2256_v53, %v1894_v39  ;;  %v2284_v28 = vmul.f32 %v2256_v53, %v1898_v42  ;;  %v2288_v3 = vmul.f32 %v2256_v53, %v1902_v38 }
 0x22a   :  { %v2292_v56 = vmul.f32 %v2256_v53, %v1906_v40  ;;  %v2296_v37 = vmul.f32 %v2256_v53, %v1910_v50  ;;  %v2300_v39 = vmul.f32 %v2256_v53, %v1914_v54  ;;  %v2304_v42 = vmul.f32 %v2256_v53, %v1918_v48 }
 0x22b   :  { %v2308_v38 = vmul.f32 %v2256_v53, %v1922_v52  ;;  %v2312_v40 = vmul.f32 %v2256_v53, %v1926_v62  ;;  %v2316_v50 = vmul.f32 %v2256_v53, %v1930_v2  ;;  %v2320_v54 = vmul.f32 %v2256_v53, %v1934_v60 }
 0x22c   :  { %v2324_v48 = vmul.f32 %v2256_v53, %v1938_v0  ;;  %v2328_v52 = vmul.f32 %v2256_v53, %v3405_v32  ;;  %v2332_v62 = vmul.f32 %v2256_v53, %v3406_v19  ;;  %v2336_v2 = vmul.f32 %v2256_v53, %v1950_v8 }
 0x22d   :  { %v2340_v60 = vmul.f32 %v2256_v53, %v1954_v12  ;;  %v2344_v0 = vmul.f32 %v2256_v53, %v1958_v22  ;;  %v2348_v61 = vmul.f32 %v2256_v53, %v3392_v7  ;;  %v2352_v44 = vmul.f32 %v2256_v53, %v3393_v21 }
 0x22e   :  { %v2356_v8 = vmul.f32 %v2256_v53, %v1970_v9  ;;  %v2360_v12 = vmul.f32 %v2256_v53, %v1974_v49  ;;  %v2364_v22 = vmul.f32 %v2256_v53, %v1978_v59  ;;  %v2368_v7 = vmul.f32 %v2256_v53, %v1982_v24 }
 0x22f   :  { %v2372_v21 = vmul.f32 %v2256_v53, %v1986_v16  ;;  %v2376_v9 = vmul.f32 %v2256_v53, %v1990_v31  ;;  %v2380_v49 = vmul.f32 %v2256_v53, %v1994_v35  ;;  %v2384_v59 = vmul.f32 %v2256_v53, %v1998_v51 }
 0x230   :  { %v2388_v24 = vmul.f32 %v2256_v53, %v2002_v36  ;;  %v2392_v16 = vmul.f32 %v2256_v53, %v2006_v26  ;;  %v2396_v31 = vmul.f32 %v2256_v53, %v2010_v20  ;;  %v2400_v35 = vmul.f32 %v2256_v53, %v2014_v33 }
 0x231   :  { %v2404_v51 = vmul.f32 %v2256_v53, %v2018_v63  ;;  %v2408_v36 = vmul.f32 %v2256_v53, %v2022_v43  ;;  %v2412_v26 = vmul.f32 %v2256_v53, %v2026_v46  ;;  %v2416_v20 = vmul.f32 %v2256_v53, %v2030_v41 }
 0x232   :  { %v2420_v33 = vmul.f32 %v2256_v53, %v2034_v45  ;;  %v2424_v63 = vmul.f32 %v2256_v53, %v2038_v55  ;;  %v2428_v43 = vmul.f32 %v2256_v53, %v3407_v30  ;;  %v2432_v46 = vmul.f32 %v2256_v53, %v3408_v5  ;;  %v3415_v5 = vld [vmem:[#allocation16_spill] sm:$0xff] }
 0x233   :  { %v2436_v41 = vmul.f32 %v2256_v53, %v3409_v25  ;;  %v2440_v45 = vmul.f32 %v2256_v53, %v3410_v29  ;;  %v2444_v55 = vmul.f32 %v2256_v53, %v2058_v6  ;;  %v2448_v47 = vmul.f32 %v2256_v53, %v3394_v23  ;;  %v3417_v25 = vld [vmem:[#allocation9_spill] sm:$0xff]  ;;  %v3419_v29 = vld [vmem:[#allocation6_spill] sm:$0xff] }
 0x234   :  { %v2452_v32 = vmul.f32 %v2256_v53, %v3395_v10  ;;  %v2456_v19 = vmul.f32 %v2256_v53, %v3396_v14  ;;  %v2460_v30 = vmul.f32 %v2256_v53, %v3397_v4  ;;  %v2464_v6 = vmul.f32 %v2256_v53, %v2078_v13  ;;  %v2485_v13 = vld [vmem:[%s3294_s2] ss:$0 sm:$0xff] }
 0x235   :  { %v2468_v23 = vmul.f32 %v2256_v53, %v2082_v17  ;;  %v2472_v10 = vmul.f32 %v2256_v53, %v3415_v5  ;;  %v2476_v14 = vmul.f32 %v2256_v53, %v3417_v25  ;;  %v2480_v4 = vmul.f32 %v2256_v53, %v3419_v29 }
 0x236   :  { %3411 = vst [vmem:[#allocation2_spill] sm:$0xff] %v2456_v19  ;;  %3412 = vst [vmem:[#allocation4_spill] sm:$0xff] %v2460_v30  ;;  %v3426_v19 = vld [vmem:[#allocation25_spill] sm:$0xff] }
 0x237   :  { %3413 = vst [vmem:[#allocation13_spill] sm:$0xff] %v2464_v6  ;;  %3414 = vst [vmem:[#allocation10_spill] sm:$0xff] %v2468_v23  ;;  %v3421_v6 = vld [vmem:[#allocation8_spill] sm:$0xff]  ;;  %v3422_v23 = vld [vmem:[#allocation14_spill] sm:$0xff] }
 0x238   :  { %3416 = vst [vmem:[#allocation12_spill] sm:$0xff] %v2472_v10  ;;  %3418 = vst [vmem:[#allocation15_spill] sm:$0xff] %v2476_v14  ;;  %v2489_v17 = vmul.f32 %v2256_v53, %v3421_v6  ;;  %v2493_v5 = vmul.f32 %v2256_v53, %v3422_v23  ;;  %v3423_v10 = vld [vmem:[#allocation22_spill] sm:$0xff]  ;;  %v3424_v14 = vld [vmem:[#allocation23_spill] sm:$0xff]  ;;  %v2509_v6 = vmul.f32 %v2256_v53, %v3426_v19 }
 0x239   :  { %3420 = vst [vmem:[#allocation26_spill] sm:$0xff] %v2480_v4  ;;  %v2497_v25 = vmul.f32 %v2256_v53, %v3423_v10  ;;  %v2501_v29 = vmul.f32 %v2256_v53, %v3424_v14  ;;  %v3425_v4 = vld [vmem:[#allocation24_spill] sm:$0xff]  ;;  %v2513_v23 = vmul.f32 %v2256_v53, %v3401_v57  ;;  %v2517_v10 = vmul.f32 %v2256_v53, %v2126_v11 }
 0x23a   :  { %v2505_v30 = vmul.f32 %v2256_v53, %v3425_v4  ;;  %v2521_v14 = vmul.f32 %v2485_v13, %v2260_v15  ;;  %v2525_v4 = vmul.f32 %v2485_v13, %v2264_v18  ;;  %v2529_v19 = vmul.f32 %v2485_v13, %v2268_v1 }
 0x23b   :  { %v2533_v57 = vmul.f32 %v2485_v13, %v2272_v27  ;;  %v2537_v11 = vmul.f32 %v2485_v13, %v2276_v34  ;;  %v2541_v53 = vmul.f32 %v2485_v13, %v2280_v58  ;;  %v2545_v15 = vmul.f32 %v2485_v13, %v2284_v28 }
 0x23c   :  { %v2549_v18 = vmul.f32 %v2485_v13, %v2288_v3  ;;  %v2553_v1 = vmul.f32 %v2485_v13, %v2292_v56  ;;  %v2557_v27 = vmul.f32 %v2485_v13, %v2296_v37  ;;  %v2561_v34 = vmul.f32 %v2485_v13, %v2300_v39 }
 0x23d   :  { %v2565_v58 = vmul.f32 %v2485_v13, %v2304_v42  ;;  %v2569_v28 = vmul.f32 %v2485_v13, %v2308_v38  ;;  %v2573_v3 = vmul.f32 %v2485_v13, %v2312_v40  ;;  %v2577_v56 = vmul.f32 %v2485_v13, %v2316_v50 }
 0x23e   :  { %v2581_v37 = vmul.f32 %v2485_v13, %v2320_v54  ;;  %v2585_v39 = vmul.f32 %v2485_v13, %v2324_v48  ;;  %v2589_v42 = vmul.f32 %v2485_v13, %v2328_v52  ;;  %v2593_v38 = vmul.f32 %v2485_v13, %v2332_v62 }
 0x23f   :  { %v2597_v40 = vmul.f32 %v2485_v13, %v2336_v2  ;;  %v2601_v50 = vmul.f32 %v2485_v13, %v2340_v60  ;;  %v2605_v54 = vmul.f32 %v2485_v13, %v2344_v0  ;;  %v2609_v48 = vmul.f32 %v2485_v13, %v2348_v61 }
 0x240   :  { %v2613_v52 = vmul.f32 %v2485_v13, %v2352_v44  ;;  %v2617_v62 = vmul.f32 %v2485_v13, %v2356_v8  ;;  %v2621_v2 = vmul.f32 %v2485_v13, %v2360_v12  ;;  %v2625_v60 = vmul.f32 %v2485_v13, %v2364_v22 }
 0x241   :  { %v2629_v0 = vmul.f32 %v2485_v13, %v2368_v7  ;;  %v2633_v61 = vmul.f32 %v2485_v13, %v2372_v21  ;;  %v2637_v44 = vmul.f32 %v2485_v13, %v2376_v9  ;;  %v2641_v8 = vmul.f32 %v2485_v13, %v2380_v49 }
 0x242   :  { %v2645_v12 = vmul.f32 %v2485_v13, %v2384_v59  ;;  %v2649_v22 = vmul.f32 %v2485_v13, %v2388_v24  ;;  %v2653_v7 = vmul.f32 %v2485_v13, %v2392_v16  ;;  %v2657_v21 = vmul.f32 %v2485_v13, %v2396_v31 }
 0x243   :  { %v2661_v9 = vmul.f32 %v2485_v13, %v2400_v35  ;;  %v2665_v49 = vmul.f32 %v2485_v13, %v2404_v51  ;;  %v2669_v59 = vmul.f32 %v2485_v13, %v2408_v36  ;;  %v2673_v24 = vmul.f32 %v2485_v13, %v2412_v26 }
 0x244   :  { %v2677_v16 = vmul.f32 %v2485_v13, %v2416_v20  ;;  %v2681_v31 = vmul.f32 %v2485_v13, %v2420_v33  ;;  %v2685_v35 = vmul.f32 %v2485_v13, %v2424_v63  ;;  %v2689_v51 = vmul.f32 %v2485_v13, %v2428_v43 }
 0x245   :  { %v2693_v36 = vmul.f32 %v2485_v13, %v2432_v46  ;;  %v2697_v26 = vmul.f32 %v2485_v13, %v2436_v41  ;;  %v2701_v20 = vmul.f32 %v2485_v13, %v2440_v45  ;;  %v2705_v33 = vmul.f32 %v2485_v13, %v2444_v55  ;;  %v3432_v46 = vld [vmem:[#allocation2_spill] sm:$0xff] }
 0x246   :  { %v2709_v63 = vmul.f32 %v2485_v13, %v2448_v47  ;;  %v2713_v43 = vmul.f32 %v2485_v13, %v2452_v32  ;;  %v2717_v41 = vmul.f32 %v2485_v13, %v3432_v46 }
 0x247   :  { %3427 = vst [vmem:[#allocation17_spill] sm:$0xff] %v2697_v26  ;;  %3428 = vst [vmem:[#allocation18_spill] sm:$0xff] %v2701_v20  ;;  %v3434_v26 = vld [vmem:[#allocation4_spill] sm:$0xff]  ;;  %v3435_v20 = vld [vmem:[#allocation13_spill] sm:$0xff] }
 0x248   :  { %3429 = vst [vmem:[#allocation19_spill] sm:$0xff] %v2705_v33  ;;  %3430 = vst [vmem:[#allocation20_spill] sm:$0xff] %v2709_v63  ;;  %v2721_v45 = vmul.f32 %v2485_v13, %v3434_v26  ;;  %v2725_v55 = vmul.f32 %v2485_v13, %v3435_v20  ;;  %v3436_v33 = vld [vmem:[#allocation10_spill] sm:$0xff]  ;;  %v3437_v63 = vld [vmem:[#allocation12_spill] sm:$0xff] }
 0x249   :  { %3431 = vst [vmem:[#allocation21_spill] sm:$0xff] %v2713_v43  ;;  %3433 = vst [vmem:[#allocation7_spill] sm:$0xff] %v2717_v41  ;;  %v2729_v47 = vmul.f32 %v2485_v13, %v3436_v33  ;;  %v2733_v32 = vmul.f32 %v2485_v13, %v3437_v63  ;;  %v3438_v43 = vld [vmem:[#allocation15_spill] sm:$0xff]  ;;  %v3439_v41 = vld [vmem:[#allocation26_spill] sm:$0xff]  ;;  %v2750_v33 = vmul.f32 %v2485_v13, %v2489_v17 }
 0x24a   :  { %v2737_v46 = vmul.f32 %v2485_v13, %v3438_v43  ;;  %v2741_v26 = vmul.f32 %v2485_v13, %v3439_v41  ;;  %v2746_v20 = vld [vmem:[%s3295_s3] ss:$0 sm:$0xff]  ;;  %v2754_v63 = vmul.f32 %v2485_v13, %v2493_v5  ;;  %v2758_v43 = vmul.f32 %v2485_v13, %v2497_v25 }
 0x24b   :  { %v2762_v41 = vmul.f32 %v2485_v13, %v2501_v29  ;;  %v2770_v17 = vmul.f32 %v2485_v13, %v2509_v6  ;;  %v2774_v5 = vmul.f32 %v2485_v13, %v2513_v23  ;;  %v2778_v25 = vmul.f32 %v2485_v13, %v2517_v10 }
 0x24c   :  { %3440 = vst [vmem:[#allocation3_spill] sm:$0xff] %v2741_v26  ;;  %v2766_v26 = vmul.f32 %v2485_v13, %v2505_v30  ;;  %v2782_v29 = vadd.f32 %v2746_v20, %v2521_v14  ;;  %v2786_v30 = vadd.f32 %v2746_v20, %v2525_v4  ;;  %v2790_v6 = vadd.f32 %v2746_v20, %v2529_v19 }
 0x24d   :  { %v2794_v23 = vadd.f32 %v2746_v20, %v2533_v57  ;;  %v2798_v13 = vadd.f32 %v2746_v20, %v2537_v11  ;;  %v2802_v10 = vadd.f32 %v2746_v20, %v2541_v53  ;;  %v2806_v14 = vadd.f32 %v2746_v20, %v2545_v15 }
 0x24e   :  { %v2810_v4 = vadd.f32 %v2746_v20, %v2549_v18  ;;  %v2814_v19 = vadd.f32 %v2746_v20, %v2553_v1  ;;  %v2818_v57 = vadd.f32 %v2746_v20, %v2557_v27  ;;  %v2822_v11 = vadd.f32 %v2746_v20, %v2561_v34 }
 0x24f   :  { %v2826_v53 = vadd.f32 %v2746_v20, %v2565_v58  ;;  %v2830_v15 = vadd.f32 %v2746_v20, %v2569_v28  ;;  %v2834_v18 = vadd.f32 %v2746_v20, %v2573_v3  ;;  %v2838_v1 = vadd.f32 %v2746_v20, %v2577_v56 }
 0x250   :  { %v2842_v27 = vadd.f32 %v2746_v20, %v2581_v37  ;;  %v2846_v34 = vadd.f32 %v2746_v20, %v2585_v39  ;;  %v2850_v58 = vadd.f32 %v2746_v20, %v2589_v42  ;;  %v2854_v28 = vadd.f32 %v2746_v20, %v2593_v38 }
 0x251   :  { %v2858_v3 = vadd.f32 %v2746_v20, %v2597_v40  ;;  %v2862_v56 = vadd.f32 %v2746_v20, %v2601_v50  ;;  %v2866_v37 = vadd.f32 %v2746_v20, %v2605_v54  ;;  %v2870_v39 = vadd.f32 %v2746_v20, %v2609_v48 }
 0x252   :  { %v2874_v42 = vadd.f32 %v2746_v20, %v2613_v52  ;;  %v2878_v38 = vadd.f32 %v2746_v20, %v2617_v62  ;;  %v2882_v40 = vadd.f32 %v2746_v20, %v2621_v2  ;;  %v2886_v50 = vadd.f32 %v2746_v20, %v2625_v60 }
 0x253   :  { %v2890_v54 = vadd.f32 %v2746_v20, %v2629_v0  ;;  %v2894_v48 = vadd.f32 %v2746_v20, %v2633_v61  ;;  %v2898_v52 = vadd.f32 %v2746_v20, %v2637_v44  ;;  %v2902_v62 = vadd.f32 %v2746_v20, %v2641_v8 }
 0x254   :  { %v2906_v2 = vadd.f32 %v2746_v20, %v2645_v12  ;;  %v2910_v60 = vadd.f32 %v2746_v20, %v2649_v22  ;;  %v2914_v0 = vadd.f32 %v2746_v20, %v2653_v7  ;;  %v2918_v61 = vadd.f32 %v2746_v20, %v2657_v21 }
 0x255   :  { %v2922_v44 = vadd.f32 %v2746_v20, %v2661_v9  ;;  %v2926_v8 = vadd.f32 %v2746_v20, %v2665_v49  ;;  %v2930_v12 = vadd.f32 %v2746_v20, %v2669_v59  ;;  %v2934_v22 = vadd.f32 %v2746_v20, %v2673_v24  ;;  %v3446_v24 = vld [vmem:[#allocation17_spill] sm:$0xff] }
 0x256   :  { %v2938_v7 = vadd.f32 %v2746_v20, %v2677_v16  ;;  %v2942_v21 = vadd.f32 %v2746_v20, %v2681_v31  ;;  %v2946_v9 = vadd.f32 %v2746_v20, %v2685_v35  ;;  %v2950_v49 = vadd.f32 %v2746_v20, %v2689_v51 }
 0x257   :  { %v2954_v59 = vadd.f32 %v2746_v20, %v2693_v36  ;;  %v2958_v16 = vadd.f32 %v2746_v20, %v3446_v24 }
 0x258   :  { %3441 = vst [vmem:[#allocation5_spill] sm:$0xff] %v2938_v7  ;;  %3442 = vst [vmem:[#allocation11_spill] sm:$0xff] %v2942_v21  ;;  %v3447_v7 = vld [vmem:[#allocation18_spill] sm:$0xff]  ;;  %v3448_v21 = vld [vmem:[#allocation19_spill] sm:$0xff] }
 0x259   :  { %3443 = vst [vmem:[#allocation16_spill] sm:$0xff] %v2946_v9  ;;  %3444 = vst [vmem:[#allocation9_spill] sm:$0xff] %v2950_v49  ;;  %v2962_v31 = vadd.f32 %v2746_v20, %v3447_v7  ;;  %v2966_v35 = vadd.f32 %v2746_v20, %v3448_v21  ;;  %v3449_v9 = vld [vmem:[#allocation20_spill] sm:$0xff]  ;;  %v3450_v49 = vld [vmem:[#allocation21_spill] sm:$0xff]  ;;  %v2982_v7 = vadd.f32 %v2746_v20, %v2721_v45 }
 0x25a   :  { %3445 = vst [vmem:[#allocation6_spill] sm:$0xff] %v2954_v59  ;;  %v2970_v51 = vadd.f32 %v2746_v20, %v3449_v9  ;;  %v2974_v36 = vadd.f32 %v2746_v20, %v3450_v49  ;;  %v3451_v59 = vld [vmem:[#allocation7_spill] sm:$0xff]  ;;  %v2986_v21 = vadd.f32 %v2746_v20, %v2725_v55  ;;  %v2990_v9 = vadd.f32 %v2746_v20, %v2729_v47 }
 0x25b   :  { %v2978_v24 = vadd.f32 %v2746_v20, %v3451_v59  ;;  %v2994_v49 = vadd.f32 %v2746_v20, %v2733_v32  ;;  %v2998_v59 = vadd.f32 %v2746_v20, %v2737_v46  ;;  %v3006_v55 = vadd.f32 %v2746_v20, %v2750_v33 }
 0x25c   :  { %v3010_v47 = vadd.f32 %v2746_v20, %v2754_v63  ;;  %v3014_v32 = vadd.f32 %v2746_v20, %v2758_v43  ;;  %v3018_v46 = vadd.f32 %v2746_v20, %v2762_v41  ;;  %v3026_v33 = vadd.f32 %v2746_v20, %v2770_v17 }
 0x25d   :  { %3452 = vst [vmem:[#allocation8_spill] sm:$0xff] %v2978_v24  ;;  %v3453_v24 = vld [vmem:[#allocation3_spill] sm:$0xff]  ;;  %v3030_v63 = vadd.f32 %v2746_v20, %v2774_v5  ;;  %v3034_v43 = vadd.f32 %v2746_v20, %v2778_v25  ;;  %v1146_v41 = vmax.f32 %v2786_v30, 0.0  ;;  %v1150_v17 = vmax.f32 %v2802_v10, 0.0 }
 0x25e   :  { %v3002_v45 = vadd.f32 %v2746_v20, %v3453_v24  ;;  %3454 = vst [vmem:[#allocation14_spill] sm:$0xff] %v3014_v32  ;;  %3455 = vst [vmem:[#allocation22_spill] sm:$0xff] %v3018_v46  ;;  %v3022_v24 = vadd.f32 %v2746_v20, %v2766_v26  ;;  %v1145_v32 = vmax.f32 %v2782_v29, 0.0  ;;  %v1147_v46 = vmax.f32 %v2790_v6, 0.0 }
 0x25f   :  { %3457 = vst [vmem:[#allocation24_spill] sm:$0xff] %v3026_v33  ;;  %3458 = vst [vmem:[#allocation25_spill] sm:$0xff] %v3030_v63  ;;  %v1148_v26 = vmax.f32 %v2794_v23, 0.0  ;;  %v1151_v33 = vmax.f32 %v2806_v14, 0.0  ;;  %v1152_v5 = vmax.f32 %v2810_v4, 0.0  ;;  %v1153_v63 = vmax.f32 %v2814_v19, 0.0 }
 0x260   :  { %3456 = vst [vmem:[#allocation23_spill] sm:$0xff] %v3022_v24  ;;  %v1149_v24 = vmax.f32 %v2798_v13, 0.0  ;;  %v1154_v20 = vmax.f32 %v2818_v57, 0.0  ;;  %v1155_v25 = vmax.f32 %v2822_v11, 0.0  ;;  %v1156_v29 = vmax.f32 %v2826_v53, 0.0  ;;  %1209 = vst [vmem:[%s3296_s4] sm:$0xff] %v1145_v32 }
 0x261   :  { %1210 = vst [vmem:[%s3296_s4 + $0x8] sm:$0xff] %v1146_v41  ;;  %1211 = vst [vmem:[%s3296_s4 + $0x10] sm:$0xff] %v1147_v46  ;;  %v1157_v30 = vmax.f32 %v2830_v15, 0.0  ;;  %v1158_v6 = vmax.f32 %v2834_v18, 0.0  ;;  %v1159_v23 = vmax.f32 %v2838_v1, 0.0  ;;  %v1160_v13 = vmax.f32 %v2842_v27, 0.0 }
 0x262   :  { %1212 = vst [vmem:[%s3296_s4 + $0x18] sm:$0xff] %v1148_v26  ;;  %1213 = vst [vmem:[%s3296_s4 + $0x20] sm:$0xff] %v1149_v24  ;;  %v1161_v10 = vmax.f32 %v2846_v34, 0.0  ;;  %v1162_v14 = vmax.f32 %v2850_v58, 0.0  ;;  %v1163_v4 = vmax.f32 %v2854_v28, 0.0  ;;  %v1164_v19 = vmax.f32 %v2858_v3, 0.0 }
 0x263   :  { %1214 = vst [vmem:[%s3296_s4 + $0x28] sm:$0xff] %v1150_v17  ;;  %1215 = vst [vmem:[%s3296_s4 + $0x30] sm:$0xff] %v1151_v33  ;;  %v1165_v57 = vmax.f32 %v2862_v56, 0.0  ;;  %v1166_v11 = vmax.f32 %v2866_v37, 0.0  ;;  %v1167_v53 = vmax.f32 %v2870_v39, 0.0  ;;  %v1168_v15 = vmax.f32 %v2874_v42, 0.0 }
 0x264   :  { %1216 = vst [vmem:[%s3296_s4 + $0x38] sm:$0xff] %v1152_v5  ;;  %1217 = vst [vmem:[%s3296_s4 + $0x40] sm:$0xff] %v1153_v63  ;;  %v1169_v18 = vmax.f32 %v2878_v38, 0.0  ;;  %v1170_v1 = vmax.f32 %v2882_v40, 0.0  ;;  %v1171_v27 = vmax.f32 %v2886_v50, 0.0  ;;  %v1172_v34 = vmax.f32 %v2890_v54, 0.0 }
 0x265   :  { %1218 = vst [vmem:[%s3296_s4 + $0x48] sm:$0xff] %v1154_v20  ;;  %1219 = vst [vmem:[%s3296_s4 + $0x50] sm:$0xff] %v1155_v25  ;;  %v1173_v58 = vmax.f32 %v2894_v48, 0.0  ;;  %v1174_v28 = vmax.f32 %v2898_v52, 0.0  ;;  %v1175_v3 = vmax.f32 %v2902_v62, 0.0  ;;  %v1176_v56 = vmax.f32 %v2906_v2, 0.0 }
 0x266   :  { %1220 = vst [vmem:[%s3296_s4 + $0x58] sm:$0xff] %v1156_v29  ;;  %1221 = vst [vmem:[%s3296_s4 + $0x60] sm:$0xff] %v1157_v30  ;;  %v1177_v37 = vmax.f32 %v2910_v60, 0.0  ;;  %v1178_v39 = vmax.f32 %v2914_v0, 0.0  ;;  %v1179_v42 = vmax.f32 %v2918_v61, 0.0  ;;  %v1180_v38 = vmax.f32 %v2922_v44, 0.0 }
 0x267   :  { %1222 = vst [vmem:[%s3296_s4 + $0x68] sm:$0xff] %v1158_v6  ;;  %1223 = vst [vmem:[%s3296_s4 + $0x70] sm:$0xff] %v1159_v23  ;;  %v1181_v40 = vmax.f32 %v2926_v8, 0.0  ;;  %v1182_v50 = vmax.f32 %v2930_v12, 0.0  ;;  %v1183_v54 = vmax.f32 %v2934_v22, 0.0  ;;  %v3459_v48 = vld [vmem:[#allocation5_spill] sm:$0xff] }
 0x268   :  { %1224 = vst [vmem:[%s3296_s4 + $0x78] sm:$0xff] %v1160_v13  ;;  %1225 = vst [vmem:[%s3296_s4 + $0x80] sm:$0xff] %v1161_v10  ;;  %v1184_v52 = vmax.f32 %v3459_v48, 0.0  ;;  %v3460_v62 = vld [vmem:[#allocation11_spill] sm:$0xff]  ;;  %v3461_v60 = vld [vmem:[#allocation16_spill] sm:$0xff]  ;;  %v1189_v22 = vmax.f32 %v2958_v16, 0.0 }
 0x269   :  { %1226 = vst [vmem:[%s3296_s4 + $0x88] sm:$0xff] %v1162_v14  ;;  %1227 = vst [vmem:[%s3296_s4 + $0x90] sm:$0xff] %v1163_v4  ;;  %v1185_v2 = vmax.f32 %v3460_v62, 0.0  ;;  %v1186_v0 = vmax.f32 %v3461_v60, 0.0  ;;  %v3462_v61 = vld [vmem:[#allocation9_spill] sm:$0xff]  ;;  %v3463_v8 = vld [vmem:[#allocation6_spill] sm:$0xff] }
 0x26a   :  { %1228 = vst [vmem:[%s3296_s4 + $0x98] sm:$0xff] %v1164_v19  ;;  %1229 = vst [vmem:[%s3296_s4 + $0xa0] sm:$0xff] %v1165_v57  ;;  %v1187_v44 = vmax.f32 %v3462_v61, 0.0  ;;  %v1188_v12 = vmax.f32 %v3463_v8, 0.0  ;;  %v1190_v32 = vmax.f32 %v2962_v31, 0.0  ;;  %v1191_v46 = vmax.f32 %v2966_v35, 0.0 }
 0x26b   :  { %1230 = vst [vmem:[%s3296_s4 + $0xa8] sm:$0xff] %v1166_v11  ;;  %1231 = vst [vmem:[%s3296_s4 + $0xb0] sm:$0xff] %v1167_v53  ;;  %v1192_v24 = vmax.f32 %v2970_v51, 0.0  ;;  %v1193_v16 = vmax.f32 %v2974_v36, 0.0  ;;  %v3464_v31 = vld [vmem:[#allocation8_spill] sm:$0xff]  ;;  %v1195_v51 = vmax.f32 %v2982_v7, 0.0 }
 0x26c   :  { %1232 = vst [vmem:[%s3296_s4 + $0xb8] sm:$0xff] %v1168_v15  ;;  %1233 = vst [vmem:[%s3296_s4 + $0xc0] sm:$0xff] %v1169_v18  ;;  %v1194_v35 = vmax.f32 %v3464_v31, 0.0  ;;  %v1196_v33 = vmax.f32 %v2986_v21, 0.0  ;;  %v1197_v36 = vmax.f32 %v2990_v9, 0.0  ;;  %v1198_v7 = vmax.f32 %v2994_v49, 0.0 }
 0x26d   :  { %1234 = vst [vmem:[%s3296_s4 + $0xc8] sm:$0xff] %v1170_v1  ;;  %1235 = vst [vmem:[%s3296_s4 + $0xd0] sm:$0xff] %v1171_v27  ;;  %v1199_v21 = vmax.f32 %v2998_v59, 0.0  ;;  %v1200_v63 = vmax.f32 %v3002_v45, 0.0  ;;  %v1201_v9 = vmax.f32 %v3006_v55, 0.0  ;;  %v1202_v49 = vmax.f32 %v3010_v47, 0.0 }
 0x26e   :  { %1236 = vst [vmem:[%s3296_s4 + $0xd8] sm:$0xff] %v1172_v34  ;;  %1237 = vst [vmem:[%s3296_s4 + $0xe0] sm:$0xff] %v1173_v58  ;;  %v3465_v59 = vld [vmem:[#allocation14_spill] sm:$0xff]  ;;  %v3467_v55 = vld [vmem:[#allocation23_spill] sm:$0xff]  ;;  %v1208_v29 = vmax.f32 %v3034_v43, 0.0 }
 0x26f   :  { %1238 = vst [vmem:[%s3296_s4 + $0xe8] sm:$0xff] %v1174_v28  ;;  %1239 = vst [vmem:[%s3296_s4 + $0xf0] sm:$0xff] %v1175_v3  ;;  %v1203_v45 = vmax.f32 %v3465_v59, 0.0  ;;  %v3466_v41 = vld [vmem:[#allocation22_spill] sm:$0xff]  ;;  %v1205_v47 = vmax.f32 %v3467_v55, 0.0  ;;  %v3468_v17 = vld [vmem:[#allocation24_spill] sm:$0xff] }
 0x270   :  { %1240 = vst [vmem:[%s3296_s4 + $0xf8] sm:$0xff] %v1176_v56  ;;  %1241 = vst [vmem:[%s3296_s4 + $0x100] sm:$0xff] %v1177_v37  ;;  %v1204_v26 = vmax.f32 %v3466_v41, 0.0  ;;  %v1206_v5 = vmax.f32 %v3468_v17, 0.0  ;;  %v3469_v20 = vld [vmem:[#allocation25_spill] sm:$0xff] }
 0x271   :  { %1242 = vst [vmem:[%s3296_s4 + $0x108] sm:$0xff] %v1178_v39  ;;  %1243 = vst [vmem:[%s3296_s4 + $0x110] sm:$0xff] %v1179_v42  ;;  %v1207_v25 = vmax.f32 %v3469_v20, 0.0 }
 0x272   :  { %1244 = vst [vmem:[%s3296_s4 + $0x118] sm:$0xff] %v1180_v38  ;;  %1245 = vst [vmem:[%s3296_s4 + $0x120] sm:$0xff] %v1181_v40 }
 0x273   :  { %1246 = vst [vmem:[%s3296_s4 + $0x128] sm:$0xff] %v1182_v50  ;;  %1247 = vst [vmem:[%s3296_s4 + $0x130] sm:$0xff] %v1183_v54 }
 0x274   :  { %1248 = vst [vmem:[%s3296_s4 + $0x138] sm:$0xff] %v1184_v52  ;;  %1249 = vst [vmem:[%s3296_s4 + $0x140] sm:$0xff] %v1185_v2 }
 0x275   :  { %1250 = vst [vmem:[%s3296_s4 + $0x148] sm:$0xff] %v1186_v0  ;;  %1251 = vst [vmem:[%s3296_s4 + $0x150] sm:$0xff] %v1187_v44 }
 0x276   :  { %1252 = vst [vmem:[%s3296_s4 + $0x158] sm:$0xff] %v1188_v12  ;;  %1253 = vst [vmem:[%s3296_s4 + $0x160] sm:$0xff] %v1189_v22 }
 0x277   :  { %1254 = vst [vmem:[%s3296_s4 + $0x168] sm:$0xff] %v1190_v32  ;;  %1255 = vst [vmem:[%s3296_s4 + $0x170] sm:$0xff] %v1191_v46 }
 0x278   :  { %1256 = vst [vmem:[%s3296_s4 + $0x178] sm:$0xff] %v1192_v24  ;;  %1257 = vst [vmem:[%s3296_s4 + $0x180] sm:$0xff] %v1193_v16 }
 0x279   :  { %1258 = vst [vmem:[%s3296_s4 + $0x188] sm:$0xff] %v1194_v35  ;;  %1259 = vst [vmem:[%s3296_s4 + $0x190] sm:$0xff] %v1195_v51 }
 0x27a   :  { %1260 = vst [vmem:[%s3296_s4 + $0x198] sm:$0xff] %v1196_v33  ;;  %1261 = vst [vmem:[%s3296_s4 + $0x1a0] sm:$0xff] %v1197_v36 }
 0x27b   :  { %1262 = vst [vmem:[%s3296_s4 + $0x1a8] sm:$0xff] %v1198_v7  ;;  %1263 = vst [vmem:[%s3296_s4 + $0x1b0] sm:$0xff] %v1199_v21 }
 0x27c   :  { %1264 = vst [vmem:[%s3296_s4 + $0x1b8] sm:$0xff] %v1200_v63  ;;  %1265 = vst [vmem:[%s3296_s4 + $0x1c0] sm:$0xff] %v1201_v9 }
 0x27d   :  { %1266 = vst [vmem:[%s3296_s4 + $0x1c8] sm:$0xff] %v1202_v49  ;;  %1267 = vst [vmem:[%s3296_s4 + $0x1d0] sm:$0xff] %v1203_v45 }
 0x27e   :  { %1268 = vst [vmem:[%s3296_s4 + $0x1d8] sm:$0xff] %v1204_v26  ;;  %1269 = vst [vmem:[%s3296_s4 + $0x1e0] sm:$0xff] %v1205_v47 }
 0x27f   :  { %1270 = vst [vmem:[%s3296_s4 + $0x1e8] sm:$0xff] %v1206_v5  ;;  %1271 = vst [vmem:[%s3296_s4 + $0x1f0] sm:$0xff] %v1207_v25 }
 0x280   :  { %1272 = vst [vmem:[%s3296_s4 + $0x1f8] sm:$0xff] %v1208_v29 }

// kernel: vgg_forward.10
= control target key start
LH: loop header
LB: loop body
LE: loop exit
PB: predicated region body
PF: predicated region fallthrough
CT: control target
= control target key end

     0   :  { %v5765_v0 = vmov 0   ;;  %s8823_s1 = inlined_call_operand.vmem [shape: bf16[1152,128], index: 1, kind: input, shape index: {}]   ;;  %s8824_s0 = inlined_call_operand.vmem [shape: bf16[512,1152], index: 0, kind: input, shape index: {}]   ;;  %s8825_s2 = inlined_call_operand.vmem [shape: f32[1,128], index: 2, kind: input, shape index: {}]   ;;  %s8826_s3 = inlined_call_operand.vmem [shape: f32[1,128], index: 3, kind: input, shape index: {}]   ;;  %s8827_s4 = inlined_call_operand.vmem [shape: f32[128,128], index: 4, kind: output, shape index: {}]  }
   0x1   :  { %2386 = vmatprep.subr.bf16.mxu1 %v5765_v0  ;;  %2675 = vmatprep.subr.bf16.mxu0 %v5765_v0  ;;  %v5275_v1 = vld [vmem:[%s8823_s1] sm:$0xff]   ;;  %v5277_v3 = vld [vmem:[%s8823_s1 + $0x8] sm:$0xff]   ;;  %v5279_v5 = vld [vmem:[%s8823_s1 + $0x10] sm:$0xff]  }
   0x2   :  { %v5799_v2 = vld [vmem:[%s8823_s1 + $0x80] sm:$0xff]   ;;  %2387 = vmatpush1.bf16.msra.mxu1 %v5275_v1  ;;  %v5809_v4 = vld [vmem:[%s8823_s1 + $0x88] sm:$0xff]   ;;  %v5820_v6 = vld [vmem:[%s8823_s1 + $0x90] sm:$0xff]  }
   0x3   :  { %2676 = vmatpush1.bf16.msra.mxu0 %v5799_v2  ;;  %2388 = vmatprep.subr.bf16.mxu1 %v5765_v0  ;;  %v5281_v7 = vld [vmem:[%s8823_s1 + $0x18] sm:$0xff]   ;;  %v5283_v9 = vld [vmem:[%s8823_s1 + $0x20] sm:$0xff]   ;;  %v5285_v11 = vld [vmem:[%s8823_s1 + $0x28] sm:$0xff]  }
   0x4   :  { %2677 = vmatprep.subr.bf16.mxu0 %v5765_v0  ;;  %v5831_v8 = vld [vmem:[%s8823_s1 + $0x98] sm:$0xff]   ;;  %v5842_v10 = vld [vmem:[%s8823_s1 + $0xa0] sm:$0xff]   ;;  %v5853_v12 = vld [vmem:[%s8823_s1 + $0xa8] sm:$0xff]  }
   0x5   :  { %v5287_v13 = vld [vmem:[%s8823_s1 + $0x30] sm:$0xff]   ;;  %v5289_v15 = vld [vmem:[%s8823_s1 + $0x38] sm:$0xff]   ;;  %v5291_v17 = vld [vmem:[%s8823_s1 + $0x40] sm:$0xff]  }
   0x6   :  { %2389 = vmatpush1.bf16.msra.mxu1 %v5277_v3  ;;  %v5864_v14 = vld [vmem:[%s8823_s1 + $0xb0] sm:$0xff]   ;;  %v5875_v16 = vld [vmem:[%s8823_s1 + $0xb8] sm:$0xff]   ;;  %v5886_v18 = vld [vmem:[%s8823_s1 + $0xc0] sm:$0xff]  }
   0x7   :  { %2678 = vmatpush1.bf16.msra.mxu0 %v5809_v4  ;;  %2390 = vmatprep.subr.bf16.mxu1 %v5765_v0  ;;  %v5309_v19 = vld [vmem:[%s8824_s0 + $0x4] ss:$36 sps:$4 sm:$0xff]   ;;  %v5312_v21 = vld [vmem:[%s8824_s0 + $0xc] ss:$36 sps:$4 sm:$0xff]   ;;  %v5297_v25 = vld [vmem:[%s8823_s1 + $0x58] sm:$0xff]  }
   0x8   :  { %2679 = vmatprep.subr.bf16.mxu0 %v5765_v0  ;;  %v5293_v20 = vld [vmem:[%s8823_s1 + $0x48] sm:$0xff]   ;;  %2418 = vmatprep.mubr.bf16.mxu1 %v5309_v19  ;;  %v5295_v23 = vld [vmem:[%s8823_s1 + $0x50] sm:$0xff]   ;;  %v5925_v26 = vld [vmem:[%s8823_s1 + $0xd8] sm:$0xff]  }
   0x9   :  { %v5903_v22 = vld [vmem:[%s8823_s1 + $0xc8] sm:$0xff]   ;;  %2707 = vmatprep.mubr.bf16.mxu0 %v5312_v21  ;;  %v5914_v24 = vld [vmem:[%s8823_s1 + $0xd0] sm:$0xff]   ;;  %v5299_v27 = vld [vmem:[%s8823_s1 + $0x60] sm:$0xff]  }
   0xa   :  { %2391 = vmatpush1.bf16.msra.mxu1 %v5279_v5  ;;  %v5936_v28 = vld [vmem:[%s8823_s1 + $0xe0] sm:$0xff]   ;;  %v5301_v29 = vld [vmem:[%s8823_s1 + $0x68] sm:$0xff]   ;;  %v5303_v31 = vld [vmem:[%s8823_s1 + $0x70] sm:$0xff]  }
   0xb   :  { %2680 = vmatpush1.bf16.msra.mxu0 %v5820_v6  ;;  %2392 = vmatprep.subr.bf16.mxu1 %v5765_v0  ;;  %v5947_v30 = vld [vmem:[%s8823_s1 + $0xe8] sm:$0xff]   ;;  %v5958_v32 = vld [vmem:[%s8823_s1 + $0xf0] sm:$0xff]   ;;  %v5305_v33 = vld [vmem:[%s8823_s1 + $0x78] sm:$0xff]  }
   0xc   :  { %2681 = vmatprep.subr.bf16.mxu0 %v5765_v0  ;;  %v5969_v34 = vld [vmem:[%s8823_s1 + $0xf8] sm:$0xff]   ;;  %v5307_v35 = vld [vmem:[%s8824_s0] ss:$36 sps:$4 sm:$0xff]   ;;  %v5310_v36 = vld [vmem:[%s8824_s0 + $0x8] ss:$36 sps:$4 sm:$0xff]  }
   0xd   :  { %v5313_v37 = vld [vmem:[%s8823_s1 + $0x100] sm:$0xff]   ;;  %v5315_v38 = vld [vmem:[%s8824_s0 + $0x4c] ss:$36 sps:$4 sm:$0xff]   ;;  %v5317_v39 = vld [vmem:[%s8824_s0 + $0x54] ss:$36 sps:$4 sm:$0xff]  }
   0xe   :  { %2393 = vmatpush1.bf16.msra.mxu1 %v5281_v7  ;;  %v5314_v40 = vld [vmem:[%s8823_s1 + $0x108] sm:$0xff]   ;;  %v5320_v42 = vld [vmem:[%s8824_s0 + $0x50] ss:$36 sps:$4 sm:$0xff]   ;;  %v5325_v45 = vld [vmem:[%s8824_s0 + $0x9c] ss:$36 sps:$4 sm:$0xff]  }
   0xf   :  { %2682 = vmatpush1.bf16.msra.mxu0 %v5831_v8  ;;  %2394 = vmatprep.subr.bf16.mxu1 %v5765_v0  ;;  %v5319_v41 = vld [vmem:[%s8824_s0 + $0x48] ss:$36 sps:$4 sm:$0xff]   ;;  %v5323_v43 = vld [vmem:[%s8824_s0 + $0x94] ss:$36 sps:$4 sm:$0xff]   ;;  %v5329_v49 = vld [vmem:[%s8823_s1 + $0x120] sm:$0xff]  }
  0x10   :  { %2683 = vmatprep.subr.bf16.mxu0 %v5765_v0  ;;  %v5321_v44 = vld [vmem:[%s8823_s1 + $0x110] sm:$0xff]   ;;  %v5322_v46 = vld [vmem:[%s8823_s1 + $0x118] sm:$0xff]   ;;  %v5333_v51 = vld [vmem:[%s8824_s0 + $0xe4] ss:$36 sps:$4 sm:$0xff]  }
  0x11   :  { %v5327_v47 = vld [vmem:[%s8824_s0 + $0x90] ss:$36 sps:$4 sm:$0xff]   ;;  %v5328_v48 = vld [vmem:[%s8824_s0 + $0x98] ss:$36 sps:$4 sm:$0xff]   ;;  %v5330_v52 = vld [vmem:[%s8823_s1 + $0x128] sm:$0xff]  }
  0x12   :  { %2395 = vmatpush1.bf16.msra.mxu1 %v5283_v9  ;;  %v5331_v50 = vld [vmem:[%s8824_s0 + $0xdc] ss:$36 sps:$4 sm:$0xff]   ;;  %v5339_v55 = vld [vmem:[%s8824_s0 + $0x124] ss:$36 sps:$4 sm:$0xff]   ;;  %v5337_v56 = vld [vmem:[%s8823_s1 + $0x130] sm:$0xff]  }
  0x13   :  { %2684 = vmatpush1.bf16.msra.mxu0 %v5842_v10  ;;  %2396 = vmatprep.subr.bf16.mxu1 %v5765_v0  ;;  %v5335_v53 = vld [vmem:[%s8824_s0 + $0xd8] ss:$36 sps:$4 sm:$0xff]   ;;  %v5336_v54 = vld [vmem:[%s8824_s0 + $0xe0] ss:$36 sps:$4 sm:$0xff]   ;;  %v5341_v57 = vld [vmem:[%s8824_s0 + $0x12c] ss:$36 sps:$4 sm:$0xff]  }
  0x14   :  { %2685 = vmatprep.subr.bf16.mxu0 %v5765_v0  ;;  %v5338_v58 = vld [vmem:[%s8823_s1 + $0x138] sm:$0xff]   ;;  %v5343_v59 = vld [vmem:[%s8824_s0 + $0x120] ss:$36 sps:$4 sm:$0xff]   ;;  %v5344_v60 = vld [vmem:[%s8824_s0 + $0x128] ss:$36 sps:$4 sm:$0xff]  }
  0x15   :  { %v5345_v61 = vld [vmem:[%s8823_s1 + $0x140] sm:$0xff]   ;;  %v5347_v62 = vld [vmem:[%s8824_s0 + $0x16c] ss:$36 sps:$4 sm:$0xff]   ;;  %v5349_v63 = vld [vmem:[%s8824_s0 + $0x174] ss:$36 sps:$4 sm:$0xff]  }
  0x16   :  { %2397 = vmatpush1.bf16.msra.mxu1 %v5285_v11  ;;  %v5346_v1 = vld [vmem:[%s8823_s1 + $0x148] sm:$0xff]   ;;  %v5352_v3 = vld [vmem:[%s8824_s0 + $0x170] ss:$36 sps:$4 sm:$0xff]   ;;  %v5354_v7 = vld [vmem:[%s8823_s1 + $0x158] sm:$0xff]  }
  0x17   :  { %2686 = vmatpush1.bf16.msra.mxu0 %v5853_v12  ;;  %2398 = vmatprep.subr.bf16.mxu1 %v5765_v0  ;;  %v5353_v5 = vld [vmem:[%s8823_s1 + $0x150] sm:$0xff]   ;;  %v5360_v9 = vld [vmem:[%s8824_s0 + $0x1b8] ss:$36 sps:$4 sm:$0xff]  }
  0x18   :  { %2687 = vmatprep.subr.bf16.mxu0 %v5765_v0  ;;  %v5363_v11 = vld [vmem:[%s8824_s0 + $0x1fc] ss:$36 sps:$4 sm:$0xff]   ;;  %v5373_v21 = vld [vmem:[%s8824_s0 + $0x10] ss:$36 sps:$4 sm:$0xff]  }
  0x19   :  { %v5370_v19 = vld [vmem:[%s8823_s1 + $0x178] sm:$0xff]  }
  0x1a   :  { %2399 = vmatpush1.bf16.msra.mxu1 %v5287_v13  ;;  %v5362_v13 = vld [vmem:[%s8823_s1 + $0x168] sm:$0xff]  }
  0x1b   :  { %2688 = vmatpush1.bf16.msra.mxu0 %v5864_v14  ;;  %2400 = vmatprep.subr.bf16.mxu1 %v5765_v0 }
  0x1c   :  { %2689 = vmatprep.subr.bf16.mxu0 %v5765_v0 }
  0x1e   :  { %2401 = vmatpush1.bf16.msra.mxu1 %v5289_v15  ;;  %v5368_v15 = vld [vmem:[%s8824_s0 + $0x200] ss:$36 sps:$4 sm:$0xff]  }
  0x1f   :  { %2690 = vmatpush1.bf16.msra.mxu0 %v5875_v16  ;;  %2402 = vmatprep.subr.bf16.mxu1 %v5765_v0 }
  0x20   :  { %2691 = vmatprep.subr.bf16.mxu0 %v5765_v0 }
  0x22   :  { %2403 = vmatpush1.bf16.msra.mxu1 %v5291_v17  ;;  %v5369_v17 = vld [vmem:[%s8823_s1 + $0x170] sm:$0xff]  }
  0x23   :  { %2692 = vmatpush1.bf16.msra.mxu0 %v5886_v18  ;;  %2404 = vmatprep.subr.bf16.mxu1 %v5765_v0 }
  0x24   :  { %2693 = vmatprep.subr.bf16.mxu0 %v5765_v0 }
  0x26   :  { %2405 = vmatpush1.bf16.msra.mxu1 %v5293_v20  ;;  %v5376_v20 = vld [vmem:[%s8824_s0 + $0x240] ss:$36 sps:$4 sm:$0xff]  }
  0x27   :  { %2694 = vmatpush1.bf16.msra.mxu0 %v5903_v22  ;;  %2406 = vmatprep.subr.bf16.mxu1 %v5765_v0 }
  0x28   :  { %2695 = vmatprep.subr.bf16.mxu0 %v5765_v0 }
  0x2a   :  { %2407 = vmatpush1.bf16.msra.mxu1 %v5295_v23  ;;  %v5377_v23 = vld [vmem:[%s8823_s1 + $0x180] sm:$0xff]  }
  0x2b   :  { %2696 = vmatpush1.bf16.msra.mxu0 %v5914_v24  ;;  %2408 = vmatprep.subr.bf16.mxu1 %v5765_v0 }
  0x2c   :  { %2697 = vmatprep.subr.bf16.mxu0 %v5765_v0 }
  0x2e   :  { %2409 = vmatpush1.bf16.msra.mxu1 %v5297_v25  ;;  %v5382_v25 = vld [vmem:[%s8824_s0 + $0x288] ss:$36 sps:$4 sm:$0xff]  }
  0x2f   :  { %2698 = vmatpush1.bf16.msra.mxu0 %v5925_v26  ;;  %2410 = vmatprep.subr.bf16.mxu1 %v5765_v0 }
  0x30   :  { %2699 = vmatprep.subr.bf16.mxu0 %v5765_v0 }
  0x32   :  { %2411 = vmatpush1.bf16.msra.mxu1 %v5299_v27  ;;  %v5383_v27 = vld [vmem:[%s8824_s0 + $0x58] ss:$36 sps:$4 sm:$0xff]  }
  0x33   :  { %2700 = vmatpush1.bf16.msra.mxu0 %v5936_v28  ;;  %2412 = vmatprep.subr.bf16.mxu1 %v5765_v0 }
  0x34   :  { %2701 = vmatprep.subr.bf16.mxu0 %v5765_v0 }
  0x36   :  { %2413 = vmatpush1.bf16.msra.mxu1 %v5301_v29  ;;  %v5386_v29 = vld [vmem:[%s8824_s0 + $0xa4] ss:$36 sps:$4 sm:$0xff]  }
  0x37   :  { %2702 = vmatpush1.bf16.msra.mxu0 %v5947_v30  ;;  %2414 = vmatprep.subr.bf16.mxu1 %v5765_v0 }
  0x38   :  { %2703 = vmatprep.subr.bf16.mxu0 %v5765_v0 }
  0x3a   :  { %2415 = vmatpush1.bf16.msra.mxu1 %v5303_v31  ;;  %v5388_v31 = vld [vmem:[%s8824_s0 + $0x2d0] ss:$36 sps:$4 sm:$0xff]  }
  0x3b   :  { %2704 = vmatpush1.bf16.msra.mxu0 %v5958_v32  ;;  %2416 = vmatprep.subr.bf16.mxu1 %v5765_v0 }
  0x3c   :  { %2705 = vmatprep.subr.bf16.mxu0 %v5765_v0 }
  0x3e   :  { %2417 = vmatpush1.bf16.msra.mxu1 %v5305_v33  ;;  %v5389_v33 = vld [vmem:[%s8824_s0 + $0xa0] ss:$36 sps:$4 sm:$0xff]  }
  0x3f   :  { %2706 = vmatpush1.bf16.msra.mxu0 %v5969_v34  ;;  %4922 = vmatprep.subr.bf16.mxu1 %v5765_v0 }
  0x40   :  { %2964 = vmatprep.subr.bf16.mxu0 %v5765_v0 }
  0x41   :  { %2419 = vmatmul.mubr.bf16.vlgmr.msra.gmra.mrb[0].mxu1 %v5307_v35  ;;  %v5393_v35 = vld [vmem:[%s8824_s0 + $0xec] ss:$36 sps:$4 sm:$0xff]  }
  0x42   :  { %2708 = vmatmul.mubr.bf16.vlgmr.msra.gmra.mrb[0].mxu0 %v5310_v36  ;;  %4938 = vmatpush1.bf16.msra.mxu1 %v5799_v2  ;;  %v5351_v2 = vld [vmem:[%s8824_s0 + $0x168] ss:$36 sps:$4 sm:$0xff]   ;;  %v5429_v36 = vld [vmem:[%s8823_s1 + $0x1a0] sm:$0xff]  }
  0x43   :  { %2965 = vmatpush1.bf16.msra.mxu0 %v5313_v37  ;;  %2426 = vmatprep.mubr.bf16.mxu1 %v5315_v38  ;;  %v5442_v37 = vld [vmem:[%s8823_s1 + $0x1a8] sm:$0xff]   ;;  %v5395_v38 = vld [vmem:[%s8824_s0 + $0x318] ss:$36 sps:$4 sm:$0xff]  }
  0x44   :  { %2966 = vmatprep.subr.bf16.mxu0 %v5765_v0  ;;  %2715 = vmatprep.mubr.bf16.mxu0 %v5317_v39  ;;  %v5396_v39 = vld [vmem:[%s8824_s0 + $0xe8] ss:$36 sps:$4 sm:$0xff]  }
  0x45   :  { %4923 = vmatprep.subr.bf16.mxu1 %v5765_v0 }
  0x46   :  { %4939 = vmatpush1.bf16.msra.mxu1 %v5809_v4  ;;  %v5355_v4 = vld [vmem:[%s8824_s0 + $0x1b4] ss:$36 sps:$4 sm:$0xff]  }
  0x47   :  { %2967 = vmatpush1.bf16.msra.mxu0 %v5314_v40  ;;  %4924 = vmatprep.subr.bf16.mxu1 %v5765_v0  ;;  %v5397_v40 = vld [vmem:[%s8824_s0 + $0x364] ss:$36 sps:$4 sm:$0xff]  }
  0x48   :  { %2968 = vmatprep.subr.bf16.mxu0 %v5765_v0 }
  0x49   :  { %2427 = vmatmul.mubr.bf16.gmra.mrb[4].mxu1 %v5319_v41  ;;  %v5399_v41 = vld [vmem:[%s8824_s0 + $0x134] ss:$36 sps:$4 sm:$0xff]  }
  0x4a   :  { %2716 = vmatmul.mubr.bf16.gmra.mrb[4].mxu0 %v5320_v42  ;;  %2434 = vmatprep.mubr.bf16.mxu1 %v5323_v43  ;;  %v5455_v42 = vld [vmem:[%s8823_s1 + $0x1b0] sm:$0xff]   ;;  %v5468_v43 = vld [vmem:[%s8823_s1 + $0x1b8] sm:$0xff]  }
  0x4b   :  { %2969 = vmatpush1.bf16.msra.mxu0 %v5321_v44  ;;  %2723 = vmatprep.mubr.bf16.mxu0 %v5325_v45  ;;  %v5401_v44 = vld [vmem:[%s8824_s0 + $0x360] ss:$36 sps:$4 sm:$0xff]   ;;  %v5402_v45 = vld [vmem:[%s8824_s0 + $0x130] ss:$36 sps:$4 sm:$0xff]  }
  0x4c   :  { %2970 = vmatprep.subr.bf16.mxu0 %v5765_v0  ;;  %4940 = vmatpush1.bf16.msra.mxu1 %v5820_v6  ;;  %v5357_v6 = vld [vmem:[%s8824_s0 + $0x1bc] ss:$36 sps:$4 sm:$0xff]  }
  0x4d   :  { %4925 = vmatprep.subr.bf16.mxu1 %v5765_v0 }
  0x4f   :  { %2971 = vmatpush1.bf16.msra.mxu0 %v5322_v46  ;;  %v5404_v46 = vld [vmem:[%s8824_s0 + $0x3ac] ss:$36 sps:$4 sm:$0xff]  }
  0x50   :  { %2972 = vmatprep.subr.bf16.mxu0 %v5765_v0  ;;  %4941 = vmatpush1.bf16.msra.mxu1 %v5831_v8  ;;  %v5359_v8 = vld [vmem:[%s8824_s0 + $0x1b0] ss:$36 sps:$4 sm:$0xff]  }
  0x51   :  { %2435 = vmatmul.mubr.bf16.gmra.mrb[8].mxu1 %v5327_v47  ;;  %4926 = vmatprep.subr.bf16.mxu1 %v5765_v0  ;;  %v5406_v47 = vld [vmem:[%s8824_s0 + $0x17c] ss:$36 sps:$4 sm:$0xff]  }
  0x52   :  { %2724 = vmatmul.mubr.bf16.gmra.mrb[8].mxu0 %v5328_v48  ;;  %2442 = vmatprep.mubr.bf16.mxu1 %v5331_v50  ;;  %v5481_v48 = vld [vmem:[%s8823_s1 + $0x1c0] sm:$0xff]   ;;  %v5408_v50 = vld [vmem:[%s8824_s0 + $0x3a8] ss:$36 sps:$4 sm:$0xff]  }
  0x53   :  { %2973 = vmatpush1.bf16.msra.mxu0 %v5329_v49  ;;  %2731 = vmatprep.mubr.bf16.mxu0 %v5333_v51  ;;  %v5494_v49 = vld [vmem:[%s8823_s1 + $0x1c8] sm:$0xff]   ;;  %v5409_v51 = vld [vmem:[%s8824_s0 + $0x178] ss:$36 sps:$4 sm:$0xff]  }
  0x54   :  { %2974 = vmatprep.subr.bf16.mxu0 %v5765_v0  ;;  %4942 = vmatpush1.bf16.msra.mxu1 %v5842_v10  ;;  %v5361_v10 = vld [vmem:[%s8823_s1 + $0x160] sm:$0xff]  }
  0x55   :  { %4927 = vmatprep.subr.bf16.mxu1 %v5765_v0 }
  0x57   :  { %2975 = vmatpush1.bf16.msra.mxu0 %v5330_v52  ;;  %v5410_v52 = vld [vmem:[%s8824_s0 + $0x3f4] ss:$36 sps:$4 sm:$0xff]  }
  0x58   :  { %2976 = vmatprep.subr.bf16.mxu0 %v5765_v0  ;;  %4943 = vmatpush1.bf16.msra.mxu1 %v5853_v12  ;;  %v5365_v12 = vld [vmem:[%s8824_s0 + $0x204] ss:$36 sps:$4 sm:$0xff]  }
  0x59   :  { %2443 = vmatmul.mubr.bf16.gmra.mrb[12].mxu1 %v5335_v53  ;;  %4928 = vmatprep.subr.bf16.mxu1 %v5765_v0  ;;  %v5412_v53 = vld [vmem:[%s8824_s0 + $0x1c4] ss:$36 sps:$4 sm:$0xff]  }
  0x5a   :  { %2732 = vmatmul.mubr.bf16.gmra.mrb[12].mxu0 %v5336_v54  ;;  %2450 = vmatprep.mubr.bf16.mxu1 %v5339_v55  ;;  %v5507_v54 = vld [vmem:[%s8823_s1 + $0x1d0] sm:$0xff]  }
  0x5b   :  { %2977 = vmatpush1.bf16.msra.mxu0 %v5337_v56  ;;  %2739 = vmatprep.mubr.bf16.mxu0 %v5341_v57  ;;  %v5414_v55 = vld [vmem:[%s8824_s0 + $0x3f0] ss:$36 sps:$4 sm:$0xff]   ;;  %v5415_v56 = vld [vmem:[%s8824_s0 + $0x1c0] ss:$36 sps:$4 sm:$0xff]  }
  0x5c   :  { %2978 = vmatprep.subr.bf16.mxu0 %v5765_v0  ;;  %4944 = vmatpush1.bf16.msra.mxu1 %v5864_v14  ;;  %v5367_v14 = vld [vmem:[%s8824_s0 + $0x1f8] ss:$36 sps:$4 sm:$0xff]  }
  0x5d   :  { %4929 = vmatprep.subr.bf16.mxu1 %v5765_v0  ;;  %v5417_v57 = vld [vmem:[%s8824_s0 + $0x43c] ss:$36 sps:$4 sm:$0xff]  }
  0x5f   :  { %2979 = vmatpush1.bf16.msra.mxu0 %v5338_v58  ;;  %v5419_v58 = vld [vmem:[%s8824_s0 + $0x20c] ss:$36 sps:$4 sm:$0xff]  }
  0x60   :  { %2980 = vmatprep.subr.bf16.mxu0 %v5765_v0  ;;  %4945 = vmatpush1.bf16.msra.mxu1 %v5875_v16  ;;  %v5371_v16 = vld [vmem:[%s8824_s0 + $0x244] ss:$36 sps:$4 sm:$0xff]  }
  0x61   :  { %2451 = vmatmul.mubr.bf16.gmra.mrb[16].mxu1 %v5343_v59  ;;  %4930 = vmatprep.subr.bf16.mxu1 %v5765_v0  ;;  %v5421_v59 = vld [vmem:[%s8824_s0 + $0x438] ss:$36 sps:$4 sm:$0xff]  }
  0x62   :  { %2740 = vmatmul.mubr.bf16.gmra.mrb[16].mxu0 %v5344_v60  ;;  %2458 = vmatprep.mubr.bf16.mxu1 %v5347_v62  ;;  %v5422_v60 = vld [vmem:[%s8824_s0 + $0x208] ss:$36 sps:$4 sm:$0xff]   ;;  %v5520_v62 = vld [vmem:[%s8823_s1 + $0x1d8] sm:$0xff]  }
  0x63   :  { %2981 = vmatpush1.bf16.msra.mxu0 %v5345_v61  ;;  %2747 = vmatprep.mubr.bf16.mxu0 %v5349_v63  ;;  %v5423_v61 = vld [vmem:[%s8824_s0 + $0x484] ss:$36 sps:$4 sm:$0xff]   ;;  %v5425_v63 = vld [vmem:[%s8824_s0 + $0x254] ss:$36 sps:$4 sm:$0xff]  }
  0x64   :  { %2982 = vmatprep.subr.bf16.mxu0 %v5765_v0  ;;  %4946 = vmatpush1.bf16.msra.mxu1 %v5886_v18  ;;  %v5375_v18 = vld [vmem:[%s8824_s0 + $0x14] ss:$36 sps:$4 sm:$0xff]  }
  0x65   :  { %4931 = vmatprep.subr.bf16.mxu1 %v5765_v0 }
  0x67   :  { %2983 = vmatpush1.bf16.msra.mxu0 %v5346_v1  ;;  %v5427_v1 = vld [vmem:[%s8824_s0 + $0x480] ss:$36 sps:$4 sm:$0xff]  }
  0x68   :  { %2984 = vmatprep.subr.bf16.mxu0 %v5765_v0  ;;  %4947 = vmatpush1.bf16.msra.mxu1 %v5903_v22  ;;  %v5378_v22 = vld [vmem:[%s8824_s0 + $0x28c] ss:$36 sps:$4 sm:$0xff]  }
  0x69   :  { %2459 = vmatmul.mubr.bf16.gmra.mrb[20].mxu1 %v5351_v2  ;;  %4932 = vmatprep.subr.bf16.mxu1 %v5765_v0  ;;  %v5428_v2 = vld [vmem:[%s8824_s0 + $0x250] ss:$36 sps:$4 sm:$0xff]  }
  0x6a   :  { %2748 = vmatmul.mubr.bf16.gmra.mrb[20].mxu0 %v5352_v3  ;;  %2466 = vmatprep.mubr.bf16.mxu1 %v5355_v4  ;;  %v5430_v3 = vld [vmem:[%s8824_s0 + $0x4cc] ss:$36 sps:$4 sm:$0xff]   ;;  %v5432_v4 = vld [vmem:[%s8824_s0 + $0x29c] ss:$36 sps:$4 sm:$0xff]  }
  0x6b   :  { %2985 = vmatpush1.bf16.msra.mxu0 %v5353_v5  ;;  %2755 = vmatprep.mubr.bf16.mxu0 %v5357_v6  ;;  %v6325_v5 = vld [vmem:[%s8823_s1 + $0x200] sm:$0xff]   ;;  %v5434_v6 = vld [vmem:[%s8824_s0 + $0x4c8] ss:$36 sps:$4 sm:$0xff]  }
  0x6c   :  { %2986 = vmatprep.subr.bf16.mxu0 %v5765_v0  ;;  %4948 = vmatpush1.bf16.msra.mxu1 %v5914_v24  ;;  %v5380_v24 = vld [vmem:[%s8824_s0 + $0x5c] ss:$36 sps:$4 sm:$0xff]  }
  0x6d   :  { %4933 = vmatprep.subr.bf16.mxu1 %v5765_v0 }
  0x6f   :  { %2987 = vmatpush1.bf16.msra.mxu0 %v5354_v7  ;;  %v5435_v7 = vld [vmem:[%s8824_s0 + $0x298] ss:$36 sps:$4 sm:$0xff]  }
  0x70   :  { %2988 = vmatprep.subr.bf16.mxu0 %v5765_v0  ;;  %4949 = vmatpush1.bf16.msra.mxu1 %v5925_v26  ;;  %v5390_v26 = vld [vmem:[%s8823_s1 + $0x188] sm:$0xff]  }
  0x71   :  { %2467 = vmatmul.mubr.bf16.gmra.mrb[24].mxu1 %v5359_v8  ;;  %4934 = vmatprep.subr.bf16.mxu1 %v5765_v0  ;;  %v5436_v8 = vld [vmem:[%s8824_s0 + $0x514] ss:$36 sps:$4 sm:$0xff]  }
  0x72   :  { %2756 = vmatmul.mubr.bf16.gmra.mrb[24].mxu0 %v5360_v9  ;;  %2474 = vmatprep.mubr.bf16.mxu1 %v5363_v11  ;;  %v5534_v9 = vld [vmem:[%s8823_s1 + $0x1e0] sm:$0xff]   ;;  %v5440_v11 = vld [vmem:[%s8824_s0 + $0x510] ss:$36 sps:$4 sm:$0xff]  }
  0x73   :  { %2989 = vmatpush1.bf16.msra.mxu0 %v5361_v10  ;;  %2763 = vmatprep.mubr.bf16.mxu0 %v5365_v12  ;;  %v5438_v10 = vld [vmem:[%s8824_s0 + $0x2e4] ss:$36 sps:$4 sm:$0xff]  }
  0x74   :  { %2990 = vmatprep.subr.bf16.mxu0 %v5765_v0  ;;  %4950 = vmatpush1.bf16.msra.mxu1 %v5936_v28  ;;  %v5384_v28 = vld [vmem:[%s8824_s0 + $0x2d4] ss:$36 sps:$4 sm:$0xff]   ;;  %v5441_v12 = vld [vmem:[%s8824_s0 + $0x2e0] ss:$36 sps:$4 sm:$0xff]  }
  0x75   :  { %4935 = vmatprep.subr.bf16.mxu1 %v5765_v0 }
  0x77   :  { %2991 = vmatpush1.bf16.msra.mxu0 %v5362_v13  ;;  %v5443_v13 = vld [vmem:[%s8824_s0 + $0x55c] ss:$36 sps:$4 sm:$0xff]  }
  0x78   :  { %2992 = vmatprep.subr.bf16.mxu0 %v5765_v0  ;;  %4951 = vmatpush1.bf16.msra.mxu1 %v5947_v30  ;;  %v5403_v30 = vld [vmem:[%s8823_s1 + $0x190] sm:$0xff]  }
  0x79   :  { %2475 = vmatmul.mubr.bf16.gmra.mrb[28].mxu1 %v5367_v14  ;;  %4936 = vmatprep.subr.bf16.mxu1 %v5765_v0  ;;  %v5445_v14 = vld [vmem:[%s8824_s0 + $0x32c] ss:$36 sps:$4 sm:$0xff]  }
  0x7a   :  { %2764 = vmatmul.mubr.bf16.gmra.mrb[28].mxu0 %v5368_v15  ;;  %2482 = vmatprep.mubr.bf16.mxu1 %v5371_v16  ;;  %v5547_v15 = vld [vmem:[%s8823_s1 + $0x1e8] sm:$0xff]   ;;  %v5447_v16 = vld [vmem:[%s8824_s0 + $0x558] ss:$36 sps:$4 sm:$0xff]  }
  0x7b   :  { %2993 = vmatpush1.bf16.msra.mxu0 %v5369_v17  ;;  %2996 = vmatprep.mubr.bf16.mxu0 %v5375_v18  ;;  %v5448_v17 = vld [vmem:[%s8824_s0 + $0x328] ss:$36 sps:$4 sm:$0xff]  }
  0x7c   :  { %2994 = vmatprep.subr.bf16.mxu0 %v5765_v0  ;;  %4952 = vmatpush1.bf16.msra.mxu1 %v5958_v32  ;;  %v5416_v32 = vld [vmem:[%s8823_s1 + $0x198] sm:$0xff]   ;;  %v5449_v18 = vld [vmem:[%s8824_s0 + $0x5a4] ss:$36 sps:$4 sm:$0xff]  }
  0x7d   :  { %4937 = vmatprep.subr.bf16.mxu1 %v5765_v0 }
  0x7f   :  { %2995 = vmatpush1.bf16.msra.mxu0 %v5370_v19  ;;  %v5451_v19 = vld [vmem:[%s8824_s0 + $0x374] ss:$36 sps:$4 sm:$0xff]  }
  0x80   :  { %3253 = vmatprep.subr.bf16.mxu0 %v5765_v0  ;;  %4953 = vmatpush1.bf16.msra.mxu1 %v5969_v34  ;;  %v5391_v34 = vld [vmem:[%s8824_s0 + $0x31c] ss:$36 sps:$4 sm:$0xff]  }
  0x81   :  { %2483 = vmatmul.mubr.bf16.gmra.mrb[32].mxu1 %v5376_v20  ;;  %4842 = vmatprep.subr.bf16.mxu1 %v6325_v5  ;;  %v5453_v20 = vld [vmem:[%s8824_s0 + $0x5a0] ss:$36 sps:$4 sm:$0xff]  }
  0x82   :  { %2997 = vmatmul.mubr.bf16.vlgmr.msra.gmra.mrb[0].mxu0 %v5373_v21  ;;  %2490 = vmatprep.mubr.bf16.mxu1 %v5378_v22  ;;  %v5454_v21 = vld [vmem:[%s8824_s0 + $0x370] ss:$36 sps:$4 sm:$0xff]  }
  0x83   :  { %3254 = vmatpush1.bf16.msra.mxu0 %v5377_v23  ;;  %3004 = vmatprep.mubr.bf16.mxu0 %v5380_v24  ;;  %v5456_v22 = vld [vmem:[%s8824_s0 + $0x5ec] ss:$36 sps:$4 sm:$0xff]   ;;  %v5458_v23 = vld [vmem:[%s8824_s0 + $0x3bc] ss:$36 sps:$4 sm:$0xff]  }
  0x84   :  { %3255 = vmatprep.subr.bf16.mxu0 %v5765_v0  ;;  %v5561_v24 = vld [vmem:[%s8823_s1 + $0x1f0] sm:$0xff]  }
  0x87   :  { %3256 = vmatpush1.bf16.msra.mxu0 %v5390_v26  ;;  %v5461_v26 = vld [vmem:[%s8824_s0 + $0x3b8] ss:$36 sps:$4 sm:$0xff]  }
  0x88   :  { %3257 = vmatprep.subr.bf16.mxu0 %v5765_v0 }
  0x89   :  { %2491 = vmatmul.mubr.bf16.gmra.mrb[36].mxu1 %v5382_v25  ;;  %v5460_v25 = vld [vmem:[%s8824_s0 + $0x5e8] ss:$36 sps:$4 sm:$0xff]  }
  0x8a   :  { %3005 = vmatmul.mubr.bf16.gmra.mrb[4].mxu0 %v5383_v27  ;;  %2498 = vmatprep.mubr.bf16.mxu1 %v5384_v28  ;;  %v5462_v27 = vld [vmem:[%s8824_s0 + $0x634] ss:$36 sps:$4 sm:$0xff]   ;;  %v5464_v28 = vld [vmem:[%s8824_s0 + $0x404] ss:$36 sps:$4 sm:$0xff]  }
  0x8b   :  { %3012 = vmatprep.mubr.bf16.mxu0 %v5386_v29  ;;  %3258 = vmatpush1.bf16.msra.mxu0 %v5403_v30  ;;  %v5467_v29 = vld [vmem:[%s8824_s0 + $0x400] ss:$36 sps:$4 sm:$0xff]  }
  0x8c   :  { %3259 = vmatprep.subr.bf16.mxu0 %v5765_v0  ;;  %v5469_v30 = vld [vmem:[%s8824_s0 + $0x67c] ss:$36 sps:$4 sm:$0xff]  }
  0x8f   :  { %3260 = vmatpush1.bf16.msra.mxu0 %v5416_v32  ;;  %v5575_v32 = vld [vmem:[%s8823_s1 + $0x1f8] sm:$0xff]  }
  0x90   :  { %3261 = vmatprep.subr.bf16.mxu0 %v5765_v0 }
  0x91   :  { %2499 = vmatmul.mubr.bf16.gmra.mrb[40].mxu1 %v5388_v31  ;;  %v5471_v31 = vld [vmem:[%s8824_s0 + $0x44c] ss:$36 sps:$4 sm:$0xff]  }
  0x92   :  { %3013 = vmatmul.mubr.bf16.gmra.mrb[8].mxu0 %v5389_v33  ;;  %2506 = vmatprep.mubr.bf16.mxu1 %v5391_v34  ;;  %v5473_v33 = vld [vmem:[%s8824_s0 + $0x678] ss:$36 sps:$4 sm:$0xff]   ;;  %v5474_v34 = vld [vmem:[%s8824_s0 + $0x448] ss:$36 sps:$4 sm:$0xff]  }
  0x93   :  { %3020 = vmatprep.mubr.bf16.mxu0 %v5393_v35  ;;  %3262 = vmatpush1.bf16.msra.mxu0 %v5429_v36  ;;  %v5475_v35 = vld [vmem:[%s8824_s0 + $0x6c4] ss:$36 sps:$4 sm:$0xff]   ;;  %v5477_v36 = vld [vmem:[%s8824_s0 + $0x494] ss:$36 sps:$4 sm:$0xff]  }
  0x94   :  { %3263 = vmatprep.subr.bf16.mxu0 %v5765_v0 }
  0x97   :  { %3264 = vmatpush1.bf16.msra.mxu0 %v5442_v37  ;;  %v5479_v37 = vld [vmem:[%s8824_s0 + $0x6c0] ss:$36 sps:$4 sm:$0xff]  }
  0x98   :  { %3265 = vmatprep.subr.bf16.mxu0 %v5765_v0 }
  0x99   :  { %2507 = vmatmul.mubr.bf16.gmra.mrb[44].mxu1 %v5395_v38  ;;  %v5480_v38 = vld [vmem:[%s8824_s0 + $0x490] ss:$36 sps:$4 sm:$0xff]  }
  0x9a   :  { %3021 = vmatmul.mubr.bf16.gmra.mrb[12].mxu0 %v5396_v39  ;;  %2514 = vmatprep.mubr.bf16.mxu1 %v5397_v40  ;;  %v5482_v39 = vld [vmem:[%s8824_s0 + $0x70c] ss:$36 sps:$4 sm:$0xff]   ;;  %v5484_v40 = vld [vmem:[%s8824_s0 + $0x4dc] ss:$36 sps:$4 sm:$0xff]  }
  0x9b   :  { %3028 = vmatprep.mubr.bf16.mxu0 %v5399_v41  ;;  %3266 = vmatpush1.bf16.msra.mxu0 %v5455_v42  ;;  %v5486_v41 = vld [vmem:[%s8824_s0 + $0x708] ss:$36 sps:$4 sm:$0xff]   ;;  %v5487_v42 = vld [vmem:[%s8824_s0 + $0x4d8] ss:$36 sps:$4 sm:$0xff]  }
  0x9c   :  { %3267 = vmatprep.subr.bf16.mxu0 %v5765_v0 }
  0x9f   :  { %3268 = vmatpush1.bf16.msra.mxu0 %v5468_v43  ;;  %v5488_v43 = vld [vmem:[%s8824_s0 + $0x754] ss:$36 sps:$4 sm:$0xff]  }
  0xa0   :  { %3269 = vmatprep.subr.bf16.mxu0 %v5765_v0 }
  0xa1   :  { %2515 = vmatmul.mubr.bf16.gmra.mrb[48].mxu1 %v5401_v44  ;;  %v5490_v44 = vld [vmem:[%s8824_s0 + $0x524] ss:$36 sps:$4 sm:$0xff]  }
  0xa2   :  { %3029 = vmatmul.mubr.bf16.gmra.mrb[16].mxu0 %v5402_v45  ;;  %2522 = vmatprep.mubr.bf16.mxu1 %v5404_v46  ;;  %v5492_v45 = vld [vmem:[%s8824_s0 + $0x750] ss:$36 sps:$4 sm:$0xff]   ;;  %v5493_v46 = vld [vmem:[%s8824_s0 + $0x520] ss:$36 sps:$4 sm:$0xff]  }
  0xa3   :  { %3036 = vmatprep.mubr.bf16.mxu0 %v5406_v47  ;;  %3270 = vmatpush1.bf16.msra.mxu0 %v5481_v48  ;;  %v5495_v47 = vld [vmem:[%s8824_s0 + $0x79c] ss:$36 sps:$4 sm:$0xff]   ;;  %v5497_v48 = vld [vmem:[%s8824_s0 + $0x56c] ss:$36 sps:$4 sm:$0xff]  }
  0xa4   :  { %3271 = vmatprep.subr.bf16.mxu0 %v5765_v0 }
  0xa7   :  { %3272 = vmatpush1.bf16.msra.mxu0 %v5494_v49 }
  0xa8   :  { %3273 = vmatprep.subr.bf16.mxu0 %v5765_v0 }
  0xa9   :  { %2523 = vmatmul.mubr.bf16.gmra.mrb[52].mxu1 %v5408_v50 }
  0xaa   :  { %3037 = vmatmul.mubr.bf16.gmra.mrb[20].mxu0 %v5409_v51  ;;  %2530 = vmatprep.mubr.bf16.mxu1 %v5410_v52  ;;  %v5499_v51 = vld [vmem:[%s8824_s0 + $0x798] ss:$36 sps:$4 sm:$0xff]  }
  0xab   :  { %3044 = vmatprep.mubr.bf16.mxu0 %v5412_v53  ;;  %3274 = vmatpush1.bf16.msra.mxu0 %v5507_v54  ;;  %v5500_v53 = vld [vmem:[%s8824_s0 + $0x568] ss:$36 sps:$4 sm:$0xff]  }
  0xac   :  { %3275 = vmatprep.subr.bf16.mxu0 %v5765_v0  ;;  %v5501_v54 = vld [vmem:[%s8824_s0 + $0x7e4] ss:$36 sps:$4 sm:$0xff]  }
  0xaf   :  { %3276 = vmatpush1.bf16.msra.mxu0 %v5520_v62  ;;  %v5508_v62 = vld [vmem:[%s8824_s0 + $0x82c] ss:$36 sps:$4 sm:$0xff]  }
  0xb0   :  { %3277 = vmatprep.subr.bf16.mxu0 %v5765_v0 }
  0xb1   :  { %2531 = vmatmul.mubr.bf16.gmra.mrb[56].mxu1 %v5414_v55 }
  0xb2   :  { %3045 = vmatmul.mubr.bf16.gmra.mrb[24].mxu0 %v5415_v56  ;;  %2538 = vmatprep.mubr.bf16.mxu1 %v5417_v57  ;;  %v5503_v56 = vld [vmem:[%s8824_s0 + $0x5b4] ss:$36 sps:$4 sm:$0xff]  }
  0xb3   :  { %3052 = vmatprep.mubr.bf16.mxu0 %v5419_v58  ;;  %3278 = vmatpush1.bf16.msra.mxu0 %v5534_v9 }
  0xb4   :  { %3279 = vmatprep.subr.bf16.mxu0 %v5765_v0 }
  0xb7   :  { %3280 = vmatpush1.bf16.msra.mxu0 %v5547_v15  ;;  %v5519_v15 = vld [vmem:[%s8824_s0 + $0x640] ss:$36 sps:$4 sm:$0xff]  }
  0xb8   :  { %3281 = vmatprep.subr.bf16.mxu0 %v5765_v0 }
  0xb9   :  { %2539 = vmatmul.mubr.bf16.gmra.mrb[60].mxu1 %v5421_v59  ;;  %v5505_v59 = vld [vmem:[%s8824_s0 + $0x7e0] ss:$36 sps:$4 sm:$0xff]  }
  0xba   :  { %3053 = vmatmul.mubr.bf16.gmra.mrb[28].mxu0 %v5422_v60  ;;  %2546 = vmatprep.mubr.bf16.mxu1 %v5423_v61  ;;  %v5506_v61 = vld [vmem:[%s8824_s0 + $0x5b0] ss:$36 sps:$4 sm:$0xff]  }
  0xbb   :  { %3060 = vmatprep.mubr.bf16.mxu0 %v5425_v63  ;;  %3282 = vmatpush1.bf16.msra.mxu0 %v5561_v24  ;;  %v5529_v24 = vld [vmem:[%s8824_s0 + $0x24c] ss:$36 sps:$4 sm:$0xff]  }
  0xbc   :  { %3283 = vmatprep.subr.bf16.mxu0 %v5765_v0  ;;  %v5466_v0 = vld [vmem:[%s8824_s0 + $0x630] ss:$36 sps:$4 sm:$0xff]  }
  0xbf   :  { %3284 = vmatpush1.bf16.msra.mxu0 %v5575_v32  ;;  %v5535_v32 = vld [vmem:[%s8824_s0 + $0x294] ss:$36 sps:$4 sm:$0xff]  }
  0xc1   :  { %2547 = vmatmul.mubr.bf16.gmra.mrb[64].mxu1 %v5427_v1  ;;  %v5510_v1 = vld [vmem:[%s8824_s0 + $0x5fc] ss:$36 sps:$4 sm:$0xff]  }
  0xc2   :  { %3061 = vmatmul.mubr.bf16.gmra.mrb[32].mxu0 %v5428_v2  ;;  %2554 = vmatprep.mubr.bf16.mxu1 %v5430_v3 }
  0xc3   :  { %3068 = vmatprep.mubr.bf16.mxu0 %v5432_v4  ;;  %v5512_v4 = vld [vmem:[%s8824_s0 + $0x828] ss:$36 sps:$4 sm:$0xff]  }
  0xc9   :  { %2555 = vmatmul.mubr.bf16.gmra.mrb[68].mxu1 %v5434_v6 }
  0xca   :  { %3069 = vmatmul.mubr.bf16.gmra.mrb[36].mxu0 %v5435_v7  ;;  %2562 = vmatprep.mubr.bf16.mxu1 %v5436_v8  ;;  %v5513_v7 = vld [vmem:[%s8824_s0 + $0x5f8] ss:$36 sps:$4 sm:$0xff]  }
  0xcb   :  { %3076 = vmatprep.mubr.bf16.mxu0 %v5438_v10  ;;  %v5514_v8 = vld [vmem:[%s8824_s0 + $0x874] ss:$36 sps:$4 sm:$0xff]   ;;  %v5516_v10 = vld [vmem:[%s8824_s0 + $0x644] ss:$36 sps:$4 sm:$0xff]  }
  0xd1   :  { %2563 = vmatmul.mubr.bf16.gmra.mrb[72].mxu1 %v5440_v11 }
  0xd2   :  { %3077 = vmatmul.mubr.bf16.gmra.mrb[40].mxu0 %v5441_v12  ;;  %2570 = vmatprep.mubr.bf16.mxu1 %v5443_v13  ;;  %v5518_v13 = vld [vmem:[%s8824_s0 + $0x870] ss:$36 sps:$4 sm:$0xff]  }
  0xd3   :  { %3084 = vmatprep.mubr.bf16.mxu0 %v5445_v14 }
  0xd9   :  { %2571 = vmatmul.mubr.bf16.gmra.mrb[76].mxu1 %v5447_v16  ;;  %v5521_v16 = vld [vmem:[%s8824_s0 + $0x8bc] ss:$36 sps:$4 sm:$0xff]  }
  0xda   :  { %3085 = vmatmul.mubr.bf16.gmra.mrb[44].mxu0 %v5448_v17  ;;  %2578 = vmatprep.mubr.bf16.mxu1 %v5449_v18  ;;  %v5523_v18 = vld [vmem:[%s8824_s0 + $0x68c] ss:$36 sps:$4 sm:$0xff]  }
  0xdb   :  { %3092 = vmatprep.mubr.bf16.mxu0 %v5451_v19 }
  0xe1   :  { %2579 = vmatmul.mubr.bf16.gmra.mrb[80].mxu1 %v5453_v20 }
  0xe2   :  { %3093 = vmatmul.mubr.bf16.gmra.mrb[48].mxu0 %v5454_v21  ;;  %2586 = vmatprep.mubr.bf16.mxu1 %v5456_v22  ;;  %v5525_v21 = vld [vmem:[%s8824_s0 + $0x8b8] ss:$36 sps:$4 sm:$0xff]  }
  0xe3   :  { %3100 = vmatprep.mubr.bf16.mxu0 %v5458_v23  ;;  %v5526_v23 = vld [vmem:[%s8824_s0 + $0x688] ss:$36 sps:$4 sm:$0xff]  }
  0xe9   :  { %2587 = vmatmul.mubr.bf16.gmra.mrb[84].mxu1 %v5460_v25 }
  0xea   :  { %3101 = vmatmul.mubr.bf16.gmra.mrb[52].mxu0 %v5461_v26  ;;  %2594 = vmatprep.mubr.bf16.mxu1 %v5462_v27  ;;  %v5530_v26 = vld [vmem:[%s8824_s0 + $0x6d4] ss:$36 sps:$4 sm:$0xff]  }
  0xeb   :  { %3108 = vmatprep.mubr.bf16.mxu0 %v5464_v28 }
  0xf1   :  { %2595 = vmatmul.mubr.bf16.gmra.mrb[88].mxu1 %v5466_v0  ;;  %v5527_v0 = vld [vmem:[%s8824_s0 + $0x248] ss:$36 sps:$4 sm:$0xff]  }
  0xf2   :  { %3109 = vmatmul.mubr.bf16.gmra.mrb[56].mxu0 %v5467_v29  ;;  %2602 = vmatprep.mubr.bf16.mxu1 %v5469_v30  ;;  %v5532_v30 = vld [vmem:[%s8824_s0 + $0x6d0] ss:$36 sps:$4 sm:$0xff]  }
  0xf3   :  { %3116 = vmatprep.mubr.bf16.mxu0 %v5471_v31 }
  0xf9   :  { %2603 = vmatmul.mubr.bf16.gmra.mrb[92].mxu1 %v5473_v33  ;;  %v5537_v33 = vld [vmem:[%s8824_s0 + $0x71c] ss:$36 sps:$4 sm:$0xff]  }
  0xfa   :  { %3117 = vmatmul.mubr.bf16.gmra.mrb[60].mxu0 %v5474_v34  ;;  %2610 = vmatprep.mubr.bf16.mxu1 %v5475_v35  ;;  %v5554_v34 = vld [vmem:[%s8823_s1 + $0x208] sm:$0xff]   ;;  %v5574_v35 = vld [vmem:[%s8823_s1 + $0x210] sm:$0xff]  }
  0xfb   :  { %3124 = vmatprep.mubr.bf16.mxu0 %v5477_v36 }
 0x101   :  { %2611 = vmatmul.mubr.bf16.gmra.mrb[96].mxu1 %v5479_v37 }
 0x102   :  { %3125 = vmatmul.mubr.bf16.gmra.mrb[64].mxu0 %v5480_v38  ;;  %2618 = vmatprep.mubr.bf16.mxu1 %v5482_v39  ;;  %v5539_v38 = vld [vmem:[%s8824_s0 + $0x290] ss:$36 sps:$4 sm:$0xff]  }
 0x103   :  { %3132 = vmatprep.mubr.bf16.mxu0 %v5484_v40  ;;  %v5541_v40 = vld [vmem:[%s8824_s0 + $0x2dc] ss:$36 sps:$4 sm:$0xff]  }
 0x109   :  { %2619 = vmatmul.mubr.bf16.gmra.mrb[100].mxu1 %v5486_v41 }
 0x10a   :  { %3133 = vmatmul.mubr.bf16.gmra.mrb[68].mxu0 %v5487_v42  ;;  %2626 = vmatprep.mubr.bf16.mxu1 %v5488_v43  ;;  %v5543_v42 = vld [vmem:[%s8824_s0 + $0x764] ss:$36 sps:$4 sm:$0xff]   ;;  %v5594_v43 = vld [vmem:[%s8823_s1 + $0x218] sm:$0xff]  }
 0x10b   :  { %3140 = vmatprep.mubr.bf16.mxu0 %v5490_v44 }
 0x111   :  { %2627 = vmatmul.mubr.bf16.gmra.mrb[104].mxu1 %v5492_v45  ;;  %v5613_v45 = vld [vmem:[%s8823_s1 + $0x220] sm:$0xff]  }
 0x112   :  { %3141 = vmatmul.mubr.bf16.gmra.mrb[72].mxu0 %v5493_v46  ;;  %2634 = vmatprep.mubr.bf16.mxu1 %v5495_v47  ;;  %v5545_v47 = vld [vmem:[%s8824_s0 + $0x2d8] ss:$36 sps:$4 sm:$0xff]  }
 0x113   :  { %3148 = vmatprep.mubr.bf16.mxu0 %v5497_v48 }
 0x114   :  { %v6463_v49 = vpop.f32.mrb[0].mxu1 }
 0x115   :  { %v2422_v50 = vpop.f32.mrb[1].mxu1 }
 0x116   :  { %v6468_v52 = vpop.f32.mrb[2].mxu1  ;;  %v5546_v50 = vld [vmem:[%s8824_s0 + $0x760] ss:$36 sps:$4 sm:$0xff]  }
 0x117   :  { %v2425_v55 = vpop.f32.mrb[3].mxu1 }
 0x118   :  { %v5632_v55 = vld [vmem:[%s8823_s1 + $0x228] sm:$0xff]  }
 0x119   :  { %2635 = vmatmul.mubr.bf16.gmra.mrb[108].mxu1 %v5499_v51  ;;  %v5548_v51 = vld [vmem:[%s8824_s0 + $0x324] ss:$36 sps:$4 sm:$0xff]  }
 0x11a   :  { %3149 = vmatmul.mubr.bf16.gmra.mrb[76].mxu0 %v5500_v53  ;;  %2642 = vmatprep.mubr.bf16.mxu1 %v5501_v54  ;;  %v5550_v54 = vld [vmem:[%s8824_s0 + $0x7ac] ss:$36 sps:$4 sm:$0xff]  }
 0x11b   :  { %3156 = vmatprep.mubr.bf16.mxu0 %v5503_v56  ;;  %v5651_v56 = vld [vmem:[%s8823_s1 + $0x230] sm:$0xff]  }
 0x11c   :  { %v6479_v57 = vpop.f32.mrb[4].mxu1 }
 0x11d   :  { %v2430_v58 = vpop.f32.mrb[5].mxu1 }
 0x11e   :  { %v6484_v60 = vpop.f32.mrb[6].mxu1  ;;  %v5552_v58 = vld [vmem:[%s8824_s0 + $0x320] ss:$36 sps:$4 sm:$0xff]  }
 0x11f   :  { %v2433_v63 = vpop.f32.mrb[7].mxu1 }
 0x120   :  { %v5559_v63 = vld [vmem:[%s8824_s0 + $0x368] ss:$36 sps:$4 sm:$0xff]  }
 0x121   :  { %2643 = vmatmul.mubr.bf16.gmra.mrb[112].mxu1 %v5505_v59  ;;  %v5553_v59 = vld [vmem:[%s8824_s0 + $0x7a8] ss:$36 sps:$4 sm:$0xff]  }
 0x122   :  { %3157 = vmatmul.mubr.bf16.gmra.mrb[80].mxu0 %v5506_v61  ;;  %2650 = vmatprep.mubr.bf16.mxu1 %v5508_v62  ;;  %v5555_v61 = vld [vmem:[%s8824_s0 + $0x36c] ss:$36 sps:$4 sm:$0xff]   ;;  %v5557_v62 = vld [vmem:[%s8824_s0 + $0x7f4] ss:$36 sps:$4 sm:$0xff]  }
 0x123   :  { %3164 = vmatprep.mubr.bf16.mxu0 %v5510_v1  ;;  %v5560_v1 = vld [vmem:[%s8824_s0 + $0x7f0] ss:$36 sps:$4 sm:$0xff]  }
 0x124   :  { %v6495_v2 = vpop.f32.mrb[8].mxu1 }
 0x125   :  { %v2438_v3 = vpop.f32.mrb[9].mxu1 }
 0x126   :  { %v6500_v6 = vpop.f32.mrb[10].mxu1  ;;  %v5562_v3 = vld [vmem:[%s8824_s0 + $0x3b4] ss:$36 sps:$4 sm:$0xff]  }
 0x127   :  { %v2441_v9 = vpop.f32.mrb[11].mxu1 }
 0x128   :  { %v5568_v9 = vld [vmem:[%s8824_s0 + $0x3fc] ss:$36 sps:$4 sm:$0xff]  }
 0x129   :  { %2651 = vmatmul.mubr.bf16.gmra.mrb[116].mxu1 %v5512_v4  ;;  %v5564_v4 = vld [vmem:[%s8824_s0 + $0x83c] ss:$36 sps:$4 sm:$0xff]  }
 0x12a   :  { %3165 = vmatmul.mubr.bf16.gmra.mrb[84].mxu0 %v5513_v7  ;;  %2658 = vmatprep.mubr.bf16.mxu1 %v5514_v8  ;;  %v5566_v7 = vld [vmem:[%s8824_s0 + $0x3b0] ss:$36 sps:$4 sm:$0xff]   ;;  %v5567_v8 = vld [vmem:[%s8824_s0 + $0x838] ss:$36 sps:$4 sm:$0xff]  }
 0x12b   :  { %3172 = vmatprep.mubr.bf16.mxu0 %v5516_v10  ;;  %v5570_v10 = vld [vmem:[%s8824_s0 + $0x884] ss:$36 sps:$4 sm:$0xff]  }
 0x12c   :  { %v6511_v11 = vpop.f32.mrb[12].mxu1 }
 0x12d   :  { %v2446_v12 = vpop.f32.mrb[13].mxu1 }
 0x12e   :  { %v6516_v14 = vpop.f32.mrb[14].mxu1  ;;  %v5670_v12 = vld [vmem:[%s8823_s1 + $0x238] sm:$0xff]  }
 0x12f   :  { %v2449_v17 = vpop.f32.mrb[15].mxu1 }
 0x130   :  { %v5578_v17 = vld [vmem:[%s8824_s0 + $0x8cc] ss:$36 sps:$4 sm:$0xff]  }
 0x131   :  { %2659 = vmatmul.mubr.bf16.gmra.mrb[120].mxu1 %v5518_v13  ;;  %v5572_v13 = vld [vmem:[%s8824_s0 + $0x3f8] ss:$36 sps:$4 sm:$0xff]  }
 0x132   :  { %3173 = vmatmul.mubr.bf16.gmra.mrb[88].mxu0 %v5519_v15  ;;  %2666 = vmatprep.mubr.bf16.mxu1 %v5521_v16  ;;  %v5573_v15 = vld [vmem:[%s8824_s0 + $0x880] ss:$36 sps:$4 sm:$0xff]  }
 0x133   :  { %3180 = vmatprep.mubr.bf16.mxu0 %v5523_v18  ;;  %v5576_v16 = vld [vmem:[%s8824_s0 + $0x444] ss:$36 sps:$4 sm:$0xff]  }
 0x134   :  { %v6527_v19 = vpop.f32.mrb[16].mxu1  ;;  %v5580_v18 = vld [vmem:[%s8824_s0 + $0x440] ss:$36 sps:$4 sm:$0xff]  }
 0x135   :  { %v2454_v20 = vpop.f32.mrb[17].mxu1 }
 0x136   :  { %v6532_v22 = vpop.f32.mrb[18].mxu1  ;;  %v5581_v20 = vld [vmem:[%s8824_s0 + $0x8c8] ss:$36 sps:$4 sm:$0xff]  }
 0x137   :  { %v2457_v25 = vpop.f32.mrb[19].mxu1 }
 0x138   :  { %v5584_v25 = vld [vmem:[%s8824_s0 + $0x18] ss:$36 sps:$4 sm:$0xff]  }
 0x139   :  { %2667 = vmatmul.mubr.bf16.gmra.mrb[124].mxu1 %v5525_v21  ;;  %v5582_v21 = vld [vmem:[%s8824_s0 + $0x48c] ss:$36 sps:$4 sm:$0xff]  }
 0x13a   :  { %3181 = vmatmul.mubr.bf16.gmra.mrb[92].mxu0 %v5526_v23  ;;  %2771 = vmatprep.mubr.bf16.mxu1 %v5529_v24  ;;  %v5586_v23 = vld [vmem:[%s8824_s0 + $0x1c] ss:$36 sps:$4 sm:$0xff]   ;;  %v5587_v24 = vld [vmem:[%s8824_s0 + $0x488] ss:$36 sps:$4 sm:$0xff]  }
 0x13b   :  { %3188 = vmatprep.mubr.bf16.mxu0 %v5530_v26  ;;  %v5588_v26 = vld [vmem:[%s8824_s0 + $0x4d4] ss:$36 sps:$4 sm:$0xff]  }
 0x13c   :  { %v6543_v27 = vpop.f32.mrb[20].mxu1 }
 0x13d   :  { %v2462_v28 = vpop.f32.mrb[21].mxu1 }
 0x13e   :  { %v6548_v29 = vpop.f32.mrb[22].mxu1  ;;  %v5590_v28 = vld [vmem:[%s8824_s0 + $0x64] ss:$36 sps:$4 sm:$0xff]  }
 0x13f   :  { %v2465_v31 = vpop.f32.mrb[23].mxu1 }
 0x140   :  { %v5595_v31 = vld [vmem:[%s8824_s0 + $0x51c] ss:$36 sps:$4 sm:$0xff]  }
 0x141   :  { %2772 = vmatmul.mubr.bf16.vlgmr.msra.gmra.mrb[32].mxu1 %v5527_v0  ;;  %v5592_v0 = vld [vmem:[%s8824_s0 + $0x4d0] ss:$36 sps:$4 sm:$0xff]  }
 0x142   :  { %3189 = vmatmul.mubr.bf16.gmra.mrb[96].mxu0 %v5532_v30  ;;  %4843 = vmatpush3.bf16.msra.mxu1 %v6325_v5  ;;  %v5540_v5 = vld [vmem:[%s8824_s0 + $0x718] ss:$36 sps:$4 sm:$0xff]   ;;  %v5593_v30 = vld [vmem:[%s8824_s0 + $0x60] ss:$36 sps:$4 sm:$0xff]  }
 0x143   :  { %2779 = vmatprep.mubr.bf16.mxu1 %v5535_v32  ;;  %3196 = vmatprep.mubr.bf16.mxu0 %v5537_v33  ;;  %v5597_v32 = vld [vmem:[%s8824_s0 + $0xac] ss:$36 sps:$4 sm:$0xff]   ;;  %v5599_v33 = vld [vmem:[%s8824_s0 + $0x518] ss:$36 sps:$4 sm:$0xff]  }
 0x144   :  { %v6566_v36 = vpop.f32.mrb[24].mxu1  ;;  %4844 = vmatprep.subr.bf16.mxu1 %v5554_v34 }
 0x145   :  { %v2470_v37 = vpop.f32.mrb[25].mxu1 }
 0x146   :  { %v6571_v39 = vpop.f32.mrb[26].mxu1  ;;  %4845 = vmatpush3.bf16.msra.mxu1 %v5554_v34  ;;  %v5600_v34 = vld [vmem:[%s8824_s0 + $0xa8] ss:$36 sps:$4 sm:$0xff]   ;;  %v5603_v37 = vld [vmem:[%s8824_s0 + $0xf4] ss:$36 sps:$4 sm:$0xff]  }
 0x147   :  { %v2473_v41 = vpop.f32.mrb[27].mxu1  ;;  %4846 = vmatprep.subr.bf16.mxu1 %v5574_v35 }
 0x148   :  { %v5609_v41 = vld [vmem:[%s8824_s0 + $0x13c] ss:$36 sps:$4 sm:$0xff]  }
 0x149   :  { %2780 = vmatmul.mubr.bf16.gmra.mrb[36].mxu1 %v5539_v38  ;;  %v5605_v38 = vld [vmem:[%s8824_s0 + $0x560] ss:$36 sps:$4 sm:$0xff]  }
 0x14a   :  { %3197 = vmatmul.mubr.bf16.gmra.mrb[100].mxu0 %v5540_v5  ;;  %2787 = vmatprep.mubr.bf16.mxu1 %v5541_v40  ;;  %v5606_v5 = vld [vmem:[%s8824_s0 + $0xf0] ss:$36 sps:$4 sm:$0xff]  }
 0x14b   :  { %3204 = vmatprep.mubr.bf16.mxu0 %v5543_v42  ;;  %4847 = vmatpush3.bf16.msra.mxu1 %v5574_v35  ;;  %v5601_v35 = vld [vmem:[%s8824_s0 + $0x564] ss:$36 sps:$4 sm:$0xff]   ;;  %v5607_v40 = vld [vmem:[%s8824_s0 + $0x5ac] ss:$36 sps:$4 sm:$0xff]  }
 0x14c   :  { %v6585_v44 = vpop.f32.mrb[28].mxu1  ;;  %4848 = vmatprep.subr.bf16.mxu1 %v5594_v43  ;;  %v5611_v42 = vld [vmem:[%s8824_s0 + $0x5a8] ss:$36 sps:$4 sm:$0xff]  }
 0x14d   :  { %v2478_v46 = vpop.f32.mrb[29].mxu1 }
 0x14e   :  { %v6593_v48 = vpop.f32.mrb[30].mxu1  ;;  %v5616_v46 = vld [vmem:[%s8824_s0 + $0x184] ss:$36 sps:$4 sm:$0xff]  }
 0x14f   :  { %v2481_v53 = vpop.f32.mrb[31].mxu1  ;;  %4849 = vmatpush3.bf16.msra.mxu1 %v5594_v43  ;;  %v5612_v43 = vld [vmem:[%s8824_s0 + $0x138] ss:$36 sps:$4 sm:$0xff]  }
 0x150   :  { %4850 = vmatprep.subr.bf16.mxu1 %v5613_v45  ;;  %v5622_v53 = vld [vmem:[%s8824_s0 + $0x1cc] ss:$36 sps:$4 sm:$0xff]  }
 0x151   :  { %2788 = vmatmul.mubr.bf16.gmra.mrb[40].mxu1 %v5545_v47  ;;  %v5618_v47 = vld [vmem:[%s8824_s0 + $0x5f0] ss:$36 sps:$4 sm:$0xff]  }
 0x152   :  { %3205 = vmatmul.mubr.bf16.gmra.mrb[104].mxu0 %v5546_v50  ;;  %2795 = vmatprep.mubr.bf16.mxu1 %v5548_v51  ;;  %v5619_v50 = vld [vmem:[%s8824_s0 + $0x180] ss:$36 sps:$4 sm:$0xff]  }
 0x153   :  { %3212 = vmatprep.mubr.bf16.mxu0 %v5550_v54  ;;  %4851 = vmatpush3.bf16.msra.mxu1 %v5613_v45  ;;  %v5614_v45 = vld [vmem:[%s8824_s0 + $0x5f4] ss:$36 sps:$4 sm:$0xff]   ;;  %v5620_v51 = vld [vmem:[%s8824_s0 + $0x63c] ss:$36 sps:$4 sm:$0xff]  }
 0x154   :  { %4852 = vmatprep.subr.bf16.mxu1 %v5632_v55  ;;  %v5624_v54 = vld [vmem:[%s8824_s0 + $0x638] ss:$36 sps:$4 sm:$0xff]  }
 0x157   :  { %4853 = vmatpush3.bf16.msra.mxu1 %v5632_v55  ;;  %v5625_v55 = vld [vmem:[%s8824_s0 + $0x1c8] ss:$36 sps:$4 sm:$0xff]  }
 0x158   :  { %4854 = vmatprep.subr.bf16.mxu1 %v5651_v56 }
 0x159   :  { %2796 = vmatmul.mubr.bf16.gmra.mrb[44].mxu1 %v5552_v58  ;;  %v5628_v58 = vld [vmem:[%s8824_s0 + $0x214] ss:$36 sps:$4 sm:$0xff]  }
 0x15a   :  { %3213 = vmatmul.mubr.bf16.gmra.mrb[108].mxu0 %v5553_v59  ;;  %2803 = vmatprep.mubr.bf16.mxu1 %v5555_v61  ;;  %v5630_v59 = vld [vmem:[%s8824_s0 + $0x680] ss:$36 sps:$4 sm:$0xff]   ;;  %v5631_v61 = vld [vmem:[%s8824_s0 + $0x210] ss:$36 sps:$4 sm:$0xff]  }
 0x15b   :  { %3220 = vmatprep.mubr.bf16.mxu0 %v5557_v62  ;;  %4855 = vmatpush3.bf16.msra.mxu1 %v5651_v56  ;;  %v5626_v56 = vld [vmem:[%s8824_s0 + $0x684] ss:$36 sps:$4 sm:$0xff]   ;;  %v5633_v62 = vld [vmem:[%s8824_s0 + $0x6cc] ss:$36 sps:$4 sm:$0xff]  }
 0x15c   :  { %4856 = vmatprep.subr.bf16.mxu1 %v5670_v12 }
 0x15f   :  { %4857 = vmatpush3.bf16.msra.mxu1 %v5670_v12  ;;  %v5647_v12 = vld [vmem:[%s8824_s0 + $0x2ec] ss:$36 sps:$4 sm:$0xff]  }
 0x161   :  { %2804 = vmatmul.mubr.bf16.gmra.mrb[48].mxu1 %v5559_v63  ;;  %v5635_v63 = vld [vmem:[%s8824_s0 + $0x25c] ss:$36 sps:$4 sm:$0xff]  }
 0x162   :  { %3221 = vmatmul.mubr.bf16.gmra.mrb[112].mxu0 %v5560_v1  ;;  %2811 = vmatprep.mubr.bf16.mxu1 %v5562_v3  ;;  %v5637_v1 = vld [vmem:[%s8824_s0 + $0x6c8] ss:$36 sps:$4 sm:$0xff]   ;;  %v5638_v3 = vld [vmem:[%s8824_s0 + $0x258] ss:$36 sps:$4 sm:$0xff]  }
 0x163   :  { %3228 = vmatprep.mubr.bf16.mxu0 %v5564_v4  ;;  %v5639_v4 = vld [vmem:[%s8824_s0 + $0x714] ss:$36 sps:$4 sm:$0xff]  }
 0x169   :  { %2812 = vmatmul.mubr.bf16.gmra.mrb[52].mxu1 %v5566_v7  ;;  %v5641_v7 = vld [vmem:[%s8824_s0 + $0x2a4] ss:$36 sps:$4 sm:$0xff]  }
 0x16a   :  { %3229 = vmatmul.mubr.bf16.gmra.mrb[116].mxu0 %v5567_v8  ;;  %2819 = vmatprep.mubr.bf16.mxu1 %v5568_v9  ;;  %v5643_v8 = vld [vmem:[%s8824_s0 + $0x710] ss:$36 sps:$4 sm:$0xff]   ;;  %v5644_v9 = vld [vmem:[%s8824_s0 + $0x2a0] ss:$36 sps:$4 sm:$0xff]  }
 0x16b   :  { %3236 = vmatprep.mubr.bf16.mxu0 %v5570_v10  ;;  %v5645_v10 = vld [vmem:[%s8824_s0 + $0x75c] ss:$36 sps:$4 sm:$0xff]  }
 0x171   :  { %2820 = vmatmul.mubr.bf16.gmra.mrb[56].mxu1 %v5572_v13  ;;  %v5649_v13 = vld [vmem:[%s8824_s0 + $0x758] ss:$36 sps:$4 sm:$0xff]  }
 0x172   :  { %3237 = vmatmul.mubr.bf16.gmra.mrb[120].mxu0 %v5573_v15  ;;  %2827 = vmatprep.mubr.bf16.mxu1 %v5576_v16  ;;  %v5650_v15 = vld [vmem:[%s8824_s0 + $0x2e8] ss:$36 sps:$4 sm:$0xff]  }
 0x173   :  { %3244 = vmatprep.mubr.bf16.mxu0 %v5578_v17  ;;  %v5652_v16 = vld [vmem:[%s8824_s0 + $0x7a4] ss:$36 sps:$4 sm:$0xff]   ;;  %v5654_v17 = vld [vmem:[%s8824_s0 + $0x334] ss:$36 sps:$4 sm:$0xff]  }
 0x179   :  { %2828 = vmatmul.mubr.bf16.gmra.mrb[60].mxu1 %v5580_v18  ;;  %v5656_v18 = vld [vmem:[%s8824_s0 + $0x7a0] ss:$36 sps:$4 sm:$0xff]  }
 0x17a   :  { %3245 = vmatmul.mubr.bf16.gmra.mrb[124].mxu0 %v5581_v20  ;;  %2835 = vmatprep.mubr.bf16.mxu1 %v5582_v21  ;;  %v5657_v20 = vld [vmem:[%s8824_s0 + $0x330] ss:$36 sps:$4 sm:$0xff]  }
 0x17b   :  { %3285 = vmatprep.mubr.bf16.mxu0 %v5586_v23  ;;  %v5658_v21 = vld [vmem:[%s8824_s0 + $0x7ec] ss:$36 sps:$4 sm:$0xff]   ;;  %v5660_v23 = vld [vmem:[%s8824_s0 + $0x37c] ss:$36 sps:$4 sm:$0xff]  }
 0x181   :  { %2836 = vmatmul.mubr.bf16.gmra.mrb[64].mxu1 %v5587_v24  ;;  %v5662_v24 = vld [vmem:[%s8824_s0 + $0x7e8] ss:$36 sps:$4 sm:$0xff]  }
 0x182   :  { %3286 = vmatmul.mubr.bf16.vlgmr.msra.gmra.mrb[0].mxu0 %v5584_v25  ;;  %2843 = vmatprep.mubr.bf16.mxu1 %v5588_v26  ;;  %v5663_v25 = vld [vmem:[%s8824_s0 + $0x378] ss:$36 sps:$4 sm:$0xff]  }
 0x183   :  { %3293 = vmatprep.mubr.bf16.mxu0 %v5590_v28  ;;  %v5664_v26 = vld [vmem:[%s8824_s0 + $0x834] ss:$36 sps:$4 sm:$0xff]   ;;  %v5666_v28 = vld [vmem:[%s8824_s0 + $0x3c4] ss:$36 sps:$4 sm:$0xff]  }
 0x189   :  { %2844 = vmatmul.mubr.bf16.gmra.mrb[68].mxu1 %v5592_v0  ;;  %v5668_v0 = vld [vmem:[%s8824_s0 + $0x830] ss:$36 sps:$4 sm:$0xff]  }
 0x18a   :  { %3294 = vmatmul.mubr.bf16.gmra.mrb[4].mxu0 %v5593_v30  ;;  %2851 = vmatprep.mubr.bf16.mxu1 %v5595_v31  ;;  %v5669_v30 = vld [vmem:[%s8824_s0 + $0x3c0] ss:$36 sps:$4 sm:$0xff]  }
 0x18b   :  { %3301 = vmatprep.mubr.bf16.mxu0 %v5597_v32  ;;  %v5671_v31 = vld [vmem:[%s8824_s0 + $0x87c] ss:$36 sps:$4 sm:$0xff]   ;;  %v5673_v32 = vld [vmem:[%s8824_s0 + $0x40c] ss:$36 sps:$4 sm:$0xff]  }
 0x191   :  { %2852 = vmatmul.mubr.bf16.gmra.mrb[72].mxu1 %v5599_v33  ;;  %v5675_v33 = vld [vmem:[%s8824_s0 + $0x878] ss:$36 sps:$4 sm:$0xff]  }
 0x192   :  { %3302 = vmatmul.mubr.bf16.gmra.mrb[8].mxu0 %v5600_v34  ;;  %2859 = vmatprep.mubr.bf16.mxu1 %v5601_v35  ;;  %v5676_v34 = vld [vmem:[%s8824_s0 + $0x408] ss:$36 sps:$4 sm:$0xff]  }
 0x193   :  { %3309 = vmatprep.mubr.bf16.mxu0 %v5603_v37  ;;  %v5677_v35 = vld [vmem:[%s8824_s0 + $0x8c4] ss:$36 sps:$4 sm:$0xff]   ;;  %v5679_v37 = vld [vmem:[%s8824_s0 + $0x454] ss:$36 sps:$4 sm:$0xff]  }
 0x199   :  { %2860 = vmatmul.mubr.bf16.gmra.mrb[76].mxu1 %v5605_v38  ;;  %v5681_v38 = vld [vmem:[%s8824_s0 + $0x8c0] ss:$36 sps:$4 sm:$0xff]  }
 0x19a   :  { %3310 = vmatmul.mubr.bf16.gmra.mrb[12].mxu0 %v5606_v5  ;;  %2867 = vmatprep.mubr.bf16.mxu1 %v5607_v40  ;;  %v5682_v5 = vld [vmem:[%s8824_s0 + $0x450] ss:$36 sps:$4 sm:$0xff]   ;;  %v5685_v40 = vld [vmem:[%s8824_s0 + $0x20] ss:$36 sps:$4 sm:$0xff]  }
 0x19b   :  { %3317 = vmatprep.mubr.bf16.mxu0 %v5609_v41  ;;  %v5683_v41 = vld [vmem:[%s8824_s0 + $0x49c] ss:$36 sps:$4 sm:$0xff]  }
 0x1a1   :  { %2868 = vmatmul.mubr.bf16.gmra.mrb[80].mxu1 %v5611_v42  ;;  %v5687_v42 = vld [vmem:[%s8824_s0 + $0x68] ss:$36 sps:$4 sm:$0xff]  }
 0x1a2   :  { %3318 = vmatmul.mubr.bf16.gmra.mrb[16].mxu0 %v5612_v43  ;;  %2875 = vmatprep.mubr.bf16.mxu1 %v5614_v45  ;;  %v5686_v43 = vld [vmem:[%s8824_s0 + $0x498] ss:$36 sps:$4 sm:$0xff]   ;;  %v5690_v45 = vld [vmem:[%s8824_s0 + $0xb0] ss:$36 sps:$4 sm:$0xff]  }
 0x1a3   :  { %3325 = vmatprep.mubr.bf16.mxu0 %v5616_v46  ;;  %v5688_v46 = vld [vmem:[%s8824_s0 + $0x4e4] ss:$36 sps:$4 sm:$0xff]  }
 0x1a9   :  { %2876 = vmatmul.mubr.bf16.gmra.mrb[84].mxu1 %v5618_v47  ;;  %v5692_v47 = vld [vmem:[%s8824_s0 + $0xf8] ss:$36 sps:$4 sm:$0xff]  }
 0x1aa   :  { %3326 = vmatmul.mubr.bf16.gmra.mrb[20].mxu0 %v5619_v50  ;;  %2883 = vmatprep.mubr.bf16.mxu1 %v5620_v51  ;;  %v5691_v50 = vld [vmem:[%s8824_s0 + $0x4e0] ss:$36 sps:$4 sm:$0xff]  }
 0x1ab   :  { %3333 = vmatprep.mubr.bf16.mxu0 %v5622_v53  ;;  %v5695_v51 = vld [vmem:[%s8824_s0 + $0x140] ss:$36 sps:$4 sm:$0xff]   ;;  %v5693_v53 = vld [vmem:[%s8824_s0 + $0x52c] ss:$36 sps:$4 sm:$0xff]  }
 0x1b1   :  { %2884 = vmatmul.mubr.bf16.gmra.mrb[88].mxu1 %v5624_v54  ;;  %v5697_v54 = vld [vmem:[%s8824_s0 + $0x188] ss:$36 sps:$4 sm:$0xff]  }
 0x1b2   :  { %3334 = vmatmul.mubr.bf16.gmra.mrb[24].mxu0 %v5625_v55  ;;  %2891 = vmatprep.mubr.bf16.mxu1 %v5626_v56  ;;  %v5696_v55 = vld [vmem:[%s8824_s0 + $0x528] ss:$36 sps:$4 sm:$0xff]   ;;  %v5700_v56 = vld [vmem:[%s8824_s0 + $0x1d0] ss:$36 sps:$4 sm:$0xff]  }
 0x1b3   :  { %3341 = vmatprep.mubr.bf16.mxu0 %v5628_v58  ;;  %v5698_v58 = vld [vmem:[%s8824_s0 + $0x574] ss:$36 sps:$4 sm:$0xff]  }
 0x1b9   :  { %2892 = vmatmul.mubr.bf16.gmra.mrb[92].mxu1 %v5630_v59 }
 0x1ba   :  { %3342 = vmatmul.mubr.bf16.gmra.mrb[28].mxu0 %v5631_v61  ;;  %2899 = vmatprep.mubr.bf16.mxu1 %v5633_v62  ;;  %v5702_v62 = vld [vmem:[%s8824_s0 + $0x218] ss:$36 sps:$4 sm:$0xff]  }
 0x1bb   :  { %3349 = vmatprep.mubr.bf16.mxu0 %v5635_v63 }
 0x1c1   :  { %2900 = vmatmul.mubr.bf16.gmra.mrb[96].mxu1 %v5637_v1  ;;  %v5701_v1 = vld [vmem:[%s8824_s0 + $0x570] ss:$36 sps:$4 sm:$0xff]  }
 0x1c2   :  { %3350 = vmatmul.mubr.bf16.gmra.mrb[32].mxu0 %v5638_v3  ;;  %2907 = vmatprep.mubr.bf16.mxu1 %v5639_v4  ;;  %v5705_v3 = vld [vmem:[%s8824_s0 + $0x260] ss:$36 sps:$4 sm:$0xff]  }
 0x1c3   :  { %3357 = vmatprep.mubr.bf16.mxu0 %v5641_v7  ;;  %v5703_v7 = vld [vmem:[%s8824_s0 + $0x5bc] ss:$36 sps:$4 sm:$0xff]  }
 0x1c9   :  { %2908 = vmatmul.mubr.bf16.gmra.mrb[100].mxu1 %v5643_v8 }
 0x1ca   :  { %3358 = vmatmul.mubr.bf16.gmra.mrb[36].mxu0 %v5644_v9  ;;  %2915 = vmatprep.mubr.bf16.mxu1 %v5645_v10  ;;  %v5707_v10 = vld [vmem:[%s8824_s0 + $0x2a8] ss:$36 sps:$4 sm:$0xff]  }
 0x1cb   :  { %3365 = vmatprep.mubr.bf16.mxu0 %v5647_v12 }
 0x1d1   :  { %2916 = vmatmul.mubr.bf16.gmra.mrb[104].mxu1 %v5649_v13  ;;  %v5706_v13 = vld [vmem:[%s8824_s0 + $0x5b8] ss:$36 sps:$4 sm:$0xff]  }
 0x1d2   :  { %3366 = vmatmul.mubr.bf16.gmra.mrb[40].mxu0 %v5650_v15  ;;  %2923 = vmatprep.mubr.bf16.mxu1 %v5652_v16  ;;  %v5710_v15 = vld [vmem:[%s8824_s0 + $0x2f0] ss:$36 sps:$4 sm:$0xff]  }
 0x1d3   :  { %3373 = vmatprep.mubr.bf16.mxu0 %v5654_v17  ;;  %v5708_v17 = vld [vmem:[%s8824_s0 + $0x604] ss:$36 sps:$4 sm:$0xff]  }
 0x1d9   :  { %2924 = vmatmul.mubr.bf16.gmra.mrb[108].mxu1 %v5656_v18 }
 0x1da   :  { %3374 = vmatmul.mubr.bf16.gmra.mrb[44].mxu0 %v5657_v20  ;;  %2931 = vmatprep.mubr.bf16.mxu1 %v5658_v21  ;;  %v5712_v21 = vld [vmem:[%s8824_s0 + $0x338] ss:$36 sps:$4 sm:$0xff]  }
 0x1db   :  { %3381 = vmatprep.mubr.bf16.mxu0 %v5660_v23 }
 0x1e1   :  { %2932 = vmatmul.mubr.bf16.gmra.mrb[112].mxu1 %v5662_v24  ;;  %v5711_v24 = vld [vmem:[%s8824_s0 + $0x600] ss:$36 sps:$4 sm:$0xff]  }
 0x1e2   :  { %3382 = vmatmul.mubr.bf16.gmra.mrb[48].mxu0 %v5663_v25  ;;  %2939 = vmatprep.mubr.bf16.mxu1 %v5664_v26  ;;  %v5715_v25 = vld [vmem:[%s8824_s0 + $0x380] ss:$36 sps:$4 sm:$0xff]  }
 0x1e3   :  { %3389 = vmatprep.mubr.bf16.mxu0 %v5666_v28  ;;  %v5713_v28 = vld [vmem:[%s8824_s0 + $0x64c] ss:$36 sps:$4 sm:$0xff]  }
 0x1e9   :  { %2940 = vmatmul.mubr.bf16.gmra.mrb[116].mxu1 %v5668_v0 }
 0x1ea   :  { %3390 = vmatmul.mubr.bf16.gmra.mrb[52].mxu0 %v5669_v30  ;;  %2947 = vmatprep.mubr.bf16.mxu1 %v5671_v31  ;;  %v5717_v31 = vld [vmem:[%s8824_s0 + $0x3c8] ss:$36 sps:$4 sm:$0xff]  }
 0x1eb   :  { %3397 = vmatprep.mubr.bf16.mxu0 %v5673_v32 }
 0x1f1   :  { %2948 = vmatmul.mubr.bf16.gmra.mrb[120].mxu1 %v5675_v33  ;;  %v5716_v33 = vld [vmem:[%s8824_s0 + $0x648] ss:$36 sps:$4 sm:$0xff]  }
 0x1f2   :  { %3398 = vmatmul.mubr.bf16.gmra.mrb[56].mxu0 %v5676_v34  ;;  %2955 = vmatprep.mubr.bf16.mxu1 %v5677_v35  ;;  %v5720_v34 = vld [vmem:[%s8824_s0 + $0x410] ss:$36 sps:$4 sm:$0xff]  }
 0x1f3   :  { %3405 = vmatprep.mubr.bf16.mxu0 %v5679_v37  ;;  %v5718_v37 = vld [vmem:[%s8824_s0 + $0x694] ss:$36 sps:$4 sm:$0xff]  }
 0x1f9   :  { %2956 = vmatmul.mubr.bf16.gmra.mrb[124].mxu1 %v5681_v38 }
 0x1fa   :  { %3406 = vmatmul.mubr.bf16.gmra.mrb[60].mxu0 %v5682_v5  ;;  %4858 = vmatprep.mubr.bf16.mxu1 %v5685_v40  ;;  %v5722_v40 = vld [vmem:[%s8824_s0 + $0x458] ss:$36 sps:$4 sm:$0xff]  }
 0x1fb   :  { %3413 = vmatprep.mubr.bf16.mxu0 %v5683_v41 }
 0x201   :  { %4859 = vmatmul.mubr.bf16.vlgmr.msra.gmra.mrb[128].mxu1 %v5687_v42  ;;  %v5721_v42 = vld [vmem:[%s8824_s0 + $0x690] ss:$36 sps:$4 sm:$0xff]  }
 0x202   :  { %3414 = vmatmul.mubr.bf16.gmra.mrb[64].mxu0 %v5686_v43  ;;  %4862 = vmatprep.mubr.bf16.mxu1 %v5690_v45  ;;  %v5725_v43 = vld [vmem:[%s8824_s0 + $0x4a0] ss:$36 sps:$4 sm:$0xff]  }
 0x203   :  { %3421 = vmatprep.mubr.bf16.mxu0 %v5688_v46  ;;  %v5723_v46 = vld [vmem:[%s8824_s0 + $0x6dc] ss:$36 sps:$4 sm:$0xff]  }
 0x209   :  { %4863 = vmatmul.mubr.bf16.gmra.mrb[132].mxu1 %v5692_v47 }
 0x20a   :  { %3422 = vmatmul.mubr.bf16.gmra.mrb[68].mxu0 %v5691_v50  ;;  %4866 = vmatprep.mubr.bf16.mxu1 %v5695_v51  ;;  %v5727_v51 = vld [vmem:[%s8824_s0 + $0x4e8] ss:$36 sps:$4 sm:$0xff]  }
 0x20b   :  { %3429 = vmatprep.mubr.bf16.mxu0 %v5693_v53 }
 0x211   :  { %4867 = vmatmul.mubr.bf16.gmra.mrb[136].mxu1 %v5697_v54  ;;  %v5726_v54 = vld [vmem:[%s8824_s0 + $0x6d8] ss:$36 sps:$4 sm:$0xff]  }
 0x212   :  { %3430 = vmatmul.mubr.bf16.gmra.mrb[72].mxu0 %v5696_v55  ;;  %4870 = vmatprep.mubr.bf16.mxu1 %v5700_v56  ;;  %v5730_v55 = vld [vmem:[%s8824_s0 + $0x530] ss:$36 sps:$4 sm:$0xff]  }
 0x213   :  { %3437 = vmatprep.mubr.bf16.mxu0 %v5698_v58  ;;  %v5728_v58 = vld [vmem:[%s8824_s0 + $0x724] ss:$36 sps:$4 sm:$0xff]  }
 0x214   :  { %v6901_v59 = vpop.f32.mrb[32].mxu1 }
 0x215   :  { %v2775_v61 = vpop.f32.mrb[33].mxu1 }
 0x216   :  { %v6906_v63 = vpop.f32.mrb[34].mxu1 }
 0x217   :  { %v2778_v4 = vpop.f32.mrb[35].mxu1 }
 0x218   :  { %v5731_v4 = vld [vmem:[%s8824_s0 + $0x720] ss:$36 sps:$4 sm:$0xff]  }
 0x219   :  { %4871 = vmatmul.mubr.bf16.gmra.mrb[140].mxu1 %v5702_v62 }
 0x21a   :  { %3438 = vmatmul.mubr.bf16.gmra.mrb[76].mxu0 %v5701_v1  ;;  %4874 = vmatprep.mubr.bf16.mxu1 %v5705_v3  ;;  %v5732_v1 = vld [vmem:[%s8824_s0 + $0x578] ss:$36 sps:$4 sm:$0xff]  }
 0x21b   :  { %3445 = vmatprep.mubr.bf16.mxu0 %v5703_v7  ;;  %v5735_v7 = vld [vmem:[%s8824_s0 + $0x5c0] ss:$36 sps:$4 sm:$0xff]  }
 0x21c   :  { %v6917_v8 = vpop.f32.mrb[36].mxu1 }
 0x21d   :  { %v2783_v9 = vpop.f32.mrb[37].mxu1 }
 0x21e   :  { %v6922_v12 = vpop.f32.mrb[38].mxu1 }
 0x21f   :  { %v2786_v16 = vpop.f32.mrb[39].mxu1 }
 0x220   :  { %v5737_v16 = vld [vmem:[%s8824_s0 + $0x608] ss:$36 sps:$4 sm:$0xff]  }
 0x221   :  { %4875 = vmatmul.mubr.bf16.gmra.mrb[144].mxu1 %v5707_v10  ;;  %v5733_v10 = vld [vmem:[%s8824_s0 + $0x76c] ss:$36 sps:$4 sm:$0xff]  }
 0x222   :  { %3446 = vmatmul.mubr.bf16.gmra.mrb[80].mxu0 %v5706_v13  ;;  %4878 = vmatprep.mubr.bf16.mxu1 %v5710_v15 }
 0x223   :  { %3453 = vmatprep.mubr.bf16.mxu0 %v5708_v17 }
 0x224   :  { %v6933_v18 = vpop.f32.mrb[40].mxu1 }
 0x225   :  { %v2791_v20 = vpop.f32.mrb[41].mxu1 }
 0x226   :  { %v6938_v23 = vpop.f32.mrb[42].mxu1  ;;  %v5736_v20 = vld [vmem:[%s8824_s0 + $0x768] ss:$36 sps:$4 sm:$0xff]  }
 0x227   :  { %v2794_v26 = vpop.f32.mrb[43].mxu1 }
 0x229   :  { %4879 = vmatmul.mubr.bf16.gmra.mrb[148].mxu1 %v5712_v21  ;;  %v5740_v21 = vld [vmem:[%s8824_s0 + $0x650] ss:$36 sps:$4 sm:$0xff]  }
 0x22a   :  { %3454 = vmatmul.mubr.bf16.gmra.mrb[84].mxu0 %v5711_v24  ;;  %4882 = vmatprep.mubr.bf16.mxu1 %v5715_v25  ;;  %v5738_v25 = vld [vmem:[%s8824_s0 + $0x7b4] ss:$36 sps:$4 sm:$0xff]  }
 0x22b   :  { %3461 = vmatprep.mubr.bf16.mxu0 %v5713_v28 }
 0x22c   :  { %v6949_v0 = vpop.f32.mrb[44].mxu1 }
 0x22d   :  { %v2799_v30 = vpop.f32.mrb[45].mxu1 }
 0x22e   :  { %v6954_v32 = vpop.f32.mrb[46].mxu1 }
 0x22f   :  { %v2802_v35 = vpop.f32.mrb[47].mxu1 }
 0x231   :  { %4883 = vmatmul.mubr.bf16.gmra.mrb[152].mxu1 %v5717_v31  ;;  %v5742_v31 = vld [vmem:[%s8824_s0 + $0x698] ss:$36 sps:$4 sm:$0xff]  }
 0x232   :  { %3462 = vmatmul.mubr.bf16.gmra.mrb[88].mxu0 %v5716_v33  ;;  %4886 = vmatprep.mubr.bf16.mxu1 %v5720_v34 }
 0x233   :  { %3469 = vmatprep.mubr.bf16.mxu0 %v5718_v37  ;;  %v5741_v37 = vld [vmem:[%s8824_s0 + $0x7b0] ss:$36 sps:$4 sm:$0xff]  }
 0x234   :  { %v6965_v38 = vpop.f32.mrb[48].mxu1 }
 0x235   :  { %v2807_v5 = vpop.f32.mrb[49].mxu1 }
 0x236   :  { %v6970_v41 = vpop.f32.mrb[50].mxu1  ;;  %v5745_v5 = vld [vmem:[%s8824_s0 + $0x6e0] ss:$36 sps:$4 sm:$0xff]  }
 0x237   :  { %v2810_v45 = vpop.f32.mrb[51].mxu1 }
 0x239   :  { %4887 = vmatmul.mubr.bf16.gmra.mrb[156].mxu1 %v5722_v40 }
 0x23a   :  { %3470 = vmatmul.mubr.bf16.gmra.mrb[92].mxu0 %v5721_v42  ;;  %4890 = vmatprep.mubr.bf16.mxu1 %v5725_v43  ;;  %v5743_v43 = vld [vmem:[%s8824_s0 + $0x7fc] ss:$36 sps:$4 sm:$0xff]  }
 0x23b   :  { %3477 = vmatprep.mubr.bf16.mxu0 %v5723_v46 }
 0x23c   :  { %v6981_v47 = vpop.f32.mrb[52].mxu1 }
 0x23d   :  { %v2815_v50 = vpop.f32.mrb[53].mxu1 }
 0x23e   :  { %v6986_v53 = vpop.f32.mrb[54].mxu1 }
 0x23f   :  { %v2818_v56 = vpop.f32.mrb[55].mxu1 }
 0x241   :  { %4891 = vmatmul.mubr.bf16.gmra.mrb[160].mxu1 %v5727_v51 }
 0x242   :  { %3478 = vmatmul.mubr.bf16.gmra.mrb[96].mxu0 %v5726_v54  ;;  %4894 = vmatprep.mubr.bf16.mxu1 %v5730_v55  ;;  %v5747_v54 = vld [vmem:[%s8824_s0 + $0x728] ss:$36 sps:$4 sm:$0xff]  }
 0x243   :  { %3485 = vmatprep.mubr.bf16.mxu0 %v5728_v58 }
 0x244   :  { %v6997_v61 = vpop.f32.mrb[56].mxu1 }
 0x245   :  { %v2823_v62 = vpop.f32.mrb[57].mxu1 }
 0x246   :  { %v7002_v3 = vpop.f32.mrb[58].mxu1  ;;  %v5750_v62 = vld [vmem:[%s8824_s0 + $0x770] ss:$36 sps:$4 sm:$0xff]  }
 0x247   :  { %v2826_v9 = vpop.f32.mrb[59].mxu1 }
 0x249   :  { %4895 = vmatmul.mubr.bf16.gmra.mrb[164].mxu1 %v5732_v1 }
 0x24a   :  { %3486 = vmatmul.mubr.bf16.gmra.mrb[100].mxu0 %v5731_v4  ;;  %4898 = vmatprep.mubr.bf16.mxu1 %v5735_v7  ;;  %v5748_v7 = vld [vmem:[%s8824_s0 + $0x844] ss:$36 sps:$4 sm:$0xff]  }
 0x24b   :  { %3493 = vmatprep.mubr.bf16.mxu0 %v5733_v10 }
 0x24c   :  { %v7013_v13 = vpop.f32.mrb[60].mxu1 }
 0x24d   :  { %v2831_v15 = vpop.f32.mrb[61].mxu1 }
 0x24e   :  { %v7018_v17 = vpop.f32.mrb[62].mxu1 }
 0x24f   :  { %v2834_v24 = vpop.f32.mrb[63].mxu1 }
 0x251   :  { %4899 = vmatmul.mubr.bf16.gmra.mrb[168].mxu1 %v5737_v16 }
 0x252   :  { %3494 = vmatmul.mubr.bf16.gmra.mrb[104].mxu0 %v5736_v20  ;;  %4902 = vmatprep.mubr.bf16.mxu1 %v5740_v21  ;;  %v5752_v20 = vld [vmem:[%s8824_s0 + $0x7b8] ss:$36 sps:$4 sm:$0xff]  }
 0x253   :  { %3501 = vmatprep.mubr.bf16.mxu0 %v5738_v25 }
 0x254   :  { %v7029_v26 = vpop.f32.mrb[64].mxu1 }
 0x255   :  { %v3287_v28 = vpop.f32.mrb[0].mxu0  ;;  %v2839_v30 = vpop.f32.mrb[65].mxu1 }
 0x256   :  { %v7035_v33 = vadd.f32 %v3287_v28, %v6463_v49  ;;  %v3289_v34 = vpop.f32.mrb[1].mxu0  ;;  %v7037_v35 = vpop.f32.mrb[66].mxu1  ;;  %v5755_v28 = vld [vmem:[%s8824_s0 + $0x800] ss:$36 sps:$4 sm:$0xff]  }
 0x257   :  { %v3290_v40 = vpop.f32.mrb[2].mxu0  ;;  %v2842_v42 = vpop.f32.mrb[67].mxu1  ;;  %v5753_v34 = vld [vmem:[%s8824_s0 + $0x88c] ss:$36 sps:$4 sm:$0xff]  }
 0x258   :  { %v7049_v49 = vadd.f32 %v3290_v40, %v6468_v52  ;;  %v3292_v45 = vpop.f32.mrb[3].mxu0  ;;  %v5746_v52 = vld [vmem:[%s8824_s0 + $0x7f8] ss:$36 sps:$4 sm:$0xff]  }
 0x259   :  { %4903 = vmatmul.mubr.bf16.gmra.mrb[172].mxu1 %v5742_v31 }
 0x25a   :  { %3502 = vmatmul.mubr.bf16.gmra.mrb[108].mxu0 %v5741_v37  ;;  %4906 = vmatprep.mubr.bf16.mxu1 %v5745_v5 }
 0x25b   :  { %3509 = vmatprep.mubr.bf16.mxu0 %v5743_v43  ;;  %v5757_v43 = vld [vmem:[%s8824_s0 + $0x848] ss:$36 sps:$4 sm:$0xff]  }
 0x25c   :  { %v7051_v46 = vpop.f32.mrb[68].mxu1 }
 0x25d   :  { %v3295_v50 = vpop.f32.mrb[4].mxu0  ;;  %v2847_v51 = vpop.f32.mrb[69].mxu1 }
 0x25e   :  { %v7057_v55 = vadd.f32 %v3295_v50, %v6479_v57  ;;  %v3297_v56 = vpop.f32.mrb[5].mxu0  ;;  %v7059_v58 = vpop.f32.mrb[70].mxu1 }
 0x25f   :  { %v3298_v1 = vpop.f32.mrb[6].mxu0  ;;  %v2850_v4 = vpop.f32.mrb[71].mxu1 }
 0x260   :  { %v7071_v57 = vadd.f32 %v3298_v1, %v6484_v60  ;;  %v3300_v9 = vpop.f32.mrb[7].mxu0  ;;  %v5751_v60 = vld [vmem:[%s8824_s0 + $0x840] ss:$36 sps:$4 sm:$0xff]  }
 0x261   :  { %4907 = vmatmul.mubr.bf16.gmra.mrb[176].mxu1 %v5747_v54  ;;  %v5760_v54 = vld [vmem:[%s8824_s0 + $0x890] ss:$36 sps:$4 sm:$0xff]  }
 0x262   :  { %3510 = vmatmul.mubr.bf16.gmra.mrb[112].mxu0 %v5746_v52  ;;  %4910 = vmatprep.mubr.bf16.mxu1 %v5750_v62  ;;  %v5758_v62 = vld [vmem:[%s8824_s0 + $0x8d4] ss:$36 sps:$4 sm:$0xff]  }
 0x263   :  { %3517 = vmatprep.mubr.bf16.mxu0 %v5748_v7 }
 0x264   :  { %v7073_v10 = vpop.f32.mrb[72].mxu1 }
 0x265   :  { %v3303_v15 = vpop.f32.mrb[8].mxu0  ;;  %v2855_v16 = vpop.f32.mrb[73].mxu1 }
 0x266   :  { %v7079_v21 = vadd.f32 %v3303_v15, %v6495_v2  ;;  %v3305_v24 = vpop.f32.mrb[9].mxu0  ;;  %v7081_v25 = vpop.f32.mrb[74].mxu1  ;;  %v5762_v15 = vld [vmem:[%s8824_s0 + $0x8d8] ss:$36 sps:$4 sm:$0xff]  }
 0x267   :  { %v3306_v30 = vpop.f32.mrb[10].mxu0  ;;  %v2858_v31 = vpop.f32.mrb[75].mxu1 }
 0x268   :  { %v7093_v2 = vadd.f32 %v3306_v30, %v6500_v6  ;;  %v3308_v37 = vpop.f32.mrb[11].mxu0  ;;  %v5756_v6 = vld [vmem:[%s8824_s0 + $0x888] ss:$36 sps:$4 sm:$0xff]  }
 0x269   :  { %4911 = vmatmul.mubr.bf16.gmra.mrb[180].mxu1 %v5752_v20 }
 0x26a   :  { %3518 = vmatmul.mubr.bf16.gmra.mrb[116].mxu0 %v5751_v60  ;;  %4914 = vmatprep.mubr.bf16.mxu1 %v5755_v28 }
 0x26b   :  { %3525 = vmatprep.mubr.bf16.mxu0 %v5753_v34 }
 0x26c   :  { %v7095_v5 = vpop.f32.mrb[76].mxu1 }
 0x26d   :  { %v3311_v40 = vpop.f32.mrb[12].mxu0  ;;  %v2863_v42 = vpop.f32.mrb[77].mxu1 }
 0x26e   :  { %v7101_v45 = vadd.f32 %v3311_v40, %v6511_v11  ;;  %v3313_v50 = vpop.f32.mrb[13].mxu0  ;;  %v7103_v51 = vpop.f32.mrb[78].mxu1 }
 0x26f   :  { %v3314_v56 = vpop.f32.mrb[14].mxu0  ;;  %v2866_v52 = vpop.f32.mrb[79].mxu1 }
 0x270   :  { %v7115_v11 = vadd.f32 %v3314_v56, %v6516_v14  ;;  %v3316_v1 = vpop.f32.mrb[15].mxu0  ;;  %v5761_v14 = vld [vmem:[%s8824_s0 + $0x8d0] ss:$36 sps:$4 sm:$0xff]  }
 0x271   :  { %4915 = vmatmul.mubr.bf16.gmra.mrb[184].mxu1 %v5757_v43 }
 0x272   :  { %3526 = vmatmul.mubr.bf16.gmra.mrb[120].mxu0 %v5756_v6  ;;  %4918 = vmatprep.mubr.bf16.mxu1 %v5760_v54 }
 0x273   :  { %3533 = vmatprep.mubr.bf16.mxu0 %v5758_v62 }
 0x274   :  { %v7117_v4 = vpop.f32.mrb[80].mxu1 }
 0x275   :  { %v3319_v7 = vpop.f32.mrb[16].mxu0  ;;  %v2871_v9 = vpop.f32.mrb[81].mxu1 }
 0x276   :  { %v7123_v16 = vadd.f32 %v3319_v7, %v6527_v19  ;;  %v3321_v20 = vpop.f32.mrb[17].mxu0  ;;  %v7125_v24 = vpop.f32.mrb[82].mxu1 }
 0x277   :  { %v3322_v60 = vpop.f32.mrb[18].mxu0  ;;  %v2874_v28 = vpop.f32.mrb[83].mxu1 }
 0x278   :  { %v7131_v30 = vadd.f32 %v3322_v60, %v6532_v22  ;;  %v3324_v31 = vpop.f32.mrb[19].mxu0 }
 0x279   :  { %4919 = vmatmul.mubr.bf16.gmra.mrb[188].mxu1 %v5762_v15 }
 0x27a   :  { %3534 = vmatmul.mubr.bf16.gmra.mrb[124].mxu0 %v5761_v14 }
 0x27c   :  { %v7133_v34 = vpop.f32.mrb[84].mxu1 }
 0x27d   :  { %v3327_v37 = vpop.f32.mrb[20].mxu0  ;;  %v2879_v19 = vpop.f32.mrb[85].mxu1 }
 0x27e   :  { %v7136_v40 = vadd.f32 %v3327_v37, %v6543_v27  ;;  %v3329_v42 = vpop.f32.mrb[21].mxu0  ;;  %v7138_v43 = vpop.f32.mrb[86].mxu1 }
 0x27f   :  { %v3330_v50 = vpop.f32.mrb[22].mxu0  ;;  %v2882_v6 = vpop.f32.mrb[87].mxu1 }
 0x280   :  { %v7141_v54 = vadd.f32 %v3330_v50, %v6548_v29  ;;  %v3332_v22 = vpop.f32.mrb[23].mxu0 }
 0x284   :  { %v7143_v56 = vpop.f32.mrb[88].mxu1 }
 0x285   :  { %v3335_v52 = vpop.f32.mrb[24].mxu0  ;;  %v2887_v62 = vpop.f32.mrb[89].mxu1 }
 0x286   :  { %v7146_v1 = vadd.f32 %v3335_v52, %v6566_v36  ;;  %v3337_v7 = vpop.f32.mrb[25].mxu0  ;;  %v7148_v9 = vpop.f32.mrb[90].mxu1 }
 0x287   :  { %v3338_v27 = vpop.f32.mrb[26].mxu0  ;;  %v2890_v15 = vpop.f32.mrb[91].mxu1 }
 0x288   :  { %v7151_v20 = vadd.f32 %v3338_v27, %v6571_v39  ;;  %v3340_v14 = vpop.f32.mrb[27].mxu0 }
 0x28c   :  { %v7153_v60 = vpop.f32.mrb[92].mxu1 }
 0x28d   :  { %v3343_v29 = vpop.f32.mrb[28].mxu0  ;;  %v2895_v28 = vpop.f32.mrb[93].mxu1 }
 0x28e   :  { %v7156_v31 = vadd.f32 %v3343_v29, %v6585_v44  ;;  %v3345_v37 = vpop.f32.mrb[29].mxu0  ;;  %v7158_v19 = vpop.f32.mrb[94].mxu1 }
 0x28f   :  { %v3346_v36 = vpop.f32.mrb[30].mxu0  ;;  %v2898_v42 = vpop.f32.mrb[95].mxu1 }
 0x290   :  { %v7161_v50 = vadd.f32 %v3346_v36, %v6593_v48  ;;  %v3348_v6 = vpop.f32.mrb[31].mxu0 }
 0x294   :  { %v7163_v22 = vpop.f32.mrb[96].mxu1 }
 0x295   :  { %v3351_v39 = vpop.f32.mrb[32].mxu0  ;;  %v2903_v52 = vpop.f32.mrb[97].mxu1 }
 0x296   :  { %v7166_v62 = vadd.f32 %v3351_v39, %v6901_v59  ;;  %v3353_v7 = vpop.f32.mrb[33].mxu0  ;;  %v7168_v27 = vpop.f32.mrb[98].mxu1 }
 0x297   :  { %v3354_v44 = vpop.f32.mrb[34].mxu0  ;;  %v2906_v15 = vpop.f32.mrb[99].mxu1 }
 0x298   :  { %v7171_v14 = vadd.f32 %v3354_v44, %v6906_v63  ;;  %v3356_v29 = vpop.f32.mrb[35].mxu0 }
 0x29c   :  { %v7173_v28 = vpop.f32.mrb[100].mxu1 }
 0x29d   :  { %8881 = vst [vmem:[#allocation2_spill] sm:$0xff] %v7173_v28  ;;  %v3359_v48 = vpop.f32.mrb[36].mxu0  ;;  %v2911_v37 = vpop.f32.mrb[101].mxu1 }
 0x29e   :  { %v7176_v36 = vadd.f32 %v3359_v48, %v6917_v8  ;;  %v3361_v42 = vpop.f32.mrb[37].mxu0  ;;  %v7178_v6 = vpop.f32.mrb[102].mxu1 }
 0x29f   :  { %8882 = vst [vmem:[#allocation3_spill] sm:$0xff] %v7178_v6  ;;  %v3362_v59 = vpop.f32.mrb[38].mxu0  ;;  %v2914_v39 = vpop.f32.mrb[103].mxu1 }
 0x2a0   :  { %v7181_v52 = vadd.f32 %v3362_v59, %v6922_v12  ;;  %v3364_v7 = vpop.f32.mrb[39].mxu0 }
 0x2a4   :  { %v7183_v15 = vpop.f32.mrb[104].mxu1 }
 0x2a5   :  { %8883 = vst [vmem:[#allocation4_spill] sm:$0xff] %v7183_v15  ;;  %v3367_v63 = vpop.f32.mrb[40].mxu0  ;;  %v2919_v44 = vpop.f32.mrb[105].mxu1 }
 0x2a6   :  { %v7186_v29 = vadd.f32 %v3367_v63, %v6933_v18  ;;  %v3369_v37 = vpop.f32.mrb[41].mxu0  ;;  %v7188_v28 = vpop.f32.mrb[106].mxu1 }
 0x2a7   :  { %8884 = vst [vmem:[#allocation5_spill] sm:$0xff] %v7188_v28  ;;  %v3370_v8 = vpop.f32.mrb[42].mxu0  ;;  %v2922_v48 = vpop.f32.mrb[107].mxu1 }
 0x2a8   :  { %v7191_v42 = vadd.f32 %v3370_v8, %v6938_v23  ;;  %v3372_v39 = vpop.f32.mrb[43].mxu0 }
 0x2ac   :  { %v7193_v6 = vpop.f32.mrb[108].mxu1 }
 0x2ad   :  { %8885 = vst [vmem:[#allocation6_spill] sm:$0xff] %v7193_v6  ;;  %v3375_v12 = vpop.f32.mrb[44].mxu0  ;;  %v2927_v59 = vpop.f32.mrb[109].mxu1 }
 0x2ae   :  { %v7196_v7 = vadd.f32 %v3375_v12, %v6949_v0  ;;  %v3377_v44 = vpop.f32.mrb[45].mxu0  ;;  %v7198_v15 = vpop.f32.mrb[110].mxu1 }
 0x2af   :  { %8886 = vst [vmem:[#allocation7_spill] sm:$0xff] %v7198_v15  ;;  %v3378_v18 = vpop.f32.mrb[46].mxu0  ;;  %v2930_v63 = vpop.f32.mrb[111].mxu1 }
 0x2b0   :  { %v7201_v37 = vadd.f32 %v3378_v18, %v6954_v32  ;;  %v3380_v48 = vpop.f32.mrb[47].mxu0 }
 0x2b4   :  { %v7203_v28 = vpop.f32.mrb[112].mxu1 }
 0x2b5   :  { %8887 = vst [vmem:[#allocation8_spill] sm:$0xff] %v7203_v28  ;;  %v3383_v23 = vpop.f32.mrb[48].mxu0  ;;  %v2935_v8 = vpop.f32.mrb[113].mxu1 }
 0x2b6   :  { %v7206_v39 = vadd.f32 %v3383_v23, %v6965_v38  ;;  %v3385_v59 = vpop.f32.mrb[49].mxu0  ;;  %v7208_v6 = vpop.f32.mrb[114].mxu1 }
 0x2b7   :  { %8888 = vst [vmem:[#allocation9_spill] sm:$0xff] %v7208_v6  ;;  %v3386_v0 = vpop.f32.mrb[50].mxu0  ;;  %v2938_v12 = vpop.f32.mrb[115].mxu1 }
 0x2b8   :  { %v7211_v44 = vadd.f32 %v3386_v0, %v6970_v41  ;;  %v3388_v63 = vpop.f32.mrb[51].mxu0 }
 0x2bc   :  { %v7213_v15 = vpop.f32.mrb[116].mxu1 }
 0x2bd   :  { %8889 = vst [vmem:[#allocation10_spill] sm:$0xff] %v7213_v15  ;;  %v3391_v32 = vpop.f32.mrb[52].mxu0  ;;  %v2943_v18 = vpop.f32.mrb[117].mxu1 }
 0x2be   :  { %v7216_v48 = vadd.f32 %v3391_v32, %v6981_v47  ;;  %v3393_v8 = vpop.f32.mrb[53].mxu0  ;;  %v7218_v28 = vpop.f32.mrb[118].mxu1 }
 0x2bf   :  { %8890 = vst [vmem:[#allocation11_spill] sm:$0xff] %v7218_v28  ;;  %v3394_v38 = vpop.f32.mrb[54].mxu0  ;;  %v2946_v23 = vpop.f32.mrb[119].mxu1 }
 0x2c0   :  { %v7221_v59 = vadd.f32 %v3394_v38, %v6986_v53  ;;  %v3396_v12 = vpop.f32.mrb[55].mxu0 }
 0x2c4   :  { %v7223_v6 = vpop.f32.mrb[120].mxu1 }
 0x2c5   :  { %8891 = vst [vmem:[#allocation12_spill] sm:$0xff] %v7223_v6  ;;  %v3399_v41 = vpop.f32.mrb[56].mxu0  ;;  %v2951_v0 = vpop.f32.mrb[121].mxu1 }
 0x2c6   :  { %v7226_v63 = vadd.f32 %v3399_v41, %v6997_v61  ;;  %v3401_v18 = vpop.f32.mrb[57].mxu0  ;;  %v7228_v15 = vpop.f32.mrb[122].mxu1 }
 0x2c7   :  { %8892 = vst [vmem:[#allocation13_spill] sm:$0xff] %v7228_v15  ;;  %v3402_v47 = vpop.f32.mrb[58].mxu0  ;;  %v2954_v32 = vpop.f32.mrb[123].mxu1 }
 0x2c8   :  { %v7231_v8 = vadd.f32 %v3402_v47, %v7002_v3  ;;  %v3404_v23 = vpop.f32.mrb[59].mxu0 }
 0x2cc   :  { %v7233_v28 = vpop.f32.mrb[124].mxu1 }
 0x2cd   :  { %v3407_v53 = vpop.f32.mrb[60].mxu0  ;;  %v2959_v38 = vpop.f32.mrb[125].mxu1 }
 0x2ce   :  { %v7236_v12 = vadd.f32 %v3407_v53, %v7013_v13  ;;  %v3409_v0 = vpop.f32.mrb[61].mxu0  ;;  %v7238_v6 = vpop.f32.mrb[126].mxu1 }
 0x2cf   :  { %8893 = vst [vmem:[#allocation14_spill] sm:$0xff] %v7238_v6  ;;  %v3410_v61 = vpop.f32.mrb[62].mxu0  ;;  %v2962_v41 = vpop.f32.mrb[127].mxu1 }
 0x2d0   :  { %v7241_v18 = vadd.f32 %v3410_v61, %v7018_v17  ;;  %v3412_v32 = vpop.f32.mrb[63].mxu0 }
 0x2d4   :  { %v4860_v15 = vpop.f32.mrb[128].mxu1 }
 0x2d5   :  { %v3415_v3 = vpop.f32.mrb[64].mxu0  ;;  %v7244_v47 = vadd.f32 %v7057_v55, %v4860_v15  ;;  %v3576_v23 = vpop.f32.mrb[129].mxu1 }
 0x2d6   :  { %v7247_v38 = vadd.f32 %v3415_v3, %v7029_v26  ;;  %v3417_v13 = vpop.f32.mrb[65].mxu0  ;;  %v7250_v53 = vadd.f32 %v7035_v33, %v3576_v23  ;;  %v4861_v0 = vpop.f32.mrb[130].mxu1 }
 0x2d7   :  { %8894 = vst [vmem:[#allocation15_spill] sm:$0xff] %v7244_v47  ;;  %v3418_v6 = vpop.f32.mrb[66].mxu0  ;;  %v7253_v41 = vadd.f32 %v7071_v57, %v4861_v0  ;;  %v3579_v17 = vpop.f32.mrb[131].mxu1 }
 0x2d8   :  { %v7256_v61 = vadd.f32 %v3418_v6, %v7037_v35  ;;  %v3420_v32 = vpop.f32.mrb[67].mxu0  ;;  %v7259_v55 = vadd.f32 %v7049_v49, %v3579_v17 }
 0x2da   :  { %v3831_v26 = vadd.f32 %v7259_v55, %v7250_v53 }
 0x2dc   :  { %v3832_v15 = vadd.f32 %v3831_v26, %v7244_v47  ;;  %v4864_v33 = vpop.f32.mrb[132].mxu1 }
 0x2dd   :  { %v3423_v3 = vpop.f32.mrb[68].mxu0  ;;  %v7265_v23 = vadd.f32 %v7101_v45, %v4864_v33  ;;  %v3592_v57 = vpop.f32.mrb[133].mxu1 }
 0x2de   :  { %v7268_v13 = vadd.f32 %v3423_v3, %v7051_v46  ;;  %v3425_v35 = vpop.f32.mrb[69].mxu0  ;;  %v7271_v6 = vadd.f32 %v7079_v21, %v3592_v57  ;;  %v3833_v49 = vadd.f32 %v3832_v15, %v7253_v41  ;;  %v4865_v0 = vpop.f32.mrb[134].mxu1 }
 0x2df   :  { %v3426_v17 = vpop.f32.mrb[70].mxu0  ;;  %v7275_v32 = vadd.f32 %v7115_v11, %v4865_v0  ;;  %v3595_v26 = vpop.f32.mrb[135].mxu1 }
 0x2e0   :  { %v3834_v47 = vadd.f32 %v3833_v49, %v7271_v6  ;;  %v7279_v45 = vadd.f32 %v3426_v17, %v7059_v58  ;;  %v3428_v33 = vpop.f32.mrb[71].mxu0  ;;  %v7282_v46 = vadd.f32 %v7093_v2, %v3595_v26 }
 0x2e2   :  { %v3835_v21 = vadd.f32 %v3834_v47, %v7282_v46 }
 0x2e4   :  { %v3836_v3 = vadd.f32 %v3835_v21, %v7265_v23  ;;  %v4868_v15 = vpop.f32.mrb[136].mxu1 }
 0x2e5   :  { %v3431_v57 = vpop.f32.mrb[72].mxu0  ;;  %v7287_v35 = vadd.f32 %v7136_v40, %v4868_v15  ;;  %v3608_v11 = vpop.f32.mrb[137].mxu1 }
 0x2e6   :  { %v7290_v0 = vadd.f32 %v3431_v57, %v7073_v10  ;;  %v3433_v49 = vpop.f32.mrb[73].mxu0  ;;  %v7293_v58 = vadd.f32 %v7123_v16, %v3608_v11  ;;  %v3837_v2 = vadd.f32 %v3836_v3, %v7275_v32  ;;  %v4869_v17 = vpop.f32.mrb[138].mxu1 }
 0x2e7   :  { %v3434_v26 = vpop.f32.mrb[74].mxu0  ;;  %v7297_v47 = vadd.f32 %v7141_v54, %v4869_v17  ;;  %v3611_v33 = vpop.f32.mrb[139].mxu1 }
 0x2e8   :  { %v3838_v21 = vadd.f32 %v3837_v2, %v7293_v58  ;;  %v7301_v40 = vadd.f32 %v3434_v26, %v7081_v25  ;;  %v3436_v15 = vpop.f32.mrb[75].mxu0  ;;  %v7304_v10 = vadd.f32 %v7131_v30, %v3611_v33 }
 0x2ea   :  { %v3839_v16 = vadd.f32 %v3838_v21, %v7304_v10 }
 0x2ec   :  { %v3840_v57 = vadd.f32 %v3839_v16, %v7287_v35  ;;  %v4872_v3 = vpop.f32.mrb[140].mxu1 }
 0x2ed   :  { %v3439_v11 = vpop.f32.mrb[76].mxu0  ;;  %v7309_v49 = vadd.f32 %v7156_v31, %v4872_v3  ;;  %v3624_v54 = vpop.f32.mrb[141].mxu1 }
 0x2ee   :  { %v7312_v17 = vadd.f32 %v3439_v11, %v7095_v5  ;;  %v3441_v2 = vpop.f32.mrb[77].mxu0  ;;  %v7315_v25 = vadd.f32 %v7146_v1, %v3624_v54  ;;  %v3841_v30 = vadd.f32 %v3840_v57, %v7297_v47  ;;  %v4873_v26 = vpop.f32.mrb[142].mxu1 }
 0x2ef   :  { %v3442_v33 = vpop.f32.mrb[78].mxu0  ;;  %v7319_v21 = vadd.f32 %v7161_v50, %v4873_v26  ;;  %v3627_v15 = vpop.f32.mrb[143].mxu1 }
 0x2f0   :  { %v3842_v16 = vadd.f32 %v3841_v30, %v7315_v25  ;;  %v7323_v31 = vadd.f32 %v3442_v33, %v7103_v51  ;;  %v3444_v3 = vpop.f32.mrb[79].mxu0  ;;  %v7326_v5 = vadd.f32 %v7151_v20, %v3627_v15 }
 0x2f2   :  { %v3843_v1 = vadd.f32 %v3842_v16, %v7326_v5 }
 0x2f4   :  { %v3844_v11 = vadd.f32 %v3843_v1, %v7309_v49  ;;  %v4876_v57 = vpop.f32.mrb[144].mxu1 }
 0x2f5   :  { %v3447_v54 = vpop.f32.mrb[80].mxu0  ;;  %v7331_v2 = vadd.f32 %v7176_v36, %v4876_v57  ;;  %v3640_v50 = vpop.f32.mrb[145].mxu1 }
 0x2f6   :  { %v7334_v26 = vadd.f32 %v3447_v54, %v7117_v4  ;;  %v3449_v30 = vpop.f32.mrb[81].mxu0  ;;  %v7337_v51 = vadd.f32 %v7166_v62, %v3640_v50  ;;  %v3845_v20 = vadd.f32 %v3844_v11, %v7319_v21  ;;  %v4877_v33 = vpop.f32.mrb[146].mxu1 }
 0x2f7   :  { %v3450_v15 = vpop.f32.mrb[82].mxu0  ;;  %v7341_v16 = vadd.f32 %v7181_v52, %v4877_v33  ;;  %v3643_v3 = vpop.f32.mrb[147].mxu1 }
 0x2f8   :  { %v3846_v1 = vadd.f32 %v3845_v20, %v7337_v51  ;;  %v7345_v36 = vadd.f32 %v3450_v15, %v7125_v24  ;;  %v3452_v57 = vpop.f32.mrb[83].mxu0  ;;  %v7348_v4 = vadd.f32 %v7171_v14, %v3643_v3 }
 0x2fa   :  { %v3847_v62 = vadd.f32 %v3846_v1, %v7348_v4 }
 0x2fc   :  { %v3848_v54 = vadd.f32 %v3847_v62, %v7331_v2  ;;  %v4880_v11 = vpop.f32.mrb[148].mxu1 }
 0x2fd   :  { %v3455_v50 = vpop.f32.mrb[84].mxu0  ;;  %v7353_v30 = vadd.f32 %v7196_v7, %v4880_v11  ;;  %v3656_v52 = vpop.f32.mrb[149].mxu1 }
 0x2fe   :  { %v7356_v33 = vadd.f32 %v3455_v50, %v7133_v34  ;;  %v3457_v20 = vpop.f32.mrb[85].mxu0  ;;  %v7359_v24 = vadd.f32 %v7186_v29, %v3656_v52  ;;  %v3849_v14 = vadd.f32 %v3848_v54, %v7341_v16  ;;  %v4881_v15 = vpop.f32.mrb[150].mxu1 }
 0x2ff   :  { %v3458_v3 = vpop.f32.mrb[86].mxu0  ;;  %v7363_v1 = vadd.f32 %v7201_v37, %v4881_v15  ;;  %v3659_v57 = vpop.f32.mrb[151].mxu1 }
 0x300   :  { %v3850_v62 = vadd.f32 %v3849_v14, %v7359_v24  ;;  %v7367_v7 = vadd.f32 %v3458_v3, %v7138_v43  ;;  %v3460_v11 = vpop.f32.mrb[87].mxu0  ;;  %v7370_v34 = vadd.f32 %v7191_v42, %v3659_v57 }
 0x301   :  { %8895 = vst [vmem:[#allocation16_spill] sm:$0xff] %v7363_v1 }
 0x302   :  { %v3851_v29 = vadd.f32 %v3850_v62, %v7370_v34 }
 0x304   :  { %v3852_v50 = vadd.f32 %v3851_v29, %v7353_v30  ;;  %v4884_v54 = vpop.f32.mrb[152].mxu1 }
 0x305   :  { %v3463_v52 = vpop.f32.mrb[88].mxu0  ;;  %v7375_v20 = vadd.f32 %v7216_v48, %v4884_v54  ;;  %v3672_v37 = vpop.f32.mrb[153].mxu1 }
 0x306   :  { %v7378_v15 = vadd.f32 %v3463_v52, %v7143_v56  ;;  %v3465_v14 = vpop.f32.mrb[89].mxu0  ;;  %v7381_v43 = vadd.f32 %v7206_v39, %v3672_v37  ;;  %v3853_v42 = vadd.f32 %v3852_v50, %v7363_v1  ;;  %v4885_v3 = vpop.f32.mrb[154].mxu1 }
 0x307   :  { %8896 = vst [vmem:[#allocation17_spill] sm:$0xff] %v7375_v20  ;;  %v3466_v57 = vpop.f32.mrb[90].mxu0  ;;  %v7385_v62 = vadd.f32 %v7221_v59, %v4885_v3  ;;  %v3675_v11 = vpop.f32.mrb[155].mxu1 }
 0x308   :  { %8897 = vst [vmem:[#allocation18_spill] sm:$0xff] %v7381_v43  ;;  %v3854_v29 = vadd.f32 %v3853_v42, %v7381_v43  ;;  %v7389_v48 = vadd.f32 %v3466_v57, %v7148_v9  ;;  %v3468_v54 = vpop.f32.mrb[91].mxu0  ;;  %v7392_v56 = vadd.f32 %v7211_v44, %v3675_v11 }
 0x309   :  { %8898 = vst [vmem:[#allocation19_spill] sm:$0xff] %v7385_v62 }
 0x30a   :  { %8899 = vst [vmem:[#allocation20_spill] sm:$0xff] %v7392_v56  ;;  %v3855_v39 = vadd.f32 %v3854_v29, %v7392_v56 }
 0x30c   :  { %v3856_v52 = vadd.f32 %v3855_v39, %v7375_v20  ;;  %v4888_v50 = vpop.f32.mrb[156].mxu1 }
 0x30d   :  { %v3471_v37 = vpop.f32.mrb[92].mxu0  ;;  %v7397_v14 = vadd.f32 %v7236_v12, %v4888_v50  ;;  %v3688_v59 = vpop.f32.mrb[157].mxu1 }
 0x30e   :  { %v7400_v3 = vadd.f32 %v3471_v37, %v7153_v60  ;;  %v3473_v42 = vpop.f32.mrb[93].mxu0  ;;  %v7403_v9 = vadd.f32 %v7226_v63, %v3688_v59  ;;  %v3857_v44 = vadd.f32 %v3856_v52, %v7385_v62  ;;  %v4889_v57 = vpop.f32.mrb[158].mxu1 }
 0x30f   :  { %8900 = vst [vmem:[#allocation21_spill] sm:$0xff] %v7397_v14  ;;  %v3474_v11 = vpop.f32.mrb[94].mxu0  ;;  %v7407_v29 = vadd.f32 %v7241_v18, %v4889_v57  ;;  %v3691_v54 = vpop.f32.mrb[159].mxu1 }
 0x310   :  { %8901 = vst [vmem:[#allocation22_spill] sm:$0xff] %v7403_v9  ;;  %v3858_v39 = vadd.f32 %v3857_v44, %v7403_v9  ;;  %v7411_v12 = vadd.f32 %v3474_v11, %v7158_v19  ;;  %v3476_v50 = vpop.f32.mrb[95].mxu0  ;;  %v7414_v60 = vadd.f32 %v7231_v8, %v3691_v54 }
 0x311   :  { %8902 = vst [vmem:[#allocation23_spill] sm:$0xff] %v7407_v29 }
 0x312   :  { %8903 = vst [vmem:[#allocation24_spill] sm:$0xff] %v7414_v60  ;;  %v3859_v63 = vadd.f32 %v3858_v39, %v7414_v60 }
 0x314   :  { %v3860_v37 = vadd.f32 %v3859_v63, %v7397_v14  ;;  %v4892_v52 = vpop.f32.mrb[160].mxu1 }
 0x315   :  { %v3479_v59 = vpop.f32.mrb[96].mxu0  ;;  %v7419_v42 = vadd.f32 %v7268_v13, %v4892_v52  ;;  %v3704_v18 = vpop.f32.mrb[161].mxu1 }
 0x316   :  { %v7422_v57 = vadd.f32 %v3479_v59, %v7163_v22  ;;  %v3481_v44 = vpop.f32.mrb[97].mxu0  ;;  %v7425_v19 = vadd.f32 %v7247_v38, %v3704_v18  ;;  %v3861_v8 = vadd.f32 %v3860_v37, %v7407_v29  ;;  %v4893_v11 = vpop.f32.mrb[162].mxu1 }
 0x317   :  { %8904 = vst [vmem:[#allocation25_spill] sm:$0xff] %v7419_v42  ;;  %v3482_v54 = vpop.f32.mrb[98].mxu0  ;;  %v7429_v39 = vadd.f32 %v7279_v45, %v4893_v11  ;;  %v3707_v50 = vpop.f32.mrb[163].mxu1  ;;  %v8909_v11 = vld [vmem:[#allocation2_spill] sm:$0xff] }
 0x318   :  { %8905 = vst [vmem:[#allocation26_spill] sm:$0xff] %v7425_v19  ;;  %v3862_v63 = vadd.f32 %v3861_v8, %v7425_v19  ;;  %v7433_v13 = vadd.f32 %v3482_v54, %v7168_v27  ;;  %v3484_v52 = vpop.f32.mrb[99].mxu0  ;;  %v7436_v22 = vadd.f32 %v7256_v61, %v3707_v50 }
 0x319   :  { %8906 = vst [vmem:[#allocation27_spill] sm:$0xff] %v7429_v39 }
 0x31a   :  { %8907 = vst [vmem:[#allocation28_spill] sm:$0xff] %v7436_v22  ;;  %v3863_v38 = vadd.f32 %v3862_v63, %v7436_v22 }
 0x31c   :  { %v3864_v59 = vadd.f32 %v3863_v38, %v7419_v42  ;;  %v4896_v37 = vpop.f32.mrb[164].mxu1  ;;  %v8912_v42 = vld [vmem:[#allocation3_spill] sm:$0xff] }
 0x31d   :  { %v3487_v18 = vpop.f32.mrb[100].mxu0  ;;  %v7441_v44 = vadd.f32 %v7312_v17, %v4896_v37  ;;  %v3720_v45 = vpop.f32.mrb[165].mxu1 }
 0x31e   :  { %v5004_v29 = vadd.f32 %v3487_v18, %v8909_v11  ;;  %v3489_v8 = vpop.f32.mrb[101].mxu0  ;;  %v7445_v27 = vadd.f32 %v7290_v0, %v3720_v45  ;;  %v3865_v54 = vadd.f32 %v3864_v59, %v7429_v39  ;;  %v4897_v61 = vpop.f32.mrb[166].mxu1 }
 0x31f   :  { %8908 = vst [vmem:[#allocation29_spill] sm:$0xff] %v7441_v44  ;;  %v3490_v50 = vpop.f32.mrb[102].mxu0  ;;  %v7449_v63 = vadd.f32 %v7323_v31, %v4897_v61  ;;  %v3723_v52 = vpop.f32.mrb[167].mxu1  ;;  %v8915_v8 = vld [vmem:[#allocation4_spill] sm:$0xff] }
 0x320   :  { %8910 = vst [vmem:[#allocation2_spill] sm:$0xff] %v7445_v27  ;;  %v3866_v38 = vadd.f32 %v3865_v54, %v7445_v27  ;;  %v5005_v17 = vadd.f32 %v3490_v50, %v8912_v42  ;;  %v3492_v37 = vpop.f32.mrb[103].mxu0  ;;  %v7454_v22 = vadd.f32 %v7301_v40, %v3723_v52 }
 0x321   :  { %8911 = vst [vmem:[#allocation30_spill] sm:$0xff] %v7449_v63 }
 0x322   :  { %8913 = vst [vmem:[#allocation3_spill] sm:$0xff] %v7454_v22  ;;  %v3867_v18 = vadd.f32 %v3866_v38, %v7454_v22 }
 0x324   :  { %v3868_v0 = vadd.f32 %v3867_v18, %v7441_v44  ;;  %v4900_v45 = vpop.f32.mrb[168].mxu1  ;;  %v8918_v18 = vld [vmem:[#allocation5_spill] sm:$0xff] }
 0x325   :  { %v3495_v59 = vpop.f32.mrb[104].mxu0  ;;  %v7459_v11 = vadd.f32 %v7356_v33, %v4900_v45  ;;  %v3736_v31 = vpop.f32.mrb[169].mxu1 }
 0x326   :  { %v5006_v61 = vadd.f32 %v3495_v59, %v8915_v8  ;;  %v3497_v39 = vpop.f32.mrb[105].mxu0  ;;  %v7463_v54 = vadd.f32 %v7334_v26, %v3736_v31  ;;  %v3869_v42 = vadd.f32 %v3868_v0, %v7449_v63  ;;  %v4901_v40 = vpop.f32.mrb[170].mxu1  ;;  %v8920_v8 = vld [vmem:[#allocation6_spill] sm:$0xff] }
 0x327   :  { %8914 = vst [vmem:[#allocation31_spill] sm:$0xff] %v7459_v11  ;;  %v3498_v50 = vpop.f32.mrb[106].mxu0  ;;  %v7467_v52 = vadd.f32 %v7367_v7, %v4901_v40  ;;  %v3739_v38 = vpop.f32.mrb[171].mxu1 }
 0x328   :  { %8916 = vst [vmem:[#allocation4_spill] sm:$0xff] %v7463_v54  ;;  %v3870_v37 = vadd.f32 %v3869_v42, %v7463_v54  ;;  %v5007_v33 = vadd.f32 %v3498_v50, %v8918_v18  ;;  %v3500_v45 = vpop.f32.mrb[107].mxu0  ;;  %v7472_v44 = vadd.f32 %v7345_v36, %v3739_v38 }
 0x329   :  { %8917 = vst [vmem:[#allocation32_spill] sm:$0xff] %v7467_v52 }
 0x32a   :  { %8919 = vst [vmem:[#allocation5_spill] sm:$0xff] %v7472_v44  ;;  %v3871_v39 = vadd.f32 %v3870_v37, %v7472_v44 }
 0x32c   :  { %v3872_v26 = vadd.f32 %v3871_v39, %v7459_v11  ;;  %v4904_v59 = vpop.f32.mrb[172].mxu1  ;;  %v8922_v39 = vld [vmem:[#allocation7_spill] sm:$0xff] }
 0x32d   :  { %v3503_v0 = vpop.f32.mrb[108].mxu0  ;;  %v7477_v31 = vadd.f32 %v7400_v3, %v4904_v59  ;;  %v3752_v7 = vpop.f32.mrb[173].mxu1 }
 0x32e   :  { %v5008_v40 = vadd.f32 %v3503_v0, %v8920_v8  ;;  %v3505_v63 = vpop.f32.mrb[109].mxu0  ;;  %v7481_v42 = vadd.f32 %v7378_v15, %v3752_v7  ;;  %v3873_v50 = vadd.f32 %v3872_v26, %v7467_v52  ;;  %v4905_v36 = vpop.f32.mrb[174].mxu1 }
 0x32f   :  { %v3506_v38 = vpop.f32.mrb[110].mxu0  ;;  %v7485_v37 = vadd.f32 %v7411_v12, %v4905_v36  ;;  %v3755_v18 = vpop.f32.mrb[175].mxu1  ;;  %v8923_v12 = vld [vmem:[#allocation8_spill] sm:$0xff] }
 0x330   :  { %8921 = vst [vmem:[#allocation6_spill] sm:$0xff] %v7481_v42  ;;  %v3874_v45 = vadd.f32 %v3873_v50, %v7481_v42  ;;  %v5009_v3 = vadd.f32 %v3506_v38, %v8922_v39  ;;  %v3508_v59 = vpop.f32.mrb[111].mxu0  ;;  %v7490_v11 = vadd.f32 %v7389_v48, %v3755_v18 }
 0x332   :  { %v3875_v63 = vadd.f32 %v3874_v45, %v7490_v11 }
 0x334   :  { %v3876_v15 = vadd.f32 %v3875_v63, %v7477_v31  ;;  %v4908_v0 = vpop.f32.mrb[176].mxu1  ;;  %v8924_v63 = vld [vmem:[#allocation9_spill] sm:$0xff] }
 0x335   :  { %v3511_v26 = vpop.f32.mrb[112].mxu0  ;;  %v7494_v7 = vadd.f32 %v5004_v29, %v4908_v0  ;;  %v3768_v8 = vpop.f32.mrb[177].mxu1 }
 0x336   :  { %v5010_v36 = vadd.f32 %v3511_v26, %v8923_v12  ;;  %v3513_v52 = vpop.f32.mrb[113].mxu0  ;;  %v7498_v50 = vadd.f32 %v7422_v57, %v3768_v8  ;;  %v3877_v38 = vadd.f32 %v3876_v15, %v7485_v37  ;;  %v4909_v39 = vpop.f32.mrb[178].mxu1 }
 0x337   :  { %v3514_v48 = vpop.f32.mrb[114].mxu0  ;;  %v7501_v18 = vadd.f32 %v5005_v17, %v4909_v39  ;;  %v3771_v45 = vpop.f32.mrb[179].mxu1  ;;  %v8925_v17 = vld [vmem:[#allocation10_spill] sm:$0xff] }
 0x338   :  { %v3878_v59 = vadd.f32 %v3877_v38, %v7498_v50  ;;  %v5011_v42 = vadd.f32 %v3514_v48, %v8924_v63  ;;  %v3516_v29 = vpop.f32.mrb[115].mxu0  ;;  %v7506_v0 = vadd.f32 %v7433_v13, %v3771_v45 }
 0x339   :  { %v8926_v29 = vld [vmem:[#allocation11_spill] sm:$0xff] }
 0x33a   :  { %v3879_v52 = vadd.f32 %v3878_v59, %v7506_v0 }
 0x33c   :  { %v3880_v57 = vadd.f32 %v3879_v52, %v7494_v7  ;;  %v4912_v26 = vpop.f32.mrb[180].mxu1 }
 0x33d   :  { %v3519_v8 = vpop.f32.mrb[116].mxu0  ;;  %v7510_v15 = vadd.f32 %v5008_v40, %v4912_v26  ;;  %v3784_v12 = vpop.f32.mrb[181].mxu1 }
 0x33e   :  { %v5012_v39 = vadd.f32 %v3519_v8, %v8925_v17  ;;  %v3521_v44 = vpop.f32.mrb[117].mxu0  ;;  %v7513_v54 = vadd.f32 %v5006_v61, %v3784_v12  ;;  %v3881_v38 = vadd.f32 %v3880_v57, %v7501_v18  ;;  %v4913_v48 = vpop.f32.mrb[182].mxu1  ;;  %v8927_v12 = vld [vmem:[#allocation12_spill] sm:$0xff] }
 0x33f   :  { %v3522_v63 = vpop.f32.mrb[118].mxu0  ;;  %v3796_v13 = vadd.f32 %v5009_v3, %v4913_v48  ;;  %v3787_v45 = vpop.f32.mrb[183].mxu1 }
 0x340   :  { %v3882_v59 = vadd.f32 %v3881_v38, %v7513_v54  ;;  %v5013_v52 = vadd.f32 %v3522_v63, %v8926_v29  ;;  %v3524_v22 = vpop.f32.mrb[119].mxu0  ;;  %v3788_v27 = vadd.f32 %v5007_v33, %v3787_v45  ;;  %v8928_v63 = vld [vmem:[#allocation13_spill] sm:$0xff] }
 0x342   :  { %v3883_v40 = vadd.f32 %v3882_v59, %v3788_v27 }
 0x344   :  { %v3884_v26 = vadd.f32 %v3883_v40, %v7510_v15  ;;  %v4916_v19 = vpop.f32.mrb[184].mxu1 }
 0x345   :  { %v3527_v8 = vpop.f32.mrb[120].mxu0  ;;  %v3809_v44 = vadd.f32 %v5012_v39, %v4916_v19  ;;  %v3800_v61 = vpop.f32.mrb[185].mxu1 }
 0x346   :  { %v5014_v17 = vadd.f32 %v3527_v8, %v8927_v12  ;;  %v3529_v57 = vpop.f32.mrb[121].mxu0  ;;  %v3801_v14 = vadd.f32 %v5010_v36, %v3800_v61  ;;  %v3885_v60 = vadd.f32 %v3884_v26, %v3796_v13  ;;  %v4917_v3 = vpop.f32.mrb[186].mxu1 }
 0x347   :  { %v3530_v48 = vpop.f32.mrb[122].mxu0  ;;  %v3812_v9 = vadd.f32 %v5013_v52, %v4917_v3  ;;  %v3803_v38 = vpop.f32.mrb[187].mxu1 }
 0x348   :  { %v3886_v62 = vadd.f32 %v3885_v60, %v3801_v14  ;;  %v5015_v22 = vadd.f32 %v3530_v48, %v8928_v63  ;;  %v3532_v33 = vpop.f32.mrb[123].mxu0  ;;  %v3804_v45 = vadd.f32 %v5011_v42, %v3803_v38  ;;  %v8929_v60 = vld [vmem:[#allocation14_spill] sm:$0xff] }
 0x34a   :  { %v3887_v59 = vadd.f32 %v3886_v62, %v3804_v45 }
 0x34c   :  { %v3888_v29 = vadd.f32 %v3887_v59, %v3809_v44  ;;  %v4920_v40 = vpop.f32.mrb[188].mxu1 }
 0x34d   :  { %v3535_v20 = vpop.f32.mrb[124].mxu0  ;;  %v3816_v19 = vpop.f32.mrb[189].mxu1 }
 0x34e   :  { %v5016_v39 = vadd.f32 %v3535_v20, %v7233_v28  ;;  %v3537_v8 = vpop.f32.mrb[125].mxu0  ;;  %v3817_v12 = vadd.f32 %v5014_v17, %v3816_v19  ;;  %v3889_v36 = vadd.f32 %v3888_v29, %v3812_v9  ;;  %v4921_v26 = vpop.f32.mrb[190].mxu1 }
 0x34f   :  { %v3538_v61 = vpop.f32.mrb[126].mxu0  ;;  %v3819_v57 = vpop.f32.mrb[191].mxu1 }
 0x350   :  { %v3825_v52 = vadd.f32 %v5016_v39, %v4920_v40  ;;  %v3890_v3 = vadd.f32 %v3889_v36, %v3817_v12  ;;  %v5017_v56 = vadd.f32 %v3538_v61, %v8929_v60  ;;  %v3540_v48 = vpop.f32.mrb[127].mxu0  ;;  %v3820_v63 = vadd.f32 %v5015_v22, %v3819_v57 }
 0x352   :  { %v3828_v42 = vadd.f32 %v5017_v56, %v4921_v26  ;;  %v3891_v62 = vadd.f32 %v3890_v3, %v3820_v63 }
 0x354   :  { %v3892_v38 = vadd.f32 %v3891_v62, %v3825_v52 }
 0x356   :  { %v3893_v33 = vadd.f32 %v3892_v38, %v3828_v42 }
 0x358   :  { %v3894_v59 = vrot.slane %v3893_v33, 4 }
 0x35a   :  { %v3895_v43 = vadd.f32 %v3894_v59, %v3893_v33 }
 0x35c   :  { %v3896_v1 = vrot.slane %v3895_v43, 2 }
 0x35e   :  { %v3897_v28 = vadd.f32 %v3896_v1, %v3895_v43 }
 0x360   :  { %v3898_v20 = vrot.slane %v3897_v28, 1 }
 0x362   :  { %v3899_v17 = vadd.f32 %v3898_v20, %v3897_v28 }
 0x364   :  { %v7523_v29 = vmul.f32 0.001953125, %v3899_v17 }
 0x366   :  { %v7527_v40 = vsub.f32 %v7490_v11, %v7523_v29  ;;  %v7531_v19 = vsub.f32 %v7477_v31, %v7523_v29  ;;  %v7535_v56 = vsub.f32 %v7485_v37, %v7523_v29  ;;  %v7539_v22 = vsub.f32 %v7498_v50, %v7523_v29 }
 0x367   :  { %v7543_v1 = vsub.f32 %v7506_v0, %v7523_v29  ;;  %v7547_v43 = vsub.f32 %v7494_v7, %v7523_v29  ;;  %v7551_v11 = vsub.f32 %v7501_v18, %v7523_v29  ;;  %v7555_v31 = vsub.f32 %v7513_v54, %v7523_v29 }
 0x368   :  { %v7558_v37 = vsub.f32 %v3788_v27, %v7523_v29  ;;  %v7562_v50 = vsub.f32 %v7510_v15, %v7523_v29  ;;  %v7565_v0 = vsub.f32 %v3796_v13, %v7523_v29  ;;  %v7568_v7 = vsub.f32 %v3801_v14, %v7523_v29 }
 0x369   :  { %v7571_v18 = vsub.f32 %v3804_v45, %v7523_v29  ;;  %v7574_v39 = vsub.f32 %v3809_v44, %v7523_v29  ;;  %v7577_v54 = vsub.f32 %v3812_v9, %v7523_v29  ;;  %v7580_v27 = vsub.f32 %v3817_v12, %v7523_v29  ;;  %v8935_v44 = vld [vmem:[#allocation15_spill] sm:$0xff] }
 0x36a   :  { %v7583_v15 = vsub.f32 %v3820_v63, %v7523_v29  ;;  %v7586_v13 = vsub.f32 %v3825_v52, %v7523_v29  ;;  %v7589_v14 = vsub.f32 %v3828_v42, %v7523_v29  ;;  %v7593_v45 = vsub.f32 %v7250_v53, %v7523_v29 }
 0x36b   :  { %8930 = vst [vmem:[#allocation7_spill] sm:$0xff] %v7571_v18  ;;  %8931 = vst [vmem:[#allocation8_spill] sm:$0xff] %v7574_v39  ;;  %v7597_v9 = vsub.f32 %v7259_v55, %v7523_v29  ;;  %v7601_v8 = vsub.f32 %v8935_v44, %v7523_v29  ;;  %v7609_v26 = vsub.f32 %v7253_v41, %v7523_v29 }
 0x36c   :  { %8932 = vst [vmem:[#allocation9_spill] sm:$0xff] %v7577_v54  ;;  %8933 = vst [vmem:[#allocation10_spill] sm:$0xff] %v7580_v27  ;;  %v3966_v12 = vmul.f32 %v7593_v45, %v7593_v45  ;;  %v7613_v53 = vsub.f32 %v7271_v6, %v7523_v29  ;;  %v7619_v57 = vsub.f32 %v7282_v46, %v7523_v29 }
 0x36d   :  { %8934 = vst [vmem:[#allocation11_spill] sm:$0xff] %v7583_v15  ;;  %v3967_v36 = vmul.f32 %v7597_v9, %v7597_v9  ;;  %v3968_v55 = vmul.f32 %v7601_v8, %v7601_v8  ;;  %v3969_v52 = vmul.f32 %v7609_v26, %v7609_v26  ;;  %v7625_v41 = vsub.f32 %v7265_v23, %v7523_v29 }
 0x36e   :  { %v3970_v6 = vmul.f32 %v7613_v53, %v7613_v53  ;;  %v7631_v48 = vsub.f32 %v7275_v32, %v7523_v29  ;;  %v3971_v46 = vmul.f32 %v7619_v57, %v7619_v57  ;;  %v7637_v42 = vsub.f32 %v7293_v58, %v7523_v29 }
 0x36f   :  { %v4030_v61 = vadd.f32 %v3967_v36, %v3966_v12  ;;  %v3972_v23 = vmul.f32 %v7625_v41, %v7625_v41  ;;  %v7643_v38 = vsub.f32 %v7304_v10, %v7523_v29  ;;  %v7649_v59 = vsub.f32 %v7287_v35, %v7523_v29 }
 0x370   :  { %v3973_v32 = vmul.f32 %v7631_v48, %v7631_v48  ;;  %v3974_v58 = vmul.f32 %v7637_v42, %v7637_v42  ;;  %v7655_v20 = vsub.f32 %v7297_v47, %v7523_v29  ;;  %v7661_v44 = vsub.f32 %v7315_v25, %v7523_v29 }
 0x371   :  { %v4031_v3 = vadd.f32 %v4030_v61, %v3968_v55  ;;  %v3975_v10 = vmul.f32 %v7643_v38, %v7643_v38  ;;  %v3976_v35 = vmul.f32 %v7649_v59, %v7649_v59  ;;  %v7667_v36 = vsub.f32 %v7326_v5, %v7523_v29 }
 0x372   :  { %v3977_v47 = vmul.f32 %v7655_v20, %v7655_v20  ;;  %v7673_v61 = vsub.f32 %v7309_v49, %v7523_v29  ;;  %v3978_v25 = vmul.f32 %v7661_v44, %v7661_v44 }
 0x373   :  { %v4032_v60 = vadd.f32 %v4031_v3, %v3969_v52  ;;  %v7679_v3 = vsub.f32 %v7319_v21, %v7523_v29  ;;  %v3979_v5 = vmul.f32 %v7667_v36, %v7667_v36 }
 0x374   :  { %v3980_v49 = vmul.f32 %v7673_v61, %v7673_v61 }
 0x375   :  { %v4033_v63 = vadd.f32 %v4032_v60, %v3970_v6  ;;  %v7685_v60 = vsub.f32 %v7337_v51, %v7523_v29  ;;  %v3981_v21 = vmul.f32 %v7679_v3, %v7679_v3 }
 0x377   :  { %v4034_v62 = vadd.f32 %v4033_v63, %v3971_v46  ;;  %v7691_v63 = vsub.f32 %v7348_v4, %v7523_v29  ;;  %v3982_v51 = vmul.f32 %v7685_v60, %v7685_v60 }
 0x379   :  { %v4035_v33 = vadd.f32 %v4034_v62, %v3972_v23  ;;  %v7697_v62 = vsub.f32 %v7331_v2, %v7523_v29  ;;  %v3983_v4 = vmul.f32 %v7691_v63, %v7691_v63 }
 0x37b   :  { %v4036_v28 = vadd.f32 %v4035_v33, %v3973_v32  ;;  %v7703_v33 = vsub.f32 %v7341_v16, %v7523_v29  ;;  %v3984_v2 = vmul.f32 %v7697_v62, %v7697_v62 }
 0x37d   :  { %v4037_v17 = vadd.f32 %v4036_v28, %v3974_v58  ;;  %v7709_v28 = vsub.f32 %v7359_v24, %v7523_v29  ;;  %v3985_v16 = vmul.f32 %v7703_v33, %v7703_v33 }
 0x37f   :  { %v4038_v12 = vadd.f32 %v4037_v17, %v3975_v10  ;;  %v7715_v17 = vsub.f32 %v7370_v34, %v7523_v29  ;;  %v3986_v24 = vmul.f32 %v7709_v28, %v7709_v28 }
 0x381   :  { %v4039_v55 = vadd.f32 %v4038_v12, %v3976_v35  ;;  %v7721_v12 = vsub.f32 %v7353_v30, %v7523_v29  ;;  %v3987_v34 = vmul.f32 %v7715_v17, %v7715_v17 }
 0x383   :  { %v4040_v52 = vadd.f32 %v4039_v55, %v3977_v47  ;;  %v8936_v55 = vld [vmem:[#allocation16_spill] sm:$0xff]  ;;  %v3988_v30 = vmul.f32 %v7721_v12, %v7721_v12 }
 0x385   :  { %v4041_v6 = vadd.f32 %v4040_v52, %v3978_v25  ;;  %v7727_v25 = vsub.f32 %v8936_v55, %v7523_v29 }
 0x387   :  { %v4042_v46 = vadd.f32 %v4041_v6, %v3979_v5  ;;  %v8937_v5 = vld [vmem:[#allocation18_spill] sm:$0xff] }
 0x388   :  { %v7733_v6 = vsub.f32 %v8937_v5, %v7523_v29  ;;  %v8943_v5 = vld [vmem:[#allocation24_spill] sm:$0xff] }
 0x389   :  { %v4043_v23 = vadd.f32 %v4042_v46, %v3980_v49  ;;  %v8938_v46 = vld [vmem:[#allocation20_spill] sm:$0xff] }
 0x38b   :  { %v4044_v32 = vadd.f32 %v4043_v23, %v3981_v21  ;;  %v7739_v21 = vsub.f32 %v8938_v46, %v7523_v29  ;;  %v3989_v23 = vmul.f32 %v7727_v25, %v7727_v25 }
 0x38d   :  { %v4045_v58 = vadd.f32 %v4044_v32, %v3982_v51  ;;  %v8939_v32 = vld [vmem:[#allocation17_spill] sm:$0xff] }
 0x38f   :  { %v4046_v10 = vadd.f32 %v4045_v58, %v3983_v4  ;;  %v7745_v4 = vsub.f32 %v8939_v32, %v7523_v29  ;;  %v3990_v58 = vmul.f32 %v7733_v6, %v7733_v6 }
 0x391   :  { %v4047_v35 = vadd.f32 %v4046_v10, %v3984_v2  ;;  %v8940_v10 = vld [vmem:[#allocation19_spill] sm:$0xff] }
 0x393   :  { %v4048_v47 = vadd.f32 %v4047_v35, %v3985_v16  ;;  %v7751_v16 = vsub.f32 %v8940_v10, %v7523_v29  ;;  %v3991_v35 = vmul.f32 %v7739_v21, %v7739_v21 }
 0x395   :  { %v4049_v52 = vadd.f32 %v4048_v47, %v3986_v24  ;;  %v8941_v47 = vld [vmem:[#allocation22_spill] sm:$0xff] }
 0x396   :  { %v7757_v55 = vsub.f32 %v8941_v47, %v7523_v29  ;;  %v8949_v47 = vld [vmem:[#allocation26_spill] sm:$0xff] }
 0x397   :  { %v4050_v49 = vadd.f32 %v4049_v52, %v3987_v34  ;;  %v3992_v34 = vmul.f32 %v7745_v4, %v7745_v4 }
 0x398   :  { %8942 = vst [vmem:[#allocation12_spill] sm:$0xff] %v7757_v55  ;;  %v3994_v32 = vmul.f32 %v7757_v55, %v7757_v55 }
 0x399   :  { %v4051_v51 = vadd.f32 %v4050_v49, %v3988_v30  ;;  %v7763_v30 = vsub.f32 %v8943_v5, %v7523_v29  ;;  %v3993_v49 = vmul.f32 %v7751_v16, %v7751_v16  ;;  %v7781_v5 = vsub.f32 %v8949_v47, %v7523_v29  ;;  %v8955_v47 = vld [vmem:[#allocation27_spill] sm:$0xff] }
 0x39b   :  { %v4052_v2 = vadd.f32 %v4051_v51, %v3989_v23  ;;  %8944 = vst [vmem:[#allocation13_spill] sm:$0xff] %v7763_v30  ;;  %v8945_v23 = vld [vmem:[#allocation21_spill] sm:$0xff]  ;;  %8950 = vst [vmem:[#allocation16_spill] sm:$0xff] %v7781_v5 }
 0x39c   :  { %v7769_v51 = vsub.f32 %v8945_v23, %v7523_v29  ;;  %v8951_v23 = vld [vmem:[#allocation28_spill] sm:$0xff] }
 0x39d   :  { %v4053_v24 = vadd.f32 %v4052_v2, %v3990_v58  ;;  %v8947_v2 = vld [vmem:[#allocation23_spill] sm:$0xff]  ;;  %v7787_v55 = vsub.f32 %v8951_v23, %v7523_v29  ;;  %v8957_v23 = vld [vmem:[#allocation2_spill] sm:$0xff] }
 0x39e   :  { %8946 = vst [vmem:[#allocation14_spill] sm:$0xff] %v7769_v51  ;;  %v7775_v10 = vsub.f32 %v8947_v2, %v7523_v29  ;;  %v8953_v2 = vld [vmem:[#allocation25_spill] sm:$0xff] }
 0x39f   :  { %v4054_v52 = vadd.f32 %v4053_v24, %v3991_v35  ;;  %v3995_v35 = vmul.f32 %v7763_v30, %v7763_v30  ;;  %8952 = vst [vmem:[#allocation18_spill] sm:$0xff] %v7787_v55  ;;  %v7793_v30 = vsub.f32 %v8953_v2, %v7523_v29  ;;  %v8959_v2 = vld [vmem:[#allocation3_spill] sm:$0xff] }
 0x3a0   :  { %8948 = vst [vmem:[#allocation15_spill] sm:$0xff] %v7775_v10 }
 0x3a1   :  { %v4055_v46 = vadd.f32 %v4054_v52, %v3992_v34  ;;  %v3996_v34 = vmul.f32 %v7769_v51, %v7769_v51  ;;  %8954 = vst [vmem:[#allocation20_spill] sm:$0xff] %v7793_v30  ;;  %v7799_v51 = vsub.f32 %v8955_v47, %v7523_v29  ;;  %v8961_v47 = vld [vmem:[#allocation29_spill] sm:$0xff] }
 0x3a3   :  { %v4056_v58 = vadd.f32 %v4055_v46, %v3993_v49  ;;  %v3997_v49 = vmul.f32 %v7775_v10, %v7775_v10  ;;  %8956 = vst [vmem:[#allocation17_spill] sm:$0xff] %v7799_v51  ;;  %v7805_v10 = vsub.f32 %v8957_v23, %v7523_v29  ;;  %v8963_v23 = vld [vmem:[#allocation30_spill] sm:$0xff] }
 0x3a5   :  { %v4057_v24 = vadd.f32 %v4056_v58, %v3994_v32  ;;  %v3998_v32 = vmul.f32 %v7781_v5, %v7781_v5  ;;  %8958 = vst [vmem:[#allocation19_spill] sm:$0xff] %v7805_v10  ;;  %v7811_v5 = vsub.f32 %v8959_v2, %v7523_v29  ;;  %v8965_v2 = vld [vmem:[#allocation4_spill] sm:$0xff] }
 0x3a7   :  { %v4058_v52 = vadd.f32 %v4057_v24, %v3995_v35  ;;  %v3999_v35 = vmul.f32 %v7787_v55, %v7787_v55  ;;  %8960 = vst [vmem:[#allocation22_spill] sm:$0xff] %v7811_v5  ;;  %v7817_v55 = vsub.f32 %v8961_v47, %v7523_v29  ;;  %v8966_v47 = vld [vmem:[#allocation5_spill] sm:$0xff] }
 0x3a9   :  { %v4059_v46 = vadd.f32 %v4058_v52, %v3996_v34  ;;  %v4000_v34 = vmul.f32 %v7793_v30, %v7793_v30  ;;  %8962 = vst [vmem:[#allocation24_spill] sm:$0xff] %v7817_v55  ;;  %v7823_v30 = vsub.f32 %v8963_v23, %v7523_v29  ;;  %v8968_v23 = vld [vmem:[#allocation31_spill] sm:$0xff] }
 0x3ab   :  { %v4060_v58 = vadd.f32 %v4059_v46, %v3997_v49  ;;  %v4001_v49 = vmul.f32 %v7799_v51, %v7799_v51  ;;  %8964 = vst [vmem:[#allocation21_spill] sm:$0xff] %v7823_v30  ;;  %v7829_v51 = vsub.f32 %v8965_v2, %v7523_v29  ;;  %v8969_v2 = vld [vmem:[#allocation32_spill] sm:$0xff] }
 0x3ad   :  { %v4061_v24 = vadd.f32 %v4060_v58, %v3998_v32  ;;  %v4002_v32 = vmul.f32 %v7805_v10, %v7805_v10  ;;  %v7835_v10 = vsub.f32 %v8966_v47, %v7523_v29  ;;  %v8970_v47 = vld [vmem:[#allocation6_spill] sm:$0xff] }
 0x3af   :  { %v4062_v52 = vadd.f32 %v4061_v24, %v3999_v35  ;;  %v4003_v35 = vmul.f32 %v7811_v5, %v7811_v5  ;;  %8967 = vst [vmem:[#allocation23_spill] sm:$0xff] %v7835_v10  ;;  %v7841_v5 = vsub.f32 %v8968_v23, %v7523_v29 }
 0x3b1   :  { %v4063_v46 = vadd.f32 %v4062_v52, %v4000_v34  ;;  %v4004_v34 = vmul.f32 %v7817_v55, %v7817_v55  ;;  %v7847_v55 = vsub.f32 %v8969_v2, %v7523_v29 }
 0x3b3   :  { %v4064_v58 = vadd.f32 %v4063_v46, %v4001_v49  ;;  %v4005_v49 = vmul.f32 %v7823_v30, %v7823_v30  ;;  %v7853_v30 = vsub.f32 %v8970_v47, %v7523_v29  ;;  %v4009_v23 = vmul.f32 %v7847_v55, %v7847_v55 }
 0x3b4   :  { %v4012_v29 = vmul.f32 %v7531_v19, %v7531_v19  ;;  %v4013_v47 = vmul.f32 %v7535_v56, %v7535_v56 }
 0x3b5   :  { %v4065_v24 = vadd.f32 %v4064_v58, %v4002_v32  ;;  %v4006_v32 = vmul.f32 %v7829_v51, %v7829_v51 }
 0x3b7   :  { %v4066_v52 = vadd.f32 %v4065_v24, %v4003_v35  ;;  %v4007_v35 = vmul.f32 %v7835_v10, %v7835_v10  ;;  %v4011_v10 = vmul.f32 %v7527_v40, %v7527_v40 }
 0x3b9   :  { %v4067_v46 = vadd.f32 %v4066_v52, %v4004_v34  ;;  %v4008_v34 = vmul.f32 %v7841_v5, %v7841_v5 }
 0x3bb   :  { %v4068_v58 = vadd.f32 %v4067_v46, %v4005_v49  ;;  %v4010_v46 = vmul.f32 %v7853_v30, %v7853_v30 }
 0x3bd   :  { %v4069_v24 = vadd.f32 %v4068_v58, %v4006_v32 }
 0x3bf   :  { %v4070_v52 = vadd.f32 %v4069_v24, %v4007_v35  ;;  %v4014_v24 = vmul.f32 %v7539_v22, %v7539_v22 }
 0x3c1   :  { %v4071_v49 = vadd.f32 %v4070_v52, %v4008_v34  ;;  %v4015_v52 = vmul.f32 %v7543_v1, %v7543_v1 }
 0x3c3   :  { %v4072_v2 = vadd.f32 %v4071_v49, %v4009_v23  ;;  %v4016_v49 = vmul.f32 %v7547_v43, %v7547_v43 }
 0x3c5   :  { %v4073_v32 = vadd.f32 %v4072_v2, %v4010_v46  ;;  %v4017_v2 = vmul.f32 %v7551_v11, %v7551_v11 }
 0x3c7   :  { %v4074_v58 = vadd.f32 %v4073_v32, %v4011_v10  ;;  %v4018_v32 = vmul.f32 %v7555_v31, %v7555_v31 }
 0x3c9   :  { %v4075_v35 = vadd.f32 %v4074_v58, %v4012_v29  ;;  %v4019_v58 = vmul.f32 %v7558_v37, %v7558_v37 }
 0x3cb   :  { %v4076_v34 = vadd.f32 %v4075_v35, %v4013_v47  ;;  %v4020_v35 = vmul.f32 %v7562_v50, %v7562_v50 }
 0x3cd   :  { %v4077_v23 = vadd.f32 %v4076_v34, %v4014_v24  ;;  %v4021_v34 = vmul.f32 %v7565_v0, %v7565_v0 }
 0x3cf   :  { %v4078_v46 = vadd.f32 %v4077_v23, %v4015_v52  ;;  %v4022_v23 = vmul.f32 %v7568_v7, %v7568_v7 }
 0x3d1   :  { %v4079_v10 = vadd.f32 %v4078_v46, %v4016_v49  ;;  %v4023_v46 = vmul.f32 %v7571_v18, %v7571_v18 }
 0x3d3   :  { %v4080_v29 = vadd.f32 %v4079_v10, %v4017_v2  ;;  %v4024_v10 = vmul.f32 %v7574_v39, %v7574_v39 }
 0x3d5   :  { %v4081_v47 = vadd.f32 %v4080_v29, %v4018_v32  ;;  %v4025_v29 = vmul.f32 %v7577_v54, %v7577_v54 }
 0x3d7   :  { %v4082_v24 = vadd.f32 %v4081_v47, %v4019_v58  ;;  %v4026_v47 = vmul.f32 %v7580_v27, %v7580_v27 }
 0x3d9   :  { %v4083_v52 = vadd.f32 %v4082_v24, %v4020_v35  ;;  %v4027_v24 = vmul.f32 %v7583_v15, %v7583_v15 }
 0x3db   :  { %v4084_v49 = vadd.f32 %v4083_v52, %v4021_v34  ;;  %v4028_v52 = vmul.f32 %v7586_v13, %v7586_v13 }
 0x3dd   :  { %v4085_v2 = vadd.f32 %v4084_v49, %v4022_v23  ;;  %v4029_v49 = vmul.f32 %v7589_v14, %v7589_v14 }
 0x3df   :  { %v4086_v32 = vadd.f32 %v4085_v2, %v4023_v46 }
 0x3e1   :  { %v4087_v58 = vadd.f32 %v4086_v32, %v4024_v10 }
 0x3e3   :  { %v4088_v35 = vadd.f32 %v4087_v58, %v4025_v29 }
 0x3e5   :  { %v4089_v34 = vadd.f32 %v4088_v35, %v4026_v47 }
 0x3e7   :  { %v4090_v23 = vadd.f32 %v4089_v34, %v4027_v24  ;;  %v8972_v24 = vld [vmem:[#allocation13_spill] sm:$0xff]  ;;  %v8973_v34 = vld [vmem:[#allocation14_spill] sm:$0xff] }
 0x3e9   :  { %v4091_v46 = vadd.f32 %v4090_v23, %v4028_v52  ;;  %v8974_v52 = vld [vmem:[#allocation15_spill] sm:$0xff]  ;;  %v8975_v23 = vld [vmem:[#allocation16_spill] sm:$0xff] }
 0x3eb   :  { %v4092_v2 = vadd.f32 %v4091_v46, %v4029_v49  ;;  %v8976_v49 = vld [vmem:[#allocation18_spill] sm:$0xff] }
 0x3ed   :  { %v4093_v39 = vrot.slane %v4092_v2, 4 }
 0x3ef   :  { %v4094_v54 = vadd.f32 %v4093_v39, %v4092_v2  ;;  %v8977_v2 = vld [vmem:[#allocation20_spill] sm:$0xff] }
 0x3f1   :  { %v4095_v10 = vrot.slane %v4094_v54, 2 }
 0x3f3   :  { %v4096_v32 = vadd.f32 %v4095_v10, %v4094_v54 }
 0x3f5   :  { %v4097_v18 = vrot.slane %v4096_v32, 1 }
 0x3f7   :  { %v4098_v27 = vadd.f32 %v4097_v18, %v4096_v32  ;;  %v8978_v32 = vld [vmem:[#allocation17_spill] sm:$0xff] }
 0x3f9   :  { %v4099_v29 = vmul.f32 0.001953125, %v4098_v27 }
 0x3fb   :  { %v4100_v58 = vadd.f32 1e-05, %v4099_v29 }
 0x3fd   :  { %5763 = vrsqrt.f32 %v4100_v58  ;;  %v8980_v58 = vld [vmem:[#allocation19_spill] sm:$0xff] }
 0x407   :  { %v7899_v15 = vpop.eup %5763 }
 0x408   :  { %v7903_v47 = vmul.f32 %v7899_v15, %v7593_v45  ;;  %v7907_v35 = vmul.f32 %v7899_v15, %v7597_v9  ;;  %v7911_v39 = vmul.f32 %v7899_v15, %v7601_v8  ;;  %v7915_v18 = vmul.f32 %v7899_v15, %v7609_v26 }
 0x409   :  { %v7919_v54 = vmul.f32 %v7899_v15, %v7613_v53  ;;  %v7923_v27 = vmul.f32 %v7899_v15, %v7619_v57  ;;  %v7927_v45 = vmul.f32 %v7899_v15, %v7625_v41  ;;  %v7931_v9 = vmul.f32 %v7899_v15, %v7631_v48 }
 0x40a   :  { %v7935_v8 = vmul.f32 %v7899_v15, %v7637_v42  ;;  %v7939_v26 = vmul.f32 %v7899_v15, %v7643_v38  ;;  %v7943_v53 = vmul.f32 %v7899_v15, %v7649_v59  ;;  %v7947_v57 = vmul.f32 %v7899_v15, %v7655_v20 }
 0x40b   :  { %v7951_v41 = vmul.f32 %v7899_v15, %v7661_v44  ;;  %v7955_v48 = vmul.f32 %v7899_v15, %v7667_v36  ;;  %v7959_v42 = vmul.f32 %v7899_v15, %v7673_v61  ;;  %v7963_v38 = vmul.f32 %v7899_v15, %v7679_v3 }
 0x40c   :  { %v7967_v59 = vmul.f32 %v7899_v15, %v7685_v60  ;;  %v7971_v20 = vmul.f32 %v7899_v15, %v7691_v63  ;;  %v7975_v44 = vmul.f32 %v7899_v15, %v7697_v62  ;;  %v7979_v36 = vmul.f32 %v7899_v15, %v7703_v33 }
 0x40d   :  { %v7983_v61 = vmul.f32 %v7899_v15, %v7709_v28  ;;  %v7987_v3 = vmul.f32 %v7899_v15, %v7715_v17  ;;  %v7991_v60 = vmul.f32 %v7899_v15, %v7721_v12  ;;  %v7995_v63 = vmul.f32 %v7899_v15, %v7727_v25  ;;  %v8971_v12 = vld [vmem:[#allocation12_spill] sm:$0xff] }
 0x40e   :  { %v7999_v62 = vmul.f32 %v7899_v15, %v7733_v6  ;;  %v8003_v33 = vmul.f32 %v7899_v15, %v7739_v21  ;;  %v8007_v28 = vmul.f32 %v7899_v15, %v7745_v4  ;;  %v8011_v17 = vmul.f32 %v7899_v15, %v7751_v16 }
 0x40f   :  { %v8015_v25 = vmul.f32 %v7899_v15, %v8971_v12  ;;  %v8019_v6 = vmul.f32 %v7899_v15, %v8972_v24  ;;  %v8023_v21 = vmul.f32 %v7899_v15, %v8973_v34  ;;  %v8027_v4 = vmul.f32 %v7899_v15, %v8974_v52  ;;  %v8981_v24 = vld [vmem:[#allocation22_spill] sm:$0xff]  ;;  %v8982_v52 = vld [vmem:[#allocation24_spill] sm:$0xff] }
 0x410   :  { %v8031_v16 = vmul.f32 %v7899_v15, %v8975_v23  ;;  %v8035_v46 = vmul.f32 %v7899_v15, %v8976_v49  ;;  %v8039_v10 = vmul.f32 %v7899_v15, %v8977_v2  ;;  %v8043_v29 = vmul.f32 %v7899_v15, %v8978_v32  ;;  %v8983_v49 = vld [vmem:[#allocation21_spill] sm:$0xff] }
 0x411   :  { %v8047_v12 = vmul.f32 %v7899_v15, %v8980_v58  ;;  %v8051_v34 = vmul.f32 %v7899_v15, %v8981_v24  ;;  %v8055_v23 = vmul.f32 %v7899_v15, %v8982_v52  ;;  %v8059_v2 = vmul.f32 %v7899_v15, %v8983_v49 }
 0x412   :  { %8979 = vst [vmem:[#allocation26_spill] sm:$0xff] %v8043_v29  ;;  %v8063_v32 = vmul.f32 %v7899_v15, %v7829_v51  ;;  %v8984_v29 = vld [vmem:[#allocation23_spill] sm:$0xff]  ;;  %v8071_v24 = vmul.f32 %v7899_v15, %v7841_v5  ;;  %v8075_v52 = vmul.f32 %v7899_v15, %v7847_v55  ;;  %v8079_v49 = vmul.f32 %v7899_v15, %v7853_v30 }
 0x413   :  { %v8067_v58 = vmul.f32 %v7899_v15, %v8984_v29  ;;  %v8083_v51 = vmul.f32 %v7899_v15, %v7527_v40  ;;  %v8087_v29 = vmul.f32 %v7899_v15, %v7531_v19  ;;  %v8091_v5 = vmul.f32 %v7899_v15, %v7535_v56 }
 0x414   :  { %v8095_v55 = vmul.f32 %v7899_v15, %v7539_v22  ;;  %v8099_v30 = vmul.f32 %v7899_v15, %v7543_v1  ;;  %v8103_v40 = vmul.f32 %v7899_v15, %v7547_v43  ;;  %v8107_v19 = vmul.f32 %v7899_v15, %v7551_v11  ;;  %v8128_v11 = vld [vmem:[%s8825_s2] ss:$0 sm:$0xff] }
 0x415   :  { %v8111_v56 = vmul.f32 %v7899_v15, %v7555_v31  ;;  %v8115_v22 = vmul.f32 %v7899_v15, %v7558_v37  ;;  %v8119_v1 = vmul.f32 %v7899_v15, %v7562_v50  ;;  %v8123_v43 = vmul.f32 %v7899_v15, %v7565_v0 }
 0x416   :  { %8985 = vst [vmem:[#allocation28_spill] sm:$0xff] %v8103_v40  ;;  %8986 = vst [vmem:[#allocation25_spill] sm:$0xff] %v8107_v19  ;;  %v8132_v31 = vmul.f32 %v7899_v15, %v7568_v7  ;;  %v8995_v40 = vld [vmem:[#allocation11_spill] sm:$0xff] }
 0x417   :  { %8987 = vst [vmem:[#allocation27_spill] sm:$0xff] %v8111_v56  ;;  %8988 = vst [vmem:[#allocation2_spill] sm:$0xff] %v8115_v22  ;;  %v8991_v56 = vld [vmem:[#allocation7_spill] sm:$0xff]  ;;  %v8992_v22 = vld [vmem:[#allocation8_spill] sm:$0xff]  ;;  %v8152_v7 = vmul.f32 %v7899_v15, %v8995_v40  ;;  %v8172_v40 = vmul.f32 %v8128_v11, %v7911_v39  ;;  %v8196_v39 = vmul.f32 %v8128_v11, %v7935_v8 }
 0x418   :  { %8989 = vst [vmem:[#allocation3_spill] sm:$0xff] %v8119_v1  ;;  %8990 = vst [vmem:[#allocation29_spill] sm:$0xff] %v8123_v43  ;;  %v8136_v37 = vmul.f32 %v7899_v15, %v8991_v56  ;;  %v8140_v50 = vmul.f32 %v7899_v15, %v8992_v22  ;;  %v8993_v1 = vld [vmem:[#allocation9_spill] sm:$0xff]  ;;  %v8994_v43 = vld [vmem:[#allocation10_spill] sm:$0xff]  ;;  %v8156_v56 = vmul.f32 %v7899_v15, %v7586_v13 }
 0x419   :  { %v8144_v0 = vmul.f32 %v7899_v15, %v8993_v1  ;;  %v8148_v19 = vmul.f32 %v7899_v15, %v8994_v43  ;;  %v8160_v22 = vmul.f32 %v7899_v15, %v7589_v14  ;;  %v8164_v1 = vmul.f32 %v8128_v11, %v7903_v47 }
 0x41a   :  { %v8168_v43 = vmul.f32 %v8128_v11, %v7907_v35  ;;  %v8176_v13 = vmul.f32 %v8128_v11, %v7915_v18  ;;  %v8180_v15 = vmul.f32 %v8128_v11, %v7919_v54  ;;  %v8184_v14 = vmul.f32 %v8128_v11, %v7923_v27 }
 0x41b   :  { %v8188_v47 = vmul.f32 %v8128_v11, %v7927_v45  ;;  %v8192_v35 = vmul.f32 %v8128_v11, %v7931_v9  ;;  %v8200_v18 = vmul.f32 %v8128_v11, %v7939_v26  ;;  %v8204_v54 = vmul.f32 %v8128_v11, %v7943_v53 }
 0x41c   :  { %v8208_v27 = vmul.f32 %v8128_v11, %v7947_v57  ;;  %v8212_v45 = vmul.f32 %v8128_v11, %v7951_v41  ;;  %v8216_v9 = vmul.f32 %v8128_v11, %v7955_v48  ;;  %v8220_v8 = vmul.f32 %v8128_v11, %v7959_v42 }
 0x41d   :  { %v8224_v26 = vmul.f32 %v8128_v11, %v7963_v38  ;;  %v8228_v53 = vmul.f32 %v8128_v11, %v7967_v59  ;;  %v8232_v57 = vmul.f32 %v8128_v11, %v7971_v20  ;;  %v8236_v41 = vmul.f32 %v8128_v11, %v7975_v44 }
 0x41e   :  { %v8240_v48 = vmul.f32 %v8128_v11, %v7979_v36  ;;  %v8244_v42 = vmul.f32 %v8128_v11, %v7983_v61  ;;  %v8248_v38 = vmul.f32 %v8128_v11, %v7987_v3  ;;  %v8252_v59 = vmul.f32 %v8128_v11, %v7991_v60 }
 0x41f   :  { %v8256_v20 = vmul.f32 %v8128_v11, %v7995_v63  ;;  %v8260_v44 = vmul.f32 %v8128_v11, %v7999_v62  ;;  %v8264_v36 = vmul.f32 %v8128_v11, %v8003_v33  ;;  %v8268_v61 = vmul.f32 %v8128_v11, %v8007_v28 }
 0x420   :  { %v8272_v3 = vmul.f32 %v8128_v11, %v8011_v17  ;;  %v8276_v60 = vmul.f32 %v8128_v11, %v8015_v25  ;;  %v8280_v63 = vmul.f32 %v8128_v11, %v8019_v6  ;;  %v8284_v62 = vmul.f32 %v8128_v11, %v8023_v21  ;;  %v8996_v6 = vld [vmem:[#allocation26_spill] sm:$0xff] }
 0x421   :  { %v8288_v33 = vmul.f32 %v8128_v11, %v8027_v4  ;;  %v8292_v28 = vmul.f32 %v8128_v11, %v8031_v16  ;;  %v8296_v17 = vmul.f32 %v8128_v11, %v8035_v46  ;;  %v8300_v25 = vmul.f32 %v8128_v11, %v8039_v10 }
 0x422   :  { %v8304_v21 = vmul.f32 %v8128_v11, %v8996_v6  ;;  %v8308_v4 = vmul.f32 %v8128_v11, %v8047_v12  ;;  %v8312_v16 = vmul.f32 %v8128_v11, %v8051_v34  ;;  %v8316_v46 = vmul.f32 %v8128_v11, %v8055_v23 }
 0x423   :  { %v8320_v10 = vmul.f32 %v8128_v11, %v8059_v2  ;;  %v8324_v6 = vmul.f32 %v8128_v11, %v8063_v32  ;;  %v8328_v12 = vmul.f32 %v8128_v11, %v8067_v58  ;;  %v8332_v34 = vmul.f32 %v8128_v11, %v8071_v24 }
 0x424   :  { %v8336_v23 = vmul.f32 %v8128_v11, %v8075_v52  ;;  %v8340_v2 = vmul.f32 %v8128_v11, %v8079_v49  ;;  %v8344_v32 = vmul.f32 %v8128_v11, %v8083_v51  ;;  %v8348_v58 = vmul.f32 %v8128_v11, %v8087_v29 }
 0x425   :  { %v8352_v24 = vmul.f32 %v8128_v11, %v8091_v5  ;;  %v8356_v52 = vmul.f32 %v8128_v11, %v8095_v55  ;;  %v8360_v49 = vmul.f32 %v8128_v11, %v8099_v30 }
 0x426   :  { %8997 = vst [vmem:[#allocation30_spill] sm:$0xff] %v8340_v2  ;;  %8998 = vst [vmem:[#allocation4_spill] sm:$0xff] %v8344_v32  ;;  %v9003_v2 = vld [vmem:[#allocation28_spill] sm:$0xff]  ;;  %v9004_v32 = vld [vmem:[#allocation25_spill] sm:$0xff] }
 0x427   :  { %8999 = vst [vmem:[#allocation5_spill] sm:$0xff] %v8348_v58  ;;  %9000 = vst [vmem:[#allocation31_spill] sm:$0xff] %v8352_v24  ;;  %v8364_v51 = vmul.f32 %v8128_v11, %v9003_v2  ;;  %v8368_v29 = vmul.f32 %v8128_v11, %v9004_v32  ;;  %v9005_v58 = vld [vmem:[#allocation27_spill] sm:$0xff]  ;;  %v9006_v24 = vld [vmem:[#allocation2_spill] sm:$0xff] }
 0x428   :  { %9001 = vst [vmem:[#allocation32_spill] sm:$0xff] %v8356_v52  ;;  %9002 = vst [vmem:[#allocation6_spill] sm:$0xff] %v8360_v49  ;;  %v8372_v5 = vmul.f32 %v8128_v11, %v9005_v58  ;;  %v8376_v55 = vmul.f32 %v8128_v11, %v9006_v24  ;;  %v9007_v52 = vld [vmem:[#allocation3_spill] sm:$0xff]  ;;  %v9008_v49 = vld [vmem:[#allocation29_spill] sm:$0xff]  ;;  %v8393_v58 = vmul.f32 %v8128_v11, %v8132_v31 }
 0x429   :  { %v8380_v30 = vmul.f32 %v8128_v11, %v9007_v52  ;;  %v8384_v2 = vmul.f32 %v8128_v11, %v9008_v49  ;;  %v8389_v32 = vld [vmem:[%s8826_s3] ss:$0 sm:$0xff]  ;;  %v8397_v24 = vmul.f32 %v8128_v11, %v8136_v37  ;;  %v8401_v52 = vmul.f32 %v8128_v11, %v8140_v50 }
 0x42a   :  { %v8405_v49 = vmul.f32 %v8128_v11, %v8144_v0  ;;  %v8413_v31 = vmul.f32 %v8128_v11, %v8152_v7  ;;  %v8417_v37 = vmul.f32 %v8128_v11, %v8156_v56  ;;  %v8421_v50 = vmul.f32 %v8128_v11, %v8160_v22 }
 0x42b   :  { %9009 = vst [vmem:[#allocation12_spill] sm:$0xff] %v8384_v2  ;;  %v8409_v2 = vmul.f32 %v8128_v11, %v8148_v19  ;;  %v8425_v0 = vadd.f32 %v8389_v32, %v8164_v1  ;;  %v8429_v19 = vadd.f32 %v8389_v32, %v8168_v43  ;;  %v8433_v7 = vadd.f32 %v8389_v32, %v8172_v40 }
 0x42c   :  { %v8437_v56 = vadd.f32 %v8389_v32, %v8176_v13  ;;  %v8441_v11 = vadd.f32 %v8389_v32, %v8180_v15  ;;  %v8445_v22 = vadd.f32 %v8389_v32, %v8184_v14  ;;  %v8449_v1 = vadd.f32 %v8389_v32, %v8188_v47 }
 0x42d   :  { %v8453_v43 = vadd.f32 %v8389_v32, %v8192_v35  ;;  %v8457_v40 = vadd.f32 %v8389_v32, %v8196_v39  ;;  %v8461_v13 = vadd.f32 %v8389_v32, %v8200_v18  ;;  %v8465_v15 = vadd.f32 %v8389_v32, %v8204_v54 }
 0x42e   :  { %9010 = vst [vmem:[#allocation13_spill] sm:$0xff] %v8441_v11  ;;  %9011 = vst [vmem:[#allocation14_spill] sm:$0xff] %v8445_v22  ;;  %v8469_v14 = vadd.f32 %v8389_v32, %v8208_v27  ;;  %v8473_v47 = vadd.f32 %v8389_v32, %v8212_v45  ;;  %v8477_v35 = vadd.f32 %v8389_v32, %v8216_v9 }
 0x42f   :  { %9012 = vst [vmem:[#allocation15_spill] sm:$0xff] %v8449_v1  ;;  %9013 = vst [vmem:[#allocation16_spill] sm:$0xff] %v8453_v43  ;;  %v8481_v39 = vadd.f32 %v8389_v32, %v8220_v8  ;;  %v8485_v18 = vadd.f32 %v8389_v32, %v8224_v26  ;;  %v8489_v54 = vadd.f32 %v8389_v32, %v8228_v53 }
 0x430   :  { %9014 = vst [vmem:[#allocation18_spill] sm:$0xff] %v8457_v40  ;;  %9015 = vst [vmem:[#allocation20_spill] sm:$0xff] %v8461_v13  ;;  %v8493_v27 = vadd.f32 %v8389_v32, %v8232_v57  ;;  %v8497_v45 = vadd.f32 %v8389_v32, %v8236_v41  ;;  %v8501_v9 = vadd.f32 %v8389_v32, %v8240_v48 }
 0x431   :  { %9016 = vst [vmem:[#allocation17_spill] sm:$0xff] %v8465_v15  ;;  %9017 = vst [vmem:[#allocation19_spill] sm:$0xff] %v8469_v14  ;;  %v8505_v8 = vadd.f32 %v8389_v32, %v8244_v42  ;;  %v8509_v26 = vadd.f32 %v8389_v32, %v8248_v38  ;;  %v8513_v53 = vadd.f32 %v8389_v32, %v8252_v59 }
 0x432   :  { %9018 = vst [vmem:[#allocation22_spill] sm:$0xff] %v8473_v47  ;;  %9019 = vst [vmem:[#allocation24_spill] sm:$0xff] %v8477_v35  ;;  %v8517_v57 = vadd.f32 %v8389_v32, %v8256_v20  ;;  %v8521_v41 = vadd.f32 %v8389_v32, %v8260_v44  ;;  %v8525_v48 = vadd.f32 %v8389_v32, %v8264_v36 }
 0x433   :  { %9020 = vst [vmem:[#allocation21_spill] sm:$0xff] %v8481_v39  ;;  %9021 = vst [vmem:[#allocation23_spill] sm:$0xff] %v8485_v18  ;;  %v8529_v42 = vadd.f32 %v8389_v32, %v8268_v61  ;;  %v8533_v38 = vadd.f32 %v8389_v32, %v8272_v3  ;;  %v8537_v59 = vadd.f32 %v8389_v32, %v8276_v60 }
 0x434   :  { %v8541_v20 = vadd.f32 %v8389_v32, %v8280_v63  ;;  %v8545_v44 = vadd.f32 %v8389_v32, %v8284_v62  ;;  %v8549_v36 = vadd.f32 %v8389_v32, %v8288_v33  ;;  %v8553_v61 = vadd.f32 %v8389_v32, %v8292_v28 }
 0x435   :  { %v8557_v3 = vadd.f32 %v8389_v32, %v8296_v17  ;;  %v8561_v60 = vadd.f32 %v8389_v32, %v8300_v25  ;;  %v8565_v63 = vadd.f32 %v8389_v32, %v8304_v21  ;;  %v8569_v62 = vadd.f32 %v8389_v32, %v8308_v4 }
 0x436   :  { %v8573_v33 = vadd.f32 %v8389_v32, %v8312_v16  ;;  %v8577_v28 = vadd.f32 %v8389_v32, %v8316_v46  ;;  %v8581_v17 = vadd.f32 %v8389_v32, %v8320_v10  ;;  %v8585_v25 = vadd.f32 %v8389_v32, %v8324_v6  ;;  %v9027_v46 = vld [vmem:[#allocation30_spill] sm:$0xff] }
 0x437   :  { %v8589_v21 = vadd.f32 %v8389_v32, %v8328_v12  ;;  %v8593_v4 = vadd.f32 %v8389_v32, %v8332_v34  ;;  %v8597_v16 = vadd.f32 %v8389_v32, %v8336_v23  ;;  %v8601_v10 = vadd.f32 %v8389_v32, %v9027_v46 }
 0x438   :  { %9022 = vst [vmem:[#allocation7_spill] sm:$0xff] %v8581_v17  ;;  %9023 = vst [vmem:[#allocation8_spill] sm:$0xff] %v8585_v25  ;;  %v9028_v17 = vld [vmem:[#allocation4_spill] sm:$0xff]  ;;  %v9029_v25 = vld [vmem:[#allocation5_spill] sm:$0xff] }
 0x439   :  { %9024 = vst [vmem:[#allocation9_spill] sm:$0xff] %v8589_v21  ;;  %9025 = vst [vmem:[#allocation10_spill] sm:$0xff] %v8593_v4  ;;  %v8605_v6 = vadd.f32 %v8389_v32, %v9028_v17  ;;  %v8609_v12 = vadd.f32 %v8389_v32, %v9029_v25  ;;  %v9030_v21 = vld [vmem:[#allocation31_spill] sm:$0xff]  ;;  %v9031_v4 = vld [vmem:[#allocation32_spill] sm:$0xff]  ;;  %v8625_v17 = vadd.f32 %v8389_v32, %v8364_v51 }
 0x43a   :  { %9026 = vst [vmem:[#allocation11_spill] sm:$0xff] %v8597_v16  ;;  %v8613_v34 = vadd.f32 %v8389_v32, %v9030_v21  ;;  %v8617_v23 = vadd.f32 %v8389_v32, %v9031_v4  ;;  %v9032_v16 = vld [vmem:[#allocation6_spill] sm:$0xff]  ;;  %v8629_v25 = vadd.f32 %v8389_v32, %v8368_v29  ;;  %v8633_v21 = vadd.f32 %v8389_v32, %v8372_v5 }
 0x43b   :  { %v8621_v46 = vadd.f32 %v8389_v32, %v9032_v16  ;;  %v8637_v4 = vadd.f32 %v8389_v32, %v8376_v55  ;;  %v8641_v16 = vadd.f32 %v8389_v32, %v8380_v30  ;;  %v8649_v29 = vadd.f32 %v8389_v32, %v8393_v58 }
 0x43c   :  { %v8653_v5 = vadd.f32 %v8389_v32, %v8397_v24  ;;  %v8657_v55 = vadd.f32 %v8389_v32, %v8401_v52  ;;  %v8661_v30 = vadd.f32 %v8389_v32, %v8405_v49  ;;  %v8669_v58 = vadd.f32 %v8389_v32, %v8413_v31 }
 0x43d   :  { %9033 = vst [vmem:[#allocation26_spill] sm:$0xff] %v8621_v46  ;;  %v9034_v46 = vld [vmem:[#allocation12_spill] sm:$0xff]  ;;  %v8673_v24 = vadd.f32 %v8389_v32, %v8417_v37  ;;  %v8677_v52 = vadd.f32 %v8389_v32, %v8421_v50  ;;  %v4325_v37 = vmax.f32 %v8493_v27, 0.0  ;;  %v4328_v50 = vmax.f32 %v8505_v8, 0.0 }
 0x43e   :  { %v8645_v51 = vadd.f32 %v8389_v32, %v9034_v46  ;;  %9035 = vst [vmem:[#allocation28_spill] sm:$0xff] %v8657_v55  ;;  %9036 = vst [vmem:[#allocation25_spill] sm:$0xff] %v8661_v30  ;;  %v8665_v46 = vadd.f32 %v8389_v32, %v8409_v2  ;;  %v4327_v32 = vmax.f32 %v8501_v9, 0.0  ;;  %v4329_v49 = vmax.f32 %v8509_v26, 0.0 }
 0x43f   :  { %9038 = vst [vmem:[#allocation2_spill] sm:$0xff] %v8669_v58  ;;  %9039 = vst [vmem:[#allocation3_spill] sm:$0xff] %v8673_v24  ;;  %v4324_v58 = vmax.f32 %v8489_v54, 0.0  ;;  %v4326_v24 = vmax.f32 %v8497_v45, 0.0  ;;  %v4330_v30 = vmax.f32 %v8513_v53, 0.0  ;;  %v4331_v2 = vmax.f32 %v8517_v57, 0.0 }
 0x440   :  { %9037 = vst [vmem:[#allocation27_spill] sm:$0xff] %v8665_v46  ;;  %v4332_v46 = vmax.f32 %v8521_v41, 0.0  ;;  %v4333_v31 = vmax.f32 %v8525_v48, 0.0  ;;  %v4334_v54 = vmax.f32 %v8529_v42, 0.0  ;;  %v4335_v27 = vmax.f32 %v8533_v38, 0.0  ;;  %v9040_v55 = vld [vmem:[#allocation7_spill] sm:$0xff] }
 0x441   :  { %v4336_v45 = vmax.f32 %v8537_v59, 0.0  ;;  %v4337_v9 = vmax.f32 %v8541_v20, 0.0  ;;  %v4338_v8 = vmax.f32 %v8545_v44, 0.0  ;;  %v4339_v26 = vmax.f32 %v8549_v36, 0.0  ;;  %v9041_v18 = vld [vmem:[#allocation8_spill] sm:$0xff]  ;;  %v9042_v39 = vld [vmem:[#allocation9_spill] sm:$0xff] }
 0x442   :  { %v4340_v53 = vmax.f32 %v8553_v61, 0.0  ;;  %v4341_v57 = vmax.f32 %v8557_v3, 0.0  ;;  %v4342_v41 = vmax.f32 %v8561_v60, 0.0  ;;  %v4343_v48 = vmax.f32 %v8565_v63, 0.0  ;;  %v9043_v35 = vld [vmem:[#allocation10_spill] sm:$0xff]  ;;  %v9044_v47 = vld [vmem:[#allocation11_spill] sm:$0xff] }
 0x443   :  { %v4344_v42 = vmax.f32 %v8569_v62, 0.0  ;;  %v4345_v38 = vmax.f32 %v8573_v33, 0.0  ;;  %v4346_v59 = vmax.f32 %v8577_v28, 0.0  ;;  %v4347_v20 = vmax.f32 %v9040_v55, 0.0 }
 0x444   :  { %v4348_v44 = vmax.f32 %v9041_v18, 0.0  ;;  %v4349_v36 = vmax.f32 %v9042_v39, 0.0  ;;  %v4350_v61 = vmax.f32 %v9043_v35, 0.0  ;;  %v4351_v3 = vmax.f32 %v9044_v47, 0.0  ;;  %v9045_v14 = vld [vmem:[#allocation26_spill] sm:$0xff] }
 0x445   :  { %v4352_v60 = vmax.f32 %v8601_v10, 0.0  ;;  %v4353_v63 = vmax.f32 %v8605_v6, 0.0  ;;  %v4354_v62 = vmax.f32 %v8609_v12, 0.0  ;;  %v4355_v33 = vmax.f32 %v8613_v34, 0.0  ;;  %v9046_v15 = vld [vmem:[#allocation28_spill] sm:$0xff]  ;;  %v9047_v13 = vld [vmem:[#allocation25_spill] sm:$0xff] }
 0x446   :  { %v4356_v28 = vmax.f32 %v8617_v23, 0.0  ;;  %v4357_v55 = vmax.f32 %v9045_v14, 0.0  ;;  %v4358_v18 = vmax.f32 %v8625_v17, 0.0  ;;  %v4359_v39 = vmax.f32 %v8629_v25, 0.0  ;;  %v9049_v43 = vld [vmem:[#allocation2_spill] sm:$0xff]  ;;  %v9050_v1 = vld [vmem:[#allocation3_spill] sm:$0xff] }
 0x447   :  { %v4360_v35 = vmax.f32 %v8633_v21, 0.0  ;;  %v4361_v47 = vmax.f32 %v8637_v4, 0.0  ;;  %v4362_v10 = vmax.f32 %v8641_v16, 0.0  ;;  %v4363_v6 = vmax.f32 %v8645_v51, 0.0  ;;  %v9048_v40 = vld [vmem:[#allocation27_spill] sm:$0xff] }
 0x448   :  { %v4364_v12 = vmax.f32 %v8649_v29, 0.0  ;;  %v4365_v34 = vmax.f32 %v8653_v5, 0.0  ;;  %v4366_v23 = vmax.f32 %v9046_v15, 0.0  ;;  %v4367_v14 = vmax.f32 %v9047_v13, 0.0 }
 0x449   :  { %v4368_v17 = vmax.f32 %v9048_v40, 0.0  ;;  %v4369_v25 = vmax.f32 %v9049_v43, 0.0  ;;  %v4370_v21 = vmax.f32 %v9050_v1, 0.0  ;;  %v4371_v4 = vmax.f32 %v8677_v52, 0.0  ;;  %v9055_v40 = vld [vmem:[#allocation13_spill] sm:$0xff]  ;;  %v9057_v52 = vld [vmem:[#allocation14_spill] sm:$0xff] }
 0x44a   :  { %v9051_v16 = vmax.f32 %v8425_v0, 0.0  ;;  %v9052_v51 = vmax.f32 %v8429_v19, 0.0  ;;  %v9053_v5 = vmax.f32 %v8433_v7, 0.0  ;;  %v9054_v15 = vmax.f32 %v8437_v56, 0.0 }
 0x44b   :  { %v9056_v43 = vmax.f32 %v9055_v40, 0.0  ;;  %v9058_v0 = vmax.f32 %v9057_v52, 0.0 }
 0x44c   :  { %v4372_v22 = vmax.f32 %v9051_v16, %v4324_v58  ;;  %v4373_v29 = vmax.f32 %v9052_v51, %v4325_v37  ;;  %v4374_v11 = vmax.f32 %v9053_v5, %v4326_v24  ;;  %v4375_v13 = vmax.f32 %v9054_v15, %v4327_v32  ;;  %v9059_v58 = vld [vmem:[#allocation15_spill] sm:$0xff]  ;;  %v9061_v51 = vld [vmem:[#allocation16_spill] sm:$0xff]  ;;  %v9063_v24 = vld [vmem:[#allocation18_spill] sm:$0xff] }
 0x44d   :  { %v4376_v1 = vmax.f32 %v9056_v43, %v4328_v50  ;;  %v4377_v16 = vmax.f32 %v9058_v0, %v4329_v49  ;;  %v9060_v19 = vmax.f32 %v9059_v58, 0.0  ;;  %v9062_v7 = vmax.f32 %v9061_v51, 0.0  ;;  %v9065_v32 = vld [vmem:[#allocation20_spill] sm:$0xff]  ;;  %v9067_v50 = vld [vmem:[#allocation17_spill] sm:$0xff]  ;;  %v9069_v49 = vld [vmem:[#allocation19_spill] sm:$0xff] }
 0x44e   :  { %v9064_v56 = vmax.f32 %v9063_v24, 0.0  ;;  %v9066_v40 = vmax.f32 %v9065_v32, 0.0  ;;  %v9068_v52 = vmax.f32 %v9067_v50, 0.0  ;;  %v9070_v58 = vmax.f32 %v9069_v49, 0.0 }
 0x44f   :  { %v4378_v37 = vmax.f32 %v9060_v19, %v4330_v30  ;;  %v4379_v5 = vmax.f32 %v9062_v7, %v4331_v2  ;;  %v9071_v30 = vld [vmem:[#allocation22_spill] sm:$0xff]  ;;  %v9073_v7 = vld [vmem:[#allocation24_spill] sm:$0xff]  ;;  %v4389_v49 = vmax.f32 %v4341_v57, %v4357_v55 }
 0x450   :  { %v4380_v15 = vmax.f32 %v9064_v56, %v4332_v46  ;;  %v4381_v43 = vmax.f32 %v9066_v40, %v4333_v31  ;;  %v4382_v0 = vmax.f32 %v9068_v52, %v4334_v54  ;;  %v4383_v19 = vmax.f32 %v9070_v58, %v4335_v27  ;;  %v9075_v56 = vld [vmem:[#allocation21_spill] sm:$0xff]  ;;  %v9077_v40 = vld [vmem:[#allocation23_spill] sm:$0xff] }
 0x451   :  { %v9072_v51 = vmax.f32 %v9071_v30, 0.0  ;;  %v9074_v24 = vmax.f32 %v9073_v7, 0.0  ;;  %v9076_v32 = vmax.f32 %v9075_v56, 0.0  ;;  %v9078_v50 = vmax.f32 %v9077_v40, 0.0 }
 0x452   :  { %v4388_v54 = vmax.f32 %v4340_v53, %v4356_v28  ;;  %v4390_v27 = vmax.f32 %v4342_v41, %v4358_v18  ;;  %v4391_v58 = vmax.f32 %v4343_v48, %v4359_v39  ;;  %v4392_v30 = vmax.f32 %v4344_v42, %v4360_v35 }
 0x453   :  { %v4384_v2 = vmax.f32 %v9072_v51, %v4336_v45  ;;  %v4385_v46 = vmax.f32 %v9074_v24, %v4337_v9  ;;  %v4386_v31 = vmax.f32 %v9076_v32, %v4338_v8  ;;  %v4387_v52 = vmax.f32 %v9078_v50, %v4339_v26 }
 0x454   :  { %v4393_v45 = vmax.f32 %v4345_v38, %v4361_v47  ;;  %v4394_v51 = vmax.f32 %v4346_v59, %v4362_v10  ;;  %v4395_v7 = vmax.f32 %v4347_v20, %v4363_v6  ;;  %v4396_v9 = vmax.f32 %v4348_v44, %v4364_v12 }
 0x455   :  { %v4397_v24 = vmax.f32 %v4349_v36, %v4365_v34  ;;  %v4398_v56 = vmax.f32 %v4350_v61, %v4366_v23  ;;  %v4399_v8 = vmax.f32 %v4351_v3, %v4367_v14  ;;  %v4400_v32 = vmax.f32 %v4352_v60, %v4368_v17 }
 0x456   :  { %v4401_v40 = vmax.f32 %v4353_v63, %v4369_v25  ;;  %v4402_v26 = vmax.f32 %v4354_v62, %v4370_v21  ;;  %v4403_v50 = vmax.f32 %v4355_v33, %v4371_v4  ;;  %v4404_v28 = vmax.f32 %v4372_v22, %v4388_v54 }
 0x457   :  { %v4405_v53 = vmax.f32 %v4373_v29, %v4389_v49  ;;  %v4406_v55 = vmax.f32 %v4374_v11, %v4390_v27  ;;  %v4407_v57 = vmax.f32 %v4375_v13, %v4391_v58  ;;  %v4408_v18 = vmax.f32 %v4376_v1, %v4392_v30 }
 0x458   :  { %v4409_v41 = vmax.f32 %v4377_v16, %v4393_v45  ;;  %v4410_v39 = vmax.f32 %v4378_v37, %v4394_v51  ;;  %v4411_v48 = vmax.f32 %v4379_v5, %v4395_v7  ;;  %v4412_v42 = vmax.f32 %v4380_v15, %v4396_v9  ;;  %4420 = vst [vmem:[%s8827_s4] sm:$0xff] %v4404_v28 }
 0x459   :  { %v4413_v38 = vmax.f32 %v4381_v43, %v4397_v24  ;;  %v4414_v59 = vmax.f32 %v4382_v0, %v4398_v56  ;;  %v4415_v20 = vmax.f32 %v4383_v19, %v4399_v8  ;;  %4421 = vst [vmem:[%s8827_s4 + $0x8] sm:$0xff] %v4405_v53  ;;  %4422 = vst [vmem:[%s8827_s4 + $0x10] sm:$0xff] %v4406_v55 }
 0x45a   :  { %4423 = vst [vmem:[%s8827_s4 + $0x18] sm:$0xff] %v4407_v57  ;;  %v4416_v11 = vmax.f32 %v4384_v2, %v4400_v32  ;;  %v4417_v22 = vmax.f32 %v4385_v46, %v4401_v40  ;;  %v4418_v44 = vmax.f32 %v4386_v31, %v4402_v26  ;;  %v4419_v36 = vmax.f32 %v4387_v52, %v4403_v50 }
 0x45b   :  { %4424 = vst [vmem:[%s8827_s4 + $0x20] sm:$0xff] %v4408_v18  ;;  %4425 = vst [vmem:[%s8827_s4 + $0x28] sm:$0xff] %v4409_v41 }
 0x45c   :  { %4426 = vst [vmem:[%s8827_s4 + $0x30] sm:$0xff] %v4410_v39  ;;  %4427 = vst [vmem:[%s8827_s4 + $0x38] sm:$0xff] %v4411_v48 }
 0x45d   :  { %4428 = vst [vmem:[%s8827_s4 + $0x40] sm:$0xff] %v4412_v42  ;;  %4429 = vst [vmem:[%s8827_s4 + $0x48] sm:$0xff] %v4413_v38 }
 0x45e   :  { %4430 = vst [vmem:[%s8827_s4 + $0x50] sm:$0xff] %v4414_v59  ;;  %4431 = vst [vmem:[%s8827_s4 + $0x58] sm:$0xff] %v4415_v20 }
 0x45f   :  { %4432 = vst [vmem:[%s8827_s4 + $0x60] sm:$0xff] %v4416_v11  ;;  %4433 = vst [vmem:[%s8827_s4 + $0x68] sm:$0xff] %v4417_v22 }
 0x460   :  { %4434 = vst [vmem:[%s8827_s4 + $0x70] sm:$0xff] %v4418_v44  ;;  %4435 = vst [vmem:[%s8827_s4 + $0x78] sm:$0xff] %v4419_v36 }

// kernel: vgg_forward.11
= control target key start
LH: loop header
LB: loop body
LE: loop exit
PB: predicated region body
PF: predicated region fallthrough
CT: control target
= control target key end

     0   :  { %s2934_s1 = inlined_call_operand.vmem [shape: bf16[1152,128], index: 1, kind: input, shape index: {}]   ;;  %s2935_s0 = inlined_call_operand.vmem [shape: bf16[128,1152], index: 0, kind: input, shape index: {}]   ;;  %s2936_s2 = inlined_call_operand.vmem [shape: f32[1,128], index: 2, kind: input, shape index: {}]   ;;  %s2937_s3 = inlined_call_operand.vmem [shape: f32[1,128], index: 3, kind: input, shape index: {}]   ;;  %s2938_s4 = inlined_call_operand.vmem [shape: f32[128,128], index: 4, kind: output, shape index: {}]  }
   0x1   :  { %v2170_v0 = vld [vmem:[%s2934_s1 + $0x40] sm:$0xff]   ;;  %v2174_v4 = vld [vmem:[%s2934_s1 + $0x48] sm:$0xff]   ;;  %v2178_v8 = vld [vmem:[%s2934_s1 + $0x50] sm:$0xff]  }
   0x2   :  { %v2171_v1 = vld [vmem:[%s2934_s1 + $0xc0] sm:$0xff]   ;;  %1850 = vmatprep.subr.bf16.mxu0 %v2170_v0  ;;  %v2175_v5 = vld [vmem:[%s2934_s1 + $0xc8] sm:$0xff]   ;;  %v2179_v9 = vld [vmem:[%s2934_s1 + $0xd0] sm:$0xff]  }
   0x3   :  { %v2172_v2 = vld [vmem:[%s2934_s1] sm:$0xff]   ;;  %1914 = vmatprep.subr.bf16.mxu1 %v2171_v1  ;;  %v2176_v6 = vld [vmem:[%s2934_s1 + $0x8] sm:$0xff]   ;;  %v2180_v10 = vld [vmem:[%s2934_s1 + $0x10] sm:$0xff]  }
   0x4   :  { %v2173_v3 = vld [vmem:[%s2934_s1 + $0x80] sm:$0xff]   ;;  %1851 = vmatpush3.bf16.msra.mxu0 %v2172_v2  ;;  %v2177_v7 = vld [vmem:[%s2934_s1 + $0x88] sm:$0xff]   ;;  %v2181_v11 = vld [vmem:[%s2934_s1 + $0x90] sm:$0xff]  }
   0x5   :  { %1915 = vmatpush3.bf16.msra.mxu1 %v2173_v3  ;;  %1852 = vmatprep.subr.bf16.mxu0 %v2174_v4  ;;  %v2182_v12 = vld [vmem:[%s2934_s1 + $0x58] sm:$0xff]   ;;  %v2186_v16 = vld [vmem:[%s2934_s1 + $0x60] sm:$0xff]   ;;  %v2190_v20 = vld [vmem:[%s2934_s1 + $0x68] sm:$0xff]  }
   0x6   :  { %1916 = vmatprep.subr.bf16.mxu1 %v2175_v5  ;;  %v2183_v13 = vld [vmem:[%s2934_s1 + $0xd8] sm:$0xff]   ;;  %v2187_v17 = vld [vmem:[%s2934_s1 + $0xe0] sm:$0xff]   ;;  %v2191_v21 = vld [vmem:[%s2934_s1 + $0xe8] sm:$0xff]  }
   0x7   :  { %v2184_v14 = vld [vmem:[%s2934_s1 + $0x18] sm:$0xff]   ;;  %v2188_v18 = vld [vmem:[%s2934_s1 + $0x20] sm:$0xff]   ;;  %v2192_v22 = vld [vmem:[%s2934_s1 + $0x28] sm:$0xff]  }
   0x8   :  { %1853 = vmatpush3.bf16.msra.mxu0 %v2176_v6  ;;  %v2185_v15 = vld [vmem:[%s2934_s1 + $0x98] sm:$0xff]   ;;  %v2189_v19 = vld [vmem:[%s2934_s1 + $0xa0] sm:$0xff]   ;;  %v2193_v23 = vld [vmem:[%s2934_s1 + $0xa8] sm:$0xff]  }
   0x9   :  { %1917 = vmatpush3.bf16.msra.mxu1 %v2177_v7  ;;  %1854 = vmatprep.subr.bf16.mxu0 %v2178_v8  ;;  %v2194_v24 = vld [vmem:[%s2934_s1 + $0x70] sm:$0xff]   ;;  %v2198_v28 = vld [vmem:[%s2934_s1 + $0x78] sm:$0xff]   ;;  %v2202_v32 = vld [vmem:[%s2935_s0] ss:$36 sps:$4 sm:$0xff]  }
   0xa   :  { %1918 = vmatprep.subr.bf16.mxu1 %v2179_v9  ;;  %v2195_v25 = vld [vmem:[%s2934_s1 + $0xf0] sm:$0xff]   ;;  %v2199_v29 = vld [vmem:[%s2934_s1 + $0xf8] sm:$0xff]   ;;  %v2204_v33 = vld [vmem:[%s2935_s0 + $0x4] ss:$36 sps:$4 sm:$0xff]  }
   0xb   :  { %v2196_v26 = vld [vmem:[%s2934_s1 + $0x30] sm:$0xff]   ;;  %v2200_v30 = vld [vmem:[%s2934_s1 + $0x38] sm:$0xff]   ;;  %v2205_v34 = vld [vmem:[%s2935_s0 + $0x8] ss:$36 sps:$4 sm:$0xff]   ;;  %1074 = vmatprep.mubr.bf16.mxu0 %v2204_v33 }
   0xc   :  { %1855 = vmatpush3.bf16.msra.mxu0 %v2180_v10  ;;  %v2197_v27 = vld [vmem:[%s2934_s1 + $0xb0] sm:$0xff]   ;;  %v2201_v31 = vld [vmem:[%s2934_s1 + $0xb8] sm:$0xff]   ;;  %v2208_v36 = vld [vmem:[%s2934_s1 + $0x140] sm:$0xff]  }
   0xd   :  { %1919 = vmatpush3.bf16.msra.mxu1 %v2181_v11  ;;  %1856 = vmatprep.subr.bf16.mxu0 %v2182_v12  ;;  %v2207_v35 = vld [vmem:[%s2935_s0 + $0xc] ss:$36 sps:$4 sm:$0xff]   ;;  %v2209_v37 = vld [vmem:[%s2934_s1 + $0x100] sm:$0xff]   ;;  %v2212_v39 = vld [vmem:[%s2935_s0 + $0x54] ss:$36 sps:$4 sm:$0xff]  }
   0xe   :  { %1920 = vmatprep.subr.bf16.mxu1 %v2183_v13  ;;  %1171 = vmatprep.mubr.bf16.mxu1 %v2207_v35  ;;  %v2210_v38 = vld [vmem:[%s2935_s0 + $0x4c] ss:$36 sps:$4 sm:$0xff]   ;;  %v2218_v44 = vld [vmem:[%s2935_s0 + $0x94] ss:$36 sps:$4 sm:$0xff]   ;;  %v2220_v45 = vld [vmem:[%s2935_s0 + $0x9c] ss:$36 sps:$4 sm:$0xff]  }
   0xf   :  { %v2214_v40 = vld [vmem:[%s2935_s0 + $0x48] ss:$36 sps:$4 sm:$0xff]   ;;  %v2215_v41 = vld [vmem:[%s2935_s0 + $0x50] ss:$36 sps:$4 sm:$0xff]   ;;  %v2225_v47 = vld [vmem:[%s2934_s1 + $0x1c0] sm:$0xff]  }
  0x10   :  { %1857 = vmatpush3.bf16.msra.mxu0 %v2184_v14  ;;  %v2216_v42 = vld [vmem:[%s2934_s1 + $0x148] sm:$0xff]   ;;  %v2224_v46 = vld [vmem:[%s2934_s1 + $0x150] sm:$0xff]   ;;  %v2227_v50 = vld [vmem:[%s2934_s1 + $0x180] sm:$0xff]  }
  0x11   :  { %1921 = vmatpush3.bf16.msra.mxu1 %v2185_v15  ;;  %1858 = vmatprep.subr.bf16.mxu0 %v2186_v16  ;;  %v2217_v43 = vld [vmem:[%s2934_s1 + $0x108] sm:$0xff]   ;;  %v2222_v48 = vld [vmem:[%s2935_s0 + $0x90] ss:$36 sps:$4 sm:$0xff]   ;;  %v2223_v51 = vld [vmem:[%s2935_s0 + $0x98] ss:$36 sps:$4 sm:$0xff]  }
  0x12   :  { %1922 = vmatprep.subr.bf16.mxu1 %v2187_v17  ;;  %v2226_v49 = vld [vmem:[%s2934_s1 + $0x110] sm:$0xff]   ;;  %v2228_v52 = vld [vmem:[%s2935_s0 + $0xdc] ss:$36 sps:$4 sm:$0xff]   ;;  %v2230_v53 = vld [vmem:[%s2935_s0 + $0xe4] ss:$36 sps:$4 sm:$0xff]  }
  0x13   :  { %v2234_v54 = vld [vmem:[%s2934_s1 + $0x158] sm:$0xff]   ;;  %v2235_v55 = vld [vmem:[%s2934_s1 + $0x1c8] sm:$0xff]   ;;  %v2233_v59 = vld [vmem:[%s2935_s0 + $0xe0] ss:$36 sps:$4 sm:$0xff]  }
  0x14   :  { %1859 = vmatpush3.bf16.msra.mxu0 %v2188_v18  ;;  %v2236_v56 = vld [vmem:[%s2934_s1 + $0x118] sm:$0xff]   ;;  %v2237_v57 = vld [vmem:[%s2934_s1 + $0x188] sm:$0xff]   ;;  %v2244_v62 = vld [vmem:[%s2934_s1 + $0x160] sm:$0xff]  }
  0x15   :  { %1923 = vmatpush3.bf16.msra.mxu1 %v2189_v19  ;;  %1860 = vmatprep.subr.bf16.mxu0 %v2190_v20  ;;  %v2232_v58 = vld [vmem:[%s2935_s0 + $0xd8] ss:$36 sps:$4 sm:$0xff]   ;;  %v2238_v60 = vld [vmem:[%s2935_s0 + $0x124] ss:$36 sps:$4 sm:$0xff]   ;;  %v2240_v61 = vld [vmem:[%s2935_s0 + $0x12c] ss:$36 sps:$4 sm:$0xff]  }
  0x16   :  { %1924 = vmatprep.subr.bf16.mxu1 %v2191_v21  ;;  %v2245_v63 = vld [vmem:[%s2934_s1 + $0x1d0] sm:$0xff]   ;;  %v2246_v0 = vld [vmem:[%s2934_s1 + $0x120] sm:$0xff]   ;;  %v2243_v3 = vld [vmem:[%s2935_s0 + $0x128] ss:$36 sps:$4 sm:$0xff]  }
  0x17   :  { %v2247_v1 = vld [vmem:[%s2934_s1 + $0x190] sm:$0xff]   ;;  %v2242_v2 = vld [vmem:[%s2935_s0 + $0x120] ss:$36 sps:$4 sm:$0xff]   ;;  %v2254_v6 = vld [vmem:[%s2934_s1 + $0x168] sm:$0xff]  }
  0x18   :  { %1861 = vmatpush3.bf16.msra.mxu0 %v2192_v22  ;;  %v2248_v4 = vld [vmem:[%s2935_s0 + $0x16c] ss:$36 sps:$4 sm:$0xff]   ;;  %v2250_v5 = vld [vmem:[%s2935_s0 + $0x174] ss:$36 sps:$4 sm:$0xff]   ;;  %v2260_v14 = vld [vmem:[%s2935_s0 + $0x1bc] ss:$36 sps:$4 sm:$0xff]  }
  0x19   :  { %1925 = vmatpush3.bf16.msra.mxu1 %v2193_v23  ;;  %1862 = vmatprep.subr.bf16.mxu0 %v2194_v24  ;;  %v2255_v7 = vld [vmem:[%s2934_s1 + $0x1d8] sm:$0xff]   ;;  %v2256_v8 = vld [vmem:[%s2934_s1 + $0x128] sm:$0xff]   ;;  %v2253_v11 = vld [vmem:[%s2935_s0 + $0x170] ss:$36 sps:$4 sm:$0xff]  }
  0x1a   :  { %1926 = vmatprep.subr.bf16.mxu1 %v2195_v25  ;;  %v2257_v9 = vld [vmem:[%s2934_s1 + $0x198] sm:$0xff]   ;;  %v2252_v10 = vld [vmem:[%s2935_s0 + $0x168] ss:$36 sps:$4 sm:$0xff]   ;;  %v2264_v13 = vld [vmem:[%s2934_s1 + $0x170] sm:$0xff]  }
  0x1b   :  { %v2258_v12 = vld [vmem:[%s2935_s0 + $0x1b4] ss:$36 sps:$4 sm:$0xff]   ;;  %v2265_v15 = vld [vmem:[%s2934_s1 + $0x1e0] sm:$0xff]   ;;  %v2268_v18 = vld [vmem:[%s2934_s1 + $0x1e8] sm:$0xff]  }
  0x1c   :  { %1863 = vmatpush3.bf16.msra.mxu0 %v2196_v26  ;;  %v2266_v16 = vld [vmem:[%s2934_s1 + $0x130] sm:$0xff]   ;;  %v2267_v17 = vld [vmem:[%s2934_s1 + $0x1a0] sm:$0xff]   ;;  %v2269_v19 = vld [vmem:[%s2934_s1 + $0x1a8] sm:$0xff]  }
  0x1d   :  { %1927 = vmatpush3.bf16.msra.mxu1 %v2197_v27  ;;  %1864 = vmatprep.subr.bf16.mxu0 %v2198_v28  ;;  %v2262_v20 = vld [vmem:[%s2935_s0 + $0x1b0] ss:$36 sps:$4 sm:$0xff]   ;;  %v2263_v21 = vld [vmem:[%s2935_s0 + $0x1b8] ss:$36 sps:$4 sm:$0xff]   ;;  %v2272_v23 = vld [vmem:[%s2935_s0 + $0x204] ss:$36 sps:$4 sm:$0xff]  }
  0x1e   :  { %1928 = vmatprep.subr.bf16.mxu1 %v2199_v29  ;;  %v2270_v22 = vld [vmem:[%s2935_s0 + $0x1fc] ss:$36 sps:$4 sm:$0xff]   ;;  %v2277_v25 = vld [vmem:[%s2934_s1 + $0x1f0] sm:$0xff]  }
  0x1f   :  { %v2276_v24 = vld [vmem:[%s2934_s1 + $0x178] sm:$0xff]   ;;  %v2279_v27 = vld [vmem:[%s2934_s1 + $0x1b0] sm:$0xff]  }
  0x20   :  { %1865 = vmatpush3.bf16.msra.mxu0 %v2200_v30  ;;  %v2278_v26 = vld [vmem:[%s2934_s1 + $0x138] sm:$0xff]   ;;  %v2275_v30 = vld [vmem:[%s2935_s0 + $0x200] ss:$36 sps:$4 sm:$0xff]   ;;  %v2282_v35 = vld [vmem:[%s2935_s0 + $0x10] ss:$36 sps:$4 sm:$0xff]  }
  0x21   :  { %1929 = vmatpush3.bf16.msra.mxu1 %v2201_v31  ;;  %1978 = vmatprep.subr.bf16.mxu0 %v2208_v36  ;;  %v2280_v28 = vld [vmem:[%s2934_s1 + $0x1f8] sm:$0xff]  }
  0x22   :  { %2042 = vmatprep.subr.bf16.mxu1 %v2225_v47  ;;  %v2274_v29 = vld [vmem:[%s2935_s0 + $0x1f8] ss:$36 sps:$4 sm:$0xff]   ;;  %v2300_v47 = vld [vmem:[%s2935_s0 + $0xa0] ss:$36 sps:$4 sm:$0xff]  }
  0x23   :  { %1075 = vmatmul.mubr.bf16.vlgmr.msra.gmra.mrb[0].mxu0 %v2202_v32  ;;  %v2281_v31 = vld [vmem:[%s2934_s1 + $0x1b8] sm:$0xff]   ;;  %v2288_v32 = vld [vmem:[%s2934_s1 + $0x200] sm:$0xff]  }
  0x24   :  { %1172 = vmatmul.mubr.bf16.vlgmr.msra.gmra.mrb[0].mxu1 %v2205_v34  ;;  %1979 = vmatpush3.bf16.msra.mxu0 %v2209_v37  ;;  %v2284_v33 = vld [vmem:[%s2935_s0 + $0x14] ss:$36 sps:$4 sm:$0xff]   ;;  %v2287_v34 = vld [vmem:[%s2935_s0 + $0x1c] ss:$36 sps:$4 sm:$0xff]  }
  0x25   :  { %1082 = vmatprep.mubr.bf16.mxu0 %v2210_v38  ;;  %1179 = vmatprep.mubr.bf16.mxu1 %v2212_v39  ;;  %v2285_v36 = vld [vmem:[%s2935_s0 + $0x18] ss:$36 sps:$4 sm:$0xff]   ;;  %v2291_v38 = vld [vmem:[%s2935_s0 + $0x64] ss:$36 sps:$4 sm:$0xff]  }
  0x26   :  { %1980 = vmatprep.subr.bf16.mxu0 %v2216_v42  ;;  %2043 = vmatpush3.bf16.msra.mxu1 %v2227_v50  ;;  %v2289_v37 = vld [vmem:[%s2935_s0 + $0x5c] ss:$36 sps:$4 sm:$0xff]   ;;  %v2295_v39 = vld [vmem:[%s2934_s1 + $0x208] sm:$0xff]   ;;  %v2305_v50 = vld [vmem:[%s2935_s0 + $0xf4] ss:$36 sps:$4 sm:$0xff]  }
  0x27   :  { %2044 = vmatprep.subr.bf16.mxu1 %v2235_v55  ;;  %v2294_v42 = vld [vmem:[%s2935_s0 + $0x60] ss:$36 sps:$4 sm:$0xff]   ;;  %v2310_v55 = vld [vmem:[%s2935_s0 + $0x134] ss:$36 sps:$4 sm:$0xff]  }
  0x28   :  { %1981 = vmatpush3.bf16.msra.mxu0 %v2217_v43  ;;  %v2296_v43 = vld [vmem:[%s2935_s0 + $0xa4] ss:$36 sps:$4 sm:$0xff]  }
  0x29   :  { %1982 = vmatprep.subr.bf16.mxu0 %v2224_v46  ;;  %v2316_v46 = vld [vmem:[%s2934_s1 + $0x220] sm:$0xff]  }
  0x2a   :  { %2045 = vmatpush3.bf16.msra.mxu1 %v2237_v57  ;;  %v2337_v57 = vld [vmem:[%s2934_s1 + $0x238] sm:$0xff]  }
  0x2b   :  { %1083 = vmatmul.mubr.bf16.gmra.mrb[4].mxu0 %v2214_v40  ;;  %2046 = vmatprep.subr.bf16.mxu1 %v2245_v63  ;;  %v2302_v40 = vld [vmem:[%s2934_s1 + $0x210] sm:$0xff]   ;;  %v2322_v63 = vld [vmem:[%s2935_s0 + $0x180] ss:$36 sps:$4 sm:$0xff]  }
  0x2c   :  { %1180 = vmatmul.mubr.bf16.gmra.mrb[4].mxu1 %v2215_v41  ;;  %1090 = vmatprep.mubr.bf16.mxu0 %v2218_v44  ;;  %v2293_v41 = vld [vmem:[%s2935_s0 + $0x58] ss:$36 sps:$4 sm:$0xff]   ;;  %v2298_v44 = vld [vmem:[%s2935_s0 + $0xac] ss:$36 sps:$4 sm:$0xff]  }
  0x2d   :  { %1187 = vmatprep.mubr.bf16.mxu1 %v2220_v45  ;;  %1983 = vmatpush3.bf16.msra.mxu0 %v2226_v49  ;;  %v2309_v45 = vld [vmem:[%s2934_s1 + $0x218] sm:$0xff]   ;;  %v2303_v49 = vld [vmem:[%s2935_s0 + $0xec] ss:$36 sps:$4 sm:$0xff]  }
  0x2e   :  { %1984 = vmatprep.subr.bf16.mxu0 %v2234_v54  ;;  %2047 = vmatpush3.bf16.msra.mxu1 %v2247_v1  ;;  %v2308_v54 = vld [vmem:[%s2935_s0 + $0xf0] ss:$36 sps:$4 sm:$0xff]  }
  0x2f   :  { %2048 = vmatprep.subr.bf16.mxu1 %v2255_v7  ;;  %v2326_v1 = vld [vmem:[%s2935_s0 + $0x1cc] ss:$36 sps:$4 sm:$0xff]  }
  0x30   :  { %v2336_v7 = vld [vmem:[%s2935_s0 + $0x210] ss:$36 sps:$4 sm:$0xff]  }
  0x31   :  { %1985 = vmatpush3.bf16.msra.mxu0 %v2236_v56  ;;  %v2312_v56 = vld [vmem:[%s2935_s0 + $0x13c] ss:$36 sps:$4 sm:$0xff]  }
  0x32   :  { %1986 = vmatprep.subr.bf16.mxu0 %v2244_v62  ;;  %2049 = vmatpush3.bf16.msra.mxu1 %v2257_v9  ;;  %v2321_v62 = vld [vmem:[%s2935_s0 + $0x178] ss:$36 sps:$4 sm:$0xff]   ;;  %v2339_v9 = vld [vmem:[%s2935_s0 + $0x140] ss:$36 sps:$4 sm:$0xff]  }
  0x33   :  { %1091 = vmatmul.mubr.bf16.gmra.mrb[8].mxu0 %v2222_v48  ;;  %2050 = vmatprep.subr.bf16.mxu1 %v2265_v15  ;;  %v2301_v48 = vld [vmem:[%s2935_s0 + $0xa8] ss:$36 sps:$4 sm:$0xff]   ;;  %v2345_v15 = vld [vmem:[%s2935_s0 + $0x218] ss:$36 sps:$4 sm:$0xff]  }
  0x34   :  { %1188 = vmatmul.mubr.bf16.gmra.mrb[8].mxu1 %v2223_v51  ;;  %1098 = vmatprep.mubr.bf16.mxu0 %v2228_v52  ;;  %v2323_v51 = vld [vmem:[%s2934_s1 + $0x228] sm:$0xff]  }
  0x35   :  { %1195 = vmatprep.mubr.bf16.mxu1 %v2230_v53  ;;  %1987 = vmatpush3.bf16.msra.mxu0 %v2246_v0  ;;  %v2307_v52 = vld [vmem:[%s2935_s0 + $0xe8] ss:$36 sps:$4 sm:$0xff]   ;;  %v2330_v53 = vld [vmem:[%s2934_s1 + $0x230] sm:$0xff]  }
  0x36   :  { %1988 = vmatprep.subr.bf16.mxu0 %v2254_v6  ;;  %2051 = vmatpush3.bf16.msra.mxu1 %v2267_v17  ;;  %v2324_v0 = vld [vmem:[%s2935_s0 + $0x1c4] ss:$36 sps:$4 sm:$0xff]  }
  0x37   :  { %2052 = vmatprep.subr.bf16.mxu1 %v2268_v18  ;;  %v2335_v6 = vld [vmem:[%s2935_s0 + $0x208] ss:$36 sps:$4 sm:$0xff]  }
  0x39   :  { %1989 = vmatpush3.bf16.msra.mxu0 %v2256_v8  ;;  %v2338_v8 = vld [vmem:[%s2935_s0 + $0x20] ss:$36 sps:$4 sm:$0xff]  }
  0x3a   :  { %1990 = vmatprep.subr.bf16.mxu0 %v2264_v13  ;;  %2053 = vmatpush3.bf16.msra.mxu1 %v2269_v19  ;;  %v2343_v13 = vld [vmem:[%s2935_s0 + $0x1d0] ss:$36 sps:$4 sm:$0xff]  }
  0x3b   :  { %1099 = vmatmul.mubr.bf16.gmra.mrb[12].mxu0 %v2232_v58  ;;  %2054 = vmatprep.subr.bf16.mxu1 %v2277_v25  ;;  %v2314_v58 = vld [vmem:[%s2935_s0 + $0x130] ss:$36 sps:$4 sm:$0xff]  }
  0x3c   :  { %1196 = vmatmul.mubr.bf16.gmra.mrb[12].mxu1 %v2233_v59  ;;  %1106 = vmatprep.mubr.bf16.mxu0 %v2238_v60  ;;  %v2315_v59 = vld [vmem:[%s2935_s0 + $0x138] ss:$36 sps:$4 sm:$0xff]  }
  0x3d   :  { %1203 = vmatprep.mubr.bf16.mxu1 %v2240_v61  ;;  %1991 = vmatpush3.bf16.msra.mxu0 %v2266_v16  ;;  %v2317_v60 = vld [vmem:[%s2935_s0 + $0x17c] ss:$36 sps:$4 sm:$0xff]   ;;  %v2319_v61 = vld [vmem:[%s2935_s0 + $0x184] ss:$36 sps:$4 sm:$0xff]  }
  0x3e   :  { %1992 = vmatprep.subr.bf16.mxu0 %v2276_v24  ;;  %2055 = vmatpush3.bf16.msra.mxu1 %v2279_v27 }
  0x3f   :  { %2056 = vmatprep.subr.bf16.mxu1 %v2280_v28 }
  0x41   :  { %1993 = vmatpush3.bf16.msra.mxu0 %v2278_v26 }
  0x42   :  { %2122 = vmatprep.subr.bf16.mxu0 %v2288_v32  ;;  %2057 = vmatpush3.bf16.msra.mxu1 %v2281_v31 }
  0x43   :  { %1107 = vmatmul.mubr.bf16.gmra.mrb[16].mxu0 %v2242_v2  ;;  %2154 = vmatprep.subr.bf16.mxu1 %v2288_v32  ;;  %v2328_v2 = vld [vmem:[%s2935_s0 + $0x1c0] ss:$36 sps:$4 sm:$0xff]  }
  0x44   :  { %1204 = vmatmul.mubr.bf16.gmra.mrb[16].mxu1 %v2243_v3  ;;  %1114 = vmatprep.mubr.bf16.mxu0 %v2248_v4  ;;  %v2329_v3 = vld [vmem:[%s2935_s0 + $0x1c8] ss:$36 sps:$4 sm:$0xff]  }
  0x45   :  { %1211 = vmatprep.mubr.bf16.mxu1 %v2250_v5  ;;  %v2331_v4 = vld [vmem:[%s2935_s0 + $0x20c] ss:$36 sps:$4 sm:$0xff]   ;;  %v2333_v5 = vld [vmem:[%s2935_s0 + $0x214] ss:$36 sps:$4 sm:$0xff]  }
  0x4b   :  { %1115 = vmatmul.mubr.bf16.gmra.mrb[20].mxu0 %v2252_v10  ;;  %v2340_v10 = vld [vmem:[%s2935_s0 + $0x68] ss:$36 sps:$4 sm:$0xff]  }
  0x4c   :  { %1212 = vmatmul.mubr.bf16.gmra.mrb[20].mxu1 %v2253_v11  ;;  %1122 = vmatprep.mubr.bf16.mxu0 %v2258_v12  ;;  %v2341_v11 = vld [vmem:[%s2935_s0 + $0x188] ss:$36 sps:$4 sm:$0xff]   ;;  %v2342_v12 = vld [vmem:[%s2935_s0 + $0xb0] ss:$36 sps:$4 sm:$0xff]  }
  0x4d   :  { %1219 = vmatprep.mubr.bf16.mxu1 %v2260_v14  ;;  %v2344_v14 = vld [vmem:[%s2935_s0 + $0xf8] ss:$36 sps:$4 sm:$0xff]  }
  0x53   :  { %1123 = vmatmul.mubr.bf16.gmra.mrb[24].mxu0 %v2262_v20 }
  0x54   :  { %1220 = vmatmul.mubr.bf16.gmra.mrb[24].mxu1 %v2263_v21  ;;  %1130 = vmatprep.mubr.bf16.mxu0 %v2270_v22 }
  0x55   :  { %1227 = vmatprep.mubr.bf16.mxu1 %v2272_v23 }
  0x5b   :  { %1131 = vmatmul.mubr.bf16.gmra.mrb[28].mxu0 %v2274_v29 }
  0x5c   :  { %1228 = vmatmul.mubr.bf16.gmra.mrb[28].mxu1 %v2275_v30  ;;  %1268 = vmatprep.mubr.bf16.mxu0 %v2284_v33 }
  0x5d   :  { %1365 = vmatprep.mubr.bf16.mxu1 %v2287_v34 }
  0x63   :  { %1269 = vmatmul.mubr.bf16.vlgmr.msra.gmra.mrb[32].mxu0 %v2282_v35 }
  0x64   :  { %1366 = vmatmul.mubr.bf16.vlgmr.msra.gmra.mrb[32].mxu1 %v2285_v36  ;;  %2123 = vmatpush3.bf16.msra.mxu0 %v2288_v32 }
  0x65   :  { %1276 = vmatprep.mubr.bf16.mxu0 %v2289_v37  ;;  %1373 = vmatprep.mubr.bf16.mxu1 %v2291_v38 }
  0x66   :  { %2124 = vmatprep.subr.bf16.mxu0 %v2295_v39  ;;  %2162 = vmatpush3.bf16.msra.mxu1 %v2288_v32 }
  0x67   :  { %2155 = vmatprep.subr.bf16.mxu1 %v2295_v39 }
  0x68   :  { %2125 = vmatpush3.bf16.msra.mxu0 %v2295_v39 }
  0x69   :  { %2126 = vmatprep.subr.bf16.mxu0 %v2302_v40 }
  0x6a   :  { %2163 = vmatpush3.bf16.msra.mxu1 %v2295_v39 }
  0x6b   :  { %1277 = vmatmul.mubr.bf16.gmra.mrb[36].mxu0 %v2293_v41  ;;  %2156 = vmatprep.subr.bf16.mxu1 %v2302_v40 }
  0x6c   :  { %1374 = vmatmul.mubr.bf16.gmra.mrb[36].mxu1 %v2294_v42  ;;  %1284 = vmatprep.mubr.bf16.mxu0 %v2296_v43 }
  0x6d   :  { %1381 = vmatprep.mubr.bf16.mxu1 %v2298_v44  ;;  %2127 = vmatpush3.bf16.msra.mxu0 %v2302_v40 }
  0x6e   :  { %2128 = vmatprep.subr.bf16.mxu0 %v2309_v45  ;;  %2164 = vmatpush3.bf16.msra.mxu1 %v2302_v40 }
  0x6f   :  { %2157 = vmatprep.subr.bf16.mxu1 %v2309_v45 }
  0x71   :  { %2129 = vmatpush3.bf16.msra.mxu0 %v2309_v45 }
  0x72   :  { %2130 = vmatprep.subr.bf16.mxu0 %v2316_v46  ;;  %2165 = vmatpush3.bf16.msra.mxu1 %v2309_v45 }
  0x73   :  { %1285 = vmatmul.mubr.bf16.gmra.mrb[40].mxu0 %v2300_v47  ;;  %2158 = vmatprep.subr.bf16.mxu1 %v2316_v46 }
  0x74   :  { %1382 = vmatmul.mubr.bf16.gmra.mrb[40].mxu1 %v2301_v48  ;;  %1292 = vmatprep.mubr.bf16.mxu0 %v2303_v49 }
  0x75   :  { %1389 = vmatprep.mubr.bf16.mxu1 %v2305_v50  ;;  %2131 = vmatpush3.bf16.msra.mxu0 %v2316_v46 }
  0x76   :  { %2132 = vmatprep.subr.bf16.mxu0 %v2323_v51  ;;  %2166 = vmatpush3.bf16.msra.mxu1 %v2316_v46 }
  0x77   :  { %2159 = vmatprep.subr.bf16.mxu1 %v2323_v51 }
  0x79   :  { %2133 = vmatpush3.bf16.msra.mxu0 %v2323_v51 }
  0x7a   :  { %2134 = vmatprep.subr.bf16.mxu0 %v2330_v53  ;;  %2167 = vmatpush3.bf16.msra.mxu1 %v2323_v51 }
  0x7b   :  { %1293 = vmatmul.mubr.bf16.gmra.mrb[44].mxu0 %v2307_v52  ;;  %2160 = vmatprep.subr.bf16.mxu1 %v2330_v53 }
  0x7c   :  { %1390 = vmatmul.mubr.bf16.gmra.mrb[44].mxu1 %v2308_v54  ;;  %1300 = vmatprep.mubr.bf16.mxu0 %v2310_v55 }
  0x7d   :  { %1397 = vmatprep.mubr.bf16.mxu1 %v2312_v56  ;;  %2135 = vmatpush3.bf16.msra.mxu0 %v2330_v53 }
  0x7e   :  { %2136 = vmatprep.subr.bf16.mxu0 %v2337_v57  ;;  %2168 = vmatpush3.bf16.msra.mxu1 %v2330_v53 }
  0x7f   :  { %2161 = vmatprep.subr.bf16.mxu1 %v2337_v57 }
  0x81   :  { %2137 = vmatpush3.bf16.msra.mxu0 %v2337_v57 }
  0x82   :  { %2169 = vmatpush3.bf16.msra.mxu1 %v2337_v57 }
  0x83   :  { %1301 = vmatmul.mubr.bf16.gmra.mrb[48].mxu0 %v2314_v58 }
  0x84   :  { %1398 = vmatmul.mubr.bf16.gmra.mrb[48].mxu1 %v2315_v59  ;;  %1308 = vmatprep.mubr.bf16.mxu0 %v2317_v60 }
  0x85   :  { %1405 = vmatprep.mubr.bf16.mxu1 %v2319_v61 }
  0x8b   :  { %1309 = vmatmul.mubr.bf16.gmra.mrb[52].mxu0 %v2321_v62 }
  0x8c   :  { %1406 = vmatmul.mubr.bf16.gmra.mrb[52].mxu1 %v2322_v63  ;;  %1316 = vmatprep.mubr.bf16.mxu0 %v2324_v0 }
  0x8d   :  { %1413 = vmatprep.mubr.bf16.mxu1 %v2326_v1 }
  0x93   :  { %1317 = vmatmul.mubr.bf16.gmra.mrb[56].mxu0 %v2328_v2 }
  0x94   :  { %1414 = vmatmul.mubr.bf16.gmra.mrb[56].mxu1 %v2329_v3  ;;  %1324 = vmatprep.mubr.bf16.mxu0 %v2331_v4 }
  0x95   :  { %1421 = vmatprep.mubr.bf16.mxu1 %v2333_v5 }
  0x9b   :  { %1325 = vmatmul.mubr.bf16.gmra.mrb[60].mxu0 %v2335_v6 }
  0x9c   :  { %1422 = vmatmul.mubr.bf16.gmra.mrb[60].mxu1 %v2336_v7  ;;  %2138 = vmatprep.mubr.bf16.mxu0 %v2338_v8 }
  0x9d   :  { %2146 = vmatprep.mubr.bf16.mxu1 %v2339_v9 }
  0xa3   :  { %2139 = vmatmul.mubr.bf16.vlgmr.msra.gmra.mrb[64].mxu0 %v2340_v10 }
  0xa4   :  { %2147 = vmatmul.mubr.bf16.vlgmr.msra.gmra.mrb[64].mxu1 %v2341_v11  ;;  %2142 = vmatprep.mubr.bf16.mxu0 %v2342_v12 }
  0xa5   :  { %2150 = vmatprep.mubr.bf16.mxu1 %v2343_v13 }
  0xab   :  { %2143 = vmatmul.mubr.bf16.gmra.mrb[68].mxu0 %v2344_v14 }
  0xac   :  { %2151 = vmatmul.mubr.bf16.gmra.mrb[68].mxu1 %v2345_v15 }
  0xf6   :  { %v1866_v16 = vpop.f32.mrb[0].mxu0 }
  0xf7   :  { %v1930_v17 = vpop.f32.mrb[0].mxu1  ;;  %v1867_v18 = vpop.f32.mrb[1].mxu0 }
  0xf8   :  { %v1868_v19 = vadd.f32 %v1867_v18, %v1866_v16  ;;  %v1931_v20 = vpop.f32.mrb[1].mxu1  ;;  %v1869_v21 = vpop.f32.mrb[2].mxu0 }
  0xf9   :  { %v1932_v22 = vadd.f32 %v1931_v20, %v1930_v17  ;;  %v1933_v23 = vpop.f32.mrb[2].mxu1  ;;  %v1870_v24 = vpop.f32.mrb[3].mxu0 }
  0xfa   :  { %v1871_v25 = vadd.f32 %v1870_v24, %v1869_v21  ;;  %v1934_v26 = vpop.f32.mrb[3].mxu1 }
  0xfb   :  { %v2805_v27 = vadd.f32 %v1932_v22, %v1868_v19  ;;  %v1935_v28 = vadd.f32 %v1934_v26, %v1933_v23 }
  0xfd   :  { %v2807_v29 = vadd.f32 %v1935_v28, %v1871_v25 }
  0xfe   :  { %v1872_v30 = vpop.f32.mrb[4].mxu0 }
  0xff   :  { %v1936_v31 = vpop.f32.mrb[4].mxu1  ;;  %v1873_v32 = vpop.f32.mrb[5].mxu0 }
 0x100   :  { %v1874_v33 = vadd.f32 %v1873_v32, %v1872_v30  ;;  %v1937_v34 = vpop.f32.mrb[5].mxu1  ;;  %v1875_v35 = vpop.f32.mrb[6].mxu0 }
 0x101   :  { %v1938_v36 = vadd.f32 %v1937_v34, %v1936_v31  ;;  %v1939_v37 = vpop.f32.mrb[6].mxu1  ;;  %v1876_v38 = vpop.f32.mrb[7].mxu0 }
 0x102   :  { %v1877_v39 = vadd.f32 %v1876_v38, %v1875_v35  ;;  %v1940_v40 = vpop.f32.mrb[7].mxu1 }
 0x103   :  { %v2809_v41 = vadd.f32 %v1938_v36, %v1874_v33  ;;  %v1941_v42 = vadd.f32 %v1940_v40, %v1939_v37 }
 0x105   :  { %v2811_v43 = vadd.f32 %v1941_v42, %v1877_v39 }
 0x106   :  { %v1878_v44 = vpop.f32.mrb[8].mxu0 }
 0x107   :  { %v1942_v45 = vpop.f32.mrb[8].mxu1  ;;  %v1879_v46 = vpop.f32.mrb[9].mxu0 }
 0x108   :  { %v1880_v47 = vadd.f32 %v1879_v46, %v1878_v44  ;;  %v1943_v48 = vpop.f32.mrb[9].mxu1  ;;  %v1881_v49 = vpop.f32.mrb[10].mxu0 }
 0x109   :  { %v1944_v50 = vadd.f32 %v1943_v48, %v1942_v45  ;;  %v1945_v51 = vpop.f32.mrb[10].mxu1  ;;  %v1882_v52 = vpop.f32.mrb[11].mxu0 }
 0x10a   :  { %v1883_v53 = vadd.f32 %v1882_v52, %v1881_v49  ;;  %v1946_v54 = vpop.f32.mrb[11].mxu1 }
 0x10b   :  { %v2813_v55 = vadd.f32 %v1944_v50, %v1880_v47  ;;  %v1947_v56 = vadd.f32 %v1946_v54, %v1945_v51 }
 0x10d   :  { %v2815_v57 = vadd.f32 %v1947_v56, %v1883_v53 }
 0x10e   :  { %v1884_v58 = vpop.f32.mrb[12].mxu0 }
 0x10f   :  { %v1948_v59 = vpop.f32.mrb[12].mxu1  ;;  %v1885_v60 = vpop.f32.mrb[13].mxu0 }
 0x110   :  { %v1886_v61 = vadd.f32 %v1885_v60, %v1884_v58  ;;  %v1949_v62 = vpop.f32.mrb[13].mxu1  ;;  %v1887_v63 = vpop.f32.mrb[14].mxu0 }
 0x111   :  { %v1950_v0 = vadd.f32 %v1949_v62, %v1948_v59  ;;  %v1951_v1 = vpop.f32.mrb[14].mxu1  ;;  %v1888_v2 = vpop.f32.mrb[15].mxu0 }
 0x112   :  { %v1889_v3 = vadd.f32 %v1888_v2, %v1887_v63  ;;  %v1952_v4 = vpop.f32.mrb[15].mxu1 }
 0x113   :  { %v2817_v5 = vadd.f32 %v1950_v0, %v1886_v61  ;;  %v1953_v6 = vadd.f32 %v1952_v4, %v1951_v1 }
 0x115   :  { %v2819_v7 = vadd.f32 %v1953_v6, %v1889_v3 }
 0x116   :  { %v1890_v8 = vpop.f32.mrb[16].mxu0 }
 0x117   :  { %v1954_v9 = vpop.f32.mrb[16].mxu1  ;;  %v1891_v10 = vpop.f32.mrb[17].mxu0 }
 0x118   :  { %v1892_v11 = vadd.f32 %v1891_v10, %v1890_v8  ;;  %v1955_v12 = vpop.f32.mrb[17].mxu1  ;;  %v1893_v13 = vpop.f32.mrb[18].mxu0 }
 0x119   :  { %v1956_v14 = vadd.f32 %v1955_v12, %v1954_v9  ;;  %v1957_v15 = vpop.f32.mrb[18].mxu1  ;;  %v1894_v16 = vpop.f32.mrb[19].mxu0 }
 0x11a   :  { %v1895_v17 = vadd.f32 %v1894_v16, %v1893_v13  ;;  %v1958_v18 = vpop.f32.mrb[19].mxu1 }
 0x11b   :  { %v2821_v19 = vadd.f32 %v1956_v14, %v1892_v11  ;;  %v1959_v20 = vadd.f32 %v1958_v18, %v1957_v15 }
 0x11d   :  { %v2823_v21 = vadd.f32 %v1959_v20, %v1895_v17 }
 0x11e   :  { %v1896_v22 = vpop.f32.mrb[20].mxu0 }
 0x11f   :  { %v1960_v23 = vpop.f32.mrb[20].mxu1  ;;  %v1897_v24 = vpop.f32.mrb[21].mxu0 }
 0x120   :  { %v1898_v25 = vadd.f32 %v1897_v24, %v1896_v22  ;;  %v1961_v26 = vpop.f32.mrb[21].mxu1  ;;  %v1899_v28 = vpop.f32.mrb[22].mxu0 }
 0x121   :  { %v1962_v30 = vadd.f32 %v1961_v26, %v1960_v23  ;;  %v1963_v31 = vpop.f32.mrb[22].mxu1  ;;  %v1900_v32 = vpop.f32.mrb[23].mxu0 }
 0x122   :  { %v1901_v33 = vadd.f32 %v1900_v32, %v1899_v28  ;;  %v1964_v34 = vpop.f32.mrb[23].mxu1 }
 0x123   :  { %v2825_v35 = vadd.f32 %v1962_v30, %v1898_v25  ;;  %v1965_v36 = vadd.f32 %v1964_v34, %v1963_v31 }
 0x125   :  { %v2827_v37 = vadd.f32 %v1965_v36, %v1901_v33 }
 0x126   :  { %v1902_v38 = vpop.f32.mrb[24].mxu0 }
 0x127   :  { %v1966_v39 = vpop.f32.mrb[24].mxu1  ;;  %v1903_v40 = vpop.f32.mrb[25].mxu0 }
 0x128   :  { %v1904_v42 = vadd.f32 %v1903_v40, %v1902_v38  ;;  %v1967_v44 = vpop.f32.mrb[25].mxu1  ;;  %v1905_v45 = vpop.f32.mrb[26].mxu0 }
 0x129   :  { %v1968_v46 = vadd.f32 %v1967_v44, %v1966_v39  ;;  %v1969_v47 = vpop.f32.mrb[26].mxu1  ;;  %v1906_v48 = vpop.f32.mrb[27].mxu0 }
 0x12a   :  { %v1907_v49 = vadd.f32 %v1906_v48, %v1905_v45  ;;  %v1970_v50 = vpop.f32.mrb[27].mxu1 }
 0x12b   :  { %v2829_v51 = vadd.f32 %v1968_v46, %v1904_v42  ;;  %v1971_v52 = vadd.f32 %v1970_v50, %v1969_v47 }
 0x12d   :  { %v2831_v53 = vadd.f32 %v1971_v52, %v1907_v49 }
 0x12e   :  { %v1908_v54 = vpop.f32.mrb[28].mxu0 }
 0x12f   :  { %v1972_v56 = vpop.f32.mrb[28].mxu1  ;;  %v1909_v58 = vpop.f32.mrb[29].mxu0 }
 0x130   :  { %v1910_v59 = vadd.f32 %v1909_v58, %v1908_v54  ;;  %v1973_v60 = vpop.f32.mrb[29].mxu1  ;;  %v1911_v61 = vpop.f32.mrb[30].mxu0 }
 0x131   :  { %v1974_v62 = vadd.f32 %v1973_v60, %v1972_v56  ;;  %v1975_v63 = vpop.f32.mrb[30].mxu1  ;;  %v1912_v0 = vpop.f32.mrb[31].mxu0 }
 0x132   :  { %v1913_v1 = vadd.f32 %v1912_v0, %v1911_v61  ;;  %v1976_v2 = vpop.f32.mrb[31].mxu1 }
 0x133   :  { %v2833_v3 = vadd.f32 %v1974_v62, %v1910_v59  ;;  %v1977_v4 = vadd.f32 %v1976_v2, %v1975_v63 }
 0x135   :  { %v2835_v6 = vadd.f32 %v1977_v4, %v1913_v1 }
 0x136   :  { %v1994_v8 = vpop.f32.mrb[32].mxu0 }
 0x137   :  { %v1995_v9 = vpop.f32.mrb[33].mxu0  ;;  %v2058_v10 = vpop.f32.mrb[32].mxu1 }
 0x138   :  { %v1996_v11 = vadd.f32 %v1995_v9, %v1994_v8  ;;  %v1997_v12 = vpop.f32.mrb[34].mxu0  ;;  %v2059_v13 = vpop.f32.mrb[33].mxu1 }
 0x139   :  { %v1998_v14 = vpop.f32.mrb[35].mxu0  ;;  %v2060_v15 = vadd.f32 %v2059_v13, %v2058_v10  ;;  %v2061_v16 = vpop.f32.mrb[34].mxu1 }
 0x13a   :  { %v1271_v17 = vadd.f32 %v1996_v11, %v2805_v27  ;;  %v1999_v18 = vadd.f32 %v1998_v14, %v1997_v12  ;;  %v2062_v20 = vpop.f32.mrb[35].mxu1 }
 0x13b   :  { %v2063_v22 = vadd.f32 %v2062_v20, %v2061_v16 }
 0x13c   :  { %v1274_v23 = vadd.f32 %v1999_v18, %v2807_v29  ;;  %v2839_v24 = vadd.f32 %v2060_v15, %v1271_v17 }
 0x13e   :  { %v2000_v25 = vpop.f32.mrb[36].mxu0  ;;  %v2841_v26 = vadd.f32 %v2063_v22, %v1274_v23 }
 0x13f   :  { %v2001_v28 = vpop.f32.mrb[37].mxu0  ;;  %v2064_v30 = vpop.f32.mrb[36].mxu1 }
 0x140   :  { %v2002_v31 = vadd.f32 %v2001_v28, %v2000_v25  ;;  %v2003_v32 = vpop.f32.mrb[38].mxu0  ;;  %v2065_v33 = vpop.f32.mrb[37].mxu1 }
 0x141   :  { %v2004_v34 = vpop.f32.mrb[39].mxu0  ;;  %v2066_v36 = vadd.f32 %v2065_v33, %v2064_v30  ;;  %v2067_v38 = vpop.f32.mrb[38].mxu1 }
 0x142   :  { %v1279_v27 = vadd.f32 %v2002_v31, %v2809_v41  ;;  %v2005_v39 = vadd.f32 %v2004_v34, %v2003_v32  ;;  %v2068_v40 = vpop.f32.mrb[39].mxu1 }
 0x143   :  { %v2069_v42 = vadd.f32 %v2068_v40, %v2067_v38 }
 0x144   :  { %v1282_v29 = vadd.f32 %v2005_v39, %v2811_v43  ;;  %v2845_v44 = vadd.f32 %v2066_v36, %v1279_v27 }
 0x146   :  { %v2006_v45 = vpop.f32.mrb[40].mxu0  ;;  %v2847_v46 = vadd.f32 %v2069_v42, %v1282_v29 }
 0x147   :  { %v2007_v47 = vpop.f32.mrb[41].mxu0  ;;  %v2070_v48 = vpop.f32.mrb[40].mxu1 }
 0x148   :  { %v2008_v49 = vadd.f32 %v2007_v47, %v2006_v45  ;;  %v2009_v50 = vpop.f32.mrb[42].mxu0  ;;  %v2071_v52 = vpop.f32.mrb[41].mxu1 }
 0x149   :  { %v2010_v54 = vpop.f32.mrb[43].mxu0  ;;  %v2072_v56 = vadd.f32 %v2071_v52, %v2070_v48  ;;  %v2073_v58 = vpop.f32.mrb[42].mxu1 }
 0x14a   :  { %v1287_v41 = vadd.f32 %v2008_v49, %v2813_v55  ;;  %v2011_v59 = vadd.f32 %v2010_v54, %v2009_v50  ;;  %v2074_v60 = vpop.f32.mrb[43].mxu1 }
 0x14b   :  { %v2075_v61 = vadd.f32 %v2074_v60, %v2073_v58 }
 0x14c   :  { %v1290_v43 = vadd.f32 %v2011_v59, %v2815_v57  ;;  %v2851_v62 = vadd.f32 %v2072_v56, %v1287_v41 }
 0x14e   :  { %v2012_v63 = vpop.f32.mrb[44].mxu0  ;;  %v2853_v0 = vadd.f32 %v2075_v61, %v1290_v43 }
 0x14f   :  { %v2013_v1 = vpop.f32.mrb[45].mxu0  ;;  %v2076_v2 = vpop.f32.mrb[44].mxu1 }
 0x150   :  { %v2014_v4 = vadd.f32 %v2013_v1, %v2012_v63  ;;  %v2015_v8 = vpop.f32.mrb[46].mxu0  ;;  %v2077_v9 = vpop.f32.mrb[45].mxu1 }
 0x151   :  { %v2016_v10 = vpop.f32.mrb[47].mxu0  ;;  %v2078_v11 = vadd.f32 %v2077_v9, %v2076_v2  ;;  %v2079_v12 = vpop.f32.mrb[46].mxu1 }
 0x152   :  { %v1295_v55 = vadd.f32 %v2014_v4, %v2817_v5  ;;  %v2017_v13 = vadd.f32 %v2016_v10, %v2015_v8  ;;  %v2080_v14 = vpop.f32.mrb[47].mxu1 }
 0x153   :  { %v2081_v15 = vadd.f32 %v2080_v14, %v2079_v12 }
 0x154   :  { %v1298_v57 = vadd.f32 %v2017_v13, %v2819_v7  ;;  %v2857_v16 = vadd.f32 %v2078_v11, %v1295_v55 }
 0x156   :  { %v2018_v17 = vpop.f32.mrb[48].mxu0  ;;  %v2859_v18 = vadd.f32 %v2081_v15, %v1298_v57 }
 0x157   :  { %v2019_v20 = vpop.f32.mrb[49].mxu0  ;;  %v2082_v22 = vpop.f32.mrb[48].mxu1 }
 0x158   :  { %v2020_v23 = vadd.f32 %v2019_v20, %v2018_v17  ;;  %v2021_v25 = vpop.f32.mrb[50].mxu0  ;;  %v2083_v28 = vpop.f32.mrb[49].mxu1 }
 0x159   :  { %v2022_v30 = vpop.f32.mrb[51].mxu0  ;;  %v2084_v31 = vadd.f32 %v2083_v28, %v2082_v22  ;;  %v2085_v32 = vpop.f32.mrb[50].mxu1 }
 0x15a   :  { %v1303_v5 = vadd.f32 %v2020_v23, %v2821_v19  ;;  %v2023_v33 = vadd.f32 %v2022_v30, %v2021_v25  ;;  %v2086_v34 = vpop.f32.mrb[51].mxu1 }
 0x15b   :  { %v2087_v36 = vadd.f32 %v2086_v34, %v2085_v32 }
 0x15c   :  { %v1306_v7 = vadd.f32 %v2023_v33, %v2823_v21  ;;  %v1400_v38 = vadd.f32 %v2084_v31, %v1303_v5 }
 0x15e   :  { %v2024_v27 = vpop.f32.mrb[52].mxu0  ;;  %v2863_v39 = vadd.f32 %v2087_v36, %v1306_v7 }
 0x15f   :  { %v2025_v40 = vpop.f32.mrb[53].mxu0  ;;  %v2088_v42 = vpop.f32.mrb[52].mxu1 }
 0x160   :  { %v2026_v29 = vadd.f32 %v2025_v40, %v2024_v27  ;;  %v2027_v45 = vpop.f32.mrb[54].mxu0  ;;  %v2089_v47 = vpop.f32.mrb[53].mxu1 }
 0x161   :  { %v2028_v48 = vpop.f32.mrb[55].mxu0  ;;  %v2090_v49 = vadd.f32 %v2089_v47, %v2088_v42  ;;  %v2091_v50 = vpop.f32.mrb[54].mxu1 }
 0x162   :  { %v1311_v52 = vadd.f32 %v2026_v29, %v2825_v35  ;;  %v2029_v19 = vadd.f32 %v2028_v48, %v2027_v45  ;;  %v2092_v54 = vpop.f32.mrb[55].mxu1 }
 0x163   :  { %v2093_v56 = vadd.f32 %v2092_v54, %v2091_v50 }
 0x164   :  { %v1314_v58 = vadd.f32 %v2029_v19, %v2827_v37  ;;  %v1408_v21 = vadd.f32 %v2090_v49, %v1311_v52 }
 0x166   :  { %v2030_v41 = vpop.f32.mrb[56].mxu0  ;;  %v1411_v59 = vadd.f32 %v2093_v56, %v1314_v58 }
 0x167   :  { %v2031_v60 = vpop.f32.mrb[57].mxu0  ;;  %v2094_v61 = vpop.f32.mrb[56].mxu1 }
 0x168   :  { %v2032_v43 = vadd.f32 %v2031_v60, %v2030_v41  ;;  %v2033_v63 = vpop.f32.mrb[58].mxu0  ;;  %v2095_v1 = vpop.f32.mrb[57].mxu1 }
 0x169   :  { %v2034_v2 = vpop.f32.mrb[59].mxu0  ;;  %v2096_v4 = vadd.f32 %v2095_v1, %v2094_v61  ;;  %v2097_v8 = vpop.f32.mrb[58].mxu1 }
 0x16a   :  { %v1319_v9 = vadd.f32 %v2032_v43, %v2829_v51  ;;  %v2035_v10 = vadd.f32 %v2034_v2, %v2033_v63  ;;  %v2098_v35 = vpop.f32.mrb[59].mxu1 }
 0x16b   :  { %v2099_v11 = vadd.f32 %v2098_v35, %v2097_v8 }
 0x16c   :  { %v1322_v12 = vadd.f32 %v2035_v10, %v2831_v53  ;;  %v1416_v55 = vadd.f32 %v2096_v4, %v1319_v9 }
 0x16e   :  { %v2036_v37 = vpop.f32.mrb[60].mxu0  ;;  %v1419_v13 = vadd.f32 %v2099_v11, %v1322_v12 }
 0x16f   :  { %v2037_v14 = vpop.f32.mrb[61].mxu0  ;;  %v2100_v15 = vpop.f32.mrb[60].mxu1 }
 0x170   :  { %v2038_v57 = vadd.f32 %v2037_v14, %v2036_v37  ;;  %v2039_v17 = vpop.f32.mrb[62].mxu0  ;;  %v2101_v20 = vpop.f32.mrb[61].mxu1 }
 0x171   :  { %v2040_v22 = vpop.f32.mrb[63].mxu0  ;;  %v2102_v23 = vadd.f32 %v2101_v20, %v2100_v15  ;;  %v2103_v25 = vpop.f32.mrb[62].mxu1 }
 0x172   :  { %v1327_v28 = vadd.f32 %v2038_v57, %v2833_v3  ;;  %v2041_v30 = vadd.f32 %v2040_v22, %v2039_v17  ;;  %v2104_v51 = vpop.f32.mrb[63].mxu1 }
 0x173   :  { %v2105_v31 = vadd.f32 %v2104_v51, %v2103_v25 }
 0x174   :  { %v1330_v32 = vadd.f32 %v2041_v30, %v2835_v6  ;;  %v1424_v5 = vadd.f32 %v2102_v23, %v1327_v28 }
 0x176   :  { %v2140_v53 = vpop.f32.mrb[64].mxu0  ;;  %v1427_v33 = vadd.f32 %v2105_v31, %v1330_v32 }
 0x177   :  { %v1473_v34 = vadd.f32 %v2140_v53, %v2845_v44  ;;  %v2148_v36 = vpop.f32.mrb[64].mxu1  ;;  %v1464_v7 = vpop.f32.mrb[65].mxu0 }
 0x178   :  { %v1505_v27 = vadd.f32 %v2148_v36, %v1408_v21  ;;  %v1465_v40 = vadd.f32 %v1464_v7, %v2839_v24  ;;  %v1496_v42 = vpop.f32.mrb[65].mxu1  ;;  %v2141_v29 = vpop.f32.mrb[66].mxu0 }
 0x179   :  { %v1497_v45 = vadd.f32 %v1496_v42, %v1400_v38  ;;  %v1476_v3 = vadd.f32 %v2141_v29, %v2847_v46  ;;  %v2149_v47 = vpop.f32.mrb[66].mxu1  ;;  %v1467_v48 = vpop.f32.mrb[67].mxu0 }
 0x17a   :  { %v1508_v49 = vadd.f32 %v2149_v47, %v1411_v59  ;;  %v1468_v6 = vadd.f32 %v1467_v48, %v2841_v26  ;;  %v1499_v50 = vpop.f32.mrb[67].mxu1 }
 0x17b   :  { %v1500_v52 = vadd.f32 %v1499_v50, %v2863_v39 }
 0x17c   :  { %v1527_v19 = vadd.f32 %v1468_v6, %v1465_v40 }
 0x17e   :  { %v1528_v44 = vadd.f32 %v1527_v19, %v1473_v34  ;;  %v2144_v54 = vpop.f32.mrb[68].mxu0 }
 0x17f   :  { %v1489_v56 = vadd.f32 %v2144_v54, %v2857_v16  ;;  %v2152_v58 = vpop.f32.mrb[68].mxu1  ;;  %v1480_v24 = vpop.f32.mrb[69].mxu0 }
 0x180   :  { %v1521_v21 = vadd.f32 %v2152_v58, %v1424_v5  ;;  %v1481_v38 = vadd.f32 %v1480_v24, %v2851_v62  ;;  %v1529_v41 = vadd.f32 %v1528_v44, %v1476_v3  ;;  %v1512_v46 = vpop.f32.mrb[69].mxu1  ;;  %v2145_v60 = vpop.f32.mrb[70].mxu0 }
 0x181   :  { %v1513_v61 = vadd.f32 %v1512_v46, %v1416_v55  ;;  %v1492_v59 = vadd.f32 %v2145_v60, %v2859_v18  ;;  %v2153_v26 = vpop.f32.mrb[70].mxu1  ;;  %v1483_v43 = vpop.f32.mrb[71].mxu0 }
 0x182   :  { %v1530_v63 = vadd.f32 %v1529_v41, %v1481_v38  ;;  %v1524_v39 = vadd.f32 %v2153_v26, %v1427_v33  ;;  %v1484_v1 = vadd.f32 %v1483_v43, %v2853_v0  ;;  %v1515_v2 = vpop.f32.mrb[71].mxu1 }
 0x183   :  { %v1516_v4 = vadd.f32 %v1515_v2, %v1419_v13 }
 0x184   :  { %v1531_v16 = vadd.f32 %v1530_v63, %v1484_v1 }
 0x186   :  { %v1532_v8 = vadd.f32 %v1531_v16, %v1489_v56 }
 0x188   :  { %v1533_v9 = vadd.f32 %v1532_v8, %v1492_v59 }
 0x18a   :  { %v1534_v10 = vadd.f32 %v1533_v9, %v1497_v45 }
 0x18c   :  { %v1535_v35 = vadd.f32 %v1534_v10, %v1500_v52 }
 0x18e   :  { %v1536_v62 = vadd.f32 %v1535_v35, %v1505_v27 }
 0x190   :  { %v1537_v11 = vadd.f32 %v1536_v62, %v1508_v49 }
 0x192   :  { %v1538_v12 = vadd.f32 %v1537_v11, %v1513_v61 }
 0x194   :  { %v1539_v37 = vadd.f32 %v1538_v12, %v1516_v4 }
 0x196   :  { %v1540_v55 = vadd.f32 %v1539_v37, %v1521_v21 }
 0x198   :  { %v1541_v14 = vadd.f32 %v1540_v55, %v1524_v39 }
 0x19a   :  { %v1542_v18 = vrot.slane %v1541_v14, 4 }
 0x19c   :  { %v1543_v15 = vadd.f32 %v1542_v18, %v1541_v14 }
 0x19e   :  { %v1544_v57 = vrot.slane %v1543_v15, 2 }
 0x1a0   :  { %v1545_v17 = vadd.f32 %v1544_v57, %v1543_v15 }
 0x1a2   :  { %v1546_v20 = vrot.slane %v1545_v17, 1 }
 0x1a4   :  { %v1547_v22 = vadd.f32 %v1546_v20, %v1545_v17 }
 0x1a6   :  { %v1549_v0 = vmul.f32 0.0078125, %v1547_v22 }
 0x1a8   :  { %v1550_v23 = vsub.f32 %v1465_v40, %v1549_v0  ;;  %v1551_v13 = vsub.f32 %v1468_v6, %v1549_v0  ;;  %v1552_v25 = vsub.f32 %v1473_v34, %v1549_v0  ;;  %v1553_v28 = vsub.f32 %v1476_v3, %v1549_v0 }
 0x1a9   :  { %v1554_v30 = vsub.f32 %v1481_v38, %v1549_v0  ;;  %v1555_v51 = vsub.f32 %v1484_v1, %v1549_v0  ;;  %v1556_v31 = vsub.f32 %v1489_v56, %v1549_v0  ;;  %v1557_v32 = vsub.f32 %v1492_v59, %v1549_v0 }
 0x1aa   :  { %v1558_v5 = vsub.f32 %v1497_v45, %v1549_v0  ;;  %v1559_v53 = vsub.f32 %v1500_v52, %v1549_v0  ;;  %v1560_v33 = vsub.f32 %v1505_v27, %v1549_v0  ;;  %v1561_v36 = vsub.f32 %v1508_v49, %v1549_v0 }
 0x1ab   :  { %v1562_v7 = vsub.f32 %v1513_v61, %v1549_v0  ;;  %v1563_v42 = vsub.f32 %v1516_v4, %v1549_v0  ;;  %v1564_v29 = vsub.f32 %v1521_v21, %v1549_v0  ;;  %v1565_v47 = vsub.f32 %v1524_v39, %v1549_v0 }
 0x1ac   :  { %v1566_v48 = vmul.f32 %v1550_v23, %v1550_v23  ;;  %v1567_v50 = vmul.f32 %v1551_v13, %v1551_v13  ;;  %v1568_v19 = vmul.f32 %v1552_v25, %v1552_v25  ;;  %v1569_v40 = vmul.f32 %v1553_v28, %v1553_v28 }
 0x1ad   :  { %v1570_v34 = vmul.f32 %v1554_v30, %v1554_v30  ;;  %v1571_v54 = vmul.f32 %v1555_v51, %v1555_v51  ;;  %v1572_v56 = vmul.f32 %v1556_v31, %v1556_v31  ;;  %v1573_v45 = vmul.f32 %v1557_v32, %v1557_v32 }
 0x1ae   :  { %v1582_v44 = vadd.f32 %v1567_v50, %v1566_v48  ;;  %v1574_v27 = vmul.f32 %v1558_v5, %v1558_v5  ;;  %v1575_v38 = vmul.f32 %v1559_v53, %v1559_v53  ;;  %v1576_v21 = vmul.f32 %v1560_v33, %v1560_v33  ;;  %v1848_v48 = vld [vmem:[%s2936_s2] ss:$0 sm:$0xff] }
 0x1af   :  { %v1577_v60 = vmul.f32 %v1561_v36, %v1561_v36  ;;  %v1578_v59 = vmul.f32 %v1562_v7, %v1562_v7  ;;  %v1579_v43 = vmul.f32 %v1563_v42, %v1563_v42  ;;  %v1580_v39 = vmul.f32 %v1564_v29, %v1564_v29 }
 0x1b0   :  { %v1583_v6 = vadd.f32 %v1582_v44, %v1568_v19  ;;  %v1581_v2 = vmul.f32 %v1565_v47, %v1565_v47 }
 0x1b2   :  { %v1584_v3 = vadd.f32 %v1583_v6, %v1569_v40 }
 0x1b4   :  { %v1585_v58 = vadd.f32 %v1584_v3, %v1570_v34 }
 0x1b6   :  { %v1586_v24 = vadd.f32 %v1585_v58, %v1571_v54  ;;  %v1849_v58 = vld [vmem:[%s2937_s3] ss:$0 sm:$0xff] }
 0x1b8   :  { %v1587_v52 = vadd.f32 %v1586_v24, %v1572_v56 }
 0x1ba   :  { %v1588_v49 = vadd.f32 %v1587_v52, %v1573_v45 }
 0x1bc   :  { %v1589_v41 = vadd.f32 %v1588_v49, %v1574_v27 }
 0x1be   :  { %v1590_v46 = vadd.f32 %v1589_v41, %v1575_v38 }
 0x1c0   :  { %v1591_v61 = vadd.f32 %v1590_v46, %v1576_v21 }
 0x1c2   :  { %v1592_v26 = vadd.f32 %v1591_v61, %v1577_v60 }
 0x1c4   :  { %v1593_v63 = vadd.f32 %v1592_v26, %v1578_v59 }
 0x1c6   :  { %v1594_v1 = vadd.f32 %v1593_v63, %v1579_v43 }
 0x1c8   :  { %v1595_v4 = vadd.f32 %v1594_v1, %v1580_v39 }
 0x1ca   :  { %v1596_v16 = vadd.f32 %v1595_v4, %v1581_v2 }
 0x1cc   :  { %v1597_v8 = vrot.slane %v1596_v16, 4 }
 0x1ce   :  { %v1598_v9 = vadd.f32 %v1597_v8, %v1596_v16 }
 0x1d0   :  { %v1599_v10 = vrot.slane %v1598_v9, 2 }
 0x1d2   :  { %v1600_v35 = vadd.f32 %v1599_v10, %v1598_v9 }
 0x1d4   :  { %v1601_v62 = vrot.slane %v1600_v35, 1 }
 0x1d6   :  { %v1602_v11 = vadd.f32 %v1601_v62, %v1600_v35 }
 0x1d8   :  { %v1603_v12 = vmul.f32 0.0078125, %v1602_v11 }
 0x1da   :  { %v1604_v37 = vadd.f32 1e-05, %v1603_v12 }
 0x1dc   :  { %2346 = vrsqrt.f32 %v1604_v37 }
 0x1e6   :  { %v2347_v55 = vpop.eup %2346 }
 0x1e7   :  { %v1606_v14 = vmul.f32 %v2347_v55, %v1550_v23  ;;  %v1607_v18 = vmul.f32 %v2347_v55, %v1551_v13  ;;  %v1608_v15 = vmul.f32 %v2347_v55, %v1552_v25  ;;  %v1609_v57 = vmul.f32 %v2347_v55, %v1553_v28 }
 0x1e8   :  { %v1610_v17 = vmul.f32 %v2347_v55, %v1554_v30  ;;  %v1611_v20 = vmul.f32 %v2347_v55, %v1555_v51  ;;  %v1612_v22 = vmul.f32 %v2347_v55, %v1556_v31  ;;  %v1613_v0 = vmul.f32 %v2347_v55, %v1557_v32 }
 0x1e9   :  { %v1614_v50 = vmul.f32 %v2347_v55, %v1558_v5  ;;  %v1615_v19 = vmul.f32 %v2347_v55, %v1559_v53  ;;  %v1616_v44 = vmul.f32 %v2347_v55, %v1560_v33  ;;  %v1617_v40 = vmul.f32 %v2347_v55, %v1561_v36 }
 0x1ea   :  { %v1618_v6 = vmul.f32 %v2347_v55, %v1562_v7  ;;  %v1619_v34 = vmul.f32 %v2347_v55, %v1563_v42  ;;  %v1620_v3 = vmul.f32 %v2347_v55, %v1564_v29  ;;  %v1621_v54 = vmul.f32 %v2347_v55, %v1565_v47 }
 0x1eb   :  { %v1629_v23 = vmul.f32 %v1848_v48, %v1606_v14  ;;  %v1630_v13 = vmul.f32 %v1848_v48, %v1607_v18  ;;  %v1631_v25 = vmul.f32 %v1848_v48, %v1608_v15  ;;  %v1632_v28 = vmul.f32 %v1848_v48, %v1609_v57 }
 0x1ec   :  { %v1633_v30 = vmul.f32 %v1848_v48, %v1610_v17  ;;  %v1634_v51 = vmul.f32 %v1848_v48, %v1611_v20  ;;  %v1635_v31 = vmul.f32 %v1848_v48, %v1612_v22  ;;  %v1636_v32 = vmul.f32 %v1848_v48, %v1613_v0 }
 0x1ed   :  { %v1637_v5 = vmul.f32 %v1848_v48, %v1614_v50  ;;  %v1638_v53 = vmul.f32 %v1848_v48, %v1615_v19  ;;  %v1639_v33 = vmul.f32 %v1848_v48, %v1616_v44  ;;  %v1640_v36 = vmul.f32 %v1848_v48, %v1617_v40 }
 0x1ee   :  { %v1641_v7 = vmul.f32 %v1848_v48, %v1618_v6  ;;  %v1642_v42 = vmul.f32 %v1848_v48, %v1619_v34  ;;  %v1643_v29 = vmul.f32 %v1848_v48, %v1620_v3  ;;  %v1644_v47 = vmul.f32 %v1848_v48, %v1621_v54 }
 0x1ef   :  { %v1652_v56 = vadd.f32 %v1849_v58, %v1629_v23  ;;  %v1653_v24 = vadd.f32 %v1849_v58, %v1630_v13  ;;  %v1654_v45 = vadd.f32 %v1849_v58, %v1631_v25  ;;  %v1655_v52 = vadd.f32 %v1849_v58, %v1632_v28 }
 0x1f0   :  { %v1656_v27 = vadd.f32 %v1849_v58, %v1633_v30  ;;  %v1657_v49 = vadd.f32 %v1849_v58, %v1634_v51  ;;  %v1658_v38 = vadd.f32 %v1849_v58, %v1635_v31  ;;  %v1659_v41 = vadd.f32 %v1849_v58, %v1636_v32 }
 0x1f1   :  { %v1660_v21 = vadd.f32 %v1849_v58, %v1637_v5  ;;  %v1661_v46 = vadd.f32 %v1849_v58, %v1638_v53  ;;  %v1662_v60 = vadd.f32 %v1849_v58, %v1639_v33  ;;  %v1663_v61 = vadd.f32 %v1849_v58, %v1640_v36 }
 0x1f2   :  { %v1664_v59 = vadd.f32 %v1849_v58, %v1641_v7  ;;  %v1665_v26 = vadd.f32 %v1849_v58, %v1642_v42  ;;  %v1666_v43 = vadd.f32 %v1849_v58, %v1643_v29  ;;  %v1667_v63 = vadd.f32 %v1849_v58, %v1644_v47 }
 0x1f3   :  { %v1668_v39 = vmax.f32 %v1652_v56, 0.0  ;;  %v1669_v1 = vmax.f32 %v1653_v24, 0.0  ;;  %v1670_v2 = vmax.f32 %v1654_v45, 0.0  ;;  %v1671_v4 = vmax.f32 %v1655_v52, 0.0 }
 0x1f4   :  { %v1672_v16 = vmax.f32 %v1656_v27, 0.0  ;;  %v1673_v8 = vmax.f32 %v1657_v49, 0.0  ;;  %v1674_v9 = vmax.f32 %v1658_v38, 0.0  ;;  %v1675_v10 = vmax.f32 %v1659_v41, 0.0 }
 0x1f5   :  { %v1676_v35 = vmax.f32 %v1660_v21, 0.0  ;;  %v1677_v62 = vmax.f32 %v1661_v46, 0.0  ;;  %v1678_v11 = vmax.f32 %v1662_v60, 0.0  ;;  %v1679_v12 = vmax.f32 %v1663_v61, 0.0  ;;  %1684 = vst [vmem:[%s2938_s4] sm:$0xff] %v1668_v39  ;;  %1685 = vst [vmem:[%s2938_s4 + $0x8] sm:$0xff] %v1669_v1 }
 0x1f6   :  { %1686 = vst [vmem:[%s2938_s4 + $0x10] sm:$0xff] %v1670_v2  ;;  %1687 = vst [vmem:[%s2938_s4 + $0x18] sm:$0xff] %v1671_v4  ;;  %v1680_v37 = vmax.f32 %v1664_v59, 0.0  ;;  %v1681_v55 = vmax.f32 %v1665_v26, 0.0  ;;  %v1682_v14 = vmax.f32 %v1666_v43, 0.0  ;;  %v1683_v18 = vmax.f32 %v1667_v63, 0.0 }
 0x1f7   :  { %1688 = vst [vmem:[%s2938_s4 + $0x20] sm:$0xff] %v1672_v16  ;;  %1689 = vst [vmem:[%s2938_s4 + $0x28] sm:$0xff] %v1673_v8 }
 0x1f8   :  { %1690 = vst [vmem:[%s2938_s4 + $0x30] sm:$0xff] %v1674_v9  ;;  %1691 = vst [vmem:[%s2938_s4 + $0x38] sm:$0xff] %v1675_v10 }
 0x1f9   :  { %1692 = vst [vmem:[%s2938_s4 + $0x40] sm:$0xff] %v1676_v35  ;;  %1693 = vst [vmem:[%s2938_s4 + $0x48] sm:$0xff] %v1677_v62 }
 0x1fa   :  { %1694 = vst [vmem:[%s2938_s4 + $0x50] sm:$0xff] %v1678_v11  ;;  %1695 = vst [vmem:[%s2938_s4 + $0x58] sm:$0xff] %v1679_v12 }
 0x1fb   :  { %1696 = vst [vmem:[%s2938_s4 + $0x60] sm:$0xff] %v1680_v37  ;;  %1697 = vst [vmem:[%s2938_s4 + $0x68] sm:$0xff] %v1681_v55 }
 0x1fc   :  { %1698 = vst [vmem:[%s2938_s4 + $0x70] sm:$0xff] %v1682_v14  ;;  %1699 = vst [vmem:[%s2938_s4 + $0x78] sm:$0xff] %v1683_v18 }

// kernel: vgg_forward.12
= control target key start
LH: loop header
LB: loop body
LE: loop exit
PB: predicated region body
PF: predicated region fallthrough
CT: control target
= control target key end

     0   :  { %s2898_s1 = inlined_call_operand.vmem [shape: bf16[1152,128], index: 1, kind: input, shape index: {}]   ;;  %s2899_s0 = inlined_call_operand.vmem [shape: bf16[128,1152], index: 0, kind: input, shape index: {}]   ;;  %s2900_s2 = inlined_call_operand.vmem [shape: f32[1,128], index: 2, kind: input, shape index: {}]   ;;  %s2901_s3 = inlined_call_operand.vmem [shape: f32[1,128], index: 3, kind: input, shape index: {}]   ;;  %s2902_s4 = inlined_call_operand.vmem [shape: f32[32,128], index: 4, kind: output, shape index: {}]  }
   0x1   :  { %v2170_v0 = vld [vmem:[%s2898_s1 + $0x40] sm:$0xff]   ;;  %v2174_v4 = vld [vmem:[%s2898_s1 + $0x48] sm:$0xff]   ;;  %v2178_v8 = vld [vmem:[%s2898_s1 + $0x50] sm:$0xff]  }
   0x2   :  { %v2171_v1 = vld [vmem:[%s2898_s1 + $0xc0] sm:$0xff]   ;;  %1850 = vmatprep.subr.bf16.mxu0 %v2170_v0  ;;  %v2175_v5 = vld [vmem:[%s2898_s1 + $0xc8] sm:$0xff]   ;;  %v2179_v9 = vld [vmem:[%s2898_s1 + $0xd0] sm:$0xff]  }
   0x3   :  { %v2172_v2 = vld [vmem:[%s2898_s1] sm:$0xff]   ;;  %1914 = vmatprep.subr.bf16.mxu1 %v2171_v1  ;;  %v2176_v6 = vld [vmem:[%s2898_s1 + $0x8] sm:$0xff]   ;;  %v2180_v10 = vld [vmem:[%s2898_s1 + $0x10] sm:$0xff]  }
   0x4   :  { %v2173_v3 = vld [vmem:[%s2898_s1 + $0x80] sm:$0xff]   ;;  %1851 = vmatpush3.bf16.msra.mxu0 %v2172_v2  ;;  %v2177_v7 = vld [vmem:[%s2898_s1 + $0x88] sm:$0xff]   ;;  %v2181_v11 = vld [vmem:[%s2898_s1 + $0x90] sm:$0xff]  }
   0x5   :  { %1915 = vmatpush3.bf16.msra.mxu1 %v2173_v3  ;;  %1852 = vmatprep.subr.bf16.mxu0 %v2174_v4  ;;  %v2182_v12 = vld [vmem:[%s2898_s1 + $0x58] sm:$0xff]   ;;  %v2186_v16 = vld [vmem:[%s2898_s1 + $0x60] sm:$0xff]   ;;  %v2190_v20 = vld [vmem:[%s2898_s1 + $0x68] sm:$0xff]  }
   0x6   :  { %1916 = vmatprep.subr.bf16.mxu1 %v2175_v5  ;;  %v2183_v13 = vld [vmem:[%s2898_s1 + $0xd8] sm:$0xff]   ;;  %v2187_v17 = vld [vmem:[%s2898_s1 + $0xe0] sm:$0xff]   ;;  %v2191_v21 = vld [vmem:[%s2898_s1 + $0xe8] sm:$0xff]  }
   0x7   :  { %v2184_v14 = vld [vmem:[%s2898_s1 + $0x18] sm:$0xff]   ;;  %v2188_v18 = vld [vmem:[%s2898_s1 + $0x20] sm:$0xff]   ;;  %v2192_v22 = vld [vmem:[%s2898_s1 + $0x28] sm:$0xff]  }
   0x8   :  { %1853 = vmatpush3.bf16.msra.mxu0 %v2176_v6  ;;  %v2185_v15 = vld [vmem:[%s2898_s1 + $0x98] sm:$0xff]   ;;  %v2189_v19 = vld [vmem:[%s2898_s1 + $0xa0] sm:$0xff]   ;;  %v2193_v23 = vld [vmem:[%s2898_s1 + $0xa8] sm:$0xff]  }
   0x9   :  { %1917 = vmatpush3.bf16.msra.mxu1 %v2177_v7  ;;  %1854 = vmatprep.subr.bf16.mxu0 %v2178_v8  ;;  %v2194_v24 = vld [vmem:[%s2898_s1 + $0x70] sm:$0xff]   ;;  %v2198_v28 = vld [vmem:[%s2898_s1 + $0x78] sm:$0xff]   ;;  %v2202_v32 = vld [vmem:[%s2899_s0] ss:$36 sps:$4 sm:$0xff]  }
   0xa   :  { %1918 = vmatprep.subr.bf16.mxu1 %v2179_v9  ;;  %v2195_v25 = vld [vmem:[%s2898_s1 + $0xf0] sm:$0xff]   ;;  %v2199_v29 = vld [vmem:[%s2898_s1 + $0xf8] sm:$0xff]   ;;  %v2204_v33 = vld [vmem:[%s2899_s0 + $0x4] ss:$36 sps:$4 sm:$0xff]  }
   0xb   :  { %v2196_v26 = vld [vmem:[%s2898_s1 + $0x30] sm:$0xff]   ;;  %v2200_v30 = vld [vmem:[%s2898_s1 + $0x38] sm:$0xff]   ;;  %v2205_v34 = vld [vmem:[%s2899_s0 + $0x8] ss:$36 sps:$4 sm:$0xff]   ;;  %1074 = vmatprep.mubr.bf16.mxu0 %v2204_v33 }
   0xc   :  { %1855 = vmatpush3.bf16.msra.mxu0 %v2180_v10  ;;  %v2197_v27 = vld [vmem:[%s2898_s1 + $0xb0] sm:$0xff]   ;;  %v2201_v31 = vld [vmem:[%s2898_s1 + $0xb8] sm:$0xff]   ;;  %v2208_v36 = vld [vmem:[%s2898_s1 + $0x140] sm:$0xff]  }
   0xd   :  { %1919 = vmatpush3.bf16.msra.mxu1 %v2181_v11  ;;  %1856 = vmatprep.subr.bf16.mxu0 %v2182_v12  ;;  %v2207_v35 = vld [vmem:[%s2899_s0 + $0xc] ss:$36 sps:$4 sm:$0xff]   ;;  %v2209_v37 = vld [vmem:[%s2898_s1 + $0x100] sm:$0xff]   ;;  %v2212_v39 = vld [vmem:[%s2899_s0 + $0x54] ss:$36 sps:$4 sm:$0xff]  }
   0xe   :  { %1920 = vmatprep.subr.bf16.mxu1 %v2183_v13  ;;  %1171 = vmatprep.mubr.bf16.mxu1 %v2207_v35  ;;  %v2210_v38 = vld [vmem:[%s2899_s0 + $0x4c] ss:$36 sps:$4 sm:$0xff]   ;;  %v2218_v44 = vld [vmem:[%s2899_s0 + $0x94] ss:$36 sps:$4 sm:$0xff]   ;;  %v2220_v45 = vld [vmem:[%s2899_s0 + $0x9c] ss:$36 sps:$4 sm:$0xff]  }
   0xf   :  { %v2214_v40 = vld [vmem:[%s2899_s0 + $0x48] ss:$36 sps:$4 sm:$0xff]   ;;  %v2215_v41 = vld [vmem:[%s2899_s0 + $0x50] ss:$36 sps:$4 sm:$0xff]   ;;  %v2225_v47 = vld [vmem:[%s2898_s1 + $0x1c0] sm:$0xff]  }
  0x10   :  { %1857 = vmatpush3.bf16.msra.mxu0 %v2184_v14  ;;  %v2216_v42 = vld [vmem:[%s2898_s1 + $0x148] sm:$0xff]   ;;  %v2224_v46 = vld [vmem:[%s2898_s1 + $0x150] sm:$0xff]   ;;  %v2227_v50 = vld [vmem:[%s2898_s1 + $0x180] sm:$0xff]  }
  0x11   :  { %1921 = vmatpush3.bf16.msra.mxu1 %v2185_v15  ;;  %1858 = vmatprep.subr.bf16.mxu0 %v2186_v16  ;;  %v2217_v43 = vld [vmem:[%s2898_s1 + $0x108] sm:$0xff]   ;;  %v2222_v48 = vld [vmem:[%s2899_s0 + $0x90] ss:$36 sps:$4 sm:$0xff]   ;;  %v2223_v51 = vld [vmem:[%s2899_s0 + $0x98] ss:$36 sps:$4 sm:$0xff]  }
  0x12   :  { %1922 = vmatprep.subr.bf16.mxu1 %v2187_v17  ;;  %v2226_v49 = vld [vmem:[%s2898_s1 + $0x110] sm:$0xff]   ;;  %v2228_v52 = vld [vmem:[%s2899_s0 + $0xdc] ss:$36 sps:$4 sm:$0xff]   ;;  %v2230_v53 = vld [vmem:[%s2899_s0 + $0xe4] ss:$36 sps:$4 sm:$0xff]  }
  0x13   :  { %v2234_v54 = vld [vmem:[%s2898_s1 + $0x158] sm:$0xff]   ;;  %v2235_v55 = vld [vmem:[%s2898_s1 + $0x1c8] sm:$0xff]   ;;  %v2233_v59 = vld [vmem:[%s2899_s0 + $0xe0] ss:$36 sps:$4 sm:$0xff]  }
  0x14   :  { %1859 = vmatpush3.bf16.msra.mxu0 %v2188_v18  ;;  %v2236_v56 = vld [vmem:[%s2898_s1 + $0x118] sm:$0xff]   ;;  %v2237_v57 = vld [vmem:[%s2898_s1 + $0x188] sm:$0xff]   ;;  %v2244_v62 = vld [vmem:[%s2898_s1 + $0x160] sm:$0xff]  }
  0x15   :  { %1923 = vmatpush3.bf16.msra.mxu1 %v2189_v19  ;;  %1860 = vmatprep.subr.bf16.mxu0 %v2190_v20  ;;  %v2232_v58 = vld [vmem:[%s2899_s0 + $0xd8] ss:$36 sps:$4 sm:$0xff]   ;;  %v2238_v60 = vld [vmem:[%s2899_s0 + $0x124] ss:$36 sps:$4 sm:$0xff]   ;;  %v2240_v61 = vld [vmem:[%s2899_s0 + $0x12c] ss:$36 sps:$4 sm:$0xff]  }
  0x16   :  { %1924 = vmatprep.subr.bf16.mxu1 %v2191_v21  ;;  %v2245_v63 = vld [vmem:[%s2898_s1 + $0x1d0] sm:$0xff]   ;;  %v2246_v0 = vld [vmem:[%s2898_s1 + $0x120] sm:$0xff]   ;;  %v2243_v3 = vld [vmem:[%s2899_s0 + $0x128] ss:$36 sps:$4 sm:$0xff]  }
  0x17   :  { %v2247_v1 = vld [vmem:[%s2898_s1 + $0x190] sm:$0xff]   ;;  %v2242_v2 = vld [vmem:[%s2899_s0 + $0x120] ss:$36 sps:$4 sm:$0xff]   ;;  %v2254_v6 = vld [vmem:[%s2898_s1 + $0x168] sm:$0xff]  }
  0x18   :  { %1861 = vmatpush3.bf16.msra.mxu0 %v2192_v22  ;;  %v2248_v4 = vld [vmem:[%s2899_s0 + $0x16c] ss:$36 sps:$4 sm:$0xff]   ;;  %v2250_v5 = vld [vmem:[%s2899_s0 + $0x174] ss:$36 sps:$4 sm:$0xff]   ;;  %v2260_v14 = vld [vmem:[%s2899_s0 + $0x1bc] ss:$36 sps:$4 sm:$0xff]  }
  0x19   :  { %1925 = vmatpush3.bf16.msra.mxu1 %v2193_v23  ;;  %1862 = vmatprep.subr.bf16.mxu0 %v2194_v24  ;;  %v2255_v7 = vld [vmem:[%s2898_s1 + $0x1d8] sm:$0xff]   ;;  %v2256_v8 = vld [vmem:[%s2898_s1 + $0x128] sm:$0xff]   ;;  %v2253_v11 = vld [vmem:[%s2899_s0 + $0x170] ss:$36 sps:$4 sm:$0xff]  }
  0x1a   :  { %1926 = vmatprep.subr.bf16.mxu1 %v2195_v25  ;;  %v2257_v9 = vld [vmem:[%s2898_s1 + $0x198] sm:$0xff]   ;;  %v2252_v10 = vld [vmem:[%s2899_s0 + $0x168] ss:$36 sps:$4 sm:$0xff]   ;;  %v2264_v13 = vld [vmem:[%s2898_s1 + $0x170] sm:$0xff]  }
  0x1b   :  { %v2258_v12 = vld [vmem:[%s2899_s0 + $0x1b4] ss:$36 sps:$4 sm:$0xff]   ;;  %v2265_v15 = vld [vmem:[%s2898_s1 + $0x1e0] sm:$0xff]   ;;  %v2268_v18 = vld [vmem:[%s2898_s1 + $0x1e8] sm:$0xff]  }
  0x1c   :  { %1863 = vmatpush3.bf16.msra.mxu0 %v2196_v26  ;;  %v2266_v16 = vld [vmem:[%s2898_s1 + $0x130] sm:$0xff]   ;;  %v2267_v17 = vld [vmem:[%s2898_s1 + $0x1a0] sm:$0xff]   ;;  %v2269_v19 = vld [vmem:[%s2898_s1 + $0x1a8] sm:$0xff]  }
  0x1d   :  { %1927 = vmatpush3.bf16.msra.mxu1 %v2197_v27  ;;  %1864 = vmatprep.subr.bf16.mxu0 %v2198_v28  ;;  %v2262_v20 = vld [vmem:[%s2899_s0 + $0x1b0] ss:$36 sps:$4 sm:$0xff]   ;;  %v2263_v21 = vld [vmem:[%s2899_s0 + $0x1b8] ss:$36 sps:$4 sm:$0xff]   ;;  %v2272_v23 = vld [vmem:[%s2899_s0 + $0x204] ss:$36 sps:$4 sm:$0xff]  }
  0x1e   :  { %1928 = vmatprep.subr.bf16.mxu1 %v2199_v29  ;;  %v2270_v22 = vld [vmem:[%s2899_s0 + $0x1fc] ss:$36 sps:$4 sm:$0xff]   ;;  %v2277_v25 = vld [vmem:[%s2898_s1 + $0x1f0] sm:$0xff]  }
  0x1f   :  { %v2276_v24 = vld [vmem:[%s2898_s1 + $0x178] sm:$0xff]   ;;  %v2279_v27 = vld [vmem:[%s2898_s1 + $0x1b0] sm:$0xff]  }
  0x20   :  { %1865 = vmatpush3.bf16.msra.mxu0 %v2200_v30  ;;  %v2278_v26 = vld [vmem:[%s2898_s1 + $0x138] sm:$0xff]   ;;  %v2275_v30 = vld [vmem:[%s2899_s0 + $0x200] ss:$36 sps:$4 sm:$0xff]   ;;  %v2282_v35 = vld [vmem:[%s2899_s0 + $0x10] ss:$36 sps:$4 sm:$0xff]  }
  0x21   :  { %1929 = vmatpush3.bf16.msra.mxu1 %v2201_v31  ;;  %1978 = vmatprep.subr.bf16.mxu0 %v2208_v36  ;;  %v2280_v28 = vld [vmem:[%s2898_s1 + $0x1f8] sm:$0xff]  }
  0x22   :  { %2042 = vmatprep.subr.bf16.mxu1 %v2225_v47  ;;  %v2274_v29 = vld [vmem:[%s2899_s0 + $0x1f8] ss:$36 sps:$4 sm:$0xff]   ;;  %v2300_v47 = vld [vmem:[%s2899_s0 + $0xa0] ss:$36 sps:$4 sm:$0xff]  }
  0x23   :  { %1075 = vmatmul.mubr.bf16.vlgmr.msra.gmra.mrb[0].mxu0 %v2202_v32  ;;  %v2281_v31 = vld [vmem:[%s2898_s1 + $0x1b8] sm:$0xff]   ;;  %v2288_v32 = vld [vmem:[%s2898_s1 + $0x200] sm:$0xff]  }
  0x24   :  { %1172 = vmatmul.mubr.bf16.vlgmr.msra.gmra.mrb[0].mxu1 %v2205_v34  ;;  %1979 = vmatpush3.bf16.msra.mxu0 %v2209_v37  ;;  %v2284_v33 = vld [vmem:[%s2899_s0 + $0x14] ss:$36 sps:$4 sm:$0xff]   ;;  %v2287_v34 = vld [vmem:[%s2899_s0 + $0x1c] ss:$36 sps:$4 sm:$0xff]  }
  0x25   :  { %1082 = vmatprep.mubr.bf16.mxu0 %v2210_v38  ;;  %1179 = vmatprep.mubr.bf16.mxu1 %v2212_v39  ;;  %v2285_v36 = vld [vmem:[%s2899_s0 + $0x18] ss:$36 sps:$4 sm:$0xff]   ;;  %v2291_v38 = vld [vmem:[%s2899_s0 + $0x64] ss:$36 sps:$4 sm:$0xff]  }
  0x26   :  { %1980 = vmatprep.subr.bf16.mxu0 %v2216_v42  ;;  %2043 = vmatpush3.bf16.msra.mxu1 %v2227_v50  ;;  %v2289_v37 = vld [vmem:[%s2899_s0 + $0x5c] ss:$36 sps:$4 sm:$0xff]   ;;  %v2295_v39 = vld [vmem:[%s2898_s1 + $0x208] sm:$0xff]   ;;  %v2305_v50 = vld [vmem:[%s2899_s0 + $0xf4] ss:$36 sps:$4 sm:$0xff]  }
  0x27   :  { %2044 = vmatprep.subr.bf16.mxu1 %v2235_v55  ;;  %v2294_v42 = vld [vmem:[%s2899_s0 + $0x60] ss:$36 sps:$4 sm:$0xff]   ;;  %v2310_v55 = vld [vmem:[%s2899_s0 + $0x134] ss:$36 sps:$4 sm:$0xff]  }
  0x28   :  { %1981 = vmatpush3.bf16.msra.mxu0 %v2217_v43  ;;  %v2296_v43 = vld [vmem:[%s2899_s0 + $0xa4] ss:$36 sps:$4 sm:$0xff]  }
  0x29   :  { %1982 = vmatprep.subr.bf16.mxu0 %v2224_v46  ;;  %v2316_v46 = vld [vmem:[%s2898_s1 + $0x220] sm:$0xff]  }
  0x2a   :  { %2045 = vmatpush3.bf16.msra.mxu1 %v2237_v57  ;;  %v2337_v57 = vld [vmem:[%s2898_s1 + $0x238] sm:$0xff]  }
  0x2b   :  { %1083 = vmatmul.mubr.bf16.gmra.mrb[4].mxu0 %v2214_v40  ;;  %2046 = vmatprep.subr.bf16.mxu1 %v2245_v63  ;;  %v2302_v40 = vld [vmem:[%s2898_s1 + $0x210] sm:$0xff]   ;;  %v2322_v63 = vld [vmem:[%s2899_s0 + $0x180] ss:$36 sps:$4 sm:$0xff]  }
  0x2c   :  { %1180 = vmatmul.mubr.bf16.gmra.mrb[4].mxu1 %v2215_v41  ;;  %1090 = vmatprep.mubr.bf16.mxu0 %v2218_v44  ;;  %v2293_v41 = vld [vmem:[%s2899_s0 + $0x58] ss:$36 sps:$4 sm:$0xff]   ;;  %v2298_v44 = vld [vmem:[%s2899_s0 + $0xac] ss:$36 sps:$4 sm:$0xff]  }
  0x2d   :  { %1187 = vmatprep.mubr.bf16.mxu1 %v2220_v45  ;;  %1983 = vmatpush3.bf16.msra.mxu0 %v2226_v49  ;;  %v2309_v45 = vld [vmem:[%s2898_s1 + $0x218] sm:$0xff]   ;;  %v2303_v49 = vld [vmem:[%s2899_s0 + $0xec] ss:$36 sps:$4 sm:$0xff]  }
  0x2e   :  { %1984 = vmatprep.subr.bf16.mxu0 %v2234_v54  ;;  %2047 = vmatpush3.bf16.msra.mxu1 %v2247_v1  ;;  %v2308_v54 = vld [vmem:[%s2899_s0 + $0xf0] ss:$36 sps:$4 sm:$0xff]  }
  0x2f   :  { %2048 = vmatprep.subr.bf16.mxu1 %v2255_v7  ;;  %v2326_v1 = vld [vmem:[%s2899_s0 + $0x1cc] ss:$36 sps:$4 sm:$0xff]  }
  0x30   :  { %v2336_v7 = vld [vmem:[%s2899_s0 + $0x210] ss:$36 sps:$4 sm:$0xff]  }
  0x31   :  { %1985 = vmatpush3.bf16.msra.mxu0 %v2236_v56  ;;  %v2312_v56 = vld [vmem:[%s2899_s0 + $0x13c] ss:$36 sps:$4 sm:$0xff]  }
  0x32   :  { %1986 = vmatprep.subr.bf16.mxu0 %v2244_v62  ;;  %2049 = vmatpush3.bf16.msra.mxu1 %v2257_v9  ;;  %v2321_v62 = vld [vmem:[%s2899_s0 + $0x178] ss:$36 sps:$4 sm:$0xff]   ;;  %v2339_v9 = vld [vmem:[%s2899_s0 + $0x140] ss:$36 sps:$4 sm:$0xff]  }
  0x33   :  { %1091 = vmatmul.mubr.bf16.gmra.mrb[8].mxu0 %v2222_v48  ;;  %2050 = vmatprep.subr.bf16.mxu1 %v2265_v15  ;;  %v2301_v48 = vld [vmem:[%s2899_s0 + $0xa8] ss:$36 sps:$4 sm:$0xff]   ;;  %v2345_v15 = vld [vmem:[%s2899_s0 + $0x218] ss:$36 sps:$4 sm:$0xff]  }
  0x34   :  { %1188 = vmatmul.mubr.bf16.gmra.mrb[8].mxu1 %v2223_v51  ;;  %1098 = vmatprep.mubr.bf16.mxu0 %v2228_v52  ;;  %v2323_v51 = vld [vmem:[%s2898_s1 + $0x228] sm:$0xff]  }
  0x35   :  { %1195 = vmatprep.mubr.bf16.mxu1 %v2230_v53  ;;  %1987 = vmatpush3.bf16.msra.mxu0 %v2246_v0  ;;  %v2307_v52 = vld [vmem:[%s2899_s0 + $0xe8] ss:$36 sps:$4 sm:$0xff]   ;;  %v2330_v53 = vld [vmem:[%s2898_s1 + $0x230] sm:$0xff]  }
  0x36   :  { %1988 = vmatprep.subr.bf16.mxu0 %v2254_v6  ;;  %2051 = vmatpush3.bf16.msra.mxu1 %v2267_v17  ;;  %v2324_v0 = vld [vmem:[%s2899_s0 + $0x1c4] ss:$36 sps:$4 sm:$0xff]  }
  0x37   :  { %2052 = vmatprep.subr.bf16.mxu1 %v2268_v18  ;;  %v2335_v6 = vld [vmem:[%s2899_s0 + $0x208] ss:$36 sps:$4 sm:$0xff]  }
  0x39   :  { %1989 = vmatpush3.bf16.msra.mxu0 %v2256_v8  ;;  %v2338_v8 = vld [vmem:[%s2899_s0 + $0x20] ss:$36 sps:$4 sm:$0xff]  }
  0x3a   :  { %1990 = vmatprep.subr.bf16.mxu0 %v2264_v13  ;;  %2053 = vmatpush3.bf16.msra.mxu1 %v2269_v19  ;;  %v2343_v13 = vld [vmem:[%s2899_s0 + $0x1d0] ss:$36 sps:$4 sm:$0xff]  }
  0x3b   :  { %1099 = vmatmul.mubr.bf16.gmra.mrb[12].mxu0 %v2232_v58  ;;  %2054 = vmatprep.subr.bf16.mxu1 %v2277_v25  ;;  %v2314_v58 = vld [vmem:[%s2899_s0 + $0x130] ss:$36 sps:$4 sm:$0xff]  }
  0x3c   :  { %1196 = vmatmul.mubr.bf16.gmra.mrb[12].mxu1 %v2233_v59  ;;  %1106 = vmatprep.mubr.bf16.mxu0 %v2238_v60  ;;  %v2315_v59 = vld [vmem:[%s2899_s0 + $0x138] ss:$36 sps:$4 sm:$0xff]  }
  0x3d   :  { %1203 = vmatprep.mubr.bf16.mxu1 %v2240_v61  ;;  %1991 = vmatpush3.bf16.msra.mxu0 %v2266_v16  ;;  %v2317_v60 = vld [vmem:[%s2899_s0 + $0x17c] ss:$36 sps:$4 sm:$0xff]   ;;  %v2319_v61 = vld [vmem:[%s2899_s0 + $0x184] ss:$36 sps:$4 sm:$0xff]  }
  0x3e   :  { %1992 = vmatprep.subr.bf16.mxu0 %v2276_v24  ;;  %2055 = vmatpush3.bf16.msra.mxu1 %v2279_v27 }
  0x3f   :  { %2056 = vmatprep.subr.bf16.mxu1 %v2280_v28 }
  0x41   :  { %1993 = vmatpush3.bf16.msra.mxu0 %v2278_v26 }
  0x42   :  { %2122 = vmatprep.subr.bf16.mxu0 %v2288_v32  ;;  %2057 = vmatpush3.bf16.msra.mxu1 %v2281_v31 }
  0x43   :  { %1107 = vmatmul.mubr.bf16.gmra.mrb[16].mxu0 %v2242_v2  ;;  %2154 = vmatprep.subr.bf16.mxu1 %v2288_v32  ;;  %v2328_v2 = vld [vmem:[%s2899_s0 + $0x1c0] ss:$36 sps:$4 sm:$0xff]  }
  0x44   :  { %1204 = vmatmul.mubr.bf16.gmra.mrb[16].mxu1 %v2243_v3  ;;  %1114 = vmatprep.mubr.bf16.mxu0 %v2248_v4  ;;  %v2329_v3 = vld [vmem:[%s2899_s0 + $0x1c8] ss:$36 sps:$4 sm:$0xff]  }
  0x45   :  { %1211 = vmatprep.mubr.bf16.mxu1 %v2250_v5  ;;  %v2331_v4 = vld [vmem:[%s2899_s0 + $0x20c] ss:$36 sps:$4 sm:$0xff]   ;;  %v2333_v5 = vld [vmem:[%s2899_s0 + $0x214] ss:$36 sps:$4 sm:$0xff]  }
  0x4b   :  { %1115 = vmatmul.mubr.bf16.gmra.mrb[20].mxu0 %v2252_v10  ;;  %v2340_v10 = vld [vmem:[%s2899_s0 + $0x68] ss:$36 sps:$4 sm:$0xff]  }
  0x4c   :  { %1212 = vmatmul.mubr.bf16.gmra.mrb[20].mxu1 %v2253_v11  ;;  %1122 = vmatprep.mubr.bf16.mxu0 %v2258_v12  ;;  %v2341_v11 = vld [vmem:[%s2899_s0 + $0x188] ss:$36 sps:$4 sm:$0xff]   ;;  %v2342_v12 = vld [vmem:[%s2899_s0 + $0xb0] ss:$36 sps:$4 sm:$0xff]  }
  0x4d   :  { %1219 = vmatprep.mubr.bf16.mxu1 %v2260_v14  ;;  %v2344_v14 = vld [vmem:[%s2899_s0 + $0xf8] ss:$36 sps:$4 sm:$0xff]  }
  0x53   :  { %1123 = vmatmul.mubr.bf16.gmra.mrb[24].mxu0 %v2262_v20 }
  0x54   :  { %1220 = vmatmul.mubr.bf16.gmra.mrb[24].mxu1 %v2263_v21  ;;  %1130 = vmatprep.mubr.bf16.mxu0 %v2270_v22 }
  0x55   :  { %1227 = vmatprep.mubr.bf16.mxu1 %v2272_v23 }
  0x5b   :  { %1131 = vmatmul.mubr.bf16.gmra.mrb[28].mxu0 %v2274_v29 }
  0x5c   :  { %1228 = vmatmul.mubr.bf16.gmra.mrb[28].mxu1 %v2275_v30  ;;  %1268 = vmatprep.mubr.bf16.mxu0 %v2284_v33 }
  0x5d   :  { %1365 = vmatprep.mubr.bf16.mxu1 %v2287_v34 }
  0x63   :  { %1269 = vmatmul.mubr.bf16.vlgmr.msra.gmra.mrb[32].mxu0 %v2282_v35 }
  0x64   :  { %1366 = vmatmul.mubr.bf16.vlgmr.msra.gmra.mrb[32].mxu1 %v2285_v36  ;;  %2123 = vmatpush3.bf16.msra.mxu0 %v2288_v32 }
  0x65   :  { %1276 = vmatprep.mubr.bf16.mxu0 %v2289_v37  ;;  %1373 = vmatprep.mubr.bf16.mxu1 %v2291_v38 }
  0x66   :  { %2124 = vmatprep.subr.bf16.mxu0 %v2295_v39  ;;  %2162 = vmatpush3.bf16.msra.mxu1 %v2288_v32 }
  0x67   :  { %2155 = vmatprep.subr.bf16.mxu1 %v2295_v39 }
  0x68   :  { %2125 = vmatpush3.bf16.msra.mxu0 %v2295_v39 }
  0x69   :  { %2126 = vmatprep.subr.bf16.mxu0 %v2302_v40 }
  0x6a   :  { %2163 = vmatpush3.bf16.msra.mxu1 %v2295_v39 }
  0x6b   :  { %1277 = vmatmul.mubr.bf16.gmra.mrb[36].mxu0 %v2293_v41  ;;  %2156 = vmatprep.subr.bf16.mxu1 %v2302_v40 }
  0x6c   :  { %1374 = vmatmul.mubr.bf16.gmra.mrb[36].mxu1 %v2294_v42  ;;  %1284 = vmatprep.mubr.bf16.mxu0 %v2296_v43 }
  0x6d   :  { %1381 = vmatprep.mubr.bf16.mxu1 %v2298_v44  ;;  %2127 = vmatpush3.bf16.msra.mxu0 %v2302_v40 }
  0x6e   :  { %2128 = vmatprep.subr.bf16.mxu0 %v2309_v45  ;;  %2164 = vmatpush3.bf16.msra.mxu1 %v2302_v40 }
  0x6f   :  { %2157 = vmatprep.subr.bf16.mxu1 %v2309_v45 }
  0x71   :  { %2129 = vmatpush3.bf16.msra.mxu0 %v2309_v45 }
  0x72   :  { %2130 = vmatprep.subr.bf16.mxu0 %v2316_v46  ;;  %2165 = vmatpush3.bf16.msra.mxu1 %v2309_v45 }
  0x73   :  { %1285 = vmatmul.mubr.bf16.gmra.mrb[40].mxu0 %v2300_v47  ;;  %2158 = vmatprep.subr.bf16.mxu1 %v2316_v46 }
  0x74   :  { %1382 = vmatmul.mubr.bf16.gmra.mrb[40].mxu1 %v2301_v48  ;;  %1292 = vmatprep.mubr.bf16.mxu0 %v2303_v49 }
  0x75   :  { %1389 = vmatprep.mubr.bf16.mxu1 %v2305_v50  ;;  %2131 = vmatpush3.bf16.msra.mxu0 %v2316_v46 }
  0x76   :  { %2132 = vmatprep.subr.bf16.mxu0 %v2323_v51  ;;  %2166 = vmatpush3.bf16.msra.mxu1 %v2316_v46 }
  0x77   :  { %2159 = vmatprep.subr.bf16.mxu1 %v2323_v51 }
  0x79   :  { %2133 = vmatpush3.bf16.msra.mxu0 %v2323_v51 }
  0x7a   :  { %2134 = vmatprep.subr.bf16.mxu0 %v2330_v53  ;;  %2167 = vmatpush3.bf16.msra.mxu1 %v2323_v51 }
  0x7b   :  { %1293 = vmatmul.mubr.bf16.gmra.mrb[44].mxu0 %v2307_v52  ;;  %2160 = vmatprep.subr.bf16.mxu1 %v2330_v53 }
  0x7c   :  { %1390 = vmatmul.mubr.bf16.gmra.mrb[44].mxu1 %v2308_v54  ;;  %1300 = vmatprep.mubr.bf16.mxu0 %v2310_v55 }
  0x7d   :  { %1397 = vmatprep.mubr.bf16.mxu1 %v2312_v56  ;;  %2135 = vmatpush3.bf16.msra.mxu0 %v2330_v53 }
  0x7e   :  { %2136 = vmatprep.subr.bf16.mxu0 %v2337_v57  ;;  %2168 = vmatpush3.bf16.msra.mxu1 %v2330_v53 }
  0x7f   :  { %2161 = vmatprep.subr.bf16.mxu1 %v2337_v57 }
  0x81   :  { %2137 = vmatpush3.bf16.msra.mxu0 %v2337_v57 }
  0x82   :  { %2169 = vmatpush3.bf16.msra.mxu1 %v2337_v57 }
  0x83   :  { %1301 = vmatmul.mubr.bf16.gmra.mrb[48].mxu0 %v2314_v58 }
  0x84   :  { %1398 = vmatmul.mubr.bf16.gmra.mrb[48].mxu1 %v2315_v59  ;;  %1308 = vmatprep.mubr.bf16.mxu0 %v2317_v60 }
  0x85   :  { %1405 = vmatprep.mubr.bf16.mxu1 %v2319_v61 }
  0x8b   :  { %1309 = vmatmul.mubr.bf16.gmra.mrb[52].mxu0 %v2321_v62 }
  0x8c   :  { %1406 = vmatmul.mubr.bf16.gmra.mrb[52].mxu1 %v2322_v63  ;;  %1316 = vmatprep.mubr.bf16.mxu0 %v2324_v0 }
  0x8d   :  { %1413 = vmatprep.mubr.bf16.mxu1 %v2326_v1 }
  0x93   :  { %1317 = vmatmul.mubr.bf16.gmra.mrb[56].mxu0 %v2328_v2 }
  0x94   :  { %1414 = vmatmul.mubr.bf16.gmra.mrb[56].mxu1 %v2329_v3  ;;  %1324 = vmatprep.mubr.bf16.mxu0 %v2331_v4 }
  0x95   :  { %1421 = vmatprep.mubr.bf16.mxu1 %v2333_v5 }
  0x9b   :  { %1325 = vmatmul.mubr.bf16.gmra.mrb[60].mxu0 %v2335_v6 }
  0x9c   :  { %1422 = vmatmul.mubr.bf16.gmra.mrb[60].mxu1 %v2336_v7  ;;  %2138 = vmatprep.mubr.bf16.mxu0 %v2338_v8 }
  0x9d   :  { %2146 = vmatprep.mubr.bf16.mxu1 %v2339_v9 }
  0xa3   :  { %2139 = vmatmul.mubr.bf16.vlgmr.msra.gmra.mrb[64].mxu0 %v2340_v10 }
  0xa4   :  { %2147 = vmatmul.mubr.bf16.vlgmr.msra.gmra.mrb[64].mxu1 %v2341_v11  ;;  %2142 = vmatprep.mubr.bf16.mxu0 %v2342_v12 }
  0xa5   :  { %2150 = vmatprep.mubr.bf16.mxu1 %v2343_v13 }
  0xab   :  { %2143 = vmatmul.mubr.bf16.gmra.mrb[68].mxu0 %v2344_v14 }
  0xac   :  { %2151 = vmatmul.mubr.bf16.gmra.mrb[68].mxu1 %v2345_v15 }
  0xf6   :  { %v1866_v16 = vpop.f32.mrb[0].mxu0 }
  0xf7   :  { %v1930_v17 = vpop.f32.mrb[0].mxu1  ;;  %v1867_v18 = vpop.f32.mrb[1].mxu0 }
  0xf8   :  { %v1868_v19 = vadd.f32 %v1867_v18, %v1866_v16  ;;  %v1931_v20 = vpop.f32.mrb[1].mxu1  ;;  %v1869_v21 = vpop.f32.mrb[2].mxu0 }
  0xf9   :  { %v1932_v22 = vadd.f32 %v1931_v20, %v1930_v17  ;;  %v1933_v23 = vpop.f32.mrb[2].mxu1  ;;  %v1870_v24 = vpop.f32.mrb[3].mxu0 }
  0xfa   :  { %v1871_v25 = vadd.f32 %v1870_v24, %v1869_v21  ;;  %v1934_v26 = vpop.f32.mrb[3].mxu1 }
  0xfb   :  { %v2805_v27 = vadd.f32 %v1932_v22, %v1868_v19  ;;  %v1935_v28 = vadd.f32 %v1934_v26, %v1933_v23 }
  0xfd   :  { %v2807_v29 = vadd.f32 %v1935_v28, %v1871_v25 }
  0xfe   :  { %v1872_v30 = vpop.f32.mrb[4].mxu0 }
  0xff   :  { %v1936_v31 = vpop.f32.mrb[4].mxu1  ;;  %v1873_v32 = vpop.f32.mrb[5].mxu0 }
 0x100   :  { %v1874_v33 = vadd.f32 %v1873_v32, %v1872_v30  ;;  %v1937_v34 = vpop.f32.mrb[5].mxu1  ;;  %v1875_v35 = vpop.f32.mrb[6].mxu0 }
 0x101   :  { %v1938_v36 = vadd.f32 %v1937_v34, %v1936_v31  ;;  %v1939_v37 = vpop.f32.mrb[6].mxu1  ;;  %v1876_v38 = vpop.f32.mrb[7].mxu0 }
 0x102   :  { %v1877_v39 = vadd.f32 %v1876_v38, %v1875_v35  ;;  %v1940_v40 = vpop.f32.mrb[7].mxu1 }
 0x103   :  { %v2809_v41 = vadd.f32 %v1938_v36, %v1874_v33  ;;  %v1941_v42 = vadd.f32 %v1940_v40, %v1939_v37 }
 0x105   :  { %v2811_v43 = vadd.f32 %v1941_v42, %v1877_v39 }
 0x106   :  { %v1878_v44 = vpop.f32.mrb[8].mxu0 }
 0x107   :  { %v1942_v45 = vpop.f32.mrb[8].mxu1  ;;  %v1879_v46 = vpop.f32.mrb[9].mxu0 }
 0x108   :  { %v1880_v47 = vadd.f32 %v1879_v46, %v1878_v44  ;;  %v1943_v48 = vpop.f32.mrb[9].mxu1  ;;  %v1881_v49 = vpop.f32.mrb[10].mxu0 }
 0x109   :  { %v1944_v50 = vadd.f32 %v1943_v48, %v1942_v45  ;;  %v1945_v51 = vpop.f32.mrb[10].mxu1  ;;  %v1882_v52 = vpop.f32.mrb[11].mxu0 }
 0x10a   :  { %v1883_v53 = vadd.f32 %v1882_v52, %v1881_v49  ;;  %v1946_v54 = vpop.f32.mrb[11].mxu1 }
 0x10b   :  { %v2813_v55 = vadd.f32 %v1944_v50, %v1880_v47  ;;  %v1947_v56 = vadd.f32 %v1946_v54, %v1945_v51 }
 0x10d   :  { %v2815_v57 = vadd.f32 %v1947_v56, %v1883_v53 }
 0x10e   :  { %v1884_v58 = vpop.f32.mrb[12].mxu0 }
 0x10f   :  { %v1948_v59 = vpop.f32.mrb[12].mxu1  ;;  %v1885_v60 = vpop.f32.mrb[13].mxu0 }
 0x110   :  { %v1886_v61 = vadd.f32 %v1885_v60, %v1884_v58  ;;  %v1949_v62 = vpop.f32.mrb[13].mxu1  ;;  %v1887_v63 = vpop.f32.mrb[14].mxu0 }
 0x111   :  { %v1950_v0 = vadd.f32 %v1949_v62, %v1948_v59  ;;  %v1951_v1 = vpop.f32.mrb[14].mxu1  ;;  %v1888_v2 = vpop.f32.mrb[15].mxu0 }
 0x112   :  { %v1889_v3 = vadd.f32 %v1888_v2, %v1887_v63  ;;  %v1952_v4 = vpop.f32.mrb[15].mxu1 }
 0x113   :  { %v2817_v5 = vadd.f32 %v1950_v0, %v1886_v61  ;;  %v1953_v6 = vadd.f32 %v1952_v4, %v1951_v1 }
 0x115   :  { %v2819_v7 = vadd.f32 %v1953_v6, %v1889_v3 }
 0x116   :  { %v1890_v8 = vpop.f32.mrb[16].mxu0 }
 0x117   :  { %v1954_v9 = vpop.f32.mrb[16].mxu1  ;;  %v1891_v10 = vpop.f32.mrb[17].mxu0 }
 0x118   :  { %v1892_v11 = vadd.f32 %v1891_v10, %v1890_v8  ;;  %v1955_v12 = vpop.f32.mrb[17].mxu1  ;;  %v1893_v13 = vpop.f32.mrb[18].mxu0 }
 0x119   :  { %v1956_v14 = vadd.f32 %v1955_v12, %v1954_v9  ;;  %v1957_v15 = vpop.f32.mrb[18].mxu1  ;;  %v1894_v16 = vpop.f32.mrb[19].mxu0 }
 0x11a   :  { %v1895_v17 = vadd.f32 %v1894_v16, %v1893_v13  ;;  %v1958_v18 = vpop.f32.mrb[19].mxu1 }
 0x11b   :  { %v2821_v19 = vadd.f32 %v1956_v14, %v1892_v11  ;;  %v1959_v20 = vadd.f32 %v1958_v18, %v1957_v15 }
 0x11d   :  { %v2823_v21 = vadd.f32 %v1959_v20, %v1895_v17 }
 0x11e   :  { %v1896_v22 = vpop.f32.mrb[20].mxu0 }
 0x11f   :  { %v1960_v23 = vpop.f32.mrb[20].mxu1  ;;  %v1897_v24 = vpop.f32.mrb[21].mxu0 }
 0x120   :  { %v1898_v25 = vadd.f32 %v1897_v24, %v1896_v22  ;;  %v1961_v26 = vpop.f32.mrb[21].mxu1  ;;  %v1899_v28 = vpop.f32.mrb[22].mxu0 }
 0x121   :  { %v1962_v30 = vadd.f32 %v1961_v26, %v1960_v23  ;;  %v1963_v31 = vpop.f32.mrb[22].mxu1  ;;  %v1900_v32 = vpop.f32.mrb[23].mxu0 }
 0x122   :  { %v1901_v33 = vadd.f32 %v1900_v32, %v1899_v28  ;;  %v1964_v34 = vpop.f32.mrb[23].mxu1 }
 0x123   :  { %v2825_v35 = vadd.f32 %v1962_v30, %v1898_v25  ;;  %v1965_v36 = vadd.f32 %v1964_v34, %v1963_v31 }
 0x125   :  { %v2827_v37 = vadd.f32 %v1965_v36, %v1901_v33 }
 0x126   :  { %v1902_v38 = vpop.f32.mrb[24].mxu0 }
 0x127   :  { %v1966_v39 = vpop.f32.mrb[24].mxu1  ;;  %v1903_v40 = vpop.f32.mrb[25].mxu0 }
 0x128   :  { %v1904_v42 = vadd.f32 %v1903_v40, %v1902_v38  ;;  %v1967_v44 = vpop.f32.mrb[25].mxu1  ;;  %v1905_v45 = vpop.f32.mrb[26].mxu0 }
 0x129   :  { %v1968_v46 = vadd.f32 %v1967_v44, %v1966_v39  ;;  %v1969_v47 = vpop.f32.mrb[26].mxu1  ;;  %v1906_v48 = vpop.f32.mrb[27].mxu0 }
 0x12a   :  { %v1907_v49 = vadd.f32 %v1906_v48, %v1905_v45  ;;  %v1970_v50 = vpop.f32.mrb[27].mxu1 }
 0x12b   :  { %v2829_v51 = vadd.f32 %v1968_v46, %v1904_v42  ;;  %v1971_v52 = vadd.f32 %v1970_v50, %v1969_v47 }
 0x12d   :  { %v2831_v53 = vadd.f32 %v1971_v52, %v1907_v49 }
 0x12e   :  { %v1908_v54 = vpop.f32.mrb[28].mxu0 }
 0x12f   :  { %v1972_v56 = vpop.f32.mrb[28].mxu1  ;;  %v1909_v58 = vpop.f32.mrb[29].mxu0 }
 0x130   :  { %v1910_v59 = vadd.f32 %v1909_v58, %v1908_v54  ;;  %v1973_v60 = vpop.f32.mrb[29].mxu1  ;;  %v1911_v61 = vpop.f32.mrb[30].mxu0 }
 0x131   :  { %v1974_v62 = vadd.f32 %v1973_v60, %v1972_v56  ;;  %v1975_v63 = vpop.f32.mrb[30].mxu1  ;;  %v1912_v0 = vpop.f32.mrb[31].mxu0 }
 0x132   :  { %v1913_v1 = vadd.f32 %v1912_v0, %v1911_v61  ;;  %v1976_v2 = vpop.f32.mrb[31].mxu1 }
 0x133   :  { %v2833_v3 = vadd.f32 %v1974_v62, %v1910_v59  ;;  %v1977_v4 = vadd.f32 %v1976_v2, %v1975_v63 }
 0x135   :  { %v2835_v6 = vadd.f32 %v1977_v4, %v1913_v1 }
 0x136   :  { %v1994_v8 = vpop.f32.mrb[32].mxu0 }
 0x137   :  { %v1995_v9 = vpop.f32.mrb[33].mxu0  ;;  %v2058_v10 = vpop.f32.mrb[32].mxu1 }
 0x138   :  { %v1996_v11 = vadd.f32 %v1995_v9, %v1994_v8  ;;  %v1997_v12 = vpop.f32.mrb[34].mxu0  ;;  %v2059_v13 = vpop.f32.mrb[33].mxu1 }
 0x139   :  { %v1998_v14 = vpop.f32.mrb[35].mxu0  ;;  %v2060_v15 = vadd.f32 %v2059_v13, %v2058_v10  ;;  %v2061_v16 = vpop.f32.mrb[34].mxu1 }
 0x13a   :  { %v1271_v17 = vadd.f32 %v1996_v11, %v2805_v27  ;;  %v1999_v18 = vadd.f32 %v1998_v14, %v1997_v12  ;;  %v2062_v20 = vpop.f32.mrb[35].mxu1 }
 0x13b   :  { %v2063_v22 = vadd.f32 %v2062_v20, %v2061_v16 }
 0x13c   :  { %v1274_v23 = vadd.f32 %v1999_v18, %v2807_v29  ;;  %v2839_v24 = vadd.f32 %v2060_v15, %v1271_v17 }
 0x13e   :  { %v2000_v25 = vpop.f32.mrb[36].mxu0  ;;  %v2841_v26 = vadd.f32 %v2063_v22, %v1274_v23 }
 0x13f   :  { %v2001_v28 = vpop.f32.mrb[37].mxu0  ;;  %v2064_v30 = vpop.f32.mrb[36].mxu1 }
 0x140   :  { %v2002_v31 = vadd.f32 %v2001_v28, %v2000_v25  ;;  %v2003_v32 = vpop.f32.mrb[38].mxu0  ;;  %v2065_v33 = vpop.f32.mrb[37].mxu1 }
 0x141   :  { %v2004_v34 = vpop.f32.mrb[39].mxu0  ;;  %v2066_v36 = vadd.f32 %v2065_v33, %v2064_v30  ;;  %v2067_v38 = vpop.f32.mrb[38].mxu1 }
 0x142   :  { %v1279_v27 = vadd.f32 %v2002_v31, %v2809_v41  ;;  %v2005_v39 = vadd.f32 %v2004_v34, %v2003_v32  ;;  %v2068_v40 = vpop.f32.mrb[39].mxu1 }
 0x143   :  { %v2069_v42 = vadd.f32 %v2068_v40, %v2067_v38 }
 0x144   :  { %v1282_v29 = vadd.f32 %v2005_v39, %v2811_v43  ;;  %v2845_v44 = vadd.f32 %v2066_v36, %v1279_v27 }
 0x146   :  { %v2006_v45 = vpop.f32.mrb[40].mxu0  ;;  %v2847_v46 = vadd.f32 %v2069_v42, %v1282_v29 }
 0x147   :  { %v2007_v47 = vpop.f32.mrb[41].mxu0  ;;  %v2070_v48 = vpop.f32.mrb[40].mxu1 }
 0x148   :  { %v2008_v49 = vadd.f32 %v2007_v47, %v2006_v45  ;;  %v2009_v50 = vpop.f32.mrb[42].mxu0  ;;  %v2071_v52 = vpop.f32.mrb[41].mxu1 }
 0x149   :  { %v2010_v54 = vpop.f32.mrb[43].mxu0  ;;  %v2072_v56 = vadd.f32 %v2071_v52, %v2070_v48  ;;  %v2073_v58 = vpop.f32.mrb[42].mxu1 }
 0x14a   :  { %v1287_v41 = vadd.f32 %v2008_v49, %v2813_v55  ;;  %v2011_v59 = vadd.f32 %v2010_v54, %v2009_v50  ;;  %v2074_v60 = vpop.f32.mrb[43].mxu1 }
 0x14b   :  { %v2075_v61 = vadd.f32 %v2074_v60, %v2073_v58 }
 0x14c   :  { %v1290_v43 = vadd.f32 %v2011_v59, %v2815_v57  ;;  %v2851_v62 = vadd.f32 %v2072_v56, %v1287_v41 }
 0x14e   :  { %v2012_v63 = vpop.f32.mrb[44].mxu0  ;;  %v2853_v0 = vadd.f32 %v2075_v61, %v1290_v43 }
 0x14f   :  { %v2013_v1 = vpop.f32.mrb[45].mxu0  ;;  %v2076_v2 = vpop.f32.mrb[44].mxu1 }
 0x150   :  { %v2014_v4 = vadd.f32 %v2013_v1, %v2012_v63  ;;  %v2015_v8 = vpop.f32.mrb[46].mxu0  ;;  %v2077_v9 = vpop.f32.mrb[45].mxu1 }
 0x151   :  { %v2016_v10 = vpop.f32.mrb[47].mxu0  ;;  %v2078_v11 = vadd.f32 %v2077_v9, %v2076_v2  ;;  %v2079_v12 = vpop.f32.mrb[46].mxu1 }
 0x152   :  { %v1295_v55 = vadd.f32 %v2014_v4, %v2817_v5  ;;  %v2017_v13 = vadd.f32 %v2016_v10, %v2015_v8  ;;  %v2080_v14 = vpop.f32.mrb[47].mxu1 }
 0x153   :  { %v2081_v15 = vadd.f32 %v2080_v14, %v2079_v12 }
 0x154   :  { %v1298_v57 = vadd.f32 %v2017_v13, %v2819_v7  ;;  %v2857_v16 = vadd.f32 %v2078_v11, %v1295_v55 }
 0x156   :  { %v2018_v17 = vpop.f32.mrb[48].mxu0  ;;  %v2859_v18 = vadd.f32 %v2081_v15, %v1298_v57 }
 0x157   :  { %v2019_v20 = vpop.f32.mrb[49].mxu0  ;;  %v2082_v22 = vpop.f32.mrb[48].mxu1 }
 0x158   :  { %v2020_v23 = vadd.f32 %v2019_v20, %v2018_v17  ;;  %v2021_v25 = vpop.f32.mrb[50].mxu0  ;;  %v2083_v28 = vpop.f32.mrb[49].mxu1 }
 0x159   :  { %v2022_v30 = vpop.f32.mrb[51].mxu0  ;;  %v2084_v31 = vadd.f32 %v2083_v28, %v2082_v22  ;;  %v2085_v32 = vpop.f32.mrb[50].mxu1 }
 0x15a   :  { %v1303_v5 = vadd.f32 %v2020_v23, %v2821_v19  ;;  %v2023_v33 = vadd.f32 %v2022_v30, %v2021_v25  ;;  %v2086_v34 = vpop.f32.mrb[51].mxu1 }
 0x15b   :  { %v2087_v36 = vadd.f32 %v2086_v34, %v2085_v32 }
 0x15c   :  { %v1306_v7 = vadd.f32 %v2023_v33, %v2823_v21  ;;  %v1400_v38 = vadd.f32 %v2084_v31, %v1303_v5 }
 0x15e   :  { %v2024_v27 = vpop.f32.mrb[52].mxu0  ;;  %v2863_v39 = vadd.f32 %v2087_v36, %v1306_v7 }
 0x15f   :  { %v2025_v40 = vpop.f32.mrb[53].mxu0  ;;  %v2088_v42 = vpop.f32.mrb[52].mxu1 }
 0x160   :  { %v2026_v29 = vadd.f32 %v2025_v40, %v2024_v27  ;;  %v2027_v45 = vpop.f32.mrb[54].mxu0  ;;  %v2089_v47 = vpop.f32.mrb[53].mxu1 }
 0x161   :  { %v2028_v48 = vpop.f32.mrb[55].mxu0  ;;  %v2090_v49 = vadd.f32 %v2089_v47, %v2088_v42  ;;  %v2091_v50 = vpop.f32.mrb[54].mxu1 }
 0x162   :  { %v1311_v52 = vadd.f32 %v2026_v29, %v2825_v35  ;;  %v2029_v19 = vadd.f32 %v2028_v48, %v2027_v45  ;;  %v2092_v54 = vpop.f32.mrb[55].mxu1 }
 0x163   :  { %v2093_v56 = vadd.f32 %v2092_v54, %v2091_v50 }
 0x164   :  { %v1314_v58 = vadd.f32 %v2029_v19, %v2827_v37  ;;  %v1408_v21 = vadd.f32 %v2090_v49, %v1311_v52 }
 0x166   :  { %v2030_v41 = vpop.f32.mrb[56].mxu0  ;;  %v1411_v59 = vadd.f32 %v2093_v56, %v1314_v58 }
 0x167   :  { %v2031_v60 = vpop.f32.mrb[57].mxu0  ;;  %v2094_v61 = vpop.f32.mrb[56].mxu1 }
 0x168   :  { %v2032_v43 = vadd.f32 %v2031_v60, %v2030_v41  ;;  %v2033_v63 = vpop.f32.mrb[58].mxu0  ;;  %v2095_v1 = vpop.f32.mrb[57].mxu1 }
 0x169   :  { %v2034_v2 = vpop.f32.mrb[59].mxu0  ;;  %v2096_v4 = vadd.f32 %v2095_v1, %v2094_v61  ;;  %v2097_v8 = vpop.f32.mrb[58].mxu1 }
 0x16a   :  { %v1319_v9 = vadd.f32 %v2032_v43, %v2829_v51  ;;  %v2035_v10 = vadd.f32 %v2034_v2, %v2033_v63  ;;  %v2098_v35 = vpop.f32.mrb[59].mxu1 }
 0x16b   :  { %v2099_v11 = vadd.f32 %v2098_v35, %v2097_v8 }
 0x16c   :  { %v1322_v12 = vadd.f32 %v2035_v10, %v2831_v53  ;;  %v1416_v55 = vadd.f32 %v2096_v4, %v1319_v9 }
 0x16e   :  { %v2036_v37 = vpop.f32.mrb[60].mxu0  ;;  %v1419_v13 = vadd.f32 %v2099_v11, %v1322_v12 }
 0x16f   :  { %v2037_v14 = vpop.f32.mrb[61].mxu0  ;;  %v2100_v15 = vpop.f32.mrb[60].mxu1 }
 0x170   :  { %v2038_v57 = vadd.f32 %v2037_v14, %v2036_v37  ;;  %v2039_v17 = vpop.f32.mrb[62].mxu0  ;;  %v2101_v20 = vpop.f32.mrb[61].mxu1 }
 0x171   :  { %v2040_v22 = vpop.f32.mrb[63].mxu0  ;;  %v2102_v23 = vadd.f32 %v2101_v20, %v2100_v15  ;;  %v2103_v25 = vpop.f32.mrb[62].mxu1 }
 0x172   :  { %v1327_v28 = vadd.f32 %v2038_v57, %v2833_v3  ;;  %v2041_v30 = vadd.f32 %v2040_v22, %v2039_v17  ;;  %v2104_v51 = vpop.f32.mrb[63].mxu1 }
 0x173   :  { %v2105_v31 = vadd.f32 %v2104_v51, %v2103_v25 }
 0x174   :  { %v1330_v32 = vadd.f32 %v2041_v30, %v2835_v6  ;;  %v1424_v5 = vadd.f32 %v2102_v23, %v1327_v28 }
 0x176   :  { %v2140_v53 = vpop.f32.mrb[64].mxu0  ;;  %v1427_v33 = vadd.f32 %v2105_v31, %v1330_v32 }
 0x177   :  { %v1473_v34 = vadd.f32 %v2140_v53, %v2845_v44  ;;  %v2148_v36 = vpop.f32.mrb[64].mxu1  ;;  %v1464_v7 = vpop.f32.mrb[65].mxu0 }
 0x178   :  { %v1505_v27 = vadd.f32 %v2148_v36, %v1408_v21  ;;  %v1465_v40 = vadd.f32 %v1464_v7, %v2839_v24  ;;  %v1496_v42 = vpop.f32.mrb[65].mxu1  ;;  %v2141_v29 = vpop.f32.mrb[66].mxu0 }
 0x179   :  { %v1497_v45 = vadd.f32 %v1496_v42, %v1400_v38  ;;  %v1476_v3 = vadd.f32 %v2141_v29, %v2847_v46  ;;  %v2149_v47 = vpop.f32.mrb[66].mxu1  ;;  %v1467_v48 = vpop.f32.mrb[67].mxu0 }
 0x17a   :  { %v1508_v49 = vadd.f32 %v2149_v47, %v1411_v59  ;;  %v1468_v6 = vadd.f32 %v1467_v48, %v2841_v26  ;;  %v1499_v50 = vpop.f32.mrb[67].mxu1 }
 0x17b   :  { %v1500_v52 = vadd.f32 %v1499_v50, %v2863_v39 }
 0x17c   :  { %v1527_v19 = vadd.f32 %v1468_v6, %v1465_v40 }
 0x17e   :  { %v1528_v44 = vadd.f32 %v1527_v19, %v1473_v34  ;;  %v2144_v54 = vpop.f32.mrb[68].mxu0 }
 0x17f   :  { %v1489_v56 = vadd.f32 %v2144_v54, %v2857_v16  ;;  %v2152_v58 = vpop.f32.mrb[68].mxu1  ;;  %v1480_v24 = vpop.f32.mrb[69].mxu0 }
 0x180   :  { %v1521_v21 = vadd.f32 %v2152_v58, %v1424_v5  ;;  %v1481_v38 = vadd.f32 %v1480_v24, %v2851_v62  ;;  %v1529_v41 = vadd.f32 %v1528_v44, %v1476_v3  ;;  %v1512_v46 = vpop.f32.mrb[69].mxu1  ;;  %v2145_v60 = vpop.f32.mrb[70].mxu0 }
 0x181   :  { %v1513_v61 = vadd.f32 %v1512_v46, %v1416_v55  ;;  %v1492_v59 = vadd.f32 %v2145_v60, %v2859_v18  ;;  %v2153_v26 = vpop.f32.mrb[70].mxu1  ;;  %v1483_v43 = vpop.f32.mrb[71].mxu0 }
 0x182   :  { %v1530_v63 = vadd.f32 %v1529_v41, %v1481_v38  ;;  %v1524_v39 = vadd.f32 %v2153_v26, %v1427_v33  ;;  %v1484_v1 = vadd.f32 %v1483_v43, %v2853_v0  ;;  %v1515_v2 = vpop.f32.mrb[71].mxu1 }
 0x183   :  { %v1516_v4 = vadd.f32 %v1515_v2, %v1419_v13 }
 0x184   :  { %v1531_v16 = vadd.f32 %v1530_v63, %v1484_v1 }
 0x186   :  { %v1532_v8 = vadd.f32 %v1531_v16, %v1489_v56 }
 0x188   :  { %v1533_v9 = vadd.f32 %v1532_v8, %v1492_v59 }
 0x18a   :  { %v1534_v10 = vadd.f32 %v1533_v9, %v1497_v45 }
 0x18c   :  { %v1535_v35 = vadd.f32 %v1534_v10, %v1500_v52 }
 0x18e   :  { %v1536_v62 = vadd.f32 %v1535_v35, %v1505_v27 }
 0x190   :  { %v1537_v11 = vadd.f32 %v1536_v62, %v1508_v49 }
 0x192   :  { %v1538_v12 = vadd.f32 %v1537_v11, %v1513_v61 }
 0x194   :  { %v1539_v37 = vadd.f32 %v1538_v12, %v1516_v4 }
 0x196   :  { %v1540_v55 = vadd.f32 %v1539_v37, %v1521_v21 }
 0x198   :  { %v1541_v14 = vadd.f32 %v1540_v55, %v1524_v39 }
 0x19a   :  { %v1542_v18 = vrot.slane %v1541_v14, 4 }
 0x19c   :  { %v1543_v15 = vadd.f32 %v1542_v18, %v1541_v14 }
 0x19e   :  { %v1544_v57 = vrot.slane %v1543_v15, 2 }
 0x1a0   :  { %v1545_v17 = vadd.f32 %v1544_v57, %v1543_v15 }
 0x1a2   :  { %v1546_v20 = vrot.slane %v1545_v17, 1 }
 0x1a4   :  { %v1547_v22 = vadd.f32 %v1546_v20, %v1545_v17 }
 0x1a6   :  { %v1549_v0 = vmul.f32 0.0078125, %v1547_v22 }
 0x1a8   :  { %v1550_v23 = vsub.f32 %v1465_v40, %v1549_v0  ;;  %v1551_v13 = vsub.f32 %v1468_v6, %v1549_v0  ;;  %v1552_v25 = vsub.f32 %v1473_v34, %v1549_v0  ;;  %v1553_v28 = vsub.f32 %v1476_v3, %v1549_v0 }
 0x1a9   :  { %v1554_v30 = vsub.f32 %v1481_v38, %v1549_v0  ;;  %v1555_v51 = vsub.f32 %v1484_v1, %v1549_v0  ;;  %v1556_v31 = vsub.f32 %v1489_v56, %v1549_v0  ;;  %v1557_v32 = vsub.f32 %v1492_v59, %v1549_v0 }
 0x1aa   :  { %v1558_v5 = vsub.f32 %v1497_v45, %v1549_v0  ;;  %v1559_v53 = vsub.f32 %v1500_v52, %v1549_v0  ;;  %v1560_v33 = vsub.f32 %v1505_v27, %v1549_v0  ;;  %v1561_v36 = vsub.f32 %v1508_v49, %v1549_v0 }
 0x1ab   :  { %v1562_v7 = vsub.f32 %v1513_v61, %v1549_v0  ;;  %v1563_v42 = vsub.f32 %v1516_v4, %v1549_v0  ;;  %v1564_v29 = vsub.f32 %v1521_v21, %v1549_v0  ;;  %v1565_v47 = vsub.f32 %v1524_v39, %v1549_v0 }
 0x1ac   :  { %v1566_v48 = vmul.f32 %v1550_v23, %v1550_v23  ;;  %v1567_v50 = vmul.f32 %v1551_v13, %v1551_v13  ;;  %v1568_v19 = vmul.f32 %v1552_v25, %v1552_v25  ;;  %v1569_v40 = vmul.f32 %v1553_v28, %v1553_v28 }
 0x1ad   :  { %v1570_v34 = vmul.f32 %v1554_v30, %v1554_v30  ;;  %v1571_v54 = vmul.f32 %v1555_v51, %v1555_v51  ;;  %v1572_v56 = vmul.f32 %v1556_v31, %v1556_v31  ;;  %v1573_v45 = vmul.f32 %v1557_v32, %v1557_v32 }
 0x1ae   :  { %v1582_v44 = vadd.f32 %v1567_v50, %v1566_v48  ;;  %v1574_v27 = vmul.f32 %v1558_v5, %v1558_v5  ;;  %v1575_v38 = vmul.f32 %v1559_v53, %v1559_v53  ;;  %v1576_v21 = vmul.f32 %v1560_v33, %v1560_v33  ;;  %v1848_v48 = vld [vmem:[%s2900_s2] ss:$0 sm:$0xff] }
 0x1af   :  { %v1577_v60 = vmul.f32 %v1561_v36, %v1561_v36  ;;  %v1578_v59 = vmul.f32 %v1562_v7, %v1562_v7  ;;  %v1579_v43 = vmul.f32 %v1563_v42, %v1563_v42  ;;  %v1580_v39 = vmul.f32 %v1564_v29, %v1564_v29 }
 0x1b0   :  { %v1583_v6 = vadd.f32 %v1582_v44, %v1568_v19  ;;  %v1581_v2 = vmul.f32 %v1565_v47, %v1565_v47 }
 0x1b2   :  { %v1584_v3 = vadd.f32 %v1583_v6, %v1569_v40 }
 0x1b4   :  { %v1585_v58 = vadd.f32 %v1584_v3, %v1570_v34 }
 0x1b6   :  { %v1586_v24 = vadd.f32 %v1585_v58, %v1571_v54  ;;  %v1849_v58 = vld [vmem:[%s2901_s3] ss:$0 sm:$0xff] }
 0x1b8   :  { %v1587_v52 = vadd.f32 %v1586_v24, %v1572_v56 }
 0x1ba   :  { %v1588_v49 = vadd.f32 %v1587_v52, %v1573_v45 }
 0x1bc   :  { %v1589_v41 = vadd.f32 %v1588_v49, %v1574_v27 }
 0x1be   :  { %v1590_v46 = vadd.f32 %v1589_v41, %v1575_v38 }
 0x1c0   :  { %v1591_v61 = vadd.f32 %v1590_v46, %v1576_v21 }
 0x1c2   :  { %v1592_v26 = vadd.f32 %v1591_v61, %v1577_v60 }
 0x1c4   :  { %v1593_v63 = vadd.f32 %v1592_v26, %v1578_v59 }
 0x1c6   :  { %v1594_v1 = vadd.f32 %v1593_v63, %v1579_v43 }
 0x1c8   :  { %v1595_v4 = vadd.f32 %v1594_v1, %v1580_v39 }
 0x1ca   :  { %v1596_v16 = vadd.f32 %v1595_v4, %v1581_v2 }
 0x1cc   :  { %v1597_v8 = vrot.slane %v1596_v16, 4 }
 0x1ce   :  { %v1598_v9 = vadd.f32 %v1597_v8, %v1596_v16 }
 0x1d0   :  { %v1599_v10 = vrot.slane %v1598_v9, 2 }
 0x1d2   :  { %v1600_v35 = vadd.f32 %v1599_v10, %v1598_v9 }
 0x1d4   :  { %v1601_v62 = vrot.slane %v1600_v35, 1 }
 0x1d6   :  { %v1602_v11 = vadd.f32 %v1601_v62, %v1600_v35 }
 0x1d8   :  { %v1603_v12 = vmul.f32 0.0078125, %v1602_v11 }
 0x1da   :  { %v1604_v37 = vadd.f32 1e-05, %v1603_v12 }
 0x1dc   :  { %2346 = vrsqrt.f32 %v1604_v37 }
 0x1e6   :  { %v2347_v55 = vpop.eup %2346 }
 0x1e7   :  { %v1606_v14 = vmul.f32 %v2347_v55, %v1550_v23  ;;  %v1607_v18 = vmul.f32 %v2347_v55, %v1551_v13  ;;  %v1608_v15 = vmul.f32 %v2347_v55, %v1552_v25  ;;  %v1609_v57 = vmul.f32 %v2347_v55, %v1553_v28 }
 0x1e8   :  { %v1610_v17 = vmul.f32 %v2347_v55, %v1554_v30  ;;  %v1611_v20 = vmul.f32 %v2347_v55, %v1555_v51  ;;  %v1612_v22 = vmul.f32 %v2347_v55, %v1556_v31  ;;  %v1613_v0 = vmul.f32 %v2347_v55, %v1557_v32 }
 0x1e9   :  { %v1614_v50 = vmul.f32 %v2347_v55, %v1558_v5  ;;  %v1615_v19 = vmul.f32 %v2347_v55, %v1559_v53  ;;  %v1616_v44 = vmul.f32 %v2347_v55, %v1560_v33  ;;  %v1617_v40 = vmul.f32 %v2347_v55, %v1561_v36 }
 0x1ea   :  { %v1618_v6 = vmul.f32 %v2347_v55, %v1562_v7  ;;  %v1619_v34 = vmul.f32 %v2347_v55, %v1563_v42  ;;  %v1620_v3 = vmul.f32 %v2347_v55, %v1564_v29  ;;  %v1621_v54 = vmul.f32 %v2347_v55, %v1565_v47 }
 0x1eb   :  { %v1629_v23 = vmul.f32 %v1848_v48, %v1606_v14  ;;  %v1630_v13 = vmul.f32 %v1848_v48, %v1607_v18  ;;  %v1631_v25 = vmul.f32 %v1848_v48, %v1608_v15  ;;  %v1632_v28 = vmul.f32 %v1848_v48, %v1609_v57 }
 0x1ec   :  { %v1633_v30 = vmul.f32 %v1848_v48, %v1610_v17  ;;  %v1634_v51 = vmul.f32 %v1848_v48, %v1611_v20  ;;  %v1635_v31 = vmul.f32 %v1848_v48, %v1612_v22  ;;  %v1636_v32 = vmul.f32 %v1848_v48, %v1613_v0 }
 0x1ed   :  { %v1637_v5 = vmul.f32 %v1848_v48, %v1614_v50  ;;  %v1638_v53 = vmul.f32 %v1848_v48, %v1615_v19  ;;  %v1639_v33 = vmul.f32 %v1848_v48, %v1616_v44  ;;  %v1640_v36 = vmul.f32 %v1848_v48, %v1617_v40 }
 0x1ee   :  { %v1641_v7 = vmul.f32 %v1848_v48, %v1618_v6  ;;  %v1642_v42 = vmul.f32 %v1848_v48, %v1619_v34  ;;  %v1643_v29 = vmul.f32 %v1848_v48, %v1620_v3  ;;  %v1644_v47 = vmul.f32 %v1848_v48, %v1621_v54 }
 0x1ef   :  { %v1652_v56 = vadd.f32 %v1849_v58, %v1629_v23  ;;  %v1653_v24 = vadd.f32 %v1849_v58, %v1630_v13  ;;  %v1654_v45 = vadd.f32 %v1849_v58, %v1631_v25  ;;  %v1655_v52 = vadd.f32 %v1849_v58, %v1632_v28 }
 0x1f0   :  { %v1656_v27 = vadd.f32 %v1849_v58, %v1633_v30  ;;  %v1657_v49 = vadd.f32 %v1849_v58, %v1634_v51  ;;  %v1658_v38 = vadd.f32 %v1849_v58, %v1635_v31  ;;  %v1659_v41 = vadd.f32 %v1849_v58, %v1636_v32 }
 0x1f1   :  { %v1660_v21 = vadd.f32 %v1849_v58, %v1637_v5  ;;  %v1661_v46 = vadd.f32 %v1849_v58, %v1638_v53  ;;  %v1662_v60 = vadd.f32 %v1849_v58, %v1639_v33  ;;  %v1663_v61 = vadd.f32 %v1849_v58, %v1640_v36 }
 0x1f2   :  { %v1664_v59 = vadd.f32 %v1849_v58, %v1641_v7  ;;  %v1665_v26 = vadd.f32 %v1849_v58, %v1642_v42  ;;  %v1666_v43 = vadd.f32 %v1849_v58, %v1643_v29  ;;  %v1667_v63 = vadd.f32 %v1849_v58, %v1644_v47 }
 0x1f3   :  { %v1668_v39 = vmax.f32 %v1652_v56, 0.0  ;;  %v1669_v1 = vmax.f32 %v1653_v24, 0.0  ;;  %v1670_v2 = vmax.f32 %v1654_v45, 0.0  ;;  %v1671_v4 = vmax.f32 %v1655_v52, 0.0 }
 0x1f4   :  { %v1672_v16 = vmax.f32 %v1656_v27, 0.0  ;;  %v1673_v8 = vmax.f32 %v1657_v49, 0.0  ;;  %v1674_v9 = vmax.f32 %v1658_v38, 0.0  ;;  %v1675_v10 = vmax.f32 %v1659_v41, 0.0 }
 0x1f5   :  { %v1676_v35 = vmax.f32 %v1660_v21, 0.0  ;;  %v1677_v62 = vmax.f32 %v1661_v46, 0.0  ;;  %v1678_v11 = vmax.f32 %v1662_v60, 0.0  ;;  %v1679_v12 = vmax.f32 %v1663_v61, 0.0 }
 0x1f6   :  { %v1680_v37 = vmax.f32 %v1664_v59, 0.0  ;;  %v1681_v55 = vmax.f32 %v1665_v26, 0.0  ;;  %v1682_v14 = vmax.f32 %v1666_v43, 0.0  ;;  %v1683_v18 = vmax.f32 %v1667_v63, 0.0 }
 0x1f7   :  { %v1684_v15 = vmax.f32 %v1668_v39, %v1672_v16  ;;  %v1685_v57 = vmax.f32 %v1669_v1, %v1673_v8  ;;  %v1686_v17 = vmax.f32 %v1670_v2, %v1674_v9  ;;  %v1687_v20 = vmax.f32 %v1671_v4, %v1675_v10 }
 0x1f8   :  { %v1688_v22 = vmax.f32 %v1676_v35, %v1680_v37  ;;  %v1689_v0 = vmax.f32 %v1677_v62, %v1681_v55  ;;  %v1690_v48 = vmax.f32 %v1678_v11, %v1682_v14  ;;  %v1691_v50 = vmax.f32 %v1679_v12, %v1683_v18 }
 0x1fa   :  { %v1692_v19 = vmax.f32 %v1684_v15, %v1688_v22  ;;  %v1693_v44 = vmax.f32 %v1685_v57, %v1689_v0  ;;  %v1694_v40 = vmax.f32 %v1686_v17, %v1690_v48  ;;  %v1695_v6 = vmax.f32 %v1687_v20, %v1691_v50 }
 0x1fc   :  { %1696 = vst [vmem:[%s2902_s4] sm:$0xff] %v1692_v19  ;;  %1697 = vst [vmem:[%s2902_s4 + $0x8] sm:$0xff] %v1693_v44 }
 0x1fd   :  { %1698 = vst [vmem:[%s2902_s4 + $0x10] sm:$0xff] %v1694_v40  ;;  %1699 = vst [vmem:[%s2902_s4 + $0x18] sm:$0xff] %v1695_v6 }

// kernel: vgg_forward.13
= control target key start
LH: loop header
LB: loop body
LE: loop exit
PB: predicated region body
PF: predicated region fallthrough
CT: control target
= control target key end

     0   :  { %s1667_s1 = inlined_call_operand.vmem [shape: bf16[1152,128], index: 1, kind: input, shape index: {}]   ;;  %s1668_s0 = inlined_call_operand.vmem [shape: bf16[32,1152], index: 0, kind: input, shape index: {}]   ;;  %s1669_s2 = inlined_call_operand.vmem [shape: f32[1,128], index: 2, kind: input, shape index: {}]   ;;  %s1670_s3 = inlined_call_operand.vmem [shape: f32[1,128], index: 3, kind: input, shape index: {}]   ;;  %s1671_s4 = inlined_call_operand.vmem [shape: f32[32,128], index: 4, kind: output, shape index: {}]  }
   0x1   :  { %v1254_v0 = vld [vmem:[%s1667_s1 + $0x40] sm:$0xff]   ;;  %v1258_v4 = vld [vmem:[%s1667_s1 + $0x48] sm:$0xff]   ;;  %v1262_v8 = vld [vmem:[%s1667_s1 + $0x50] sm:$0xff]  }
   0x2   :  { %v1255_v1 = vld [vmem:[%s1667_s1 + $0xc0] sm:$0xff]   ;;  %1112 = vmatprep.subr.bf16.mxu0 %v1254_v0  ;;  %v1259_v5 = vld [vmem:[%s1667_s1 + $0xc8] sm:$0xff]   ;;  %v1263_v9 = vld [vmem:[%s1667_s1 + $0xd0] sm:$0xff]  }
   0x3   :  { %v1256_v2 = vld [vmem:[%s1667_s1] sm:$0xff]   ;;  %1140 = vmatprep.subr.bf16.mxu1 %v1255_v1  ;;  %v1260_v6 = vld [vmem:[%s1667_s1 + $0x8] sm:$0xff]   ;;  %v1264_v10 = vld [vmem:[%s1667_s1 + $0x10] sm:$0xff]  }
   0x4   :  { %v1257_v3 = vld [vmem:[%s1667_s1 + $0x80] sm:$0xff]   ;;  %1113 = vmatpush3.bf16.msra.mxu0 %v1256_v2  ;;  %v1261_v7 = vld [vmem:[%s1667_s1 + $0x88] sm:$0xff]   ;;  %v1265_v11 = vld [vmem:[%s1667_s1 + $0x90] sm:$0xff]  }
   0x5   :  { %1141 = vmatpush3.bf16.msra.mxu1 %v1257_v3  ;;  %1114 = vmatprep.subr.bf16.mxu0 %v1258_v4  ;;  %v1266_v12 = vld [vmem:[%s1667_s1 + $0x58] sm:$0xff]   ;;  %v1270_v16 = vld [vmem:[%s1667_s1 + $0x60] sm:$0xff]   ;;  %v1274_v20 = vld [vmem:[%s1667_s1 + $0x68] sm:$0xff]  }
   0x6   :  { %1142 = vmatprep.subr.bf16.mxu1 %v1259_v5  ;;  %v1267_v13 = vld [vmem:[%s1667_s1 + $0xd8] sm:$0xff]   ;;  %v1271_v17 = vld [vmem:[%s1667_s1 + $0xe0] sm:$0xff]   ;;  %v1275_v21 = vld [vmem:[%s1667_s1 + $0xe8] sm:$0xff]  }
   0x7   :  { %v1268_v14 = vld [vmem:[%s1667_s1 + $0x18] sm:$0xff]   ;;  %v1272_v18 = vld [vmem:[%s1667_s1 + $0x20] sm:$0xff]   ;;  %v1276_v22 = vld [vmem:[%s1667_s1 + $0x28] sm:$0xff]  }
   0x8   :  { %1115 = vmatpush3.bf16.msra.mxu0 %v1260_v6  ;;  %v1269_v15 = vld [vmem:[%s1667_s1 + $0x98] sm:$0xff]   ;;  %v1273_v19 = vld [vmem:[%s1667_s1 + $0xa0] sm:$0xff]   ;;  %v1277_v23 = vld [vmem:[%s1667_s1 + $0xa8] sm:$0xff]  }
   0x9   :  { %1143 = vmatpush3.bf16.msra.mxu1 %v1261_v7  ;;  %1116 = vmatprep.subr.bf16.mxu0 %v1262_v8  ;;  %v1278_v24 = vld [vmem:[%s1667_s1 + $0x70] sm:$0xff]   ;;  %v1282_v28 = vld [vmem:[%s1667_s1 + $0x78] sm:$0xff]   ;;  %v1286_v32 = vld [vmem:[%s1668_s0] ss:$36 sps:$4 sm:$0xff]  }
   0xa   :  { %1144 = vmatprep.subr.bf16.mxu1 %v1263_v9  ;;  %v1279_v25 = vld [vmem:[%s1667_s1 + $0xf0] sm:$0xff]   ;;  %v1283_v29 = vld [vmem:[%s1667_s1 + $0xf8] sm:$0xff]   ;;  %v1288_v33 = vld [vmem:[%s1668_s0 + $0x4] ss:$36 sps:$4 sm:$0xff]  }
   0xb   :  { %v1280_v26 = vld [vmem:[%s1667_s1 + $0x30] sm:$0xff]   ;;  %v1284_v30 = vld [vmem:[%s1667_s1 + $0x38] sm:$0xff]   ;;  %v1289_v34 = vld [vmem:[%s1668_s0 + $0x8] ss:$36 sps:$4 sm:$0xff]   ;;  %738 = vmatprep.mubr.bf16.mxu0 %v1288_v33 }
   0xc   :  { %1117 = vmatpush3.bf16.msra.mxu0 %v1264_v10  ;;  %v1281_v27 = vld [vmem:[%s1667_s1 + $0xb0] sm:$0xff]   ;;  %v1285_v31 = vld [vmem:[%s1667_s1 + $0xb8] sm:$0xff]   ;;  %v1292_v36 = vld [vmem:[%s1667_s1 + $0x140] sm:$0xff]  }
   0xd   :  { %1145 = vmatpush3.bf16.msra.mxu1 %v1265_v11  ;;  %1118 = vmatprep.subr.bf16.mxu0 %v1266_v12  ;;  %v1291_v35 = vld [vmem:[%s1668_s0 + $0xc] ss:$36 sps:$4 sm:$0xff]   ;;  %v1293_v37 = vld [vmem:[%s1667_s1 + $0x100] sm:$0xff]   ;;  %v1304_v48 = vld [vmem:[%s1667_s1 + $0x158] sm:$0xff]  }
   0xe   :  { %1146 = vmatprep.subr.bf16.mxu1 %v1267_v13  ;;  %787 = vmatprep.mubr.bf16.mxu1 %v1291_v35  ;;  %v1294_v38 = vld [vmem:[%s1667_s1 + $0x1c0] sm:$0xff]   ;;  %v1296_v40 = vld [vmem:[%s1667_s1 + $0x148] sm:$0xff]   ;;  %v1300_v44 = vld [vmem:[%s1667_s1 + $0x150] sm:$0xff]  }
   0xf   :  { %v1295_v39 = vld [vmem:[%s1667_s1 + $0x180] sm:$0xff]   ;;  %v1297_v41 = vld [vmem:[%s1667_s1 + $0x108] sm:$0xff]   ;;  %v1301_v45 = vld [vmem:[%s1667_s1 + $0x110] sm:$0xff]  }
  0x10   :  { %1119 = vmatpush3.bf16.msra.mxu0 %v1268_v14  ;;  %v1298_v42 = vld [vmem:[%s1667_s1 + $0x1c8] sm:$0xff]   ;;  %v1302_v46 = vld [vmem:[%s1667_s1 + $0x1d0] sm:$0xff]   ;;  %v1305_v49 = vld [vmem:[%s1667_s1 + $0x118] sm:$0xff]  }
  0x11   :  { %1147 = vmatpush3.bf16.msra.mxu1 %v1269_v15  ;;  %1120 = vmatprep.subr.bf16.mxu0 %v1270_v16  ;;  %v1299_v43 = vld [vmem:[%s1667_s1 + $0x188] sm:$0xff]   ;;  %v1303_v47 = vld [vmem:[%s1667_s1 + $0x190] sm:$0xff]   ;;  %v1306_v50 = vld [vmem:[%s1667_s1 + $0x1d8] sm:$0xff]  }
  0x12   :  { %1148 = vmatprep.subr.bf16.mxu1 %v1271_v17  ;;  %v1307_v51 = vld [vmem:[%s1667_s1 + $0x198] sm:$0xff]   ;;  %v1308_v52 = vld [vmem:[%s1667_s1 + $0x160] sm:$0xff]   ;;  %v1312_v56 = vld [vmem:[%s1667_s1 + $0x168] sm:$0xff]  }
  0x13   :  { %v1309_v53 = vld [vmem:[%s1667_s1 + $0x120] sm:$0xff]   ;;  %v1313_v57 = vld [vmem:[%s1668_s0 + $0x4c] ss:$36 sps:$4 sm:$0xff]   ;;  %v1315_v58 = vld [vmem:[%s1668_s0 + $0x54] ss:$36 sps:$4 sm:$0xff]  }
  0x14   :  { %1121 = vmatpush3.bf16.msra.mxu0 %v1272_v18  ;;  %v1310_v54 = vld [vmem:[%s1667_s1 + $0x1e0] sm:$0xff]   ;;  %v1317_v59 = vld [vmem:[%s1667_s1 + $0x128] sm:$0xff]   ;;  %v1319_v61 = vld [vmem:[%s1668_s0 + $0x50] ss:$36 sps:$4 sm:$0xff]  }
  0x15   :  { %1149 = vmatpush3.bf16.msra.mxu1 %v1273_v19  ;;  %1122 = vmatprep.subr.bf16.mxu0 %v1274_v20  ;;  %v1311_v55 = vld [vmem:[%s1667_s1 + $0x1a0] sm:$0xff]   ;;  %v1318_v60 = vld [vmem:[%s1668_s0 + $0x48] ss:$36 sps:$4 sm:$0xff]   ;;  %v1322_v0 = vld [vmem:[%s1667_s1 + $0x170] sm:$0xff]  }
  0x16   :  { %1150 = vmatprep.subr.bf16.mxu1 %v1275_v21  ;;  %v1320_v62 = vld [vmem:[%s1667_s1 + $0x1e8] sm:$0xff]   ;;  %v1323_v1 = vld [vmem:[%s1667_s1 + $0x130] sm:$0xff]   ;;  %v1326_v4 = vld [vmem:[%s1667_s1 + $0x178] sm:$0xff]  }
  0x17   :  { %v1321_v63 = vld [vmem:[%s1667_s1 + $0x1a8] sm:$0xff]   ;;  %v1324_v2 = vld [vmem:[%s1667_s1 + $0x1f0] sm:$0xff]   ;;  %v1327_v5 = vld [vmem:[%s1667_s1 + $0x138] sm:$0xff]  }
  0x18   :  { %1123 = vmatpush3.bf16.msra.mxu0 %v1276_v22  ;;  %v1325_v3 = vld [vmem:[%s1667_s1 + $0x1b0] sm:$0xff]   ;;  %v1328_v6 = vld [vmem:[%s1667_s1 + $0x1f8] sm:$0xff]   ;;  %v1333_v10 = vld [vmem:[%s1667_s1 + $0x200] sm:$0xff]  }
  0x19   :  { %1151 = vmatpush3.bf16.msra.mxu1 %v1277_v23  ;;  %1124 = vmatprep.subr.bf16.mxu0 %v1278_v24  ;;  %v1329_v7 = vld [vmem:[%s1668_s0 + $0x10] ss:$36 sps:$4 sm:$0xff]   ;;  %v1332_v9 = vld [vmem:[%s1667_s1 + $0x1b8] sm:$0xff]   ;;  %v1337_v13 = vld [vmem:[%s1667_s1 + $0x208] sm:$0xff]  }
  0x1a   :  { %1152 = vmatprep.subr.bf16.mxu1 %v1279_v25  ;;  %v1331_v8 = vld [vmem:[%s1668_s0 + $0x14] ss:$36 sps:$4 sm:$0xff]   ;;  %v1336_v12 = vld [vmem:[%s1668_s0 + $0x1c] ss:$36 sps:$4 sm:$0xff]   ;;  %v1342_v17 = vld [vmem:[%s1668_s0 + $0x64] ss:$36 sps:$4 sm:$0xff]  }
  0x1b   :  { %v1334_v11 = vld [vmem:[%s1668_s0 + $0x18] ss:$36 sps:$4 sm:$0xff]   ;;  %v1341_v16 = vld [vmem:[%s1667_s1 + $0x210] sm:$0xff]   ;;  %v1344_v18 = vld [vmem:[%s1668_s0 + $0x60] ss:$36 sps:$4 sm:$0xff]  }
  0x1c   :  { %1125 = vmatpush3.bf16.msra.mxu0 %v1280_v26  ;;  %v1338_v14 = vld [vmem:[%s1668_s0 + $0x5c] ss:$36 sps:$4 sm:$0xff]   ;;  %v1347_v22 = vld [vmem:[%s1667_s1 + $0x228] sm:$0xff]   ;;  %v1348_v23 = vld [vmem:[%s1667_s1 + $0x230] sm:$0xff]  }
  0x1d   :  { %1153 = vmatpush3.bf16.msra.mxu1 %v1281_v27  ;;  %1126 = vmatprep.subr.bf16.mxu0 %v1282_v28  ;;  %v1340_v15 = vld [vmem:[%s1668_s0 + $0x58] ss:$36 sps:$4 sm:$0xff]   ;;  %v1346_v20 = vld [vmem:[%s1667_s1 + $0x220] sm:$0xff]   ;;  %v1351_v25 = vld [vmem:[%s1668_s0 + $0x68] ss:$36 sps:$4 sm:$0xff]  }
  0x1e   :  { %1154 = vmatprep.subr.bf16.mxu1 %v1283_v29  ;;  %v1345_v19 = vld [vmem:[%s1667_s1 + $0x218] sm:$0xff]   ;;  %v1350_v21 = vld [vmem:[%s1668_s0 + $0x20] ss:$36 sps:$4 sm:$0xff]  }
  0x1f   :  { %v1349_v24 = vld [vmem:[%s1667_s1 + $0x238] sm:$0xff]  }
  0x20   :  { %1127 = vmatpush3.bf16.msra.mxu0 %v1284_v30 }
  0x21   :  { %1155 = vmatpush3.bf16.msra.mxu1 %v1285_v31  ;;  %1168 = vmatprep.subr.bf16.mxu0 %v1292_v36 }
  0x22   :  { %1196 = vmatprep.subr.bf16.mxu1 %v1294_v38 }
  0x23   :  { %739 = vmatmul.mubr.bf16.vlgmr.msra.gmra.mrb[0].mxu0 %v1286_v32 }
  0x24   :  { %788 = vmatmul.mubr.bf16.vlgmr.msra.gmra.mrb[0].mxu1 %v1289_v34  ;;  %1169 = vmatpush3.bf16.msra.mxu0 %v1293_v37 }
  0x25   :  { %1197 = vmatpush3.bf16.msra.mxu1 %v1295_v39  ;;  %1170 = vmatprep.subr.bf16.mxu0 %v1296_v40 }
  0x26   :  { %1198 = vmatprep.subr.bf16.mxu1 %v1298_v42  ;;  %746 = vmatprep.mubr.bf16.mxu0 %v1313_v57 }
  0x27   :  { %795 = vmatprep.mubr.bf16.mxu1 %v1315_v58 }
  0x28   :  { %1171 = vmatpush3.bf16.msra.mxu0 %v1297_v41 }
  0x29   :  { %1199 = vmatpush3.bf16.msra.mxu1 %v1299_v43  ;;  %1172 = vmatprep.subr.bf16.mxu0 %v1300_v44 }
  0x2a   :  { %1200 = vmatprep.subr.bf16.mxu1 %v1302_v46 }
  0x2b   :  { %747 = vmatmul.mubr.bf16.gmra.mrb[4].mxu0 %v1318_v60 }
  0x2c   :  { %1173 = vmatpush3.bf16.msra.mxu0 %v1301_v45  ;;  %796 = vmatmul.mubr.bf16.gmra.mrb[4].mxu1 %v1319_v61 }
  0x2d   :  { %1201 = vmatpush3.bf16.msra.mxu1 %v1303_v47  ;;  %1174 = vmatprep.subr.bf16.mxu0 %v1304_v48 }
  0x2e   :  { %1202 = vmatprep.subr.bf16.mxu1 %v1306_v50  ;;  %836 = vmatprep.mubr.bf16.mxu0 %v1331_v8 }
  0x2f   :  { %885 = vmatprep.mubr.bf16.mxu1 %v1336_v12 }
  0x30   :  { %1175 = vmatpush3.bf16.msra.mxu0 %v1305_v49 }
  0x31   :  { %1203 = vmatpush3.bf16.msra.mxu1 %v1307_v51  ;;  %1176 = vmatprep.subr.bf16.mxu0 %v1308_v52 }
  0x32   :  { %1204 = vmatprep.subr.bf16.mxu1 %v1310_v54 }
  0x34   :  { %1177 = vmatpush3.bf16.msra.mxu0 %v1309_v53 }
  0x35   :  { %1205 = vmatpush3.bf16.msra.mxu1 %v1311_v55  ;;  %1178 = vmatprep.subr.bf16.mxu0 %v1312_v56 }
  0x36   :  { %1206 = vmatprep.subr.bf16.mxu1 %v1320_v62 }
  0x38   :  { %1179 = vmatpush3.bf16.msra.mxu0 %v1317_v59 }
  0x39   :  { %1207 = vmatpush3.bf16.msra.mxu1 %v1321_v63  ;;  %1180 = vmatprep.subr.bf16.mxu0 %v1322_v0 }
  0x3a   :  { %1208 = vmatprep.subr.bf16.mxu1 %v1324_v2 }
  0x3c   :  { %1181 = vmatpush3.bf16.msra.mxu0 %v1323_v1 }
  0x3d   :  { %1209 = vmatpush3.bf16.msra.mxu1 %v1325_v3  ;;  %1182 = vmatprep.subr.bf16.mxu0 %v1326_v4 }
  0x3e   :  { %1210 = vmatprep.subr.bf16.mxu1 %v1328_v6 }
  0x40   :  { %1183 = vmatpush3.bf16.msra.mxu0 %v1327_v5 }
  0x41   :  { %1211 = vmatpush3.bf16.msra.mxu1 %v1332_v9  ;;  %1234 = vmatprep.subr.bf16.mxu0 %v1333_v10 }
  0x43   :  { %837 = vmatmul.mubr.bf16.vlgmr.msra.gmra.mrb[8].mxu0 %v1329_v7 }
  0x44   :  { %1235 = vmatpush3.bf16.msra.mxu0 %v1333_v10  ;;  %886 = vmatmul.mubr.bf16.vlgmr.msra.gmra.mrb[8].mxu1 %v1334_v11 }
  0x45   :  { %1236 = vmatprep.subr.bf16.mxu0 %v1337_v13  ;;  %844 = vmatprep.mubr.bf16.mxu0 %v1338_v14 }
  0x46   :  { %893 = vmatprep.mubr.bf16.mxu1 %v1342_v17 }
  0x48   :  { %1237 = vmatpush3.bf16.msra.mxu0 %v1337_v13 }
  0x49   :  { %1238 = vmatprep.subr.bf16.mxu0 %v1341_v16 }
  0x4b   :  { %845 = vmatmul.mubr.bf16.gmra.mrb[12].mxu0 %v1340_v15 }
  0x4c   :  { %1239 = vmatpush3.bf16.msra.mxu0 %v1341_v16  ;;  %894 = vmatmul.mubr.bf16.gmra.mrb[12].mxu1 %v1344_v18 }
  0x4d   :  { %1240 = vmatprep.subr.bf16.mxu0 %v1345_v19  ;;  %1250 = vmatprep.mubr.bf16.mxu0 %v1350_v21 }
  0x50   :  { %1241 = vmatpush3.bf16.msra.mxu0 %v1345_v19 }
  0x51   :  { %1242 = vmatprep.subr.bf16.mxu0 %v1346_v20 }
  0x54   :  { %1243 = vmatpush3.bf16.msra.mxu0 %v1346_v20 }
  0x55   :  { %1244 = vmatprep.subr.bf16.mxu0 %v1347_v22 }
  0x58   :  { %1245 = vmatpush3.bf16.msra.mxu0 %v1347_v22 }
  0x59   :  { %1246 = vmatprep.subr.bf16.mxu0 %v1348_v23 }
  0x5c   :  { %1247 = vmatpush3.bf16.msra.mxu0 %v1348_v23 }
  0x5d   :  { %1248 = vmatprep.subr.bf16.mxu0 %v1349_v24 }
  0x60   :  { %1249 = vmatpush3.bf16.msra.mxu0 %v1349_v24 }
  0x63   :  { %1251 = vmatmul.mubr.bf16.vlgmr.msra.gmra.mrb[16].mxu0 %v1351_v25 }
  0xf6   :  { %v1128_v26 = vpop.f32.mrb[0].mxu0 }
  0xf7   :  { %v1156_v27 = vpop.f32.mrb[0].mxu1  ;;  %v1129_v28 = vpop.f32.mrb[1].mxu0 }
  0xf8   :  { %v1130_v29 = vadd.f32 %v1129_v28, %v1128_v26  ;;  %v1157_v30 = vpop.f32.mrb[1].mxu1  ;;  %v1131_v31 = vpop.f32.mrb[2].mxu0 }
  0xf9   :  { %v1158_v32 = vadd.f32 %v1157_v30, %v1156_v27  ;;  %v1159_v33 = vpop.f32.mrb[2].mxu1  ;;  %v1132_v34 = vpop.f32.mrb[3].mxu0 }
  0xfa   :  { %v1133_v35 = vadd.f32 %v1132_v34, %v1131_v31  ;;  %v1160_v36 = vpop.f32.mrb[3].mxu1 }
  0xfb   :  { %v790_v37 = vadd.f32 %v1158_v32, %v1130_v29  ;;  %v1161_v38 = vadd.f32 %v1160_v36, %v1159_v33 }
  0xfd   :  { %v793_v39 = vadd.f32 %v1161_v38, %v1133_v35 }
  0xfe   :  { %v1134_v40 = vpop.f32.mrb[4].mxu0 }
  0xff   :  { %v1162_v41 = vpop.f32.mrb[4].mxu1  ;;  %v1135_v42 = vpop.f32.mrb[5].mxu0 }
 0x100   :  { %v1163_v43 = vpop.f32.mrb[5].mxu1  ;;  %v1136_v44 = vadd.f32 %v1135_v42, %v1134_v40  ;;  %v1137_v46 = vpop.f32.mrb[6].mxu0 }
 0x101   :  { %v1164_v45 = vadd.f32 %v1163_v43, %v1162_v41  ;;  %v1165_v47 = vpop.f32.mrb[6].mxu1  ;;  %v1138_v48 = vpop.f32.mrb[7].mxu0 }
 0x102   :  { %v1166_v49 = vpop.f32.mrb[7].mxu1  ;;  %v1139_v51 = vadd.f32 %v1138_v48, %v1137_v46 }
 0x103   :  { %v798_v50 = vadd.f32 %v1164_v45, %v1136_v44  ;;  %v1167_v52 = vadd.f32 %v1166_v49, %v1165_v47 }
 0x105   :  { %v801_v53 = vadd.f32 %v1167_v52, %v1139_v51 }
 0x116   :  { %v1184_v54 = vpop.f32.mrb[8].mxu0 }
 0x117   :  { %v1185_v55 = vpop.f32.mrb[9].mxu0  ;;  %v1212_v58 = vpop.f32.mrb[8].mxu1 }
 0x118   :  { %v1186_v56 = vadd.f32 %v1185_v55, %v1184_v54  ;;  %v1187_v57 = vpop.f32.mrb[10].mxu0  ;;  %v1213_v62 = vpop.f32.mrb[9].mxu1 }
 0x119   :  { %v1188_v59 = vpop.f32.mrb[11].mxu0  ;;  %v1214_v63 = vadd.f32 %v1213_v62, %v1212_v58  ;;  %v1215_v0 = vpop.f32.mrb[10].mxu1 }
 0x11a   :  { %v839_v60 = vadd.f32 %v1186_v56, %v790_v37  ;;  %v1189_v61 = vadd.f32 %v1188_v59, %v1187_v57  ;;  %v1216_v2 = vpop.f32.mrb[11].mxu1 }
 0x11b   :  { %v1217_v3 = vadd.f32 %v1216_v2, %v1215_v0 }
 0x11c   :  { %v842_v1 = vadd.f32 %v1189_v61, %v793_v39  ;;  %v888_v4 = vadd.f32 %v1214_v63, %v839_v60  ;;  %v1110_v60 = vld [vmem:[%s1669_s2] ss:$0 sm:$0xff] }
 0x11e   :  { %v1190_v5 = vpop.f32.mrb[12].mxu0  ;;  %v891_v7 = vadd.f32 %v1217_v3, %v842_v1  ;;  %v1111_v1 = vld [vmem:[%s1670_s3] ss:$0 sm:$0xff] }
 0x11f   :  { %v1191_v6 = vpop.f32.mrb[13].mxu0  ;;  %v1218_v10 = vpop.f32.mrb[12].mxu1 }
 0x120   :  { %v1192_v8 = vadd.f32 %v1191_v6, %v1190_v5  ;;  %v1193_v9 = vpop.f32.mrb[14].mxu0  ;;  %v1219_v14 = vpop.f32.mrb[13].mxu1 }
 0x121   :  { %v1194_v11 = vpop.f32.mrb[15].mxu0  ;;  %v1220_v15 = vadd.f32 %v1219_v14, %v1218_v10  ;;  %v1221_v16 = vpop.f32.mrb[14].mxu1 }
 0x122   :  { %v847_v12 = vadd.f32 %v1192_v8, %v798_v50  ;;  %v1195_v13 = vadd.f32 %v1194_v11, %v1193_v9  ;;  %v1222_v18 = vpop.f32.mrb[15].mxu1 }
 0x123   :  { %v1223_v19 = vadd.f32 %v1222_v18, %v1221_v16 }
 0x124   :  { %v850_v17 = vadd.f32 %v1195_v13, %v801_v53  ;;  %v896_v20 = vadd.f32 %v1220_v15, %v847_v12 }
 0x126   :  { %v899_v21 = vadd.f32 %v1223_v19, %v850_v17 }
 0x136   :  { %v1252_v22 = vpop.f32.mrb[16].mxu0 }
 0x137   :  { %v945_v23 = vadd.f32 %v1252_v22, %v896_v20  ;;  %v936_v24 = vpop.f32.mrb[17].mxu0 }
 0x138   :  { %v937_v25 = vadd.f32 %v936_v24, %v888_v4  ;;  %v1253_v26 = vpop.f32.mrb[18].mxu0 }
 0x139   :  { %v948_v27 = vadd.f32 %v1253_v26, %v899_v21  ;;  %v939_v28 = vpop.f32.mrb[19].mxu0 }
 0x13a   :  { %v940_v29 = vadd.f32 %v939_v28, %v891_v7 }
 0x13c   :  { %v951_v30 = vadd.f32 %v940_v29, %v937_v25 }
 0x13e   :  { %v952_v31 = vadd.f32 %v951_v30, %v945_v23 }
 0x140   :  { %v953_v32 = vadd.f32 %v952_v31, %v948_v27 }
 0x142   :  { %v954_v33 = vrot.slane %v953_v32, 4 }
 0x144   :  { %v955_v34 = vadd.f32 %v954_v33, %v953_v32 }
 0x146   :  { %v956_v35 = vrot.slane %v955_v34, 2 }
 0x148   :  { %v957_v36 = vadd.f32 %v956_v35, %v955_v34 }
 0x14a   :  { %v958_v37 = vrot.slane %v957_v36, 1 }
 0x14c   :  { %v959_v38 = vadd.f32 %v958_v37, %v957_v36 }
 0x14e   :  { %v961_v39 = vmul.f32 0.03125, %v959_v38 }
 0x150   :  { %v962_v40 = vsub.f32 %v937_v25, %v961_v39  ;;  %v963_v41 = vsub.f32 %v940_v29, %v961_v39  ;;  %v964_v42 = vsub.f32 %v945_v23, %v961_v39  ;;  %v965_v43 = vsub.f32 %v948_v27, %v961_v39 }
 0x152   :  { %v966_v44 = vmul.f32 %v962_v40, %v962_v40  ;;  %v967_v45 = vmul.f32 %v963_v41, %v963_v41  ;;  %v968_v46 = vmul.f32 %v964_v42, %v964_v42  ;;  %v969_v48 = vmul.f32 %v965_v43, %v965_v43 }
 0x154   :  { %v970_v47 = vadd.f32 %v967_v45, %v966_v44 }
 0x156   :  { %v971_v49 = vadd.f32 %v970_v47, %v968_v46 }
 0x158   :  { %v972_v50 = vadd.f32 %v971_v49, %v969_v48 }
 0x15a   :  { %v973_v51 = vrot.slane %v972_v50, 4 }
 0x15c   :  { %v974_v52 = vadd.f32 %v973_v51, %v972_v50 }
 0x15e   :  { %v975_v53 = vrot.slane %v974_v52, 2 }
 0x160   :  { %v976_v54 = vadd.f32 %v975_v53, %v974_v52 }
 0x162   :  { %v977_v55 = vrot.slane %v976_v54, 1 }
 0x164   :  { %v978_v56 = vadd.f32 %v977_v55, %v976_v54 }
 0x166   :  { %v979_v57 = vmul.f32 0.03125, %v978_v56 }
 0x168   :  { %v980_v58 = vadd.f32 1e-05, %v979_v57 }
 0x16a   :  { %1352 = vrsqrt.f32 %v980_v58 }
 0x174   :  { %v1353_v59 = vpop.eup %1352 }
 0x175   :  { %v982_v61 = vmul.f32 %v1353_v59, %v962_v40  ;;  %v983_v62 = vmul.f32 %v1353_v59, %v963_v41  ;;  %v984_v63 = vmul.f32 %v1353_v59, %v964_v42  ;;  %v985_v0 = vmul.f32 %v1353_v59, %v965_v43 }
 0x177   :  { %v993_v2 = vmul.f32 %v1110_v60, %v982_v61  ;;  %v994_v3 = vmul.f32 %v1110_v60, %v983_v62  ;;  %v995_v4 = vmul.f32 %v1110_v60, %v984_v63  ;;  %v996_v5 = vmul.f32 %v1110_v60, %v985_v0 }
 0x179   :  { %v1004_v6 = vadd.f32 %v1111_v1, %v993_v2  ;;  %v1005_v7 = vadd.f32 %v1111_v1, %v994_v3  ;;  %v1006_v8 = vadd.f32 %v1111_v1, %v995_v4  ;;  %v1007_v9 = vadd.f32 %v1111_v1, %v996_v5 }
 0x17b   :  { %v1008_v10 = vmax.f32 %v1004_v6, 0.0  ;;  %v1009_v11 = vmax.f32 %v1005_v7, 0.0  ;;  %v1010_v12 = vmax.f32 %v1006_v8, 0.0  ;;  %v1011_v13 = vmax.f32 %v1007_v9, 0.0 }
 0x17d   :  { %1012 = vst [vmem:[%s1671_s4] sm:$0xff] %v1008_v10  ;;  %1013 = vst [vmem:[%s1671_s4 + $0x8] sm:$0xff] %v1009_v11 }
 0x17e   :  { %1014 = vst [vmem:[%s1671_s4 + $0x10] sm:$0xff] %v1010_v12  ;;  %1015 = vst [vmem:[%s1671_s4 + $0x18] sm:$0xff] %v1011_v13 }

// kernel: vgg_forward.14
= control target key start
LH: loop header
LB: loop body
LE: loop exit
PB: predicated region body
PF: predicated region fallthrough
CT: control target
= control target key end

     0   :  { %s1658_s1 = inlined_call_operand.vmem [shape: bf16[1152,128], index: 1, kind: input, shape index: {}]   ;;  %s1659_s0 = inlined_call_operand.vmem [shape: bf16[32,1152], index: 0, kind: input, shape index: {}]   ;;  %s1660_s2 = inlined_call_operand.vmem [shape: f32[1,128], index: 2, kind: input, shape index: {}]   ;;  %s1661_s3 = inlined_call_operand.vmem [shape: f32[1,128], index: 3, kind: input, shape index: {}]   ;;  %s1662_s4 = inlined_call_operand.vmem [shape: f32[8,128], index: 4, kind: output, shape index: {}]  }
   0x1   :  { %v1254_v0 = vld [vmem:[%s1658_s1 + $0x40] sm:$0xff]   ;;  %v1258_v4 = vld [vmem:[%s1658_s1 + $0x48] sm:$0xff]   ;;  %v1262_v8 = vld [vmem:[%s1658_s1 + $0x50] sm:$0xff]  }
   0x2   :  { %v1255_v1 = vld [vmem:[%s1658_s1 + $0xc0] sm:$0xff]   ;;  %1112 = vmatprep.subr.bf16.mxu0 %v1254_v0  ;;  %v1259_v5 = vld [vmem:[%s1658_s1 + $0xc8] sm:$0xff]   ;;  %v1263_v9 = vld [vmem:[%s1658_s1 + $0xd0] sm:$0xff]  }
   0x3   :  { %v1256_v2 = vld [vmem:[%s1658_s1] sm:$0xff]   ;;  %1140 = vmatprep.subr.bf16.mxu1 %v1255_v1  ;;  %v1260_v6 = vld [vmem:[%s1658_s1 + $0x8] sm:$0xff]   ;;  %v1264_v10 = vld [vmem:[%s1658_s1 + $0x10] sm:$0xff]  }
   0x4   :  { %v1257_v3 = vld [vmem:[%s1658_s1 + $0x80] sm:$0xff]   ;;  %1113 = vmatpush3.bf16.msra.mxu0 %v1256_v2  ;;  %v1261_v7 = vld [vmem:[%s1658_s1 + $0x88] sm:$0xff]   ;;  %v1265_v11 = vld [vmem:[%s1658_s1 + $0x90] sm:$0xff]  }
   0x5   :  { %1141 = vmatpush3.bf16.msra.mxu1 %v1257_v3  ;;  %1114 = vmatprep.subr.bf16.mxu0 %v1258_v4  ;;  %v1266_v12 = vld [vmem:[%s1658_s1 + $0x58] sm:$0xff]   ;;  %v1270_v16 = vld [vmem:[%s1658_s1 + $0x60] sm:$0xff]   ;;  %v1274_v20 = vld [vmem:[%s1658_s1 + $0x68] sm:$0xff]  }
   0x6   :  { %1142 = vmatprep.subr.bf16.mxu1 %v1259_v5  ;;  %v1267_v13 = vld [vmem:[%s1658_s1 + $0xd8] sm:$0xff]   ;;  %v1271_v17 = vld [vmem:[%s1658_s1 + $0xe0] sm:$0xff]   ;;  %v1275_v21 = vld [vmem:[%s1658_s1 + $0xe8] sm:$0xff]  }
   0x7   :  { %v1268_v14 = vld [vmem:[%s1658_s1 + $0x18] sm:$0xff]   ;;  %v1272_v18 = vld [vmem:[%s1658_s1 + $0x20] sm:$0xff]   ;;  %v1276_v22 = vld [vmem:[%s1658_s1 + $0x28] sm:$0xff]  }
   0x8   :  { %1115 = vmatpush3.bf16.msra.mxu0 %v1260_v6  ;;  %v1269_v15 = vld [vmem:[%s1658_s1 + $0x98] sm:$0xff]   ;;  %v1273_v19 = vld [vmem:[%s1658_s1 + $0xa0] sm:$0xff]   ;;  %v1277_v23 = vld [vmem:[%s1658_s1 + $0xa8] sm:$0xff]  }
   0x9   :  { %1143 = vmatpush3.bf16.msra.mxu1 %v1261_v7  ;;  %1116 = vmatprep.subr.bf16.mxu0 %v1262_v8  ;;  %v1278_v24 = vld [vmem:[%s1658_s1 + $0x70] sm:$0xff]   ;;  %v1282_v28 = vld [vmem:[%s1658_s1 + $0x78] sm:$0xff]   ;;  %v1286_v32 = vld [vmem:[%s1659_s0] ss:$36 sps:$4 sm:$0xff]  }
   0xa   :  { %1144 = vmatprep.subr.bf16.mxu1 %v1263_v9  ;;  %v1279_v25 = vld [vmem:[%s1658_s1 + $0xf0] sm:$0xff]   ;;  %v1283_v29 = vld [vmem:[%s1658_s1 + $0xf8] sm:$0xff]   ;;  %v1288_v33 = vld [vmem:[%s1659_s0 + $0x4] ss:$36 sps:$4 sm:$0xff]  }
   0xb   :  { %v1280_v26 = vld [vmem:[%s1658_s1 + $0x30] sm:$0xff]   ;;  %v1284_v30 = vld [vmem:[%s1658_s1 + $0x38] sm:$0xff]   ;;  %v1289_v34 = vld [vmem:[%s1659_s0 + $0x8] ss:$36 sps:$4 sm:$0xff]   ;;  %738 = vmatprep.mubr.bf16.mxu0 %v1288_v33 }
   0xc   :  { %1117 = vmatpush3.bf16.msra.mxu0 %v1264_v10  ;;  %v1281_v27 = vld [vmem:[%s1658_s1 + $0xb0] sm:$0xff]   ;;  %v1285_v31 = vld [vmem:[%s1658_s1 + $0xb8] sm:$0xff]   ;;  %v1292_v36 = vld [vmem:[%s1658_s1 + $0x140] sm:$0xff]  }
   0xd   :  { %1145 = vmatpush3.bf16.msra.mxu1 %v1265_v11  ;;  %1118 = vmatprep.subr.bf16.mxu0 %v1266_v12  ;;  %v1291_v35 = vld [vmem:[%s1659_s0 + $0xc] ss:$36 sps:$4 sm:$0xff]   ;;  %v1293_v37 = vld [vmem:[%s1658_s1 + $0x100] sm:$0xff]   ;;  %v1304_v48 = vld [vmem:[%s1658_s1 + $0x158] sm:$0xff]  }
   0xe   :  { %1146 = vmatprep.subr.bf16.mxu1 %v1267_v13  ;;  %787 = vmatprep.mubr.bf16.mxu1 %v1291_v35  ;;  %v1294_v38 = vld [vmem:[%s1658_s1 + $0x1c0] sm:$0xff]   ;;  %v1296_v40 = vld [vmem:[%s1658_s1 + $0x148] sm:$0xff]   ;;  %v1300_v44 = vld [vmem:[%s1658_s1 + $0x150] sm:$0xff]  }
   0xf   :  { %v1295_v39 = vld [vmem:[%s1658_s1 + $0x180] sm:$0xff]   ;;  %v1297_v41 = vld [vmem:[%s1658_s1 + $0x108] sm:$0xff]   ;;  %v1301_v45 = vld [vmem:[%s1658_s1 + $0x110] sm:$0xff]  }
  0x10   :  { %1119 = vmatpush3.bf16.msra.mxu0 %v1268_v14  ;;  %v1298_v42 = vld [vmem:[%s1658_s1 + $0x1c8] sm:$0xff]   ;;  %v1302_v46 = vld [vmem:[%s1658_s1 + $0x1d0] sm:$0xff]   ;;  %v1305_v49 = vld [vmem:[%s1658_s1 + $0x118] sm:$0xff]  }
  0x11   :  { %1147 = vmatpush3.bf16.msra.mxu1 %v1269_v15  ;;  %1120 = vmatprep.subr.bf16.mxu0 %v1270_v16  ;;  %v1299_v43 = vld [vmem:[%s1658_s1 + $0x188] sm:$0xff]   ;;  %v1303_v47 = vld [vmem:[%s1658_s1 + $0x190] sm:$0xff]   ;;  %v1306_v50 = vld [vmem:[%s1658_s1 + $0x1d8] sm:$0xff]  }
  0x12   :  { %1148 = vmatprep.subr.bf16.mxu1 %v1271_v17  ;;  %v1307_v51 = vld [vmem:[%s1658_s1 + $0x198] sm:$0xff]   ;;  %v1308_v52 = vld [vmem:[%s1658_s1 + $0x160] sm:$0xff]   ;;  %v1312_v56 = vld [vmem:[%s1658_s1 + $0x168] sm:$0xff]  }
  0x13   :  { %v1309_v53 = vld [vmem:[%s1658_s1 + $0x120] sm:$0xff]   ;;  %v1313_v57 = vld [vmem:[%s1659_s0 + $0x4c] ss:$36 sps:$4 sm:$0xff]   ;;  %v1315_v58 = vld [vmem:[%s1659_s0 + $0x54] ss:$36 sps:$4 sm:$0xff]  }
  0x14   :  { %1121 = vmatpush3.bf16.msra.mxu0 %v1272_v18  ;;  %v1310_v54 = vld [vmem:[%s1658_s1 + $0x1e0] sm:$0xff]   ;;  %v1317_v59 = vld [vmem:[%s1658_s1 + $0x128] sm:$0xff]   ;;  %v1319_v61 = vld [vmem:[%s1659_s0 + $0x50] ss:$36 sps:$4 sm:$0xff]  }
  0x15   :  { %1149 = vmatpush3.bf16.msra.mxu1 %v1273_v19  ;;  %1122 = vmatprep.subr.bf16.mxu0 %v1274_v20  ;;  %v1311_v55 = vld [vmem:[%s1658_s1 + $0x1a0] sm:$0xff]   ;;  %v1318_v60 = vld [vmem:[%s1659_s0 + $0x48] ss:$36 sps:$4 sm:$0xff]   ;;  %v1322_v0 = vld [vmem:[%s1658_s1 + $0x170] sm:$0xff]  }
  0x16   :  { %1150 = vmatprep.subr.bf16.mxu1 %v1275_v21  ;;  %v1320_v62 = vld [vmem:[%s1658_s1 + $0x1e8] sm:$0xff]   ;;  %v1323_v1 = vld [vmem:[%s1658_s1 + $0x130] sm:$0xff]   ;;  %v1326_v4 = vld [vmem:[%s1658_s1 + $0x178] sm:$0xff]  }
  0x17   :  { %v1321_v63 = vld [vmem:[%s1658_s1 + $0x1a8] sm:$0xff]   ;;  %v1324_v2 = vld [vmem:[%s1658_s1 + $0x1f0] sm:$0xff]   ;;  %v1327_v5 = vld [vmem:[%s1658_s1 + $0x138] sm:$0xff]  }
  0x18   :  { %1123 = vmatpush3.bf16.msra.mxu0 %v1276_v22  ;;  %v1325_v3 = vld [vmem:[%s1658_s1 + $0x1b0] sm:$0xff]   ;;  %v1328_v6 = vld [vmem:[%s1658_s1 + $0x1f8] sm:$0xff]   ;;  %v1333_v10 = vld [vmem:[%s1658_s1 + $0x200] sm:$0xff]  }
  0x19   :  { %1151 = vmatpush3.bf16.msra.mxu1 %v1277_v23  ;;  %1124 = vmatprep.subr.bf16.mxu0 %v1278_v24  ;;  %v1329_v7 = vld [vmem:[%s1659_s0 + $0x10] ss:$36 sps:$4 sm:$0xff]   ;;  %v1332_v9 = vld [vmem:[%s1658_s1 + $0x1b8] sm:$0xff]   ;;  %v1337_v13 = vld [vmem:[%s1658_s1 + $0x208] sm:$0xff]  }
  0x1a   :  { %1152 = vmatprep.subr.bf16.mxu1 %v1279_v25  ;;  %v1331_v8 = vld [vmem:[%s1659_s0 + $0x14] ss:$36 sps:$4 sm:$0xff]   ;;  %v1336_v12 = vld [vmem:[%s1659_s0 + $0x1c] ss:$36 sps:$4 sm:$0xff]   ;;  %v1342_v17 = vld [vmem:[%s1659_s0 + $0x64] ss:$36 sps:$4 sm:$0xff]  }
  0x1b   :  { %v1334_v11 = vld [vmem:[%s1659_s0 + $0x18] ss:$36 sps:$4 sm:$0xff]   ;;  %v1341_v16 = vld [vmem:[%s1658_s1 + $0x210] sm:$0xff]   ;;  %v1344_v18 = vld [vmem:[%s1659_s0 + $0x60] ss:$36 sps:$4 sm:$0xff]  }
  0x1c   :  { %1125 = vmatpush3.bf16.msra.mxu0 %v1280_v26  ;;  %v1338_v14 = vld [vmem:[%s1659_s0 + $0x5c] ss:$36 sps:$4 sm:$0xff]   ;;  %v1347_v22 = vld [vmem:[%s1658_s1 + $0x228] sm:$0xff]   ;;  %v1348_v23 = vld [vmem:[%s1658_s1 + $0x230] sm:$0xff]  }
  0x1d   :  { %1153 = vmatpush3.bf16.msra.mxu1 %v1281_v27  ;;  %1126 = vmatprep.subr.bf16.mxu0 %v1282_v28  ;;  %v1340_v15 = vld [vmem:[%s1659_s0 + $0x58] ss:$36 sps:$4 sm:$0xff]   ;;  %v1346_v20 = vld [vmem:[%s1658_s1 + $0x220] sm:$0xff]   ;;  %v1351_v25 = vld [vmem:[%s1659_s0 + $0x68] ss:$36 sps:$4 sm:$0xff]  }
  0x1e   :  { %1154 = vmatprep.subr.bf16.mxu1 %v1283_v29  ;;  %v1345_v19 = vld [vmem:[%s1658_s1 + $0x218] sm:$0xff]   ;;  %v1350_v21 = vld [vmem:[%s1659_s0 + $0x20] ss:$36 sps:$4 sm:$0xff]  }
  0x1f   :  { %v1349_v24 = vld [vmem:[%s1658_s1 + $0x238] sm:$0xff]  }
  0x20   :  { %1127 = vmatpush3.bf16.msra.mxu0 %v1284_v30 }
  0x21   :  { %1155 = vmatpush3.bf16.msra.mxu1 %v1285_v31  ;;  %1168 = vmatprep.subr.bf16.mxu0 %v1292_v36 }
  0x22   :  { %1196 = vmatprep.subr.bf16.mxu1 %v1294_v38 }
  0x23   :  { %739 = vmatmul.mubr.bf16.vlgmr.msra.gmra.mrb[0].mxu0 %v1286_v32 }
  0x24   :  { %788 = vmatmul.mubr.bf16.vlgmr.msra.gmra.mrb[0].mxu1 %v1289_v34  ;;  %1169 = vmatpush3.bf16.msra.mxu0 %v1293_v37 }
  0x25   :  { %1197 = vmatpush3.bf16.msra.mxu1 %v1295_v39  ;;  %1170 = vmatprep.subr.bf16.mxu0 %v1296_v40 }
  0x26   :  { %1198 = vmatprep.subr.bf16.mxu1 %v1298_v42  ;;  %746 = vmatprep.mubr.bf16.mxu0 %v1313_v57 }
  0x27   :  { %795 = vmatprep.mubr.bf16.mxu1 %v1315_v58 }
  0x28   :  { %1171 = vmatpush3.bf16.msra.mxu0 %v1297_v41 }
  0x29   :  { %1199 = vmatpush3.bf16.msra.mxu1 %v1299_v43  ;;  %1172 = vmatprep.subr.bf16.mxu0 %v1300_v44 }
  0x2a   :  { %1200 = vmatprep.subr.bf16.mxu1 %v1302_v46 }
  0x2b   :  { %747 = vmatmul.mubr.bf16.gmra.mrb[4].mxu0 %v1318_v60 }
  0x2c   :  { %1173 = vmatpush3.bf16.msra.mxu0 %v1301_v45  ;;  %796 = vmatmul.mubr.bf16.gmra.mrb[4].mxu1 %v1319_v61 }
  0x2d   :  { %1201 = vmatpush3.bf16.msra.mxu1 %v1303_v47  ;;  %1174 = vmatprep.subr.bf16.mxu0 %v1304_v48 }
  0x2e   :  { %1202 = vmatprep.subr.bf16.mxu1 %v1306_v50  ;;  %836 = vmatprep.mubr.bf16.mxu0 %v1331_v8 }
  0x2f   :  { %885 = vmatprep.mubr.bf16.mxu1 %v1336_v12 }
  0x30   :  { %1175 = vmatpush3.bf16.msra.mxu0 %v1305_v49 }
  0x31   :  { %1203 = vmatpush3.bf16.msra.mxu1 %v1307_v51  ;;  %1176 = vmatprep.subr.bf16.mxu0 %v1308_v52 }
  0x32   :  { %1204 = vmatprep.subr.bf16.mxu1 %v1310_v54 }
  0x34   :  { %1177 = vmatpush3.bf16.msra.mxu0 %v1309_v53 }
  0x35   :  { %1205 = vmatpush3.bf16.msra.mxu1 %v1311_v55  ;;  %1178 = vmatprep.subr.bf16.mxu0 %v1312_v56 }
  0x36   :  { %1206 = vmatprep.subr.bf16.mxu1 %v1320_v62 }
  0x38   :  { %1179 = vmatpush3.bf16.msra.mxu0 %v1317_v59 }
  0x39   :  { %1207 = vmatpush3.bf16.msra.mxu1 %v1321_v63  ;;  %1180 = vmatprep.subr.bf16.mxu0 %v1322_v0 }
  0x3a   :  { %1208 = vmatprep.subr.bf16.mxu1 %v1324_v2 }
  0x3c   :  { %1181 = vmatpush3.bf16.msra.mxu0 %v1323_v1 }
  0x3d   :  { %1209 = vmatpush3.bf16.msra.mxu1 %v1325_v3  ;;  %1182 = vmatprep.subr.bf16.mxu0 %v1326_v4 }
  0x3e   :  { %1210 = vmatprep.subr.bf16.mxu1 %v1328_v6 }
  0x40   :  { %1183 = vmatpush3.bf16.msra.mxu0 %v1327_v5 }
  0x41   :  { %1211 = vmatpush3.bf16.msra.mxu1 %v1332_v9  ;;  %1234 = vmatprep.subr.bf16.mxu0 %v1333_v10 }
  0x43   :  { %837 = vmatmul.mubr.bf16.vlgmr.msra.gmra.mrb[8].mxu0 %v1329_v7 }
  0x44   :  { %1235 = vmatpush3.bf16.msra.mxu0 %v1333_v10  ;;  %886 = vmatmul.mubr.bf16.vlgmr.msra.gmra.mrb[8].mxu1 %v1334_v11 }
  0x45   :  { %1236 = vmatprep.subr.bf16.mxu0 %v1337_v13  ;;  %844 = vmatprep.mubr.bf16.mxu0 %v1338_v14 }
  0x46   :  { %893 = vmatprep.mubr.bf16.mxu1 %v1342_v17 }
  0x48   :  { %1237 = vmatpush3.bf16.msra.mxu0 %v1337_v13 }
  0x49   :  { %1238 = vmatprep.subr.bf16.mxu0 %v1341_v16 }
  0x4b   :  { %845 = vmatmul.mubr.bf16.gmra.mrb[12].mxu0 %v1340_v15 }
  0x4c   :  { %1239 = vmatpush3.bf16.msra.mxu0 %v1341_v16  ;;  %894 = vmatmul.mubr.bf16.gmra.mrb[12].mxu1 %v1344_v18 }
  0x4d   :  { %1240 = vmatprep.subr.bf16.mxu0 %v1345_v19  ;;  %1250 = vmatprep.mubr.bf16.mxu0 %v1350_v21 }
  0x50   :  { %1241 = vmatpush3.bf16.msra.mxu0 %v1345_v19 }
  0x51   :  { %1242 = vmatprep.subr.bf16.mxu0 %v1346_v20 }
  0x54   :  { %1243 = vmatpush3.bf16.msra.mxu0 %v1346_v20 }
  0x55   :  { %1244 = vmatprep.subr.bf16.mxu0 %v1347_v22 }
  0x58   :  { %1245 = vmatpush3.bf16.msra.mxu0 %v1347_v22 }
  0x59   :  { %1246 = vmatprep.subr.bf16.mxu0 %v1348_v23 }
  0x5c   :  { %1247 = vmatpush3.bf16.msra.mxu0 %v1348_v23 }
  0x5d   :  { %1248 = vmatprep.subr.bf16.mxu0 %v1349_v24 }
  0x60   :  { %1249 = vmatpush3.bf16.msra.mxu0 %v1349_v24 }
  0x63   :  { %1251 = vmatmul.mubr.bf16.vlgmr.msra.gmra.mrb[16].mxu0 %v1351_v25 }
  0xf6   :  { %v1128_v26 = vpop.f32.mrb[0].mxu0 }
  0xf7   :  { %v1156_v27 = vpop.f32.mrb[0].mxu1  ;;  %v1129_v28 = vpop.f32.mrb[1].mxu0 }
  0xf8   :  { %v1130_v29 = vadd.f32 %v1129_v28, %v1128_v26  ;;  %v1157_v30 = vpop.f32.mrb[1].mxu1  ;;  %v1131_v31 = vpop.f32.mrb[2].mxu0 }
  0xf9   :  { %v1158_v32 = vadd.f32 %v1157_v30, %v1156_v27  ;;  %v1159_v33 = vpop.f32.mrb[2].mxu1  ;;  %v1132_v34 = vpop.f32.mrb[3].mxu0 }
  0xfa   :  { %v1133_v35 = vadd.f32 %v1132_v34, %v1131_v31  ;;  %v1160_v36 = vpop.f32.mrb[3].mxu1 }
  0xfb   :  { %v790_v37 = vadd.f32 %v1158_v32, %v1130_v29  ;;  %v1161_v38 = vadd.f32 %v1160_v36, %v1159_v33 }
  0xfd   :  { %v793_v39 = vadd.f32 %v1161_v38, %v1133_v35 }
  0xfe   :  { %v1134_v40 = vpop.f32.mrb[4].mxu0 }
  0xff   :  { %v1162_v41 = vpop.f32.mrb[4].mxu1  ;;  %v1135_v42 = vpop.f32.mrb[5].mxu0 }
 0x100   :  { %v1163_v43 = vpop.f32.mrb[5].mxu1  ;;  %v1136_v44 = vadd.f32 %v1135_v42, %v1134_v40  ;;  %v1137_v46 = vpop.f32.mrb[6].mxu0 }
 0x101   :  { %v1164_v45 = vadd.f32 %v1163_v43, %v1162_v41  ;;  %v1165_v47 = vpop.f32.mrb[6].mxu1  ;;  %v1138_v48 = vpop.f32.mrb[7].mxu0 }
 0x102   :  { %v1166_v49 = vpop.f32.mrb[7].mxu1  ;;  %v1139_v51 = vadd.f32 %v1138_v48, %v1137_v46 }
 0x103   :  { %v798_v50 = vadd.f32 %v1164_v45, %v1136_v44  ;;  %v1167_v52 = vadd.f32 %v1166_v49, %v1165_v47 }
 0x105   :  { %v801_v53 = vadd.f32 %v1167_v52, %v1139_v51 }
 0x116   :  { %v1184_v54 = vpop.f32.mrb[8].mxu0 }
 0x117   :  { %v1185_v55 = vpop.f32.mrb[9].mxu0  ;;  %v1212_v58 = vpop.f32.mrb[8].mxu1 }
 0x118   :  { %v1186_v56 = vadd.f32 %v1185_v55, %v1184_v54  ;;  %v1187_v57 = vpop.f32.mrb[10].mxu0  ;;  %v1213_v62 = vpop.f32.mrb[9].mxu1 }
 0x119   :  { %v1188_v59 = vpop.f32.mrb[11].mxu0  ;;  %v1214_v63 = vadd.f32 %v1213_v62, %v1212_v58  ;;  %v1215_v0 = vpop.f32.mrb[10].mxu1 }
 0x11a   :  { %v839_v60 = vadd.f32 %v1186_v56, %v790_v37  ;;  %v1189_v61 = vadd.f32 %v1188_v59, %v1187_v57  ;;  %v1216_v2 = vpop.f32.mrb[11].mxu1 }
 0x11b   :  { %v1217_v3 = vadd.f32 %v1216_v2, %v1215_v0 }
 0x11c   :  { %v842_v1 = vadd.f32 %v1189_v61, %v793_v39  ;;  %v888_v4 = vadd.f32 %v1214_v63, %v839_v60  ;;  %v1110_v60 = vld [vmem:[%s1660_s2] ss:$0 sm:$0xff] }
 0x11e   :  { %v1190_v5 = vpop.f32.mrb[12].mxu0  ;;  %v891_v7 = vadd.f32 %v1217_v3, %v842_v1  ;;  %v1111_v1 = vld [vmem:[%s1661_s3] ss:$0 sm:$0xff] }
 0x11f   :  { %v1191_v6 = vpop.f32.mrb[13].mxu0  ;;  %v1218_v10 = vpop.f32.mrb[12].mxu1 }
 0x120   :  { %v1192_v8 = vadd.f32 %v1191_v6, %v1190_v5  ;;  %v1193_v9 = vpop.f32.mrb[14].mxu0  ;;  %v1219_v14 = vpop.f32.mrb[13].mxu1 }
 0x121   :  { %v1194_v11 = vpop.f32.mrb[15].mxu0  ;;  %v1220_v15 = vadd.f32 %v1219_v14, %v1218_v10  ;;  %v1221_v16 = vpop.f32.mrb[14].mxu1 }
 0x122   :  { %v847_v12 = vadd.f32 %v1192_v8, %v798_v50  ;;  %v1195_v13 = vadd.f32 %v1194_v11, %v1193_v9  ;;  %v1222_v18 = vpop.f32.mrb[15].mxu1 }
 0x123   :  { %v1223_v19 = vadd.f32 %v1222_v18, %v1221_v16 }
 0x124   :  { %v850_v17 = vadd.f32 %v1195_v13, %v801_v53  ;;  %v896_v20 = vadd.f32 %v1220_v15, %v847_v12 }
 0x126   :  { %v899_v21 = vadd.f32 %v1223_v19, %v850_v17 }
 0x136   :  { %v1252_v22 = vpop.f32.mrb[16].mxu0 }
 0x137   :  { %v945_v23 = vadd.f32 %v1252_v22, %v896_v20  ;;  %v936_v24 = vpop.f32.mrb[17].mxu0 }
 0x138   :  { %v937_v25 = vadd.f32 %v936_v24, %v888_v4  ;;  %v1253_v26 = vpop.f32.mrb[18].mxu0 }
 0x139   :  { %v948_v27 = vadd.f32 %v1253_v26, %v899_v21  ;;  %v939_v28 = vpop.f32.mrb[19].mxu0 }
 0x13a   :  { %v940_v29 = vadd.f32 %v939_v28, %v891_v7 }
 0x13c   :  { %v951_v30 = vadd.f32 %v940_v29, %v937_v25 }
 0x13e   :  { %v952_v31 = vadd.f32 %v951_v30, %v945_v23 }
 0x140   :  { %v953_v32 = vadd.f32 %v952_v31, %v948_v27 }
 0x142   :  { %v954_v33 = vrot.slane %v953_v32, 4 }
 0x144   :  { %v955_v34 = vadd.f32 %v954_v33, %v953_v32 }
 0x146   :  { %v956_v35 = vrot.slane %v955_v34, 2 }
 0x148   :  { %v957_v36 = vadd.f32 %v956_v35, %v955_v34 }
 0x14a   :  { %v958_v37 = vrot.slane %v957_v36, 1 }
 0x14c   :  { %v959_v38 = vadd.f32 %v958_v37, %v957_v36 }
 0x14e   :  { %v961_v39 = vmul.f32 0.03125, %v959_v38 }
 0x150   :  { %v962_v40 = vsub.f32 %v937_v25, %v961_v39  ;;  %v963_v41 = vsub.f32 %v940_v29, %v961_v39  ;;  %v964_v42 = vsub.f32 %v945_v23, %v961_v39  ;;  %v965_v43 = vsub.f32 %v948_v27, %v961_v39 }
 0x152   :  { %v966_v44 = vmul.f32 %v962_v40, %v962_v40  ;;  %v967_v45 = vmul.f32 %v963_v41, %v963_v41  ;;  %v968_v46 = vmul.f32 %v964_v42, %v964_v42  ;;  %v969_v48 = vmul.f32 %v965_v43, %v965_v43 }
 0x154   :  { %v970_v47 = vadd.f32 %v967_v45, %v966_v44 }
 0x156   :  { %v971_v49 = vadd.f32 %v970_v47, %v968_v46 }
 0x158   :  { %v972_v50 = vadd.f32 %v971_v49, %v969_v48 }
 0x15a   :  { %v973_v51 = vrot.slane %v972_v50, 4 }
 0x15c   :  { %v974_v52 = vadd.f32 %v973_v51, %v972_v50 }
 0x15e   :  { %v975_v53 = vrot.slane %v974_v52, 2 }
 0x160   :  { %v976_v54 = vadd.f32 %v975_v53, %v974_v52 }
 0x162   :  { %v977_v55 = vrot.slane %v976_v54, 1 }
 0x164   :  { %v978_v56 = vadd.f32 %v977_v55, %v976_v54 }
 0x166   :  { %v979_v57 = vmul.f32 0.03125, %v978_v56 }
 0x168   :  { %v980_v58 = vadd.f32 1e-05, %v979_v57 }
 0x16a   :  { %1352 = vrsqrt.f32 %v980_v58 }
 0x174   :  { %v1353_v59 = vpop.eup %1352 }
 0x175   :  { %v982_v61 = vmul.f32 %v1353_v59, %v962_v40  ;;  %v983_v62 = vmul.f32 %v1353_v59, %v963_v41  ;;  %v984_v63 = vmul.f32 %v1353_v59, %v964_v42  ;;  %v985_v0 = vmul.f32 %v1353_v59, %v965_v43 }
 0x177   :  { %v993_v2 = vmul.f32 %v1110_v60, %v982_v61  ;;  %v994_v3 = vmul.f32 %v1110_v60, %v983_v62  ;;  %v995_v4 = vmul.f32 %v1110_v60, %v984_v63  ;;  %v996_v5 = vmul.f32 %v1110_v60, %v985_v0 }
 0x179   :  { %v1004_v6 = vadd.f32 %v1111_v1, %v993_v2  ;;  %v1005_v7 = vadd.f32 %v1111_v1, %v994_v3  ;;  %v1006_v8 = vadd.f32 %v1111_v1, %v995_v4  ;;  %v1007_v9 = vadd.f32 %v1111_v1, %v996_v5 }
 0x17b   :  { %v1008_v10 = vmax.f32 %v1004_v6, 0.0  ;;  %v1009_v11 = vmax.f32 %v1005_v7, 0.0  ;;  %v1010_v12 = vmax.f32 %v1006_v8, 0.0  ;;  %v1011_v13 = vmax.f32 %v1007_v9, 0.0 }
 0x17d   :  { %v1012_v14 = vmax.f32 %v1008_v10, %v1009_v11  ;;  %v1013_v15 = vmax.f32 %v1010_v12, %v1011_v13 }
 0x17f   :  { %v1014_v16 = vmax.f32 %v1012_v14, %v1013_v15 }
 0x181   :  { %1015 = vst [vmem:[%s1662_s4] sm:$0xff] %v1014_v16 }

// kernel: vgg_forward.15
= control target key start
LH: loop header
LB: loop body
LE: loop exit
PB: predicated region body
PF: predicated region fallthrough
CT: control target
= control target key end

     0   :  { %vm1159_vm0 = vmmov 0   ;;  %s1425_s1 = inlined_call_operand.vmem [shape: bf16[1152,128], index: 1, kind: input, shape index: {}]   ;;  %s1426_s0 = inlined_call_operand.vmem [shape: bf16[8,1152], index: 0, kind: input, shape index: {}]   ;;  %s1427_s2 = inlined_call_operand.vmem [shape: f32[1,128], index: 2, kind: input, shape index: {}]   ;;  %s1428_s3 = inlined_call_operand.vmem [shape: f32[1,128], index: 3, kind: input, shape index: {}]   ;;  %s1429_s4 = inlined_call_operand.vmem [shape: f32[8,128], index: 4, kind: output, shape index: {}]  }
   0x1   :  { %v1075_v0 = vld [vmem:[%s1425_s1 + $0x40] sm:$0xff]   ;;  %v1079_v4 = vld [vmem:[%s1425_s1 + $0x48] sm:$0xff]   ;;  %v1083_v8 = vld [vmem:[%s1425_s1 + $0x50] sm:$0xff]  }
   0x2   :  { %v1076_v1 = vld [vmem:[%s1425_s1 + $0xc0] sm:$0xff]   ;;  %956 = vmatprep.subr.bf16.mxu0 %v1075_v0  ;;  %v1080_v5 = vld [vmem:[%s1425_s1 + $0xc8] sm:$0xff]   ;;  %v1084_v9 = vld [vmem:[%s1425_s1 + $0xd0] sm:$0xff]  }
   0x3   :  { %v1077_v2 = vld [vmem:[%s1425_s1] sm:$0xff]   ;;  %978 = vmatprep.subr.bf16.mxu1 %v1076_v1  ;;  %v1081_v6 = vld [vmem:[%s1425_s1 + $0x8] sm:$0xff]   ;;  %v1085_v10 = vld [vmem:[%s1425_s1 + $0x10] sm:$0xff]  }
   0x4   :  { %v1078_v3 = vld [vmem:[%s1425_s1 + $0x80] sm:$0xff]   ;;  %957 = vmatpush3.bf16.msra.mxu0 %v1077_v2  ;;  %v1082_v7 = vld [vmem:[%s1425_s1 + $0x88] sm:$0xff]   ;;  %v1086_v11 = vld [vmem:[%s1425_s1 + $0x90] sm:$0xff]  }
   0x5   :  { %979 = vmatpush3.bf16.msra.mxu1 %v1078_v3  ;;  %958 = vmatprep.subr.bf16.mxu0 %v1079_v4  ;;  %v1087_v12 = vld [vmem:[%s1425_s1 + $0x58] sm:$0xff]   ;;  %v1091_v16 = vld [vmem:[%s1425_s1 + $0x60] sm:$0xff]   ;;  %v1095_v20 = vld [vmem:[%s1425_s1 + $0x68] sm:$0xff]  }
   0x6   :  { %980 = vmatprep.subr.bf16.mxu1 %v1080_v5  ;;  %v1088_v13 = vld [vmem:[%s1425_s1 + $0xd8] sm:$0xff]   ;;  %v1092_v17 = vld [vmem:[%s1425_s1 + $0xe0] sm:$0xff]   ;;  %v1096_v21 = vld [vmem:[%s1425_s1 + $0xe8] sm:$0xff]  }
   0x7   :  { %v1089_v14 = vld [vmem:[%s1425_s1 + $0x18] sm:$0xff]   ;;  %v1093_v18 = vld [vmem:[%s1425_s1 + $0x20] sm:$0xff]   ;;  %v1097_v22 = vld [vmem:[%s1425_s1 + $0x28] sm:$0xff]  }
   0x8   :  { %959 = vmatpush3.bf16.msra.mxu0 %v1081_v6  ;;  %v1090_v15 = vld [vmem:[%s1425_s1 + $0x98] sm:$0xff]   ;;  %v1094_v19 = vld [vmem:[%s1425_s1 + $0xa0] sm:$0xff]   ;;  %v1098_v23 = vld [vmem:[%s1425_s1 + $0xa8] sm:$0xff]  }
   0x9   :  { %981 = vmatpush3.bf16.msra.mxu1 %v1082_v7  ;;  %960 = vmatprep.subr.bf16.mxu0 %v1083_v8  ;;  %v1099_v24 = vld [vmem:[%s1425_s1 + $0x70] sm:$0xff]   ;;  %v1103_v28 = vld [vmem:[%s1425_s1 + $0x78] sm:$0xff]   ;;  %v18_v32 = vld [vmem:[%s1426_s0] sm:$0xff] }
   0xa   :  { %982 = vmatprep.subr.bf16.mxu1 %v1084_v9  ;;  %v1100_v25 = vld [vmem:[%s1425_s1 + $0xf0] sm:$0xff]   ;;  %v1104_v29 = vld [vmem:[%s1425_s1 + $0xf8] sm:$0xff]   ;;  %v19_v33 = vld [vmem:[%s1426_s0 + $0x8] sm:$0xff]  ;;  %v873_v34 = vcombine.low %v18_v32, %v18_v32  ;;  %v874_v35 = vcombine.high %v18_v32, %v18_v32 }
   0xb   :  { %v1101_v26 = vld [vmem:[%s1425_s1 + $0x30] sm:$0xff]   ;;  %v1105_v30 = vld [vmem:[%s1425_s1 + $0x38] sm:$0xff]   ;;  %v875_v36 = vcombine.low %v19_v33, %v19_v33  ;;  %v876_v37 = vcombine.high %v19_v33, %v19_v33  ;;  %v1111_v38 = vld [vmem:[%s1425_s1 + $0x140] sm:$0xff]  }
   0xc   :  { %961 = vmatpush3.bf16.msra.mxu0 %v1085_v10  ;;  %v1102_v27 = vld [vmem:[%s1425_s1 + $0xb0] sm:$0xff]   ;;  %v1106_v31 = vld [vmem:[%s1425_s1 + $0xb8] sm:$0xff]   ;;  %v1112_v39 = vld [vmem:[%s1425_s1 + $0x100] sm:$0xff]   ;;  %663 = vmatprep.mubr.bf16.mxu0 %v874_v35 }
   0xd   :  { %983 = vmatpush3.bf16.msra.mxu1 %v1086_v11  ;;  %962 = vmatprep.subr.bf16.mxu0 %v1087_v12  ;;  %v1113_v40 = vld [vmem:[%s1425_s1 + $0x1c0] sm:$0xff]   ;;  %v1115_v42 = vld [vmem:[%s1425_s1 + $0x148] sm:$0xff]   ;;  %v1119_v46 = vld [vmem:[%s1425_s1 + $0x150] sm:$0xff]  }
   0xe   :  { %984 = vmatprep.subr.bf16.mxu1 %v1088_v13  ;;  %703 = vmatprep.mubr.bf16.mxu1 %v876_v37  ;;  %v1114_v41 = vld [vmem:[%s1425_s1 + $0x180] sm:$0xff]   ;;  %v1116_v43 = vld [vmem:[%s1425_s1 + $0x108] sm:$0xff]   ;;  %v1120_v47 = vld [vmem:[%s1425_s1 + $0x110] sm:$0xff]   ;;  %v1158_v13 = vmov 0.0  }
   0xf   :  { %v1117_v44 = vld [vmem:[%s1425_s1 + $0x1c8] sm:$0xff]   ;;  %v1121_v48 = vld [vmem:[%s1425_s1 + $0x1d0] sm:$0xff]   ;;  %v1123_v50 = vld [vmem:[%s1425_s1 + $0x158] sm:$0xff]  }
  0x10   :  { %963 = vmatpush3.bf16.msra.mxu0 %v1089_v14  ;;  %v1118_v45 = vld [vmem:[%s1425_s1 + $0x188] sm:$0xff]   ;;  %v1122_v49 = vld [vmem:[%s1425_s1 + $0x190] sm:$0xff]   ;;  %v1124_v51 = vld [vmem:[%s1425_s1 + $0x118] sm:$0xff]  }
  0x11   :  { %985 = vmatpush3.bf16.msra.mxu1 %v1090_v15  ;;  %964 = vmatprep.subr.bf16.mxu0 %v1091_v16  ;;  %v1125_v52 = vld [vmem:[%s1425_s1 + $0x1d8] sm:$0xff]   ;;  %v1127_v54 = vld [vmem:[%s1425_s1 + $0x160] sm:$0xff]   ;;  %v1131_v58 = vld [vmem:[%s1425_s1 + $0x168] sm:$0xff]  }
  0x12   :  { %986 = vmatprep.subr.bf16.mxu1 %v1092_v17  ;;  %v1126_v53 = vld [vmem:[%s1425_s1 + $0x198] sm:$0xff]   ;;  %v1128_v55 = vld [vmem:[%s1425_s1 + $0x120] sm:$0xff]   ;;  %v1132_v59 = vld [vmem:[%s1425_s1 + $0x128] sm:$0xff]  }
  0x13   :  { %v1129_v56 = vld [vmem:[%s1425_s1 + $0x1e0] sm:$0xff]   ;;  %v1133_v60 = vld [vmem:[%s1425_s1 + $0x1e8] sm:$0xff]   ;;  %v1135_v62 = vld [vmem:[%s1425_s1 + $0x170] sm:$0xff]  }
  0x14   :  { %965 = vmatpush3.bf16.msra.mxu0 %v1093_v18  ;;  %v1130_v57 = vld [vmem:[%s1425_s1 + $0x1a0] sm:$0xff]   ;;  %v1134_v61 = vld [vmem:[%s1425_s1 + $0x1a8] sm:$0xff]   ;;  %v1136_v63 = vld [vmem:[%s1425_s1 + $0x130] sm:$0xff]  }
  0x15   :  { %987 = vmatpush3.bf16.msra.mxu1 %v1094_v19  ;;  %966 = vmatprep.subr.bf16.mxu0 %v1095_v20  ;;  %v1137_v0 = vld [vmem:[%s1425_s1 + $0x1f0] sm:$0xff]   ;;  %v1139_v2 = vld [vmem:[%s1425_s1 + $0x178] sm:$0xff]   ;;  %v1147_v12 = vld [vmem:[%s1425_s1 + $0x200] sm:$0xff]  }
  0x16   :  { %988 = vmatprep.subr.bf16.mxu1 %v1096_v21  ;;  %v1138_v1 = vld [vmem:[%s1425_s1 + $0x1b0] sm:$0xff]   ;;  %v1140_v3 = vld [vmem:[%s1425_s1 + $0x138] sm:$0xff]   ;;  %v1148_v14 = vld [vmem:[%s1425_s1 + $0x208] sm:$0xff]  }
  0x17   :  { %v1141_v4 = vld [vmem:[%s1425_s1 + $0x1f8] sm:$0xff]   ;;  %v20_v5 = vld [vmem:[%s1426_s0 + $0x10] sm:$0xff]  ;;  %v1151_v17 = vld [vmem:[%s1425_s1 + $0x220] sm:$0xff]  }
  0x18   :  { %967 = vmatpush3.bf16.msra.mxu0 %v1097_v22  ;;  %v878_v6 = vcombine.high %v20_v5, %v20_v5  ;;  %v1144_v7 = vld [vmem:[%s1425_s1 + $0x1b8] sm:$0xff]   ;;  %v877_v8 = vcombine.low %v20_v5, %v20_v5  ;;  %v1149_v15 = vld [vmem:[%s1425_s1 + $0x210] sm:$0xff]   ;;  %v1152_v18 = vld [vmem:[%s1425_s1 + $0x228] sm:$0xff]  }
  0x19   :  { %989 = vmatpush3.bf16.msra.mxu1 %v1098_v23  ;;  %968 = vmatprep.subr.bf16.mxu0 %v1099_v24  ;;  %v21_v9 = vld [vmem:[%s1426_s0 + $0x18] sm:$0xff]  ;;  %v1153_v19 = vld [vmem:[%s1425_s1 + $0x230] sm:$0xff]   ;;  %v1155_v21 = vld [vmem:[%s1426_s0 + $0x20] ss:$0 sps:$4 sm:$0xff]  }
  0x1a   :  { %990 = vmatprep.subr.bf16.mxu1 %v1100_v25  ;;  %v879_v10 = vcombine.low %v21_v9, %v21_v9  ;;  %v880_v11 = vcombine.high %v21_v9, %v21_v9  ;;  %v1150_v16 = vld [vmem:[%s1425_s1 + $0x218] sm:$0xff]  }
  0x1b   :  { %v1154_v20 = vld [vmem:[%s1425_s1 + $0x238] sm:$0xff]  }
  0x1c   :  { %969 = vmatpush3.bf16.msra.mxu0 %v1101_v26 }
  0x1d   :  { %991 = vmatpush3.bf16.msra.mxu1 %v1102_v27  ;;  %970 = vmatprep.subr.bf16.mxu0 %v1103_v28 }
  0x1e   :  { %992 = vmatprep.subr.bf16.mxu1 %v1104_v29 }
  0x20   :  { %971 = vmatpush3.bf16.msra.mxu0 %v1105_v30 }
  0x21   :  { %993 = vmatpush3.bf16.msra.mxu1 %v1106_v31  ;;  %1000 = vmatprep.subr.bf16.mxu0 %v1111_v38 }
  0x22   :  { %1022 = vmatprep.subr.bf16.mxu1 %v1113_v40 }
  0x23   :  { %664 = vmatmul.mubr.bf16.vlgmr.msra.gmra.mrb[0].mxu0 %v873_v34 }
  0x24   :  { %704 = vmatmul.mubr.bf16.vlgmr.msra.gmra.mrb[0].mxu1 %v875_v36  ;;  %1001 = vmatpush3.bf16.msra.mxu0 %v1112_v39 }
  0x25   :  { %1023 = vmatpush3.bf16.msra.mxu1 %v1114_v41  ;;  %1002 = vmatprep.subr.bf16.mxu0 %v1115_v42 }
  0x26   :  { %1024 = vmatprep.subr.bf16.mxu1 %v1117_v44  ;;  %743 = vmatprep.mubr.bf16.mxu0 %v878_v6  ;;  %v955_v6 = vld [vmem:[%s1428_s3] ss:$0 sm:$0xff] }
  0x27   :  { %783 = vmatprep.mubr.bf16.mxu1 %v880_v11 }
  0x28   :  { %1003 = vmatpush3.bf16.msra.mxu0 %v1116_v43 }
  0x29   :  { %1025 = vmatpush3.bf16.msra.mxu1 %v1118_v45  ;;  %1004 = vmatprep.subr.bf16.mxu0 %v1119_v46 }
  0x2a   :  { %1026 = vmatprep.subr.bf16.mxu1 %v1121_v48 }
  0x2c   :  { %1005 = vmatpush3.bf16.msra.mxu0 %v1120_v47 }
  0x2d   :  { %1027 = vmatpush3.bf16.msra.mxu1 %v1122_v49  ;;  %1006 = vmatprep.subr.bf16.mxu0 %v1123_v50 }
  0x2e   :  { %1028 = vmatprep.subr.bf16.mxu1 %v1125_v52 }
  0x30   :  { %1007 = vmatpush3.bf16.msra.mxu0 %v1124_v51 }
  0x31   :  { %1029 = vmatpush3.bf16.msra.mxu1 %v1126_v53  ;;  %1008 = vmatprep.subr.bf16.mxu0 %v1127_v54 }
  0x32   :  { %1030 = vmatprep.subr.bf16.mxu1 %v1129_v56 }
  0x34   :  { %1009 = vmatpush3.bf16.msra.mxu0 %v1128_v55 }
  0x35   :  { %1031 = vmatpush3.bf16.msra.mxu1 %v1130_v57  ;;  %1010 = vmatprep.subr.bf16.mxu0 %v1131_v58 }
  0x36   :  { %1032 = vmatprep.subr.bf16.mxu1 %v1133_v60 }
  0x38   :  { %1011 = vmatpush3.bf16.msra.mxu0 %v1132_v59 }
  0x39   :  { %1033 = vmatpush3.bf16.msra.mxu1 %v1134_v61  ;;  %1012 = vmatprep.subr.bf16.mxu0 %v1135_v62 }
  0x3a   :  { %1034 = vmatprep.subr.bf16.mxu1 %v1137_v0 }
  0x3c   :  { %1013 = vmatpush3.bf16.msra.mxu0 %v1136_v63 }
  0x3d   :  { %1035 = vmatpush3.bf16.msra.mxu1 %v1138_v1  ;;  %1014 = vmatprep.subr.bf16.mxu0 %v1139_v2 }
  0x3e   :  { %1036 = vmatprep.subr.bf16.mxu1 %v1141_v4  ;;  %v954_v4 = vld [vmem:[%s1427_s2] ss:$0 sm:$0xff] }
  0x40   :  { %1015 = vmatpush3.bf16.msra.mxu0 %v1140_v3 }
  0x41   :  { %1037 = vmatpush3.bf16.msra.mxu1 %v1144_v7  ;;  %1053 = vmatprep.subr.bf16.mxu0 %v1158_v13 }
  0x43   :  { %744 = vmatmul.mubr.bf16.vlgmr.msra.gmra.mrb[4].mxu0 %v877_v8 }
  0x44   :  { %1054 = vmatpush3.bf16.msra.mxu0 %v1147_v12  ;;  %784 = vmatmul.mubr.bf16.vlgmr.msra.gmra.mrb[4].mxu1 %v879_v10 }
  0x45   :  { %1055 = vmatprep.subr.bf16.mxu0 %v1158_v13  ;;  %1069 = vmatprep.mubr.msk.bf16.mxu0 %vm1159_vm0, %v1158_v13 }
  0x48   :  { %1056 = vmatpush3.bf16.msra.mxu0 %v1148_v14 }
  0x49   :  { %1057 = vmatprep.subr.bf16.mxu0 %v1158_v13 }
  0x4c   :  { %1058 = vmatpush3.bf16.msra.mxu0 %v1149_v15 }
  0x4d   :  { %1059 = vmatprep.subr.bf16.mxu0 %v1158_v13 }
  0x50   :  { %1060 = vmatpush3.bf16.msra.mxu0 %v1150_v16 }
  0x51   :  { %1061 = vmatprep.subr.bf16.mxu0 %v1158_v13 }
  0x54   :  { %1062 = vmatpush3.bf16.msra.mxu0 %v1151_v17 }
  0x55   :  { %1063 = vmatprep.subr.bf16.mxu0 %v1158_v13 }
  0x58   :  { %1064 = vmatpush3.bf16.msra.mxu0 %v1152_v18 }
  0x59   :  { %1065 = vmatprep.subr.bf16.mxu0 %v1158_v13 }
  0x5c   :  { %1066 = vmatpush3.bf16.msra.mxu0 %v1153_v19 }
  0x5d   :  { %1067 = vmatprep.subr.bf16.mxu0 %v1158_v13 }
  0x60   :  { %1068 = vmatpush3.bf16.msra.mxu0 %v1154_v20 }
  0x63   :  { %1070 = vmatmul.mubr.bf16.vlgmr.msra.gmra.mrb[8].mxu0 %v1155_v21 }
  0xf6   :  { %v972_v22 = vpop.f32.mrb[0].mxu0 }
  0xf7   :  { %v994_v23 = vpop.f32.mrb[0].mxu1  ;;  %v973_v24 = vpop.f32.mrb[1].mxu0 }
  0xf8   :  { %v995_v25 = vpop.f32.mrb[1].mxu1  ;;  %v974_v26 = vadd.f32 %v973_v24, %v972_v22  ;;  %v975_v28 = vpop.f32.mrb[2].mxu0 }
  0xf9   :  { %v996_v27 = vadd.f32 %v995_v25, %v994_v23  ;;  %v997_v29 = vpop.f32.mrb[2].mxu1  ;;  %v976_v30 = vpop.f32.mrb[3].mxu0 }
  0xfa   :  { %v998_v31 = vpop.f32.mrb[3].mxu1 }
  0xfb   :  { %v706_v32 = vadd.f32 %v996_v27, %v974_v26 }
 0x116   :  { %v1016_v33 = vpop.f32.mrb[4].mxu0 }
 0x117   :  { %v1017_v34 = vpop.f32.mrb[5].mxu0  ;;  %v1038_v35 = vpop.f32.mrb[4].mxu1 }
 0x118   :  { %v1018_v36 = vadd.f32 %v1017_v34, %v1016_v33  ;;  %v1019_v37 = vpop.f32.mrb[6].mxu0  ;;  %v1039_v38 = vpop.f32.mrb[5].mxu1 }
 0x119   :  { %v1020_v39 = vpop.f32.mrb[7].mxu0  ;;  %v1040_v40 = vadd.f32 %v1039_v38, %v1038_v35  ;;  %v1041_v41 = vpop.f32.mrb[6].mxu1 }
 0x11a   :  { %v746_v42 = vadd.f32 %v1018_v36, %v706_v32  ;;  %v1042_v43 = vpop.f32.mrb[7].mxu1 }
 0x11c   :  { %v786_v44 = vadd.f32 %v1040_v40, %v746_v42 }
 0x136   :  { %v825_v45 = vpop.f32.mrb[8].mxu0 }
 0x137   :  { %v826_v46 = vadd.f32 %v825_v45, %v786_v44  ;;  %v1071_v47 = vpop.f32.mrb[9].mxu0 }
 0x138   :  { %v828_v48 = vpop.f32.mrb[10].mxu0 }
 0x139   :  { %v831_v49 = vrot.slane %v826_v46, 4  ;;  %v1072_v50 = vpop.f32.mrb[11].mxu0 }
 0x13b   :  { %v832_v51 = vadd.f32 %v831_v49, %v826_v46 }
 0x13d   :  { %v833_v52 = vrot.slane %v832_v51, 2 }
 0x13f   :  { %v834_v53 = vadd.f32 %v833_v52, %v832_v51 }
 0x141   :  { %v835_v54 = vrot.slane %v834_v53, 1 }
 0x143   :  { %v836_v55 = vadd.f32 %v835_v54, %v834_v53 }
 0x145   :  { %v838_v56 = vmul.f32 0.125, %v836_v55 }
 0x147   :  { %v839_v57 = vsub.f32 %v826_v46, %v838_v56 }
 0x149   :  { %v840_v58 = vmul.f32 %v839_v57, %v839_v57 }
 0x14b   :  { %v841_v59 = vrot.slane %v840_v58, 4 }
 0x14d   :  { %v842_v60 = vadd.f32 %v841_v59, %v840_v58 }
 0x14f   :  { %v843_v61 = vrot.slane %v842_v60, 2 }
 0x151   :  { %v844_v62 = vadd.f32 %v843_v61, %v842_v60 }
 0x153   :  { %v845_v63 = vrot.slane %v844_v62, 1 }
 0x155   :  { %v846_v0 = vadd.f32 %v845_v63, %v844_v62 }
 0x157   :  { %v847_v1 = vmul.f32 0.125, %v846_v0 }
 0x159   :  { %v848_v2 = vadd.f32 1e-05, %v847_v1 }
 0x15b   :  { %1156 = vrsqrt.f32 %v848_v2 }
 0x165   :  { %v1157_v3 = vpop.eup %1156 }
 0x166   :  { %v850_v5 = vmul.f32 %v1157_v3, %v839_v57 }
 0x168   :  { %v858_v7 = vmul.f32 %v954_v4, %v850_v5 }
 0x16a   :  { %v866_v8 = vadd.f32 %v955_v6, %v858_v7 }
 0x16c   :  { %v867_v9 = vmax.f32 %v866_v8, 0.0 }
 0x16e   :  { %868 = vst [vmem:[%s1429_s4] sm:$0xff] %v867_v9 }

// kernel: vgg_forward.17
= control target key start
LH: loop header
LB: loop body
LE: loop exit
PB: predicated region body
PF: predicated region fallthrough
CT: control target
= control target key end

     0   :  { %v857_v7 = vmov 0.0   ;;  %s1338_s0 = inlined_call_operand.vmem [shape: f32[2,128], index: 0, kind: input, shape index: {}]   ;;  %s1339_s1 = inlined_call_operand.vmem [shape: f32[128,512], index: 1, kind: input, shape index: {}]   ;;  %s1340_s2 = inlined_call_operand.vmem [shape: f32[1,512], index: 2, kind: input, shape index: {}]   ;;  %s1341_s3 = inlined_call_operand.vmem [shape: f32[1,512], index: 3, kind: input, shape index: {}]   ;;  %s1342_s4 = inlined_call_operand.vmem [shape: f32[1,512], index: 4, kind: input, shape index: {}]   ;;  %s1343_s5 = inlined_call_operand.vmem [shape: f32[512,128], index: 5, kind: input, shape index: {}]   ;;  %s1344_s6 = inlined_call_operand.vmem [shape: f32[1,128], index: 6, kind: input, shape index: {}]   ;;  %s1345_s7 = inlined_call_operand.hbm [shape: f32[2,128], index: 7, kind: output, shape index: {}]  }
   0x1   :  { %v29_v0 = vld [vmem:[%s1339_s1 + $0x8] sm:$0xff]  ;;  %v31_v2 = vld [vmem:[%s1339_s1 + $0x18] sm:$0xff]  ;;  %v28_v5 = vld [vmem:[%s1339_s1] sm:$0xff]  ;;  %178 = vmatprep.mubr.f32.mxu0 %v857_v7  ;;  %249 = vmatprep.mubr.f32.mxu1 %v857_v7 }
   0x2   :  { %v33_v1 = vld [vmem:[%s1339_s1 + $0x28] sm:$0xff]  ;;  %v35_v4 = vld [vmem:[%s1339_s1 + $0x38] sm:$0xff]  ;;  %v32_v6 = vld [vmem:[%s1339_s1 + $0x20] sm:$0xff] }
   0x3   :  { %v695_v3 = vpack.c.bf16 %v33_v1, %v29_v0  ;;  %v727_v8 = vpack.c.bf16 %v35_v4, %v31_v2  ;;  %v697_v9 = vpack.c.bf16 %v32_v6, %v28_v5  ;;  %v30_v10 = vld [vmem:[%s1339_s1 + $0x10] sm:$0xff]  ;;  %v37_v12 = vld [vmem:[%s1339_s1 + $0x48] sm:$0xff]  ;;  %v39_v15 = vld [vmem:[%s1339_s1 + $0x58] sm:$0xff] }
   0x4   :  { %v34_v11 = vld [vmem:[%s1339_s1 + $0x30] sm:$0xff]  ;;  %v41_v14 = vld [vmem:[%s1339_s1 + $0x68] sm:$0xff]  ;;  %v43_v16 = vld [vmem:[%s1339_s1 + $0x78] sm:$0xff] }
   0x5   :  { %696 = vmatprep.subr.bf16.mxu0 %v695_v3  ;;  %v729_v13 = vpack.c.bf16 %v34_v11, %v30_v10  ;;  %728 = vmatprep.subr.bf16.mxu1 %v727_v8  ;;  %v699_v17 = vpack.c.bf16 %v41_v14, %v37_v12  ;;  %v731_v18 = vpack.c.bf16 %v43_v16, %v39_v15  ;;  %v36_v19 = vld [vmem:[%s1339_s1 + $0x40] sm:$0xff]  ;;  %v38_v21 = vld [vmem:[%s1339_s1 + $0x50] sm:$0xff]  ;;  %v45_v24 = vld [vmem:[%s1339_s1 + $0x88] sm:$0xff] }
   0x6   :  { %698 = vmatpush1.bf16.msra.mxu0 %v697_v9  ;;  %v40_v20 = vld [vmem:[%s1339_s1 + $0x60] sm:$0xff]  ;;  %v42_v23 = vld [vmem:[%s1339_s1 + $0x70] sm:$0xff]  ;;  %v49_v25 = vld [vmem:[%s1339_s1 + $0xa8] sm:$0xff] }
   0x7   :  { %730 = vmatpush1.bf16.msra.mxu1 %v729_v13  ;;  %v701_v22 = vpack.c.bf16 %v40_v20, %v36_v19  ;;  %700 = vmatprep.subr.bf16.mxu0 %v699_v17  ;;  %v733_v26 = vpack.c.bf16 %v42_v23, %v38_v21  ;;  %v703_v27 = vpack.c.bf16 %v49_v25, %v45_v24  ;;  %v47_v28 = vld [vmem:[%s1339_s1 + $0x98] sm:$0xff]  ;;  %v44_v30 = vld [vmem:[%s1339_s1 + $0x80] sm:$0xff]  ;;  %v46_v33 = vld [vmem:[%s1339_s1 + $0x90] sm:$0xff] }
   0x8   :  { %732 = vmatprep.subr.bf16.mxu1 %v731_v18  ;;  %v51_v29 = vld [vmem:[%s1339_s1 + $0xb8] sm:$0xff]  ;;  %v48_v32 = vld [vmem:[%s1339_s1 + $0xa0] sm:$0xff]  ;;  %v50_v34 = vld [vmem:[%s1339_s1 + $0xb0] sm:$0xff] }
   0x9   :  { %v735_v31 = vpack.c.bf16 %v51_v29, %v47_v28  ;;  %v705_v35 = vpack.c.bf16 %v48_v32, %v44_v30  ;;  %v53_v36 = vld [vmem:[%s1339_s1 + $0xc8] sm:$0xff]  ;;  %v55_v38 = vld [vmem:[%s1339_s1 + $0xd8] sm:$0xff]  ;;  %v737_v39 = vpack.c.bf16 %v50_v34, %v46_v33  ;;  %v52_v42 = vld [vmem:[%s1339_s1 + $0xc0] sm:$0xff] }
   0xa   :  { %702 = vmatpush1.bf16.msra.mxu0 %v701_v22  ;;  %v57_v37 = vld [vmem:[%s1339_s1 + $0xe8] sm:$0xff]  ;;  %v59_v41 = vld [vmem:[%s1339_s1 + $0xf8] sm:$0xff]  ;;  %v56_v43 = vld [vmem:[%s1339_s1 + $0xe0] sm:$0xff] }
   0xb   :  { %734 = vmatpush1.bf16.msra.mxu1 %v733_v26  ;;  %704 = vmatprep.subr.bf16.mxu0 %v703_v27  ;;  %v707_v40 = vpack.c.bf16 %v57_v37, %v53_v36  ;;  %v739_v44 = vpack.c.bf16 %v59_v41, %v55_v38  ;;  %v54_v45 = vld [vmem:[%s1339_s1 + $0xd0] sm:$0xff]  ;;  %v61_v47 = vld [vmem:[%s1339_s1 + $0x108] sm:$0xff]  ;;  %v63_v49 = vld [vmem:[%s1339_s1 + $0x118] sm:$0xff]  ;;  %v709_v51 = vpack.c.bf16 %v56_v43, %v52_v42 }
   0xc   :  { %736 = vmatprep.subr.bf16.mxu1 %v735_v31  ;;  %v58_v46 = vld [vmem:[%s1339_s1 + $0xf0] sm:$0xff]  ;;  %v65_v48 = vld [vmem:[%s1339_s1 + $0x128] sm:$0xff]  ;;  %v67_v50 = vld [vmem:[%s1339_s1 + $0x138] sm:$0xff] }
   0xd   :  { %v741_v52 = vpack.c.bf16 %v58_v46, %v54_v45  ;;  %v711_v53 = vpack.c.bf16 %v65_v48, %v61_v47  ;;  %v60_v54 = vld [vmem:[%s1339_s1 + $0x100] sm:$0xff]  ;;  %v62_v56 = vld [vmem:[%s1339_s1 + $0x110] sm:$0xff]  ;;  %v743_v57 = vpack.c.bf16 %v67_v50, %v63_v49  ;;  %v69_v59 = vld [vmem:[%s1339_s1 + $0x148] sm:$0xff] }
   0xe   :  { %706 = vmatpush1.bf16.msra.mxu0 %v705_v35  ;;  %v64_v55 = vld [vmem:[%s1339_s1 + $0x120] sm:$0xff]  ;;  %v66_v58 = vld [vmem:[%s1339_s1 + $0x130] sm:$0xff]  ;;  %v73_v60 = vld [vmem:[%s1339_s1 + $0x168] sm:$0xff] }
   0xf   :  { %738 = vmatpush1.bf16.msra.mxu1 %v737_v39  ;;  %708 = vmatprep.subr.bf16.mxu0 %v707_v40  ;;  %v71_v61 = vld [vmem:[%s1339_s1 + $0x158] sm:$0xff]  ;;  %v713_v63 = vpack.c.bf16 %v64_v55, %v60_v54  ;;  %v745_v0 = vpack.c.bf16 %v66_v58, %v62_v56  ;;  %v715_v1 = vpack.c.bf16 %v73_v60, %v69_v59  ;;  %v68_v2 = vld [vmem:[%s1339_s1 + $0x140] sm:$0xff]  ;;  %v70_v4 = vld [vmem:[%s1339_s1 + $0x150] sm:$0xff] }
  0x10   :  { %740 = vmatprep.subr.bf16.mxu1 %v739_v44  ;;  %v75_v62 = vld [vmem:[%s1339_s1 + $0x178] sm:$0xff]  ;;  %v72_v3 = vld [vmem:[%s1339_s1 + $0x160] sm:$0xff]  ;;  %v74_v6 = vld [vmem:[%s1339_s1 + $0x170] sm:$0xff] }
  0x11   :  { %v747_v5 = vpack.c.bf16 %v75_v62, %v71_v61  ;;  %v77_v7 = vld [vmem:[%s1339_s1 + $0x188] sm:$0xff]  ;;  %v79_v9 = vld [vmem:[%s1339_s1 + $0x198] sm:$0xff]  ;;  %v717_v11 = vpack.c.bf16 %v72_v3, %v68_v2  ;;  %v76_v12 = vld [vmem:[%s1339_s1 + $0x180] sm:$0xff]  ;;  %v749_v13 = vpack.c.bf16 %v74_v6, %v70_v4 }
  0x12   :  { %710 = vmatpush1.bf16.msra.mxu0 %v709_v51  ;;  %v81_v8 = vld [vmem:[%s1339_s1 + $0x1a8] sm:$0xff]  ;;  %v83_v10 = vld [vmem:[%s1339_s1 + $0x1b8] sm:$0xff]  ;;  %v80_v15 = vld [vmem:[%s1339_s1 + $0x1a0] sm:$0xff] }
  0x13   :  { %742 = vmatpush1.bf16.msra.mxu1 %v741_v52  ;;  %712 = vmatprep.subr.bf16.mxu0 %v711_v53  ;;  %v719_v14 = vpack.c.bf16 %v81_v8, %v77_v7  ;;  %v78_v16 = vld [vmem:[%s1339_s1 + $0x190] sm:$0xff]  ;;  %v751_v18 = vpack.c.bf16 %v83_v10, %v79_v9  ;;  %v85_v19 = vld [vmem:[%s1339_s1 + $0x1c8] sm:$0xff] }
  0x14   :  { %744 = vmatprep.subr.bf16.mxu1 %v743_v57  ;;  %v82_v17 = vld [vmem:[%s1339_s1 + $0x1b0] sm:$0xff]  ;;  %v89_v20 = vld [vmem:[%s1339_s1 + $0x1e8] sm:$0xff] }
  0x16   :  { %714 = vmatpush1.bf16.msra.mxu0 %v713_v63 }
  0x17   :  { %746 = vmatpush1.bf16.msra.mxu1 %v745_v0  ;;  %716 = vmatprep.subr.bf16.mxu0 %v715_v1 }
  0x18   :  { %748 = vmatprep.subr.bf16.mxu1 %v747_v5 }
  0x19   :  { %12 = vsyncpa [#allocation3], 0  ;;  %v87_v21 = vld [vmem:[%s1339_s1 + $0x1d8] sm:$0xff]  ;;  %v721_v23 = vpack.c.bf16 %v80_v15, %v76_v12  ;;  %v753_v24 = vpack.c.bf16 %v82_v17, %v78_v16  ;;  %v723_v25 = vpack.c.bf16 %v89_v20, %v85_v19  ;;  %v84_v26 = vld [vmem:[%s1339_s1 + $0x1c0] sm:$0xff]  ;;  %vm256_vm0 = vcmask 1041408   ;;  %s858_s22 = smov [#allocation2]  }
  0x1a   :  { %v91_v22 = vld [vmem:[%s1339_s1 + $0x1f8] sm:$0xff]  ;;  %718 = vmatpush1.bf16.msra.mxu0 %v717_v11  ;;  %v88_v27 = vld [vmem:[%s1339_s1 + $0x1e0] sm:$0xff]  ;;  %v86_v29 = vld [vmem:[%s1339_s1 + $0x1d0] sm:$0xff] }
  0x1b   :  { %750 = vmatpush1.bf16.msra.mxu1 %v749_v13  ;;  %720 = vmatprep.subr.bf16.mxu0 %v719_v14  ;;  %v755_v28 = vpack.c.bf16 %v91_v22, %v87_v21  ;;  %v90_v30 = vld [vmem:[%s1339_s1 + $0x1f0] sm:$0xff]  ;;  %v725_v31 = vpack.c.bf16 %v88_v27, %v84_v26  ;;  %v27_v33 = vld [vmem:[%s1338_s0] sm:$0x3]  ;;  %v415_v35 = vld [vmem:[%s1343_s5 + $0x88] sm:$0xff]  ;;  %s616_s0 = sshll.u32 %s858_s22, 4  ;;  %s617_s0 = int_to_ptr.vmem [resolvable:$true] %s616_s0 }
  0x1c   :  { %752 = vmatprep.subr.bf16.mxu1 %v751_v18  ;;  %v757_v32 = vpack.c.bf16 %v90_v30, %v86_v29  ;;  %v414_v34 = vld [vmem:[%s1343_s5 + $0x80] sm:$0xff]  ;;  %v447_v38 = vld [vmem:[%s1343_s5 + $0x188] sm:$0xff]  ;;  %v416_v46 = vld [vmem:[%s1343_s5 + $0x90] sm:$0xff]  ;;  %s833_s23 = scalar_lea.vmem %s617_s0, 32  ;;  %p838_p1 = scmp.lt.s32.totalorder %s617_s0, %s617_s0 }
  0x1d   :  { %v446_v36 = vld [vmem:[%s1343_s5 + $0x180] sm:$0xff]  ;;  %v759_v37 = vpack.c.bf16 %v415_v35, %v414_v34  ;;  %v399_v40 = vld [vmem:[%s1343_s5 + $0x8] sm:$0xff]  ;;  %v417_v47 = vld [vmem:[%s1343_s5 + $0x98] sm:$0xff]  ;;  %p834_p0 = scmp.ne.s32.totalorder %s617_s0, %s833_s23  ;;  %p839_p2 = scmp.lt.s32.totalorder %s833_s23, %s833_s23 }
  0x1e   :  { %722 = vmatpush1.bf16.msra.mxu0 %v721_v23  ;;  %v398_v39 = vld [vmem:[%s1343_s5] sm:$0xff]  ;;  %v791_v41 = vpack.c.bf16 %v447_v38, %v446_v36  ;;  %v431_v44 = vld [vmem:[%s1343_s5 + $0x108] sm:$0xff]  ;;  %v448_v48 = vld [vmem:[%s1343_s5 + $0x190] sm:$0xff]  ;;  %v763_v49 = vpack.c.bf16 %v417_v47, %v416_v46 }
  0x1f   :  { %754 = vmatpush1.bf16.msra.mxu1 %v753_v24  ;;  %724 = vmatprep.subr.bf16.mxu0 %v723_v25  ;;  %v761_v42 = vpack.c.bf16 %v399_v40, %v398_v39  ;;  %v430_v43 = vld [vmem:[%s1343_s5 + $0x100] sm:$0xff]  ;;  %v449_v50 = vld [vmem:[%s1343_s5 + $0x198] sm:$0xff]  ;;  %v400_v51 = vld [vmem:[%s1343_s5 + $0x10] sm:$0xff]  ;;  %p840_p3 = por %p839_p2, %p838_p1 }
  0x20   :  { %756 = vmatprep.subr.bf16.mxu1 %v755_v28  ;;  %v793_v45 = vpack.c.bf16 %v431_v44, %v430_v43  ;;  %v401_v52 = vld [vmem:[%s1343_s5 + $0x18] sm:$0xff]  ;;  %v795_v53 = vpack.c.bf16 %v449_v50, %v448_v48  ;;  %v432_v55 = vld [vmem:[%s1343_s5 + $0x110] sm:$0xff]  ;;  %v418_v58 = vld [vmem:[%s1343_s5 + $0xa0] sm:$0xff] }
  0x21   :  { %v765_v54 = vpack.c.bf16 %v401_v52, %v400_v51  ;;  %v433_v56 = vld [vmem:[%s1343_s5 + $0x118] sm:$0xff]  ;;  %v419_v59 = vld [vmem:[%s1343_s5 + $0xa8] sm:$0xff]  ;;  %v450_v60 = vld [vmem:[%s1343_s5 + $0x1a0] sm:$0xff]  ;;  %p841_p4 = pnand %p840_p3, %p834_p0 }
  0x22   :  { %726 = vmatpush1.bf16.msra.mxu0 %v725_v31  ;;  %v797_v57 = vpack.c.bf16 %v433_v56, %v432_v55  ;;  %v767_v61 = vpack.c.bf16 %v419_v59, %v418_v58  ;;  %v451_v62 = vld [vmem:[%s1343_s5 + $0x1a8] sm:$0xff]  ;;  %v402_v63 = vld [vmem:[%s1343_s5 + $0x20] sm:$0xff]  ;;  %v420_v6 = vld [vmem:[%s1343_s5 + $0xb0] sm:$0xff] }
  0x23   :  { %758 = vmatpush1.bf16.msra.mxu1 %v757_v32  ;;  %760 = vmatprep.subr.bf16.mxu0 %v759_v37  ;;  %v403_v0 = vld [vmem:[%s1343_s5 + $0x28] sm:$0xff]  ;;  %v799_v1 = vpack.c.bf16 %v451_v62, %v450_v60  ;;  %v434_v3 = vld [vmem:[%s1343_s5 + $0x120] sm:$0xff]  ;;  %v421_v7 = vld [vmem:[%s1343_s5 + $0xb8] sm:$0xff] }
  0x24   :  { %792 = vmatprep.subr.bf16.mxu1 %v791_v41  ;;  %v769_v2 = vpack.c.bf16 %v403_v0, %v402_v63  ;;  %v435_v4 = vld [vmem:[%s1343_s5 + $0x128] sm:$0xff]  ;;  %v452_v8 = vld [vmem:[%s1343_s5 + $0x1b0] sm:$0xff]  ;;  %v771_v9 = vpack.c.bf16 %v421_v7, %v420_v6  ;;  %v453_v10 = vld [vmem:[%s1343_s5 + $0x1b8] sm:$0xff] }
  0x25   :  { %179 = vmatmul.mubr.f32.vlgmr.msra.gmra.mrb[0].mxu0 %v27_v33  ;;  %v801_v5 = vpack.c.bf16 %v435_v4, %v434_v3  ;;  %v404_v11 = vld [vmem:[%s1343_s5 + $0x30] sm:$0xff]  ;;  %v405_v12 = vld [vmem:[%s1343_s5 + $0x38] sm:$0xff]  ;;  %v803_v13 = vpack.c.bf16 %v453_v10, %v452_v8  ;;  %v422_v18 = vld [vmem:[%s1343_s5 + $0xc0] sm:$0xff] }
  0x26   :  { %250 = vmatmul.mubr.f32.vlgmr.msra.gmra.mrb[0].mxu1 %v27_v33  ;;  %762 = vmatpush3.bf16.msra.mxu0 %v761_v42  ;;  %v773_v14 = vpack.c.bf16 %v405_v12, %v404_v11  ;;  %v436_v15 = vld [vmem:[%s1343_s5 + $0x130] sm:$0xff]  ;;  %v437_v16 = vld [vmem:[%s1343_s5 + $0x138] sm:$0xff]  ;;  %v423_v19 = vld [vmem:[%s1343_s5 + $0xc8] sm:$0xff] }
  0x27   :  { %794 = vmatpush3.bf16.msra.mxu1 %v793_v45  ;;  %764 = vmatprep.subr.bf16.mxu0 %v763_v49  ;;  %v805_v17 = vpack.c.bf16 %v437_v16, %v436_v15  ;;  %v454_v20 = vld [vmem:[%s1343_s5 + $0x1c0] sm:$0xff]  ;;  %v775_v21 = vpack.c.bf16 %v423_v19, %v422_v18  ;;  %v455_v22 = vld [vmem:[%s1343_s5 + $0x1c8] sm:$0xff]  ;;  %v424_v30 = vld [vmem:[%s1343_s5 + $0xd0] sm:$0xff] }
  0x28   :  { %796 = vmatprep.subr.bf16.mxu1 %v795_v53  ;;  %v406_v23 = vld [vmem:[%s1343_s5 + $0x40] sm:$0xff]  ;;  %v407_v24 = vld [vmem:[%s1343_s5 + $0x48] sm:$0xff]  ;;  %v807_v25 = vpack.c.bf16 %v455_v22, %v454_v20  ;;  %v425_v31 = vld [vmem:[%s1343_s5 + $0xd8] sm:$0xff] }
  0x29   :  { %v777_v26 = vpack.c.bf16 %v407_v24, %v406_v23  ;;  %v438_v27 = vld [vmem:[%s1343_s5 + $0x140] sm:$0xff]  ;;  %v439_v28 = vld [vmem:[%s1343_s5 + $0x148] sm:$0xff]  ;;  %v456_v32 = vld [vmem:[%s1343_s5 + $0x1d0] sm:$0xff]  ;;  %v779_v33 = vpack.c.bf16 %v425_v31, %v424_v30 }
  0x2a   :  { %766 = vmatpush3.bf16.msra.mxu0 %v765_v54  ;;  %v809_v29 = vpack.c.bf16 %v439_v28, %v438_v27  ;;  %v457_v34 = vld [vmem:[%s1343_s5 + $0x1d8] sm:$0xff]  ;;  %v408_v35 = vld [vmem:[%s1343_s5 + $0x50] sm:$0xff]  ;;  %v426_v42 = vld [vmem:[%s1343_s5 + $0xe0] sm:$0xff] }
  0x2b   :  { %798 = vmatpush3.bf16.msra.mxu1 %v797_v57  ;;  %768 = vmatprep.subr.bf16.mxu0 %v767_v61  ;;  %v409_v36 = vld [vmem:[%s1343_s5 + $0x58] sm:$0xff]  ;;  %v811_v37 = vpack.c.bf16 %v457_v34, %v456_v32  ;;  %v440_v39 = vld [vmem:[%s1343_s5 + $0x150] sm:$0xff]  ;;  %v427_v43 = vld [vmem:[%s1343_s5 + $0xe8] sm:$0xff] }
  0x2c   :  { %800 = vmatprep.subr.bf16.mxu1 %v799_v1  ;;  %v781_v38 = vpack.c.bf16 %v409_v36, %v408_v35  ;;  %v441_v40 = vld [vmem:[%s1343_s5 + $0x158] sm:$0xff]  ;;  %v458_v44 = vld [vmem:[%s1343_s5 + $0x1e0] sm:$0xff]  ;;  %v783_v45 = vpack.c.bf16 %v427_v43, %v426_v42  ;;  %v459_v46 = vld [vmem:[%s1343_s5 + $0x1e8] sm:$0xff] }
  0x2d   :  { %v813_v41 = vpack.c.bf16 %v441_v40, %v440_v39  ;;  %v410_v47 = vld [vmem:[%s1343_s5 + $0x60] sm:$0xff]  ;;  %v411_v48 = vld [vmem:[%s1343_s5 + $0x68] sm:$0xff]  ;;  %v815_v49 = vpack.c.bf16 %v459_v46, %v458_v44  ;;  %v428_v53 = vld [vmem:[%s1343_s5 + $0xf0] sm:$0xff] }
  0x2e   :  { %770 = vmatpush3.bf16.msra.mxu0 %v769_v2  ;;  %v785_v50 = vpack.c.bf16 %v411_v48, %v410_v47  ;;  %v442_v51 = vld [vmem:[%s1343_s5 + $0x160] sm:$0xff]  ;;  %v443_v52 = vld [vmem:[%s1343_s5 + $0x168] sm:$0xff]  ;;  %v429_v55 = vld [vmem:[%s1343_s5 + $0xf8] sm:$0xff]  ;;  %v94_v2 = vlaneseq }
  0x2f   :  { %802 = vmatpush3.bf16.msra.mxu1 %v801_v5  ;;  %772 = vmatprep.subr.bf16.mxu0 %v771_v9  ;;  %v817_v54 = vpack.c.bf16 %v443_v52, %v442_v51  ;;  %v460_v56 = vld [vmem:[%s1343_s5 + $0x1f0] sm:$0xff]  ;;  %v461_v57 = vld [vmem:[%s1343_s5 + $0x1f8] sm:$0xff]  ;;  %v787_v58 = vpack.c.bf16 %v429_v55, %v428_v53  ;;  %v92_v5 = vld [vmem:[%s1340_s2] sm:$0xf] }
  0x30   :  { %804 = vmatprep.subr.bf16.mxu1 %v803_v13  ;;  %v819_v59 = vpack.c.bf16 %v461_v57, %v460_v56  ;;  %v412_v60 = vld [vmem:[%s1343_s5 + $0x70] sm:$0xff]  ;;  %v413_v61 = vld [vmem:[%s1343_s5 + $0x78] sm:$0xff]  ;;  %v95_v3 = vshrl.u32 %v94_v2, 7 }
  0x31   :  { %v444_v62 = vld [vmem:[%s1343_s5 + $0x170] sm:$0xff]  ;;  %v789_v63 = vpack.c.bf16 %v413_v61, %v412_v60  ;;  %v445_v0 = vld [vmem:[%s1343_s5 + $0x178] sm:$0xff] }
  0x32   :  { %774 = vmatpush3.bf16.msra.mxu0 %v773_v14  ;;  %v821_v1 = vpack.c.bf16 %v445_v0, %v444_v62  ;;  %v1286_v4 = vsub.s32 0, %v95_v3  ;;  %v1291_v6 = vsub.s32 2, %v95_v3  ;;  %v1293_v7 = vsub.s32 1, %v95_v3 }
  0x33   :  { %806 = vmatpush3.bf16.msra.mxu1 %v805_v17  ;;  %776 = vmatprep.subr.bf16.mxu0 %v775_v21  ;;  %v1295_v8 = vsub.s32 3, %v95_v3 }
  0x34   :  { %808 = vmatprep.subr.bf16.mxu1 %v807_v25  ;;  %v97_v9 = vrot.slane %v92_v5, %v1286_v4  ;;  %v105_v10 = vrot.slane %v92_v5, %v1291_v6  ;;  %v101_v11 = vrot.slane %v92_v5, %v1293_v7 }
  0x35   :  { %v109_v12 = vrot.slane %v92_v5, %v1295_v8 }
  0x36   :  { %778 = vmatpush3.bf16.msra.mxu0 %v777_v26 }
  0x37   :  { %810 = vmatpush3.bf16.msra.mxu1 %v809_v29  ;;  %780 = vmatprep.subr.bf16.mxu0 %v779_v33 }
  0x38   :  { %812 = vmatprep.subr.bf16.mxu1 %v811_v37 }
  0x3a   :  { %782 = vmatpush3.bf16.msra.mxu0 %v781_v38 }
  0x3b   :  { %814 = vmatpush3.bf16.msra.mxu1 %v813_v41  ;;  %784 = vmatprep.subr.bf16.mxu0 %v783_v45 }
  0x3c   :  { %816 = vmatprep.subr.bf16.mxu1 %v815_v49 }
  0x3e   :  { %786 = vmatpush3.bf16.msra.mxu0 %v785_v50 }
  0x3f   :  { %818 = vmatpush3.bf16.msra.mxu1 %v817_v54  ;;  %788 = vmatprep.subr.bf16.mxu0 %v787_v58 }
  0x40   :  { %820 = vmatprep.subr.bf16.mxu1 %v819_v59 }
  0x42   :  { %790 = vmatpush3.bf16.msra.mxu0 %v789_v63 }
  0x43   :  { %822 = vmatpush3.bf16.msra.mxu1 %v821_v1 }
  0xf8   :  { %v180_v13 = vpop.f32.mrb[0].mxu0 }
  0xf9   :  { %v181_v14 = vadd.f32 %v180_v13, %v97_v9  ;;  %v251_v15 = vpop.f32.mrb[0].mxu1  ;;  %v182_v16 = vpop.f32.mrb[1].mxu0 }
  0xfa   :  { %v252_v17 = vadd.f32 %v251_v15, %v105_v10  ;;  %v183_v18 = vadd.f32 %v182_v16, %v101_v11  ;;  %v253_v19 = vpop.f32.mrb[1].mxu1 }
  0xfb   :  { %v257_v20 = vsel %vm256_vm0, %v181_v14, 0.0  ;;  %v254_v21 = vadd.f32 %v253_v19, %v109_v12 }
  0xfc   :  { %v258_v22 = vrot.slane %v257_v20, 4  ;;  %v271_v23 = vsel %vm256_vm0, %v252_v17, 0.0  ;;  %v264_v24 = vsel %vm256_vm0, %v183_v18, 0.0 }
  0xfd   :  { %v272_v25 = vrot.slane %v271_v23, 4  ;;  %v265_v26 = vrot.slane %v264_v24, 4  ;;  %v278_v27 = vsel %vm256_vm0, %v254_v21, 0.0 }
  0xfe   :  { %v259_v28 = vadd.f32 %v258_v22, %v257_v20  ;;  %v279_v29 = vrot.slane %v278_v27, 4 }
  0xff   :  { %v273_v30 = vadd.f32 %v272_v25, %v271_v23  ;;  %v266_v31 = vadd.f32 %v265_v26, %v264_v24 }
 0x100   :  { %v260_v32 = vrot.slane %v259_v28, 2  ;;  %v280_v33 = vadd.f32 %v279_v29, %v278_v27 }
 0x101   :  { %v274_v34 = vrot.slane %v273_v30, 2  ;;  %v267_v35 = vrot.slane %v266_v31, 2 }
 0x102   :  { %v261_v36 = vadd.f32 %v260_v32, %v259_v28  ;;  %v281_v37 = vrot.slane %v280_v33, 2 }
 0x103   :  { %v275_v38 = vadd.f32 %v274_v34, %v273_v30  ;;  %v268_v39 = vadd.f32 %v267_v35, %v266_v31 }
 0x104   :  { %v262_v40 = vrot.slane %v261_v36, 1  ;;  %v282_v41 = vadd.f32 %v281_v37, %v280_v33  ;;  %v342_v37 = vld [vmem:[%s1341_s3] sm:$0xf] }
 0x105   :  { %v276_v42 = vrot.slane %v275_v38, 1  ;;  %v269_v43 = vrot.slane %v268_v39, 1 }
 0x106   :  { %v263_v44 = vadd.f32 %v262_v40, %v261_v36  ;;  %v283_v45 = vrot.slane %v282_v41, 1 }
 0x107   :  { %v277_v46 = vadd.f32 %v276_v42, %v275_v38  ;;  %v270_v47 = vadd.f32 %v269_v43, %v268_v39  ;;  %v347_v38 = vrot.slane %v342_v37, %v1286_v4  ;;  %v368_v39 = vld [vmem:[%s1342_s4] sm:$0xf] }
 0x108   :  { %v286_v48 = vmul.f32 0.5, %v263_v44  ;;  %v284_v49 = vadd.f32 %v283_v45, %v282_v41  ;;  %v355_v41 = vrot.slane %v342_v37, %v1291_v6  ;;  %v351_v44 = vrot.slane %v342_v37, %v1293_v7 }
 0x109   :  { %v288_v50 = vmul.f32 0.5, %v277_v46  ;;  %v287_v51 = vmul.f32 0.5, %v270_v47  ;;  %v359_v47 = vrot.slane %v342_v37, %v1295_v8 }
 0x10a   :  { %v290_v52 = vsub.f32 %v181_v14, %v286_v48  ;;  %v289_v53 = vmul.f32 0.5, %v284_v49  ;;  %v373_v48 = vrot.slane %v368_v39, %v1286_v4 }
 0x10b   :  { %v292_v54 = vsub.f32 %v252_v17, %v288_v50  ;;  %v291_v55 = vsub.f32 %v183_v18, %v287_v51 }
 0x10c   :  { %v294_v56 = vmul.f32 %v290_v52, %v290_v52  ;;  %v293_v57 = vsub.f32 %v254_v21, %v289_v53  ;;  %v377_v53 = vrot.slane %v368_v39, %v1293_v7 }
 0x10d   :  { %v296_v58 = vmul.f32 %v292_v54, %v292_v54  ;;  %v295_v59 = vmul.f32 %v291_v55, %v291_v55 }
 0x10e   :  { %v298_v60 = vsel %vm256_vm0, %v294_v56, 0.0  ;;  %v297_v61 = vmul.f32 %v293_v57, %v293_v57  ;;  %v381_v56 = vrot.slane %v368_v39, %v1291_v6 }
 0x10f   :  { %v299_v62 = vrot.slane %v298_v60, 4  ;;  %v312_v63 = vsel %vm256_vm0, %v296_v58, 0.0  ;;  %v305_v0 = vsel %vm256_vm0, %v295_v59, 0.0 }
 0x110   :  { %v313_v1 = vrot.slane %v312_v63, 4  ;;  %v306_v2 = vrot.slane %v305_v0, 4  ;;  %v319_v3 = vsel %vm256_vm0, %v297_v61, 0.0 }
 0x111   :  { %v300_v5 = vadd.f32 %v299_v62, %v298_v60  ;;  %v320_v9 = vrot.slane %v319_v3, 4  ;;  %v385_v60 = vrot.slane %v368_v39, %v1295_v8  ;;  %v624_v8 = vld [vmem:[%s1344_s6] ss:$0 sm:$0xff] }
 0x112   :  { %v314_v10 = vadd.f32 %v313_v1, %v312_v63  ;;  %v307_v11 = vadd.f32 %v306_v2, %v305_v0 }
 0x113   :  { %v301_v12 = vrot.slane %v300_v5, 2  ;;  %v321_v13 = vadd.f32 %v320_v9, %v319_v3 }
 0x114   :  { %v315_v14 = vrot.slane %v314_v10, 2  ;;  %v308_v15 = vrot.slane %v307_v11, 2 }
 0x115   :  { %v302_v16 = vadd.f32 %v301_v12, %v300_v5  ;;  %v322_v17 = vrot.slane %v321_v13, 2 }
 0x116   :  { %v316_v18 = vadd.f32 %v315_v14, %v314_v10  ;;  %v309_v19 = vadd.f32 %v308_v15, %v307_v11 }
 0x117   :  { %v303_v20 = vrot.slane %v302_v16, 1  ;;  %v323_v21 = vadd.f32 %v322_v17, %v321_v13 }
 0x118   :  { %v317_v22 = vrot.slane %v316_v18, 1  ;;  %v310_v23 = vrot.slane %v309_v19, 1 }
 0x119   :  { %v304_v24 = vadd.f32 %v303_v20, %v302_v16  ;;  %v324_v25 = vrot.slane %v323_v21, 1 }
 0x11a   :  { %v318_v26 = vadd.f32 %v317_v22, %v316_v18  ;;  %v311_v27 = vadd.f32 %v310_v23, %v309_v19 }
 0x11b   :  { %v326_v28 = vmul.f32 0.5, %v304_v24  ;;  %v325_v29 = vadd.f32 %v324_v25, %v323_v21 }
 0x11c   :  { %v328_v30 = vmul.f32 0.5, %v318_v26  ;;  %v327_v31 = vmul.f32 0.5, %v311_v27 }
 0x11d   :  { %v330_v32 = vadd.f32 1e-05, %v326_v28  ;;  %v329_v33 = vmul.f32 0.5, %v325_v29 }
 0x11e   :  { %v332_v34 = vadd.f32 1e-05, %v328_v30  ;;  %v331_v35 = vadd.f32 1e-05, %v327_v31 }
 0x11f   :  { %825 = vrsqrt.f32 %v330_v32  ;;  %v333_v36 = vadd.f32 1e-05, %v329_v33 }
 0x120   :  { %827 = vrsqrt.f32 %v332_v34 }
 0x121   :  { %829 = vrsqrt.f32 %v331_v35 }
 0x122   :  { %831 = vrsqrt.f32 %v333_v36 }
 0x129   :  { %v826_v40 = vpop.eup %825 }
 0x12a   :  { %v828_v42 = vpop.eup %827  ;;  %v338_v43 = vmul.f32 %v826_v40, %v290_v52 }
 0x12b   :  { %v830_v45 = vpop.eup %829  ;;  %v340_v46 = vmul.f32 %v828_v42, %v292_v54 }
 0x12c   :  { %v832_v49 = vpop.eup %831  ;;  %v364_v50 = vmul.f32 %v347_v38, %v338_v43  ;;  %v339_v51 = vmul.f32 %v830_v45, %v291_v55 }
 0x12d   :  { %v366_v58 = vmul.f32 %v355_v41, %v340_v46  ;;  %v341_v59 = vmul.f32 %v832_v49, %v293_v57 }
 0x12e   :  { %v365_v52 = vmul.f32 %v351_v44, %v339_v51  ;;  %v390_v62 = vadd.f32 %v373_v48, %v364_v50 }
 0x12f   :  { %v367_v61 = vmul.f32 %v359_v47, %v341_v59  ;;  %v392_v54 = vadd.f32 %v381_v56, %v366_v58 }
 0x130   :  { %v391_v63 = vadd.f32 %v377_v53, %v365_v52  ;;  %v394_v4 = vmax.f32 %v390_v62, 0.0 }
 0x131   :  { %v393_v0 = vadd.f32 %v385_v60, %v367_v61  ;;  %v396_v3 = vmax.f32 %v392_v54, 0.0 }
 0x132   :  { %v395_v1 = vmax.f32 %v391_v63, 0.0 }
 0x133   :  { %v397_v2 = vmax.f32 %v393_v0, 0.0 }
 0x134   :  { %533 = vmatprep.mubr.f32.mxu0 %v395_v1 }
 0x135   :  { %603 = vmatprep.mubr.f32.mxu1 %v397_v2  ;;  %534 = vmatmul.mubr.f32.vlgmr.msra.gmra.mrb[2].mxu0 %v394_v4 }
 0x136   :  { %604 = vmatmul.mubr.f32.vlgmr.msra.gmra.mrb[2].mxu1 %v396_v3 }
 0x208   :  { %v657_v7 = vpop.f32.mrb[2].mxu0 }
 0x209   :  { %v692_v6 = vpop.f32.mrb[2].mxu1  ;;  %v658_v55 = vpop.f32.mrb[3].mxu0 }
 0x20a   :  { %v659_v57 = vadd.f32 %v658_v55, %v657_v7  ;;  %v693_v5 = vpop.f32.mrb[3].mxu1 }
 0x20b   :  { %v694_v9 = vadd.f32 %v693_v5, %v692_v6 }
 0x20c   :  { %v536_v10 = vadd.f32 %v659_v57, %v624_v8 }
 0x20e   :  { %v606_v11 = vadd.f32 %v694_v9, %v536_v10 }
 0x210   :  { %609 = vst [vmem:[#allocation2] sm:$0x3] %v606_v11 }
 0x211   :  { %844 = shalt.err (!%p841_p4)
}
 0x212   :  { %s845_s6 = scalar_lea.hbm %s1345_s7, 32 }
 0x213   :  { %p846_p5 = scmp.ne.s32.totalorder %s1345_s7, %s845_s6  ;;  %p849_p6 = scmp.lt.u32.totalorder %s845_s6, %s1345_s7 }
 0x215   :  { %p851_p7 = pnand %p849_p6, %p846_p5 }
 0x217   :  { %854 = shalt.err (!%p851_p7)
}
 0x218   :  { %619 = dma.vmem_to_hbm [thread:$0]  %s617_s0, 32, %s1345_s7, [#allocation3]  }
 0x219   :  { %855 = dma.done.wait [#allocation3], 32  }
 0x21a   :  { %856 = vsyncadd [#allocation3], 4294967264 }
 0x21b   :  { %623 = vsyncpa [#allocation3], 1 }

// kernel: vgg_forward.16
= control target key start
LH: loop header
LB: loop body
LE: loop exit
PB: predicated region body
PF: predicated region fallthrough
CT: control target
= control target key end

     0   :  { %vm1170_vm0 = vmmov 0   ;;  %s1436_s1 = inlined_call_operand.vmem [shape: bf16[1152,128], index: 1, kind: input, shape index: {}]   ;;  %s1437_s0 = inlined_call_operand.vmem [shape: bf16[8,1152], index: 0, kind: input, shape index: {}]   ;;  %s1438_s2 = inlined_call_operand.vmem [shape: f32[1,128], index: 2, kind: input, shape index: {}]   ;;  %s1439_s3 = inlined_call_operand.vmem [shape: f32[1,128], index: 3, kind: input, shape index: {}]   ;;  %s1440_s4 = inlined_call_operand.vmem [shape: f32[2,128], index: 4, kind: output, shape index: {}]  }
   0x1   :  { %v1086_v0 = vld [vmem:[%s1436_s1 + $0x40] sm:$0xff]   ;;  %v1090_v4 = vld [vmem:[%s1436_s1 + $0x48] sm:$0xff]   ;;  %v1094_v8 = vld [vmem:[%s1436_s1 + $0x50] sm:$0xff]  }
   0x2   :  { %v1087_v1 = vld [vmem:[%s1436_s1 + $0xc0] sm:$0xff]   ;;  %967 = vmatprep.subr.bf16.mxu0 %v1086_v0  ;;  %v1091_v5 = vld [vmem:[%s1436_s1 + $0xc8] sm:$0xff]   ;;  %v1095_v9 = vld [vmem:[%s1436_s1 + $0xd0] sm:$0xff]  }
   0x3   :  { %v1088_v2 = vld [vmem:[%s1436_s1] sm:$0xff]   ;;  %989 = vmatprep.subr.bf16.mxu1 %v1087_v1  ;;  %v1092_v6 = vld [vmem:[%s1436_s1 + $0x8] sm:$0xff]   ;;  %v1096_v10 = vld [vmem:[%s1436_s1 + $0x10] sm:$0xff]  }
   0x4   :  { %v1089_v3 = vld [vmem:[%s1436_s1 + $0x80] sm:$0xff]   ;;  %968 = vmatpush3.bf16.msra.mxu0 %v1088_v2  ;;  %v1093_v7 = vld [vmem:[%s1436_s1 + $0x88] sm:$0xff]   ;;  %v1097_v11 = vld [vmem:[%s1436_s1 + $0x90] sm:$0xff]  }
   0x5   :  { %990 = vmatpush3.bf16.msra.mxu1 %v1089_v3  ;;  %969 = vmatprep.subr.bf16.mxu0 %v1090_v4  ;;  %v1098_v12 = vld [vmem:[%s1436_s1 + $0x58] sm:$0xff]   ;;  %v1102_v16 = vld [vmem:[%s1436_s1 + $0x60] sm:$0xff]   ;;  %v1106_v20 = vld [vmem:[%s1436_s1 + $0x68] sm:$0xff]  }
   0x6   :  { %991 = vmatprep.subr.bf16.mxu1 %v1091_v5  ;;  %v1099_v13 = vld [vmem:[%s1436_s1 + $0xd8] sm:$0xff]   ;;  %v1103_v17 = vld [vmem:[%s1436_s1 + $0xe0] sm:$0xff]   ;;  %v1107_v21 = vld [vmem:[%s1436_s1 + $0xe8] sm:$0xff]  }
   0x7   :  { %v1100_v14 = vld [vmem:[%s1436_s1 + $0x18] sm:$0xff]   ;;  %v1104_v18 = vld [vmem:[%s1436_s1 + $0x20] sm:$0xff]   ;;  %v1108_v22 = vld [vmem:[%s1436_s1 + $0x28] sm:$0xff]  }
   0x8   :  { %970 = vmatpush3.bf16.msra.mxu0 %v1092_v6  ;;  %v1101_v15 = vld [vmem:[%s1436_s1 + $0x98] sm:$0xff]   ;;  %v1105_v19 = vld [vmem:[%s1436_s1 + $0xa0] sm:$0xff]   ;;  %v1109_v23 = vld [vmem:[%s1436_s1 + $0xa8] sm:$0xff]  }
   0x9   :  { %992 = vmatpush3.bf16.msra.mxu1 %v1093_v7  ;;  %971 = vmatprep.subr.bf16.mxu0 %v1094_v8  ;;  %v1110_v24 = vld [vmem:[%s1436_s1 + $0x70] sm:$0xff]   ;;  %v1114_v28 = vld [vmem:[%s1436_s1 + $0x78] sm:$0xff]   ;;  %v18_v32 = vld [vmem:[%s1437_s0] sm:$0xff] }
   0xa   :  { %993 = vmatprep.subr.bf16.mxu1 %v1095_v9  ;;  %v1111_v25 = vld [vmem:[%s1436_s1 + $0xf0] sm:$0xff]   ;;  %v1115_v29 = vld [vmem:[%s1436_s1 + $0xf8] sm:$0xff]   ;;  %v19_v33 = vld [vmem:[%s1437_s0 + $0x8] sm:$0xff]  ;;  %v884_v34 = vcombine.low %v18_v32, %v18_v32  ;;  %v885_v35 = vcombine.high %v18_v32, %v18_v32 }
   0xb   :  { %v1112_v26 = vld [vmem:[%s1436_s1 + $0x30] sm:$0xff]   ;;  %v1116_v30 = vld [vmem:[%s1436_s1 + $0x38] sm:$0xff]   ;;  %v886_v36 = vcombine.low %v19_v33, %v19_v33  ;;  %v887_v37 = vcombine.high %v19_v33, %v19_v33  ;;  %v1122_v38 = vld [vmem:[%s1436_s1 + $0x140] sm:$0xff]  }
   0xc   :  { %972 = vmatpush3.bf16.msra.mxu0 %v1096_v10  ;;  %v1113_v27 = vld [vmem:[%s1436_s1 + $0xb0] sm:$0xff]   ;;  %v1117_v31 = vld [vmem:[%s1436_s1 + $0xb8] sm:$0xff]   ;;  %v1123_v39 = vld [vmem:[%s1436_s1 + $0x100] sm:$0xff]   ;;  %663 = vmatprep.mubr.bf16.mxu0 %v885_v35 }
   0xd   :  { %994 = vmatpush3.bf16.msra.mxu1 %v1097_v11  ;;  %973 = vmatprep.subr.bf16.mxu0 %v1098_v12  ;;  %v1124_v40 = vld [vmem:[%s1436_s1 + $0x1c0] sm:$0xff]   ;;  %v1126_v42 = vld [vmem:[%s1436_s1 + $0x148] sm:$0xff]   ;;  %v1130_v46 = vld [vmem:[%s1436_s1 + $0x150] sm:$0xff]  }
   0xe   :  { %995 = vmatprep.subr.bf16.mxu1 %v1099_v13  ;;  %703 = vmatprep.mubr.bf16.mxu1 %v887_v37  ;;  %v1125_v41 = vld [vmem:[%s1436_s1 + $0x180] sm:$0xff]   ;;  %v1127_v43 = vld [vmem:[%s1436_s1 + $0x108] sm:$0xff]   ;;  %v1131_v47 = vld [vmem:[%s1436_s1 + $0x110] sm:$0xff]   ;;  %v1169_v13 = vmov 0.0  }
   0xf   :  { %v1128_v44 = vld [vmem:[%s1436_s1 + $0x1c8] sm:$0xff]   ;;  %v1132_v48 = vld [vmem:[%s1436_s1 + $0x1d0] sm:$0xff]   ;;  %v1134_v50 = vld [vmem:[%s1436_s1 + $0x158] sm:$0xff]  }
  0x10   :  { %974 = vmatpush3.bf16.msra.mxu0 %v1100_v14  ;;  %v1129_v45 = vld [vmem:[%s1436_s1 + $0x188] sm:$0xff]   ;;  %v1133_v49 = vld [vmem:[%s1436_s1 + $0x190] sm:$0xff]   ;;  %v1135_v51 = vld [vmem:[%s1436_s1 + $0x118] sm:$0xff]  }
  0x11   :  { %996 = vmatpush3.bf16.msra.mxu1 %v1101_v15  ;;  %975 = vmatprep.subr.bf16.mxu0 %v1102_v16  ;;  %v1136_v52 = vld [vmem:[%s1436_s1 + $0x1d8] sm:$0xff]   ;;  %v1138_v54 = vld [vmem:[%s1436_s1 + $0x160] sm:$0xff]   ;;  %v1142_v58 = vld [vmem:[%s1436_s1 + $0x168] sm:$0xff]  }
  0x12   :  { %997 = vmatprep.subr.bf16.mxu1 %v1103_v17  ;;  %v1137_v53 = vld [vmem:[%s1436_s1 + $0x198] sm:$0xff]   ;;  %v1139_v55 = vld [vmem:[%s1436_s1 + $0x120] sm:$0xff]   ;;  %v1143_v59 = vld [vmem:[%s1436_s1 + $0x128] sm:$0xff]  }
  0x13   :  { %v1140_v56 = vld [vmem:[%s1436_s1 + $0x1e0] sm:$0xff]   ;;  %v1144_v60 = vld [vmem:[%s1436_s1 + $0x1e8] sm:$0xff]   ;;  %v1146_v62 = vld [vmem:[%s1436_s1 + $0x170] sm:$0xff]  }
  0x14   :  { %976 = vmatpush3.bf16.msra.mxu0 %v1104_v18  ;;  %v1141_v57 = vld [vmem:[%s1436_s1 + $0x1a0] sm:$0xff]   ;;  %v1145_v61 = vld [vmem:[%s1436_s1 + $0x1a8] sm:$0xff]   ;;  %v1147_v63 = vld [vmem:[%s1436_s1 + $0x130] sm:$0xff]  }
  0x15   :  { %998 = vmatpush3.bf16.msra.mxu1 %v1105_v19  ;;  %977 = vmatprep.subr.bf16.mxu0 %v1106_v20  ;;  %v1148_v0 = vld [vmem:[%s1436_s1 + $0x1f0] sm:$0xff]   ;;  %v1150_v2 = vld [vmem:[%s1436_s1 + $0x178] sm:$0xff]   ;;  %v1158_v12 = vld [vmem:[%s1436_s1 + $0x200] sm:$0xff]  }
  0x16   :  { %999 = vmatprep.subr.bf16.mxu1 %v1107_v21  ;;  %v1149_v1 = vld [vmem:[%s1436_s1 + $0x1b0] sm:$0xff]   ;;  %v1151_v3 = vld [vmem:[%s1436_s1 + $0x138] sm:$0xff]   ;;  %v1159_v14 = vld [vmem:[%s1436_s1 + $0x208] sm:$0xff]  }
  0x17   :  { %v1152_v4 = vld [vmem:[%s1436_s1 + $0x1f8] sm:$0xff]   ;;  %v20_v5 = vld [vmem:[%s1437_s0 + $0x10] sm:$0xff]  ;;  %v1162_v17 = vld [vmem:[%s1436_s1 + $0x220] sm:$0xff]  }
  0x18   :  { %978 = vmatpush3.bf16.msra.mxu0 %v1108_v22  ;;  %v889_v6 = vcombine.high %v20_v5, %v20_v5  ;;  %v1155_v7 = vld [vmem:[%s1436_s1 + $0x1b8] sm:$0xff]   ;;  %v888_v8 = vcombine.low %v20_v5, %v20_v5  ;;  %v1160_v15 = vld [vmem:[%s1436_s1 + $0x210] sm:$0xff]   ;;  %v1163_v18 = vld [vmem:[%s1436_s1 + $0x228] sm:$0xff]  }
  0x19   :  { %1000 = vmatpush3.bf16.msra.mxu1 %v1109_v23  ;;  %979 = vmatprep.subr.bf16.mxu0 %v1110_v24  ;;  %v21_v9 = vld [vmem:[%s1437_s0 + $0x18] sm:$0xff]  ;;  %v1164_v19 = vld [vmem:[%s1436_s1 + $0x230] sm:$0xff]   ;;  %v1166_v21 = vld [vmem:[%s1437_s0 + $0x20] ss:$0 sps:$4 sm:$0xff]  }
  0x1a   :  { %1001 = vmatprep.subr.bf16.mxu1 %v1111_v25  ;;  %v890_v10 = vcombine.low %v21_v9, %v21_v9  ;;  %v891_v11 = vcombine.high %v21_v9, %v21_v9  ;;  %v1161_v16 = vld [vmem:[%s1436_s1 + $0x218] sm:$0xff]  }
  0x1b   :  { %v1165_v20 = vld [vmem:[%s1436_s1 + $0x238] sm:$0xff]  }
  0x1c   :  { %980 = vmatpush3.bf16.msra.mxu0 %v1112_v26 }
  0x1d   :  { %1002 = vmatpush3.bf16.msra.mxu1 %v1113_v27  ;;  %981 = vmatprep.subr.bf16.mxu0 %v1114_v28 }
  0x1e   :  { %1003 = vmatprep.subr.bf16.mxu1 %v1115_v29 }
  0x20   :  { %982 = vmatpush3.bf16.msra.mxu0 %v1116_v30 }
  0x21   :  { %1004 = vmatpush3.bf16.msra.mxu1 %v1117_v31  ;;  %1011 = vmatprep.subr.bf16.mxu0 %v1122_v38 }
  0x22   :  { %1033 = vmatprep.subr.bf16.mxu1 %v1124_v40 }
  0x23   :  { %664 = vmatmul.mubr.bf16.vlgmr.msra.gmra.mrb[0].mxu0 %v884_v34 }
  0x24   :  { %704 = vmatmul.mubr.bf16.vlgmr.msra.gmra.mrb[0].mxu1 %v886_v36  ;;  %1012 = vmatpush3.bf16.msra.mxu0 %v1123_v39 }
  0x25   :  { %1034 = vmatpush3.bf16.msra.mxu1 %v1125_v41  ;;  %1013 = vmatprep.subr.bf16.mxu0 %v1126_v42 }
  0x26   :  { %1035 = vmatprep.subr.bf16.mxu1 %v1128_v44  ;;  %743 = vmatprep.mubr.bf16.mxu0 %v889_v6  ;;  %v966_v6 = vld [vmem:[%s1439_s3] ss:$0 sm:$0xff] }
  0x27   :  { %783 = vmatprep.mubr.bf16.mxu1 %v891_v11 }
  0x28   :  { %1014 = vmatpush3.bf16.msra.mxu0 %v1127_v43 }
  0x29   :  { %1036 = vmatpush3.bf16.msra.mxu1 %v1129_v45  ;;  %1015 = vmatprep.subr.bf16.mxu0 %v1130_v46 }
  0x2a   :  { %1037 = vmatprep.subr.bf16.mxu1 %v1132_v48 }
  0x2c   :  { %1016 = vmatpush3.bf16.msra.mxu0 %v1131_v47 }
  0x2d   :  { %1038 = vmatpush3.bf16.msra.mxu1 %v1133_v49  ;;  %1017 = vmatprep.subr.bf16.mxu0 %v1134_v50 }
  0x2e   :  { %1039 = vmatprep.subr.bf16.mxu1 %v1136_v52 }
  0x30   :  { %1018 = vmatpush3.bf16.msra.mxu0 %v1135_v51 }
  0x31   :  { %1040 = vmatpush3.bf16.msra.mxu1 %v1137_v53  ;;  %1019 = vmatprep.subr.bf16.mxu0 %v1138_v54 }
  0x32   :  { %1041 = vmatprep.subr.bf16.mxu1 %v1140_v56 }
  0x34   :  { %1020 = vmatpush3.bf16.msra.mxu0 %v1139_v55 }
  0x35   :  { %1042 = vmatpush3.bf16.msra.mxu1 %v1141_v57  ;;  %1021 = vmatprep.subr.bf16.mxu0 %v1142_v58 }
  0x36   :  { %1043 = vmatprep.subr.bf16.mxu1 %v1144_v60 }
  0x38   :  { %1022 = vmatpush3.bf16.msra.mxu0 %v1143_v59 }
  0x39   :  { %1044 = vmatpush3.bf16.msra.mxu1 %v1145_v61  ;;  %1023 = vmatprep.subr.bf16.mxu0 %v1146_v62 }
  0x3a   :  { %1045 = vmatprep.subr.bf16.mxu1 %v1148_v0 }
  0x3c   :  { %1024 = vmatpush3.bf16.msra.mxu0 %v1147_v63 }
  0x3d   :  { %1046 = vmatpush3.bf16.msra.mxu1 %v1149_v1  ;;  %1025 = vmatprep.subr.bf16.mxu0 %v1150_v2 }
  0x3e   :  { %1047 = vmatprep.subr.bf16.mxu1 %v1152_v4  ;;  %v965_v4 = vld [vmem:[%s1438_s2] ss:$0 sm:$0xff] }
  0x40   :  { %1026 = vmatpush3.bf16.msra.mxu0 %v1151_v3 }
  0x41   :  { %1048 = vmatpush3.bf16.msra.mxu1 %v1155_v7  ;;  %1064 = vmatprep.subr.bf16.mxu0 %v1169_v13 }
  0x43   :  { %744 = vmatmul.mubr.bf16.vlgmr.msra.gmra.mrb[4].mxu0 %v888_v8 }
  0x44   :  { %1065 = vmatpush3.bf16.msra.mxu0 %v1158_v12  ;;  %784 = vmatmul.mubr.bf16.vlgmr.msra.gmra.mrb[4].mxu1 %v890_v10 }
  0x45   :  { %1066 = vmatprep.subr.bf16.mxu0 %v1169_v13  ;;  %1080 = vmatprep.mubr.msk.bf16.mxu0 %vm1170_vm0, %v1169_v13 }
  0x48   :  { %1067 = vmatpush3.bf16.msra.mxu0 %v1159_v14 }
  0x49   :  { %1068 = vmatprep.subr.bf16.mxu0 %v1169_v13 }
  0x4c   :  { %1069 = vmatpush3.bf16.msra.mxu0 %v1160_v15 }
  0x4d   :  { %1070 = vmatprep.subr.bf16.mxu0 %v1169_v13 }
  0x50   :  { %1071 = vmatpush3.bf16.msra.mxu0 %v1161_v16 }
  0x51   :  { %1072 = vmatprep.subr.bf16.mxu0 %v1169_v13 }
  0x54   :  { %1073 = vmatpush3.bf16.msra.mxu0 %v1162_v17 }
  0x55   :  { %1074 = vmatprep.subr.bf16.mxu0 %v1169_v13 }
  0x58   :  { %1075 = vmatpush3.bf16.msra.mxu0 %v1163_v18 }
  0x59   :  { %1076 = vmatprep.subr.bf16.mxu0 %v1169_v13 }
  0x5c   :  { %1077 = vmatpush3.bf16.msra.mxu0 %v1164_v19 }
  0x5d   :  { %1078 = vmatprep.subr.bf16.mxu0 %v1169_v13 }
  0x60   :  { %1079 = vmatpush3.bf16.msra.mxu0 %v1165_v20 }
  0x63   :  { %1081 = vmatmul.mubr.bf16.vlgmr.msra.gmra.mrb[8].mxu0 %v1166_v21 }
  0xf6   :  { %v983_v22 = vpop.f32.mrb[0].mxu0 }
  0xf7   :  { %v1005_v23 = vpop.f32.mrb[0].mxu1  ;;  %v984_v24 = vpop.f32.mrb[1].mxu0 }
  0xf8   :  { %v1006_v25 = vpop.f32.mrb[1].mxu1  ;;  %v985_v26 = vadd.f32 %v984_v24, %v983_v22  ;;  %v986_v28 = vpop.f32.mrb[2].mxu0 }
  0xf9   :  { %v1007_v27 = vadd.f32 %v1006_v25, %v1005_v23  ;;  %v1008_v29 = vpop.f32.mrb[2].mxu1  ;;  %v987_v30 = vpop.f32.mrb[3].mxu0 }
  0xfa   :  { %v1009_v31 = vpop.f32.mrb[3].mxu1 }
  0xfb   :  { %v706_v32 = vadd.f32 %v1007_v27, %v985_v26 }
 0x116   :  { %v1027_v33 = vpop.f32.mrb[4].mxu0 }
 0x117   :  { %v1028_v34 = vpop.f32.mrb[5].mxu0  ;;  %v1049_v35 = vpop.f32.mrb[4].mxu1 }
 0x118   :  { %v1029_v36 = vadd.f32 %v1028_v34, %v1027_v33  ;;  %v1030_v37 = vpop.f32.mrb[6].mxu0  ;;  %v1050_v38 = vpop.f32.mrb[5].mxu1 }
 0x119   :  { %v1031_v39 = vpop.f32.mrb[7].mxu0  ;;  %v1051_v40 = vadd.f32 %v1050_v38, %v1049_v35  ;;  %v1052_v41 = vpop.f32.mrb[6].mxu1 }
 0x11a   :  { %v746_v42 = vadd.f32 %v1029_v36, %v706_v32  ;;  %v1053_v43 = vpop.f32.mrb[7].mxu1 }
 0x11c   :  { %v786_v44 = vadd.f32 %v1051_v40, %v746_v42 }
 0x136   :  { %v825_v45 = vpop.f32.mrb[8].mxu0 }
 0x137   :  { %v826_v46 = vadd.f32 %v825_v45, %v786_v44  ;;  %v1082_v47 = vpop.f32.mrb[9].mxu0 }
 0x138   :  { %v828_v48 = vpop.f32.mrb[10].mxu0 }
 0x139   :  { %v831_v49 = vrot.slane %v826_v46, 4  ;;  %v1083_v50 = vpop.f32.mrb[11].mxu0 }
 0x13b   :  { %v832_v51 = vadd.f32 %v831_v49, %v826_v46 }
 0x13d   :  { %v833_v52 = vrot.slane %v832_v51, 2 }
 0x13f   :  { %v834_v53 = vadd.f32 %v833_v52, %v832_v51 }
 0x141   :  { %v835_v54 = vrot.slane %v834_v53, 1 }
 0x143   :  { %v836_v55 = vadd.f32 %v835_v54, %v834_v53 }
 0x145   :  { %v838_v56 = vmul.f32 0.125, %v836_v55 }
 0x147   :  { %v839_v57 = vsub.f32 %v826_v46, %v838_v56 }
 0x149   :  { %v840_v58 = vmul.f32 %v839_v57, %v839_v57 }
 0x14b   :  { %v841_v59 = vrot.slane %v840_v58, 4 }
 0x14d   :  { %v842_v60 = vadd.f32 %v841_v59, %v840_v58 }
 0x14f   :  { %v843_v61 = vrot.slane %v842_v60, 2 }
 0x151   :  { %v844_v62 = vadd.f32 %v843_v61, %v842_v60 }
 0x153   :  { %v845_v63 = vrot.slane %v844_v62, 1 }
 0x155   :  { %v846_v0 = vadd.f32 %v845_v63, %v844_v62 }
 0x157   :  { %v847_v1 = vmul.f32 0.125, %v846_v0 }
 0x159   :  { %v848_v2 = vadd.f32 1e-05, %v847_v1 }
 0x15b   :  { %1167 = vrsqrt.f32 %v848_v2 }
 0x165   :  { %v1168_v3 = vpop.eup %1167 }
 0x166   :  { %v850_v5 = vmul.f32 %v1168_v3, %v839_v57 }
 0x168   :  { %v858_v7 = vmul.f32 %v965_v4, %v850_v5 }
 0x16a   :  { %v866_v8 = vadd.f32 %v966_v6, %v858_v7 }
 0x16c   :  { %v867_v9 = vmax.f32 %v866_v8, 0.0 }
 0x16e   :  { %v869_v10 = vrot.slane %v867_v9, 2  ;;  %v872_v12 = vrot.slane %v867_v9, 4  ;;  %v875_v14 = vrot.slane %v867_v9, 6 }
 0x170   :  { %v871_v11 = vadd.f32 %v869_v10, %v867_v9 }
 0x172   :  { %v874_v13 = vadd.f32 %v872_v12, %v871_v11 }
 0x174   :  { %v877_v15 = vadd.f32 %v875_v14, %v874_v13 }
 0x176   :  { %v878_v16 = vmul.f32 0.25, %v877_v15 }
 0x178   :  { %879 = vst [vmem:[%s1440_s4] sm:$0x3] %v878_v16 }

</bundles_post_ra>
